<compile_context>
chip_gen: v6e
topology: v6e:2x2x1
jax: 0.10.0
libtpu: 0.0.40
codegen_flags: <defaults>
</compile_context>

<pallas_src>
import math

import jax
import jax.numpy as jnp
from jax.experimental import pallas as pl
from jax.experimental.pallas import tpu as pltpu

# ---- model hyper-parameters (consistent with AugmentedCNF.__init__) ----
IO_DIM = 8          # io_dim
AUG_DIM = 8         # aug_dim      -> W = io_dim + aug_dim = 16 (must be even)
N_LAYERS = 2        # N_layers     (DNNBlock(io_dim+aug_dim, 20, 2) per layer)
HIDDEN = 20         # hidden_dim of DNNBlock
N_HLAYER = 2        # n_Hlayer of DNNBlock
NT = 2              # ODEBlock Nt (RK4 steps)

W_DIM = IO_DIM + AUG_DIM      # 16
HALF = W_DIM // 2             # 8  (io_dim//2 of each chain)
H2 = 2 * HIDDEN               # 40 (merged hidden width: chain1 ++ chain2)
N_EVAL = 4 * NT               # 8  (RK4 stage evaluations per ODE block)

LANE = 128                    # TPU lane width
MAX_TILE_B = 2048             # batch lanes per grid step

# ---- weight-slab row offsets (all 8-aligned), per ODE block, transposed pieces ----
OFF_W0T = 0                       # (H2, W_DIM)
OFF_W1T = OFF_W0T + H2            # (H2, H2)
OFF_W2T = OFF_W1T + H2            # (H2, H2)
OFF_W3T = OFF_W2T + H2            # (W_DIM, H2)
OFF_B0E = OFF_W3T + W_DIM         # (H2, N_EVAL)   t-dependent first-layer bias table
OFF_B1 = OFF_B0E + H2             # (H2, 1)
OFF_B2 = OFF_B1 + H2              # (H2, 1)
OFF_B3 = OFF_B2 + H2              # (W_DIM, 1)
BLOCK_ROWS = OFF_B3 + W_DIM       # 272
OFF_SCALE = N_LAYERS * BLOCK_ROWS  # (W_DIM, 1)
SLAB_ROWS = OFF_SCALE + W_DIM      # 560
SLAB_COLS = H2                     # 40


def _softplus(x):
    # numerically stable, branch-free; matches torch.nn.Softplus to f32 resolution.
    return jnp.maximum(x, 0.0) + jnp.log1p(jnp.exp(-jnp.abs(x)))


# ------------------------------- fused kernel ----------------------------------
def _cnf_kernel(x_ref, slab_ref, o_ref):
    """Whole AugmentedCNF.x_to_z on one batch tile.

    x_ref:    (IO_DIM, tile_b)   input features on sublanes, batch on lanes
    slab_ref: (SLAB_ROWS, SLAB_COLS) all merged/transposed weights (one DMA)
    o_ref:    (W_DIM, tile_b)
    """
    tb = o_ref.shape[-1]

    # Augmentation concat in-kernel: aug feature rows start at zero.
    x = jnp.concatenate(
        [x_ref[...], jnp.zeros((AUG_DIM, tb), jnp.float32)], axis=0)   # (W_DIM, tb)

    hstep = 1.0 / NT

    for blk in range(N_LAYERS):
        r = blk * BLOCK_ROWS
        w0t = slab_ref[pl.ds(r + OFF_W0T, H2), pl.ds(0, W_DIM)]        # (40, 16)
        w1t = slab_ref[pl.ds(r + OFF_W1T, H2), pl.ds(0, H2)]           # (40, 40)
        w2t = slab_ref[pl.ds(r + OFF_W2T, H2), pl.ds(0, H2)]           # (40, 40)
        w3t = slab_ref[pl.ds(r + OFF_W3T, W_DIM), pl.ds(0, H2)]        # (16, 40)
        b0e = slab_ref[pl.ds(r + OFF_B0E, H2), pl.ds(0, N_EVAL)]       # (40, 8)
        # Bias broadcasts hoisted out of the NT*4 unrolled stage loop.
        b1 = jnp.broadcast_to(
            slab_ref[pl.ds(r + OFF_B1, H2), pl.ds(0, 1)], (H2, tb))
        b2 = jnp.broadcast_to(
            slab_ref[pl.ds(r + OFF_B2, H2), pl.ds(0, 1)], (H2, tb))
        b3 = jnp.broadcast_to(
            slab_ref[pl.ds(r + OFF_B3, W_DIM), pl.ds(0, 1)], (W_DIM, tb))

        def f(xin, e):
            """Merged DNNBlock vector field; e indexes the precomputed t-bias column."""
            h = jnp.dot(w0t, xin, preferred_element_type=jnp.float32)
            h = _softplus(h + jnp.broadcast_to(b0e[:, e:e + 1], (H2, tb)))
            h = _softplus(jnp.dot(w1t, h, preferred_element_type=jnp.float32) + b1)
            h = _softplus(jnp.dot(w2t, h, preferred_element_type=jnp.float32) + b2)
            return jnp.dot(w3t, h, preferred_element_type=jnp.float32) + b3

        # Fixed-step RK4 on t in [0, 1]; incremental accumulation keeps the live set
        # to {x, acc, current k, hidden}.
        for n in range(NT):
            e = 4 * n
            k = f(x, e)                                    # k1
            acc = x + (hstep / 6.0) * k
            k = f(x + (0.5 * hstep) * k, e + 1)            # k2
            acc = acc + (hstep / 3.0) * k
            k = f(x + (0.5 * hstep) * k, e + 2)            # k3
            acc = acc + (hstep / 3.0) * k
            k = f(x + hstep * k, e + 3)                    # k4
            x = acc + (hstep / 6.0) * k

    # Scaling: exp(log_scale) on the first io_dim feature rows, identity on the rest.
    scale = jnp.broadcast_to(
        slab_ref[pl.ds(OFF_SCALE, W_DIM), pl.ds(0, 1)], (W_DIM, tb))
    o_ref[...] = x * scale


# --------------------- wrapper-side weight preprocessing ------------------------
def _merge_block(block_params):
    """Merge chain1/chain2 of one DNNBlock into block-diagonal weights with the
    even/odd de-interleave and the (out2, out1) re-interleave folded in."""
    (w01, b01), (w11, b11), (w21, b21), (w31, b31) = block_params["chain1"]
    (w02, b02), (w12, b12), (w22, b22), (w32, b32) = block_params["chain2"]
    H = HIDDEN

    # Linear(D+1 -> H) applied to [t, x_i]: split the t-row from the x-rows.
    w0t1, w0x1 = w01[0:1, :], w01[1:, :]
    w0t2, w0x2 = w02[0:1, :], w02[1:, :]

    # W0: (W_DIM, 2H); even input dims (= x1) feed chain1, odd (= x2) feed chain2.
    W0 = jnp.zeros((W_DIM, H2), jnp.float32)
    W0 = W0.at[0::2, :H].set(w0x1)
    W0 = W0.at[1::2, H:].set(w0x2)

    # t-dependent effective bias table, one row per RK4 stage evaluation.
    w0t = jnp.concatenate([w0t1, w0t2], axis=1)            # (1, 2H)
    b0 = jnp.concatenate([b01, b02], axis=1)               # (1, 2H)
    hs = 1.0 / NT
    ts = []
    for n in range(NT):
        t0 = n * hs
        ts += [t0, t0 + 0.5 * hs, t0 + 0.5 * hs, t0 + hs]
    ts = jnp.asarray(ts, jnp.float32)[:, None]             # (N_EVAL, 1)
    B0EFF = ts * w0t + b0                                   # (N_EVAL, 2H)

    def blkdiag(a, b):
        za = jnp.zeros((a.shape[0], b.shape[1]), jnp.float32)
        zb = jnp.zeros((b.shape[0], a.shape[1]), jnp.float32)
        return jnp.concatenate(
            [jnp.concatenate([a, za], axis=1),
             jnp.concatenate([zb, b], axis=1)], axis=0)

    W1 = blkdiag(w11, w12)
    b1 = jnp.concatenate([b11, b12], axis=1)
    W2 = blkdiag(w21, w22)
    b2 = jnp.concatenate([b21, b22], axis=1)

    # W3: (2H, W_DIM); out = stack((out2, out1), dim=2).reshape  ->
    #   even output dims = chain2 output, odd output dims = chain1 output.
    W3 = jnp.zeros((H2, W_DIM), jnp.float32)
    W3 = W3.at[:H, 1::2].set(w31)
    W3 = W3.at[H:, 0::2].set(w32)
    b3 = jnp.zeros((1, W_DIM), jnp.float32)
    b3 = b3.at[:, 1::2].set(b31)
    b3 = b3.at[:, 0::2].set(b32)

    return [W0, B0EFF, W1, b1, W2, b2, W3, b3]


def _build_slab(params):
    """Pack all (transposed) merged weights + biases + scale into one f32 slab."""
    slab = jnp.zeros((SLAB_ROWS, SLAB_COLS), jnp.float32)

    def put(s, row, a):
        return s.at[row:row + a.shape[0], :a.shape[1]].set(a)

    for blk, bp in enumerate(params["blocks"]):
        W0, B0EFF, W1, b1, W2, b2, W3, b3 = _merge_block(bp)
        r = blk * BLOCK_ROWS
        slab = put(slab, r + OFF_W0T, W0.T)       # (40, 16)
        slab = put(slab, r + OFF_W1T, W1.T)       # (40, 40)
        slab = put(slab, r + OFF_W2T, W2.T)       # (40, 40)
        slab = put(slab, r + OFF_W3T, W3.T)       # (16, 40)
        slab = put(slab, r + OFF_B0E, B0EFF.T)    # (40, 8)
        slab = put(slab, r + OFF_B1, b1.T)        # (40, 1)
        slab = put(slab, r + OFF_B2, b2.T)        # (40, 1)
        slab = put(slab, r + OFF_B3, b3.T)        # (16, 1)

    scale = jnp.concatenate(
        [jnp.exp(params["log_scale"]), jnp.ones((1, AUG_DIM), jnp.float32)], axis=1)
    slab = put(slab, OFF_SCALE, scale.T)          # (16, 1)
    return slab


# ------------------------------- forward ----------------------------------------
def augmented_cnf_forward(params, x):
    """AugmentedCNF.forward(x, reverse=False) -> (z[:, :io_dim], z[:, io_dim:])."""
    B = x.shape[0]
    slab = _build_slab(params)

    # Batch on the lane axis: transpose once in the wrapper (tiny: B x io_dim f32),
    # pad batch up to a lane-tile multiple; the aug-dim concat happens in-kernel.
    x_t = x.T                                                   # (IO_DIM, B)
    pad_b = max(LANE, ((B + LANE - 1) // LANE) * LANE)
    if pad_b <= LANE:
        n_tiles, tile_b = 1, pad_b
    else:
        # >= 2 grid steps so ("parallel",) shards across both v7x TensorCores;
        # tiles capped at MAX_TILE_B lanes to amortize per-step overhead.
        n_tiles = max(2, (pad_b + MAX_TILE_B - 1) // MAX_TILE_B)
        tile_b = ((pad_b + n_tiles * LANE - 1) // (n_tiles * LANE)) * LANE
        pad_b = n_tiles * tile_b
    x_t = jnp.pad(x_t, ((0, 0), (0, pad_b - B)))

    out_t = pl.pallas_call(
        _cnf_kernel,
        out_shape=jax.ShapeDtypeStruct((W_DIM, pad_b), jnp.float32),
        grid=(n_tiles,),
        in_specs=[pl.BlockSpec((IO_DIM, tile_b), lambda i: (0, i)),
                  pl.BlockSpec((SLAB_ROWS, SLAB_COLS), lambda i: (0, 0))],
        out_specs=pl.BlockSpec((W_DIM, tile_b), lambda i: (0, i)),
        compiler_params=pltpu.CompilerParams(
            dimension_semantics=("parallel",)),      # v7x: shard batch on both TCs
    )(x_t, slab)

    out = out_t[:, :B].T                                        # (B, W_DIM)
    return out[:, :IO_DIM], out[:, IO_DIM:]


# ----------------------- pure-JAX reference (per-chain) --------------------------
def _chain_apply(chain, ttx):
    (w0, b0), (w1, b1), (w2, b2), (w3, b3) = chain
    h = jnp.logaddexp(ttx @ w0 + b0, 0.0)
    h = jnp.logaddexp(h @ w1 + b1, 0.0)
    h = jnp.logaddexp(h @ w2 + b2, 0.0)
    return h @ w3 + b3


def _dnn_block_ref(bp, t, x):
    B, W = x.shape
    x1, x2 = x[:, 0::2], x[:, 1::2]
    tt = jnp.full((B, 1), t, jnp.float32)
    out1 = _chain_apply(bp["chain1"], jnp.concatenate([tt, x1], axis=1))
    out2 = _chain_apply(bp["chain2"], jnp.concatenate([tt, x2], axis=1))
    return jnp.stack([out2, out1], axis=2).reshape(B, W)


def _reference_forward(params, x):
    B = x.shape[0]
    z = jnp.concatenate([x, jnp.zeros((B, AUG_DIM), jnp.float32)], axis=1)
    h = 1.0 / NT
    for bp in params["blocks"]:
        for n in range(NT):
            t0 = n * h
            k1 = _dnn_block_ref(bp, t0, z)
            k2 = _dnn_block_ref(bp, t0 + 0.5 * h, z + 0.5 * h * k1)
            k3 = _dnn_block_ref(bp, t0 + 0.5 * h, z + 0.5 * h * k2)
            k4 = _dnn_block_ref(bp, t0 + h, z + h * k3)
            z = z + (h / 6.0) * (k1 + 2.0 * k2 + 2.0 * k3 + k4)
    scale = jnp.concatenate(
        [jnp.exp(params["log_scale"]), jnp.ones((1, AUG_DIM), jnp.float32)], axis=1)
    z = z * scale
    return z[:, :IO_DIM], z[:, IO_DIM:]


# ---------------------------- parameter init -------------------------------------
def _init_linear(key, fan_in, fan_out):
    kw, kb = jax.random.split(key)
    bound = 1.0 / math.sqrt(fan_in)
    w = jax.random.uniform(kw, (fan_in, fan_out), jnp.float32, -bound, bound)
    b = jax.random.uniform(kb, (1, fan_out), jnp.float32, -bound, bound)
    return w, b


def _init_chain(key):
    sizes = [(HALF + 1, HIDDEN)] + [(HIDDEN, HIDDEN)] * N_HLAYER + [(HIDDEN, HALF)]
    keys = jax.random.split(key, len(sizes))
    return [_init_linear(k, fi, fo) for k, (fi, fo) in zip(keys, sizes)]


def init_params(key):
    blocks = []
    for _ in range(N_LAYERS):
        key, k1, k2 = jax.random.split(key, 3)
        blocks.append({"chain1": _init_chain(k1), "chain2": _init_chain(k2)})
    return {"blocks": blocks,
            "log_scale": jnp.zeros((1, IO_DIM), jnp.float32)}


# ------------------------------------ main ----------------------------------------
if __name__ == "__main__":
    key = jax.random.PRNGKey(0)
    k_param, k_data = jax.random.split(key)

    params = init_params(k_param)
    batch = 8
    x = jax.random.normal(k_data, (batch, IO_DIM), dtype=jnp.float32)

    fwd = jax.jit(augmented_cnf_forward)
    z, aug = fwd(params, x)
    jax.block_until_ready((z, aug))

    assert z.shape == (batch, IO_DIM) and aug.shape == (batch, AUG_DIM)
    assert bool(jnp.all(jnp.isfinite(z))) and bool(jnp.all(jnp.isfinite(aug)))

    # Validate the chain1/chain2 block-diagonal fold + RK4 against an f32 per-chain
    # reference (loose tolerance covers default-precision MXU drift; an interleave
    # bug would produce O(1) errors).
    with jax.default_matmul_precision("float32"):
        z_ref, aug_ref = _reference_forward(params, x)
    err = max(float(jnp.max(jnp.abs(z - z_ref))),
              float(jnp.max(jnp.abs(aug - aug_ref))))
    assert err < 5e-2, f"kernel/reference mismatch: max abs err = {err}"

    print("KERNEL_OK")
</pallas_src>

<mosaic_0001>
module attributes {stable_mosaic.version = 11 : i64} {
  func.func @_cnf_kernel(%arg0: i32, %arg1: memref<8x128xf32, #tpu.memory_space<vmem>>, %arg2: memref<560x40xf32, #tpu.memory_space<vmem>>, %arg3: memref<16x128xf32, #tpu.memory_space<vmem>>) attributes {dimension_semantics = [#tpu.dimension_semantics<parallel>], iteration_bounds = array<i64: 1>, scalar_prefetch = 0 : i64, scratch_operands = 0 : i64, tpu.core_type = #tpu.core_type<tc>, window_params = [{transform_indices = @transform_0, window_bounds = array<i64: 8, 128>}, {pipeline_mode = #tpu.pipeline_mode<synchronous>, transform_indices = @transform_1, window_bounds = array<i64: 560, 40>}, {transform_indices = @transform_2, window_bounds = array<i64: 16, 128>}]} {
    %c0 = arith.constant 0 : index
    %c0_0 = arith.constant 0 : index
    %0 = vector.load %arg1[%c0, %c0_0] : memref<8x128xf32, #tpu.memory_space<vmem>>, vector<8x128xf32>
    %cst = arith.constant 0.000000e+00 : f32
    %1 = vector.broadcast %cst : f32 to vector<8x128xf32>
    %2 = tpu.concatenate %0, %1 in 0 : vector<8x128xf32>, vector<8x128xf32> -> vector<16x128xf32>
    %c0_1 = arith.constant 0 : index
    %c0_2 = arith.constant 0 : index
    %3 = vector.load %arg2[%c0_1, %c0_2] : memref<560x40xf32, #tpu.memory_space<vmem>>, vector<40x16xf32>
    %c40 = arith.constant 40 : index
    %c0_3 = arith.constant 0 : index
    %4 = vector.load %arg2[%c40, %c0_3] : memref<560x40xf32, #tpu.memory_space<vmem>>, vector<40x40xf32>
    %c80 = arith.constant 80 : index
    %c0_4 = arith.constant 0 : index
    %5 = vector.load %arg2[%c80, %c0_4] : memref<560x40xf32, #tpu.memory_space<vmem>>, vector<40x40xf32>
    %c120 = arith.constant 120 : index
    %c0_5 = arith.constant 0 : index
    %6 = vector.load %arg2[%c120, %c0_5] : memref<560x40xf32, #tpu.memory_space<vmem>>, vector<16x40xf32>
    %c136 = arith.constant 136 : index
    %c0_6 = arith.constant 0 : index
    %7 = vector.load %arg2[%c136, %c0_6] : memref<560x40xf32, #tpu.memory_space<vmem>>, vector<40x8xf32>
    %c176 = arith.constant 176 : index
    %c0_7 = arith.constant 0 : index
    %8 = vector.load %arg2[%c176, %c0_7] : memref<560x40xf32, #tpu.memory_space<vmem>>, vector<40x1xf32>
    %9 = vector.shape_cast %8 : vector<40x1xf32> to vector<40x1xf32>
    %10 = vector.broadcast %9 : vector<40x1xf32> to vector<40x128xf32>
    %c216 = arith.constant 216 : index
    %c0_8 = arith.constant 0 : index
    %11 = vector.load %arg2[%c216, %c0_8] : memref<560x40xf32, #tpu.memory_space<vmem>>, vector<40x1xf32>
    %12 = vector.shape_cast %11 : vector<40x1xf32> to vector<40x1xf32>
    %13 = vector.broadcast %12 : vector<40x1xf32> to vector<40x128xf32>
    %c256 = arith.constant 256 : index
    %c0_9 = arith.constant 0 : index
    %14 = vector.load %arg2[%c256, %c0_9] : memref<560x40xf32, #tpu.memory_space<vmem>>, vector<16x1xf32>
    %15 = vector.shape_cast %14 : vector<16x1xf32> to vector<16x1xf32>
    %16 = vector.broadcast %15 : vector<16x1xf32> to vector<16x128xf32>
    %cst_10 = arith.constant dense<0.000000e+00> : vector<40x128xf32>
    %17 = tpu.matmul %3, %2, %cst_10 {dimension_numbers = #tpu.dot_dimension_numbers<[1], [0], [0], [1], [0, 0, 1, 1], [], []>} : vector<40x16xf32>, vector<16x128xf32>, vector<40x128xf32> -> vector<40x128xf32>
    %18 = vector.extract_strided_slice %7 {offsets = [0, 0], sizes = [40, 1], strides = [1, 1]} : vector<40x8xf32> to vector<40x1xf32>
    %19 = vector.shape_cast %18 : vector<40x1xf32> to vector<40x1xf32>
    %20 = vector.broadcast %19 : vector<40x1xf32> to vector<40x128xf32>
    %21 = arith.addf %17, %20 : vector<40x128xf32>
    %cst_11 = arith.constant 0.000000e+00 : f32
    %22 = vector.broadcast %cst_11 : f32 to vector<40x128xf32>
    %23 = arith.maximumf %21, %22 : vector<40x128xf32>
    %24 = math.absf %21 : vector<40x128xf32>
    %cst_12 = arith.constant 0.000000e+00 : f32
    %25 = vector.broadcast %cst_12 : f32 to vector<40x128xf32>
    %26 = arith.subf %25, %24 : vector<40x128xf32>
    %27 = math.exp %26 : vector<40x128xf32>
    %28 = math.log1p %27 : vector<40x128xf32>
    %29 = arith.addf %23, %28 : vector<40x128xf32>
    %cst_13 = arith.constant dense<0.000000e+00> : vector<40x128xf32>
    %30 = tpu.matmul %4, %29, %cst_13 {dimension_numbers = #tpu.dot_dimension_numbers<[1], [0], [0], [1], [0, 0, 1, 1], [], []>} : vector<40x40xf32>, vector<40x128xf32>, vector<40x128xf32> -> vector<40x128xf32>
    %31 = arith.addf %30, %10 : vector<40x128xf32>
    %cst_14 = arith.constant 0.000000e+00 : f32
    %32 = vector.broadcast %cst_14 : f32 to vector<40x128xf32>
    %33 = arith.maximumf %31, %32 : vector<40x128xf32>
    %34 = math.absf %31 : vector<40x128xf32>
    %cst_15 = arith.constant 0.000000e+00 : f32
    %35 = vector.broadcast %cst_15 : f32 to vector<40x128xf32>
    %36 = arith.subf %35, %34 : vector<40x128xf32>
    %37 = math.exp %36 : vector<40x128xf32>
    %38 = math.log1p %37 : vector<40x128xf32>
    %39 = arith.addf %33, %38 : vector<40x128xf32>
    %cst_16 = arith.constant dense<0.000000e+00> : vector<40x128xf32>
    %40 = tpu.matmul %5, %39, %cst_16 {dimension_numbers = #tpu.dot_dimension_numbers<[1], [0], [0], [1], [0, 0, 1, 1], [], []>} : vector<40x40xf32>, vector<40x128xf32>, vector<40x128xf32> -> vector<40x128xf32>
    %41 = arith.addf %40, %13 : vector<40x128xf32>
    %cst_17 = arith.constant 0.000000e+00 : f32
    %42 = vector.broadcast %cst_17 : f32 to vector<40x128xf32>
    %43 = arith.maximumf %41, %42 : vector<40x128xf32>
    %44 = math.absf %41 : vector<40x128xf32>
    %cst_18 = arith.constant 0.000000e+00 : f32
    %45 = vector.broadcast %cst_18 : f32 to vector<40x128xf32>
    %46 = arith.subf %45, %44 : vector<40x128xf32>
    %47 = math.exp %46 : vector<40x128xf32>
    %48 = math.log1p %47 : vector<40x128xf32>
    %49 = arith.addf %43, %48 : vector<40x128xf32>
    %cst_19 = arith.constant dense<0.000000e+00> : vector<16x128xf32>
    %50 = tpu.matmul %6, %49, %cst_19 {dimension_numbers = #tpu.dot_dimension_numbers<[1], [0], [0], [1], [0, 0, 1, 1], [], []>} : vector<16x40xf32>, vector<40x128xf32>, vector<16x128xf32> -> vector<16x128xf32>
    %51 = arith.addf %50, %16 : vector<16x128xf32>
    %cst_20 = arith.constant 0.0833333358 : f32
    %52 = vector.broadcast %cst_20 : f32 to vector<16x128xf32>
    %53 = arith.mulf %52, %51 : vector<16x128xf32>
    %54 = arith.addf %2, %53 : vector<16x128xf32>
    %cst_21 = arith.constant 2.500000e-01 : f32
    %55 = vector.broadcast %cst_21 : f32 to vector<16x128xf32>
    %56 = arith.mulf %55, %51 : vector<16x128xf32>
    %57 = arith.addf %2, %56 : vector<16x128xf32>
    %cst_22 = arith.constant dense<0.000000e+00> : vector<40x128xf32>
    %58 = tpu.matmul %3, %57, %cst_22 {dimension_numbers = #tpu.dot_dimension_numbers<[1], [0], [0], [1], [0, 0, 1, 1], [], []>} : vector<40x16xf32>, vector<16x128xf32>, vector<40x128xf32> -> vector<40x128xf32>
    %59 = vector.extract_strided_slice %7 {offsets = [0, 1], sizes = [40, 1], strides = [1, 1]} : vector<40x8xf32> to vector<40x1xf32>
    %60 = vector.shape_cast %59 : vector<40x1xf32> to vector<40x1xf32>
    %61 = vector.broadcast %60 : vector<40x1xf32> to vector<40x128xf32>
    %62 = arith.addf %58, %61 : vector<40x128xf32>
    %cst_23 = arith.constant 0.000000e+00 : f32
    %63 = vector.broadcast %cst_23 : f32 to vector<40x128xf32>
    %64 = arith.maximumf %62, %63 : vector<40x128xf32>
    %65 = math.absf %62 : vector<40x128xf32>
    %cst_24 = arith.constant 0.000000e+00 : f32
    %66 = vector.broadcast %cst_24 : f32 to vector<40x128xf32>
    %67 = arith.subf %66, %65 : vector<40x128xf32>
    %68 = math.exp %67 : vector<40x128xf32>
    %69 = math.log1p %68 : vector<40x128xf32>
    %70 = arith.addf %64, %69 : vector<40x128xf32>
    %cst_25 = arith.constant dense<0.000000e+00> : vector<40x128xf32>
    %71 = tpu.matmul %4, %70, %cst_25 {dimension_numbers = #tpu.dot_dimension_numbers<[1], [0], [0], [1], [0, 0, 1, 1], [], []>} : vector<40x40xf32>, vector<40x128xf32>, vector<40x128xf32> -> vector<40x128xf32>
    %72 = arith.addf %71, %10 : vector<40x128xf32>
    %cst_26 = arith.constant 0.000000e+00 : f32
    %73 = vector.broadcast %cst_26 : f32 to vector<40x128xf32>
    %74 = arith.maximumf %72, %73 : vector<40x128xf32>
    %75 = math.absf %72 : vector<40x128xf32>
    %cst_27 = arith.constant 0.000000e+00 : f32
    %76 = vector.broadcast %cst_27 : f32 to vector<40x128xf32>
    %77 = arith.subf %76, %75 : vector<40x128xf32>
    %78 = math.exp %77 : vector<40x128xf32>
    %79 = math.log1p %78 : vector<40x128xf32>
    %80 = arith.addf %74, %79 : vector<40x128xf32>
    %cst_28 = arith.constant dense<0.000000e+00> : vector<40x128xf32>
    %81 = tpu.matmul %5, %80, %cst_28 {dimension_numbers = #tpu.dot_dimension_numbers<[1], [0], [0], [1], [0, 0, 1, 1], [], []>} : vector<40x40xf32>, vector<40x128xf32>, vector<40x128xf32> -> vector<40x128xf32>
    %82 = arith.addf %81, %13 : vector<40x128xf32>
    %cst_29 = arith.constant 0.000000e+00 : f32
    %83 = vector.broadcast %cst_29 : f32 to vector<40x128xf32>
    %84 = arith.maximumf %82, %83 : vector<40x128xf32>
    %85 = math.absf %82 : vector<40x128xf32>
    %cst_30 = arith.constant 0.000000e+00 : f32
    %86 = vector.broadcast %cst_30 : f32 to vector<40x128xf32>
    %87 = arith.subf %86, %85 : vector<40x128xf32>
    %88 = math.exp %87 : vector<40x128xf32>
    %89 = math.log1p %88 : vector<40x128xf32>
    %90 = arith.addf %84, %89 : vector<40x128xf32>
    %cst_31 = arith.constant dense<0.000000e+00> : vector<16x128xf32>
    %91 = tpu.matmul %6, %90, %cst_31 {dimension_numbers = #tpu.dot_dimension_numbers<[1], [0], [0], [1], [0, 0, 1, 1], [], []>} : vector<16x40xf32>, vector<40x128xf32>, vector<16x128xf32> -> vector<16x128xf32>
    %92 = arith.addf %91, %16 : vector<16x128xf32>
    %cst_32 = arith.constant 0.166666672 : f32
    %93 = vector.broadcast %cst_32 : f32 to vector<16x128xf32>
    %94 = arith.mulf %93, %92 : vector<16x128xf32>
    %95 = arith.addf %54, %94 : vector<16x128xf32>
    %cst_33 = arith.constant 2.500000e-01 : f32
    %96 = vector.broadcast %cst_33 : f32 to vector<16x128xf32>
    %97 = arith.mulf %96, %92 : vector<16x128xf32>
    %98 = arith.addf %2, %97 : vector<16x128xf32>
    %cst_34 = arith.constant dense<0.000000e+00> : vector<40x128xf32>
    %99 = tpu.matmul %3, %98, %cst_34 {dimension_numbers = #tpu.dot_dimension_numbers<[1], [0], [0], [1], [0, 0, 1, 1], [], []>} : vector<40x16xf32>, vector<16x128xf32>, vector<40x128xf32> -> vector<40x128xf32>
    %100 = vector.extract_strided_slice %7 {offsets = [0, 2], sizes = [40, 1], strides = [1, 1]} : vector<40x8xf32> to vector<40x1xf32>
    %101 = vector.shape_cast %100 : vector<40x1xf32> to vector<40x1xf32>
    %102 = vector.broadcast %101 : vector<40x1xf32> to vector<40x128xf32>
    %103 = arith.addf %99, %102 : vector<40x128xf32>
    %cst_35 = arith.constant 0.000000e+00 : f32
    %104 = vector.broadcast %cst_35 : f32 to vector<40x128xf32>
    %105 = arith.maximumf %103, %104 : vector<40x128xf32>
    %106 = math.absf %103 : vector<40x128xf32>
    %cst_36 = arith.constant 0.000000e+00 : f32
    %107 = vector.broadcast %cst_36 : f32 to vector<40x128xf32>
    %108 = arith.subf %107, %106 : vector<40x128xf32>
    %109 = math.exp %108 : vector<40x128xf32>
    %110 = math.log1p %109 : vector<40x128xf32>
    %111 = arith.addf %105, %110 : vector<40x128xf32>
    %cst_37 = arith.constant dense<0.000000e+00> : vector<40x128xf32>
    %112 = tpu.matmul %4, %111, %cst_37 {dimension_numbers = #tpu.dot_dimension_numbers<[1], [0], [0], [1], [0, 0, 1, 1], [], []>} : vector<40x40xf32>, vector<40x128xf32>, vector<40x128xf32> -> vector<40x128xf32>
    %113 = arith.addf %112, %10 : vector<40x128xf32>
    %cst_38 = arith.constant 0.000000e+00 : f32
    %114 = vector.broadcast %cst_38 : f32 to vector<40x128xf32>
    %115 = arith.maximumf %113, %114 : vector<40x128xf32>
    %116 = math.absf %113 : vector<40x128xf32>
    %cst_39 = arith.constant 0.000000e+00 : f32
    %117 = vector.broadcast %cst_39 : f32 to vector<40x128xf32>
    %118 = arith.subf %117, %116 : vector<40x128xf32>
    %119 = math.exp %118 : vector<40x128xf32>
    %120 = math.log1p %119 : vector<40x128xf32>
    %121 = arith.addf %115, %120 : vector<40x128xf32>
    %cst_40 = arith.constant dense<0.000000e+00> : vector<40x128xf32>
    %122 = tpu.matmul %5, %121, %cst_40 {dimension_numbers = #tpu.dot_dimension_numbers<[1], [0], [0], [1], [0, 0, 1, 1], [], []>} : vector<40x40xf32>, vector<40x128xf32>, vector<40x128xf32> -> vector<40x128xf32>
    %123 = arith.addf %122, %13 : vector<40x128xf32>
    %cst_41 = arith.constant 0.000000e+00 : f32
    %124 = vector.broadcast %cst_41 : f32 to vector<40x128xf32>
    %125 = arith.maximumf %123, %124 : vector<40x128xf32>
    %126 = math.absf %123 : vector<40x128xf32>
    %cst_42 = arith.constant 0.000000e+00 : f32
    %127 = vector.broadcast %cst_42 : f32 to vector<40x128xf32>
    %128 = arith.subf %127, %126 : vector<40x128xf32>
    %129 = math.exp %128 : vector<40x128xf32>
    %130 = math.log1p %129 : vector<40x128xf32>
    %131 = arith.addf %125, %130 : vector<40x128xf32>
    %cst_43 = arith.constant dense<0.000000e+00> : vector<16x128xf32>
    %132 = tpu.matmul %6, %131, %cst_43 {dimension_numbers = #tpu.dot_dimension_numbers<[1], [0], [0], [1], [0, 0, 1, 1], [], []>} : vector<16x40xf32>, vector<40x128xf32>, vector<16x128xf32> -> vector<16x128xf32>
    %133 = arith.addf %132, %16 : vector<16x128xf32>
    %cst_44 = arith.constant 0.166666672 : f32
    %134 = vector.broadcast %cst_44 : f32 to vector<16x128xf32>
    %135 = arith.mulf %134, %133 : vector<16x128xf32>
    %136 = arith.addf %95, %135 : vector<16x128xf32>
    %cst_45 = arith.constant 5.000000e-01 : f32
    %137 = vector.broadcast %cst_45 : f32 to vector<16x128xf32>
    %138 = arith.mulf %137, %133 : vector<16x128xf32>
    %139 = arith.addf %2, %138 : vector<16x128xf32>
    %cst_46 = arith.constant dense<0.000000e+00> : vector<40x128xf32>
    %140 = tpu.matmul %3, %139, %cst_46 {dimension_numbers = #tpu.dot_dimension_numbers<[1], [0], [0], [1], [0, 0, 1, 1], [], []>} : vector<40x16xf32>, vector<16x128xf32>, vector<40x128xf32> -> vector<40x128xf32>
    %141 = vector.extract_strided_slice %7 {offsets = [0, 3], sizes = [40, 1], strides = [1, 1]} : vector<40x8xf32> to vector<40x1xf32>
    %142 = vector.shape_cast %141 : vector<40x1xf32> to vector<40x1xf32>
    %143 = vector.broadcast %142 : vector<40x1xf32> to vector<40x128xf32>
    %144 = arith.addf %140, %143 : vector<40x128xf32>
    %cst_47 = arith.constant 0.000000e+00 : f32
    %145 = vector.broadcast %cst_47 : f32 to vector<40x128xf32>
    %146 = arith.maximumf %144, %145 : vector<40x128xf32>
    %147 = math.absf %144 : vector<40x128xf32>
    %cst_48 = arith.constant 0.000000e+00 : f32
    %148 = vector.broadcast %cst_48 : f32 to vector<40x128xf32>
    %149 = arith.subf %148, %147 : vector<40x128xf32>
    %150 = math.exp %149 : vector<40x128xf32>
    %151 = math.log1p %150 : vector<40x128xf32>
    %152 = arith.addf %146, %151 : vector<40x128xf32>
    %cst_49 = arith.constant dense<0.000000e+00> : vector<40x128xf32>
    %153 = tpu.matmul %4, %152, %cst_49 {dimension_numbers = #tpu.dot_dimension_numbers<[1], [0], [0], [1], [0, 0, 1, 1], [], []>} : vector<40x40xf32>, vector<40x128xf32>, vector<40x128xf32> -> vector<40x128xf32>
    %154 = arith.addf %153, %10 : vector<40x128xf32>
    %cst_50 = arith.constant 0.000000e+00 : f32
    %155 = vector.broadcast %cst_50 : f32 to vector<40x128xf32>
    %156 = arith.maximumf %154, %155 : vector<40x128xf32>
    %157 = math.absf %154 : vector<40x128xf32>
    %cst_51 = arith.constant 0.000000e+00 : f32
    %158 = vector.broadcast %cst_51 : f32 to vector<40x128xf32>
    %159 = arith.subf %158, %157 : vector<40x128xf32>
    %160 = math.exp %159 : vector<40x128xf32>
    %161 = math.log1p %160 : vector<40x128xf32>
    %162 = arith.addf %156, %161 : vector<40x128xf32>
    %cst_52 = arith.constant dense<0.000000e+00> : vector<40x128xf32>
    %163 = tpu.matmul %5, %162, %cst_52 {dimension_numbers = #tpu.dot_dimension_numbers<[1], [0], [0], [1], [0, 0, 1, 1], [], []>} : vector<40x40xf32>, vector<40x128xf32>, vector<40x128xf32> -> vector<40x128xf32>
    %164 = arith.addf %163, %13 : vector<40x128xf32>
    %cst_53 = arith.constant 0.000000e+00 : f32
    %165 = vector.broadcast %cst_53 : f32 to vector<40x128xf32>
    %166 = arith.maximumf %164, %165 : vector<40x128xf32>
    %167 = math.absf %164 : vector<40x128xf32>
    %cst_54 = arith.constant 0.000000e+00 : f32
    %168 = vector.broadcast %cst_54 : f32 to vector<40x128xf32>
    %169 = arith.subf %168, %167 : vector<40x128xf32>
    %170 = math.exp %169 : vector<40x128xf32>
    %171 = math.log1p %170 : vector<40x128xf32>
    %172 = arith.addf %166, %171 : vector<40x128xf32>
    %cst_55 = arith.constant dense<0.000000e+00> : vector<16x128xf32>
    %173 = tpu.matmul %6, %172, %cst_55 {dimension_numbers = #tpu.dot_dimension_numbers<[1], [0], [0], [1], [0, 0, 1, 1], [], []>} : vector<16x40xf32>, vector<40x128xf32>, vector<16x128xf32> -> vector<16x128xf32>
    %174 = arith.addf %173, %16 : vector<16x128xf32>
    %cst_56 = arith.constant 0.0833333358 : f32
    %175 = vector.broadcast %cst_56 : f32 to vector<16x128xf32>
    %176 = arith.mulf %175, %174 : vector<16x128xf32>
    %177 = arith.addf %136, %176 : vector<16x128xf32>
    %cst_57 = arith.constant dense<0.000000e+00> : vector<40x128xf32>
    %178 = tpu.matmul %3, %177, %cst_57 {dimension_numbers = #tpu.dot_dimension_numbers<[1], [0], [0], [1], [0, 0, 1, 1], [], []>} : vector<40x16xf32>, vector<16x128xf32>, vector<40x128xf32> -> vector<40x128xf32>
    %179 = vector.extract_strided_slice %7 {offsets = [0, 4], sizes = [40, 1], strides = [1, 1]} : vector<40x8xf32> to vector<40x1xf32>
    %180 = vector.shape_cast %179 : vector<40x1xf32> to vector<40x1xf32>
    %181 = vector.broadcast %180 : vector<40x1xf32> to vector<40x128xf32>
    %182 = arith.addf %178, %181 : vector<40x128xf32>
    %cst_58 = arith.constant 0.000000e+00 : f32
    %183 = vector.broadcast %cst_58 : f32 to vector<40x128xf32>
    %184 = arith.maximumf %182, %183 : vector<40x128xf32>
    %185 = math.absf %182 : vector<40x128xf32>
    %cst_59 = arith.constant 0.000000e+00 : f32
    %186 = vector.broadcast %cst_59 : f32 to vector<40x128xf32>
    %187 = arith.subf %186, %185 : vector<40x128xf32>
    %188 = math.exp %187 : vector<40x128xf32>
    %189 = math.log1p %188 : vector<40x128xf32>
    %190 = arith.addf %184, %189 : vector<40x128xf32>
    %cst_60 = arith.constant dense<0.000000e+00> : vector<40x128xf32>
    %191 = tpu.matmul %4, %190, %cst_60 {dimension_numbers = #tpu.dot_dimension_numbers<[1], [0], [0], [1], [0, 0, 1, 1], [], []>} : vector<40x40xf32>, vector<40x128xf32>, vector<40x128xf32> -> vector<40x128xf32>
    %192 = arith.addf %191, %10 : vector<40x128xf32>
    %cst_61 = arith.constant 0.000000e+00 : f32
    %193 = vector.broadcast %cst_61 : f32 to vector<40x128xf32>
    %194 = arith.maximumf %192, %193 : vector<40x128xf32>
    %195 = math.absf %192 : vector<40x128xf32>
    %cst_62 = arith.constant 0.000000e+00 : f32
    %196 = vector.broadcast %cst_62 : f32 to vector<40x128xf32>
    %197 = arith.subf %196, %195 : vector<40x128xf32>
    %198 = math.exp %197 : vector<40x128xf32>
    %199 = math.log1p %198 : vector<40x128xf32>
    %200 = arith.addf %194, %199 : vector<40x128xf32>
    %cst_63 = arith.constant dense<0.000000e+00> : vector<40x128xf32>
    %201 = tpu.matmul %5, %200, %cst_63 {dimension_numbers = #tpu.dot_dimension_numbers<[1], [0], [0], [1], [0, 0, 1, 1], [], []>} : vector<40x40xf32>, vector<40x128xf32>, vector<40x128xf32> -> vector<40x128xf32>
    %202 = arith.addf %201, %13 : vector<40x128xf32>
    %cst_64 = arith.constant 0.000000e+00 : f32
    %203 = vector.broadcast %cst_64 : f32 to vector<40x128xf32>
    %204 = arith.maximumf %202, %203 : vector<40x128xf32>
    %205 = math.absf %202 : vector<40x128xf32>
    %cst_65 = arith.constant 0.000000e+00 : f32
    %206 = vector.broadcast %cst_65 : f32 to vector<40x128xf32>
    %207 = arith.subf %206, %205 : vector<40x128xf32>
    %208 = math.exp %207 : vector<40x128xf32>
    %209 = math.log1p %208 : vector<40x128xf32>
    %210 = arith.addf %204, %209 : vector<40x128xf32>
    %cst_66 = arith.constant dense<0.000000e+00> : vector<16x128xf32>
    %211 = tpu.matmul %6, %210, %cst_66 {dimension_numbers = #tpu.dot_dimension_numbers<[1], [0], [0], [1], [0, 0, 1, 1], [], []>} : vector<16x40xf32>, vector<40x128xf32>, vector<16x128xf32> -> vector<16x128xf32>
    %212 = arith.addf %211, %16 : vector<16x128xf32>
    %cst_67 = arith.constant 0.0833333358 : f32
    %213 = vector.broadcast %cst_67 : f32 to vector<16x128xf32>
    %214 = arith.mulf %213, %212 : vector<16x128xf32>
    %215 = arith.addf %177, %214 : vector<16x128xf32>
    %cst_68 = arith.constant 2.500000e-01 : f32
    %216 = vector.broadcast %cst_68 : f32 to vector<16x128xf32>
    %217 = arith.mulf %216, %212 : vector<16x128xf32>
    %218 = arith.addf %177, %217 : vector<16x128xf32>
    %cst_69 = arith.constant dense<0.000000e+00> : vector<40x128xf32>
    %219 = tpu.matmul %3, %218, %cst_69 {dimension_numbers = #tpu.dot_dimension_numbers<[1], [0], [0], [1], [0, 0, 1, 1], [], []>} : vector<40x16xf32>, vector<16x128xf32>, vector<40x128xf32> -> vector<40x128xf32>
    %220 = vector.extract_strided_slice %7 {offsets = [0, 5], sizes = [40, 1], strides = [1, 1]} : vector<40x8xf32> to vector<40x1xf32>
    %221 = vector.shape_cast %220 : vector<40x1xf32> to vector<40x1xf32>
    %222 = vector.broadcast %221 : vector<40x1xf32> to vector<40x128xf32>
    %223 = arith.addf %219, %222 : vector<40x128xf32>
    %cst_70 = arith.constant 0.000000e+00 : f32
    %224 = vector.broadcast %cst_70 : f32 to vector<40x128xf32>
    %225 = arith.maximumf %223, %224 : vector<40x128xf32>
    %226 = math.absf %223 : vector<40x128xf32>
    %cst_71 = arith.constant 0.000000e+00 : f32
    %227 = vector.broadcast %cst_71 : f32 to vector<40x128xf32>
    %228 = arith.subf %227, %226 : vector<40x128xf32>
    %229 = math.exp %228 : vector<40x128xf32>
    %230 = math.log1p %229 : vector<40x128xf32>
    %231 = arith.addf %225, %230 : vector<40x128xf32>
    %cst_72 = arith.constant dense<0.000000e+00> : vector<40x128xf32>
    %232 = tpu.matmul %4, %231, %cst_72 {dimension_numbers = #tpu.dot_dimension_numbers<[1], [0], [0], [1], [0, 0, 1, 1], [], []>} : vector<40x40xf32>, vector<40x128xf32>, vector<40x128xf32> -> vector<40x128xf32>
    %233 = arith.addf %232, %10 : vector<40x128xf32>
    %cst_73 = arith.constant 0.000000e+00 : f32
    %234 = vector.broadcast %cst_73 : f32 to vector<40x128xf32>
    %235 = arith.maximumf %233, %234 : vector<40x128xf32>
    %236 = math.absf %233 : vector<40x128xf32>
    %cst_74 = arith.constant 0.000000e+00 : f32
    %237 = vector.broadcast %cst_74 : f32 to vector<40x128xf32>
    %238 = arith.subf %237, %236 : vector<40x128xf32>
    %239 = math.exp %238 : vector<40x128xf32>
    %240 = math.log1p %239 : vector<40x128xf32>
    %241 = arith.addf %235, %240 : vector<40x128xf32>
    %cst_75 = arith.constant dense<0.000000e+00> : vector<40x128xf32>
    %242 = tpu.matmul %5, %241, %cst_75 {dimension_numbers = #tpu.dot_dimension_numbers<[1], [0], [0], [1], [0, 0, 1, 1], [], []>} : vector<40x40xf32>, vector<40x128xf32>, vector<40x128xf32> -> vector<40x128xf32>
    %243 = arith.addf %242, %13 : vector<40x128xf32>
    %cst_76 = arith.constant 0.000000e+00 : f32
    %244 = vector.broadcast %cst_76 : f32 to vector<40x128xf32>
    %245 = arith.maximumf %243, %244 : vector<40x128xf32>
    %246 = math.absf %243 : vector<40x128xf32>
    %cst_77 = arith.constant 0.000000e+00 : f32
    %247 = vector.broadcast %cst_77 : f32 to vector<40x128xf32>
    %248 = arith.subf %247, %246 : vector<40x128xf32>
    %249 = math.exp %248 : vector<40x128xf32>
    %250 = math.log1p %249 : vector<40x128xf32>
    %251 = arith.addf %245, %250 : vector<40x128xf32>
    %cst_78 = arith.constant dense<0.000000e+00> : vector<16x128xf32>
    %252 = tpu.matmul %6, %251, %cst_78 {dimension_numbers = #tpu.dot_dimension_numbers<[1], [0], [0], [1], [0, 0, 1, 1], [], []>} : vector<16x40xf32>, vector<40x128xf32>, vector<16x128xf32> -> vector<16x128xf32>
    %253 = arith.addf %252, %16 : vector<16x128xf32>
    %cst_79 = arith.constant 0.166666672 : f32
    %254 = vector.broadcast %cst_79 : f32 to vector<16x128xf32>
    %255 = arith.mulf %254, %253 : vector<16x128xf32>
    %256 = arith.addf %215, %255 : vector<16x128xf32>
    %cst_80 = arith.constant 2.500000e-01 : f32
    %257 = vector.broadcast %cst_80 : f32 to vector<16x128xf32>
    %258 = arith.mulf %257, %253 : vector<16x128xf32>
    %259 = arith.addf %177, %258 : vector<16x128xf32>
    %cst_81 = arith.constant dense<0.000000e+00> : vector<40x128xf32>
    %260 = tpu.matmul %3, %259, %cst_81 {dimension_numbers = #tpu.dot_dimension_numbers<[1], [0], [0], [1], [0, 0, 1, 1], [], []>} : vector<40x16xf32>, vector<16x128xf32>, vector<40x128xf32> -> vector<40x128xf32>
    %261 = vector.extract_strided_slice %7 {offsets = [0, 6], sizes = [40, 1], strides = [1, 1]} : vector<40x8xf32> to vector<40x1xf32>
    %262 = vector.shape_cast %261 : vector<40x1xf32> to vector<40x1xf32>
    %263 = vector.broadcast %262 : vector<40x1xf32> to vector<40x128xf32>
    %264 = arith.addf %260, %263 : vector<40x128xf32>
    %cst_82 = arith.constant 0.000000e+00 : f32
    %265 = vector.broadcast %cst_82 : f32 to vector<40x128xf32>
    %266 = arith.maximumf %264, %265 : vector<40x128xf32>
    %267 = math.absf %264 : vector<40x128xf32>
    %cst_83 = arith.constant 0.000000e+00 : f32
    %268 = vector.broadcast %cst_83 : f32 to vector<40x128xf32>
    %269 = arith.subf %268, %267 : vector<40x128xf32>
    %270 = math.exp %269 : vector<40x128xf32>
    %271 = math.log1p %270 : vector<40x128xf32>
    %272 = arith.addf %266, %271 : vector<40x128xf32>
    %cst_84 = arith.constant dense<0.000000e+00> : vector<40x128xf32>
    %273 = tpu.matmul %4, %272, %cst_84 {dimension_numbers = #tpu.dot_dimension_numbers<[1], [0], [0], [1], [0, 0, 1, 1], [], []>} : vector<40x40xf32>, vector<40x128xf32>, vector<40x128xf32> -> vector<40x128xf32>
    %274 = arith.addf %273, %10 : vector<40x128xf32>
    %cst_85 = arith.constant 0.000000e+00 : f32
    %275 = vector.broadcast %cst_85 : f32 to vector<40x128xf32>
    %276 = arith.maximumf %274, %275 : vector<40x128xf32>
    %277 = math.absf %274 : vector<40x128xf32>
    %cst_86 = arith.constant 0.000000e+00 : f32
    %278 = vector.broadcast %cst_86 : f32 to vector<40x128xf32>
    %279 = arith.subf %278, %277 : vector<40x128xf32>
    %280 = math.exp %279 : vector<40x128xf32>
    %281 = math.log1p %280 : vector<40x128xf32>
    %282 = arith.addf %276, %281 : vector<40x128xf32>
    %cst_87 = arith.constant dense<0.000000e+00> : vector<40x128xf32>
    %283 = tpu.matmul %5, %282, %cst_87 {dimension_numbers = #tpu.dot_dimension_numbers<[1], [0], [0], [1], [0, 0, 1, 1], [], []>} : vector<40x40xf32>, vector<40x128xf32>, vector<40x128xf32> -> vector<40x128xf32>
    %284 = arith.addf %283, %13 : vector<40x128xf32>
    %cst_88 = arith.constant 0.000000e+00 : f32
    %285 = vector.broadcast %cst_88 : f32 to vector<40x128xf32>
    %286 = arith.maximumf %284, %285 : vector<40x128xf32>
    %287 = math.absf %284 : vector<40x128xf32>
    %cst_89 = arith.constant 0.000000e+00 : f32
    %288 = vector.broadcast %cst_89 : f32 to vector<40x128xf32>
    %289 = arith.subf %288, %287 : vector<40x128xf32>
    %290 = math.exp %289 : vector<40x128xf32>
    %291 = math.log1p %290 : vector<40x128xf32>
    %292 = arith.addf %286, %291 : vector<40x128xf32>
    %cst_90 = arith.constant dense<0.000000e+00> : vector<16x128xf32>
    %293 = tpu.matmul %6, %292, %cst_90 {dimension_numbers = #tpu.dot_dimension_numbers<[1], [0], [0], [1], [0, 0, 1, 1], [], []>} : vector<16x40xf32>, vector<40x128xf32>, vector<16x128xf32> -> vector<16x128xf32>
    %294 = arith.addf %293, %16 : vector<16x128xf32>
    %cst_91 = arith.constant 0.166666672 : f32
    %295 = vector.broadcast %cst_91 : f32 to vector<16x128xf32>
    %296 = arith.mulf %295, %294 : vector<16x128xf32>
    %297 = arith.addf %256, %296 : vector<16x128xf32>
    %cst_92 = arith.constant 5.000000e-01 : f32
    %298 = vector.broadcast %cst_92 : f32 to vector<16x128xf32>
    %299 = arith.mulf %298, %294 : vector<16x128xf32>
    %300 = arith.addf %177, %299 : vector<16x128xf32>
    %cst_93 = arith.constant dense<0.000000e+00> : vector<40x128xf32>
    %301 = tpu.matmul %3, %300, %cst_93 {dimension_numbers = #tpu.dot_dimension_numbers<[1], [0], [0], [1], [0, 0, 1, 1], [], []>} : vector<40x16xf32>, vector<16x128xf32>, vector<40x128xf32> -> vector<40x128xf32>
    %302 = vector.extract_strided_slice %7 {offsets = [0, 7], sizes = [40, 1], strides = [1, 1]} : vector<40x8xf32> to vector<40x1xf32>
    %303 = vector.shape_cast %302 : vector<40x1xf32> to vector<40x1xf32>
    %304 = vector.broadcast %303 : vector<40x1xf32> to vector<40x128xf32>
    %305 = arith.addf %301, %304 : vector<40x128xf32>
    %cst_94 = arith.constant 0.000000e+00 : f32
    %306 = vector.broadcast %cst_94 : f32 to vector<40x128xf32>
    %307 = arith.maximumf %305, %306 : vector<40x128xf32>
    %308 = math.absf %305 : vector<40x128xf32>
    %cst_95 = arith.constant 0.000000e+00 : f32
    %309 = vector.broadcast %cst_95 : f32 to vector<40x128xf32>
    %310 = arith.subf %309, %308 : vector<40x128xf32>
    %311 = math.exp %310 : vector<40x128xf32>
    %312 = math.log1p %311 : vector<40x128xf32>
    %313 = arith.addf %307, %312 : vector<40x128xf32>
    %cst_96 = arith.constant dense<0.000000e+00> : vector<40x128xf32>
    %314 = tpu.matmul %4, %313, %cst_96 {dimension_numbers = #tpu.dot_dimension_numbers<[1], [0], [0], [1], [0, 0, 1, 1], [], []>} : vector<40x40xf32>, vector<40x128xf32>, vector<40x128xf32> -> vector<40x128xf32>
    %315 = arith.addf %314, %10 : vector<40x128xf32>
    %cst_97 = arith.constant 0.000000e+00 : f32
    %316 = vector.broadcast %cst_97 : f32 to vector<40x128xf32>
    %317 = arith.maximumf %315, %316 : vector<40x128xf32>
    %318 = math.absf %315 : vector<40x128xf32>
    %cst_98 = arith.constant 0.000000e+00 : f32
    %319 = vector.broadcast %cst_98 : f32 to vector<40x128xf32>
    %320 = arith.subf %319, %318 : vector<40x128xf32>
    %321 = math.exp %320 : vector<40x128xf32>
    %322 = math.log1p %321 : vector<40x128xf32>
    %323 = arith.addf %317, %322 : vector<40x128xf32>
    %cst_99 = arith.constant dense<0.000000e+00> : vector<40x128xf32>
    %324 = tpu.matmul %5, %323, %cst_99 {dimension_numbers = #tpu.dot_dimension_numbers<[1], [0], [0], [1], [0, 0, 1, 1], [], []>} : vector<40x40xf32>, vector<40x128xf32>, vector<40x128xf32> -> vector<40x128xf32>
    %325 = arith.addf %324, %13 : vector<40x128xf32>
    %cst_100 = arith.constant 0.000000e+00 : f32
    %326 = vector.broadcast %cst_100 : f32 to vector<40x128xf32>
    %327 = arith.maximumf %325, %326 : vector<40x128xf32>
    %328 = math.absf %325 : vector<40x128xf32>
    %cst_101 = arith.constant 0.000000e+00 : f32
    %329 = vector.broadcast %cst_101 : f32 to vector<40x128xf32>
    %330 = arith.subf %329, %328 : vector<40x128xf32>
    %331 = math.exp %330 : vector<40x128xf32>
    %332 = math.log1p %331 : vector<40x128xf32>
    %333 = arith.addf %327, %332 : vector<40x128xf32>
    %cst_102 = arith.constant dense<0.000000e+00> : vector<16x128xf32>
    %334 = tpu.matmul %6, %333, %cst_102 {dimension_numbers = #tpu.dot_dimension_numbers<[1], [0], [0], [1], [0, 0, 1, 1], [], []>} : vector<16x40xf32>, vector<40x128xf32>, vector<16x128xf32> -> vector<16x128xf32>
    %335 = arith.addf %334, %16 : vector<16x128xf32>
    %cst_103 = arith.constant 0.0833333358 : f32
    %336 = vector.broadcast %cst_103 : f32 to vector<16x128xf32>
    %337 = arith.mulf %336, %335 : vector<16x128xf32>
    %338 = arith.addf %297, %337 : vector<16x128xf32>
    %c272 = arith.constant 272 : index
    %c0_104 = arith.constant 0 : index
    %339 = vector.load %arg2[%c272, %c0_104] : memref<560x40xf32, #tpu.memory_space<vmem>>, vector<40x16xf32>
    %c312 = arith.constant 312 : index
    %c0_105 = arith.constant 0 : index
    %340 = vector.load %arg2[%c312, %c0_105] : memref<560x40xf32, #tpu.memory_space<vmem>>, vector<40x40xf32>
    %c352 = arith.constant 352 : index
    %c0_106 = arith.constant 0 : index
    %341 = vector.load %arg2[%c352, %c0_106] : memref<560x40xf32, #tpu.memory_space<vmem>>, vector<40x40xf32>
    %c392 = arith.constant 392 : index
    %c0_107 = arith.constant 0 : index
    %342 = vector.load %arg2[%c392, %c0_107] : memref<560x40xf32, #tpu.memory_space<vmem>>, vector<16x40xf32>
    %c408 = arith.constant 408 : index
    %c0_108 = arith.constant 0 : index
    %343 = vector.load %arg2[%c408, %c0_108] : memref<560x40xf32, #tpu.memory_space<vmem>>, vector<40x8xf32>
    %c448 = arith.constant 448 : index
    %c0_109 = arith.constant 0 : index
    %344 = vector.load %arg2[%c448, %c0_109] : memref<560x40xf32, #tpu.memory_space<vmem>>, vector<40x1xf32>
    %345 = vector.shape_cast %344 : vector<40x1xf32> to vector<40x1xf32>
    %346 = vector.broadcast %345 : vector<40x1xf32> to vector<40x128xf32>
    %c488 = arith.constant 488 : index
    %c0_110 = arith.constant 0 : index
    %347 = vector.load %arg2[%c488, %c0_110] : memref<560x40xf32, #tpu.memory_space<vmem>>, vector<40x1xf32>
    %348 = vector.shape_cast %347 : vector<40x1xf32> to vector<40x1xf32>
    %349 = vector.broadcast %348 : vector<40x1xf32> to vector<40x128xf32>
    %c528 = arith.constant 528 : index
    %c0_111 = arith.constant 0 : index
    %350 = vector.load %arg2[%c528, %c0_111] : memref<560x40xf32, #tpu.memory_space<vmem>>, vector<16x1xf32>
    %351 = vector.shape_cast %350 : vector<16x1xf32> to vector<16x1xf32>
    %352 = vector.broadcast %351 : vector<16x1xf32> to vector<16x128xf32>
    %cst_112 = arith.constant dense<0.000000e+00> : vector<40x128xf32>
    %353 = tpu.matmul %339, %338, %cst_112 {dimension_numbers = #tpu.dot_dimension_numbers<[1], [0], [0], [1], [0, 0, 1, 1], [], []>} : vector<40x16xf32>, vector<16x128xf32>, vector<40x128xf32> -> vector<40x128xf32>
    %354 = vector.extract_strided_slice %343 {offsets = [0, 0], sizes = [40, 1], strides = [1, 1]} : vector<40x8xf32> to vector<40x1xf32>
    %355 = vector.shape_cast %354 : vector<40x1xf32> to vector<40x1xf32>
    %356 = vector.broadcast %355 : vector<40x1xf32> to vector<40x128xf32>
    %357 = arith.addf %353, %356 : vector<40x128xf32>
    %cst_113 = arith.constant 0.000000e+00 : f32
    %358 = vector.broadcast %cst_113 : f32 to vector<40x128xf32>
    %359 = arith.maximumf %357, %358 : vector<40x128xf32>
    %360 = math.absf %357 : vector<40x128xf32>
    %cst_114 = arith.constant 0.000000e+00 : f32
    %361 = vector.broadcast %cst_114 : f32 to vector<40x128xf32>
    %362 = arith.subf %361, %360 : vector<40x128xf32>
    %363 = math.exp %362 : vector<40x128xf32>
    %364 = math.log1p %363 : vector<40x128xf32>
    %365 = arith.addf %359, %364 : vector<40x128xf32>
    %cst_115 = arith.constant dense<0.000000e+00> : vector<40x128xf32>
    %366 = tpu.matmul %340, %365, %cst_115 {dimension_numbers = #tpu.dot_dimension_numbers<[1], [0], [0], [1], [0, 0, 1, 1], [], []>} : vector<40x40xf32>, vector<40x128xf32>, vector<40x128xf32> -> vector<40x128xf32>
    %367 = arith.addf %366, %346 : vector<40x128xf32>
    %cst_116 = arith.constant 0.000000e+00 : f32
    %368 = vector.broadcast %cst_116 : f32 to vector<40x128xf32>
    %369 = arith.maximumf %367, %368 : vector<40x128xf32>
    %370 = math.absf %367 : vector<40x128xf32>
    %cst_117 = arith.constant 0.000000e+00 : f32
    %371 = vector.broadcast %cst_117 : f32 to vector<40x128xf32>
    %372 = arith.subf %371, %370 : vector<40x128xf32>
    %373 = math.exp %372 : vector<40x128xf32>
    %374 = math.log1p %373 : vector<40x128xf32>
    %375 = arith.addf %369, %374 : vector<40x128xf32>
    %cst_118 = arith.constant dense<0.000000e+00> : vector<40x128xf32>
    %376 = tpu.matmul %341, %375, %cst_118 {dimension_numbers = #tpu.dot_dimension_numbers<[1], [0], [0], [1], [0, 0, 1, 1], [], []>} : vector<40x40xf32>, vector<40x128xf32>, vector<40x128xf32> -> vector<40x128xf32>
    %377 = arith.addf %376, %349 : vector<40x128xf32>
    %cst_119 = arith.constant 0.000000e+00 : f32
    %378 = vector.broadcast %cst_119 : f32 to vector<40x128xf32>
    %379 = arith.maximumf %377, %378 : vector<40x128xf32>
    %380 = math.absf %377 : vector<40x128xf32>
    %cst_120 = arith.constant 0.000000e+00 : f32
    %381 = vector.broadcast %cst_120 : f32 to vector<40x128xf32>
    %382 = arith.subf %381, %380 : vector<40x128xf32>
    %383 = math.exp %382 : vector<40x128xf32>
    %384 = math.log1p %383 : vector<40x128xf32>
    %385 = arith.addf %379, %384 : vector<40x128xf32>
    %cst_121 = arith.constant dense<0.000000e+00> : vector<16x128xf32>
    %386 = tpu.matmul %342, %385, %cst_121 {dimension_numbers = #tpu.dot_dimension_numbers<[1], [0], [0], [1], [0, 0, 1, 1], [], []>} : vector<16x40xf32>, vector<40x128xf32>, vector<16x128xf32> -> vector<16x128xf32>
    %387 = arith.addf %386, %352 : vector<16x128xf32>
    %cst_122 = arith.constant 0.0833333358 : f32
    %388 = vector.broadcast %cst_122 : f32 to vector<16x128xf32>
    %389 = arith.mulf %388, %387 : vector<16x128xf32>
    %390 = arith.addf %338, %389 : vector<16x128xf32>
    %cst_123 = arith.constant 2.500000e-01 : f32
    %391 = vector.broadcast %cst_123 : f32 to vector<16x128xf32>
    %392 = arith.mulf %391, %387 : vector<16x128xf32>
    %393 = arith.addf %338, %392 : vector<16x128xf32>
    %cst_124 = arith.constant dense<0.000000e+00> : vector<40x128xf32>
    %394 = tpu.matmul %339, %393, %cst_124 {dimension_numbers = #tpu.dot_dimension_numbers<[1], [0], [0], [1], [0, 0, 1, 1], [], []>} : vector<40x16xf32>, vector<16x128xf32>, vector<40x128xf32> -> vector<40x128xf32>
    %395 = vector.extract_strided_slice %343 {offsets = [0, 1], sizes = [40, 1], strides = [1, 1]} : vector<40x8xf32> to vector<40x1xf32>
    %396 = vector.shape_cast %395 : vector<40x1xf32> to vector<40x1xf32>
    %397 = vector.broadcast %396 : vector<40x1xf32> to vector<40x128xf32>
    %398 = arith.addf %394, %397 : vector<40x128xf32>
    %cst_125 = arith.constant 0.000000e+00 : f32
    %399 = vector.broadcast %cst_125 : f32 to vector<40x128xf32>
    %400 = arith.maximumf %398, %399 : vector<40x128xf32>
    %401 = math.absf %398 : vector<40x128xf32>
    %cst_126 = arith.constant 0.000000e+00 : f32
    %402 = vector.broadcast %cst_126 : f32 to vector<40x128xf32>
    %403 = arith.subf %402, %401 : vector<40x128xf32>
    %404 = math.exp %403 : vector<40x128xf32>
    %405 = math.log1p %404 : vector<40x128xf32>
    %406 = arith.addf %400, %405 : vector<40x128xf32>
    %cst_127 = arith.constant dense<0.000000e+00> : vector<40x128xf32>
    %407 = tpu.matmul %340, %406, %cst_127 {dimension_numbers = #tpu.dot_dimension_numbers<[1], [0], [0], [1], [0, 0, 1, 1], [], []>} : vector<40x40xf32>, vector<40x128xf32>, vector<40x128xf32> -> vector<40x128xf32>
    %408 = arith.addf %407, %346 : vector<40x128xf32>
    %cst_128 = arith.constant 0.000000e+00 : f32
    %409 = vector.broadcast %cst_128 : f32 to vector<40x128xf32>
    %410 = arith.maximumf %408, %409 : vector<40x128xf32>
    %411 = math.absf %408 : vector<40x128xf32>
    %cst_129 = arith.constant 0.000000e+00 : f32
    %412 = vector.broadcast %cst_129 : f32 to vector<40x128xf32>
    %413 = arith.subf %412, %411 : vector<40x128xf32>
    %414 = math.exp %413 : vector<40x128xf32>
    %415 = math.log1p %414 : vector<40x128xf32>
    %416 = arith.addf %410, %415 : vector<40x128xf32>
    %cst_130 = arith.constant dense<0.000000e+00> : vector<40x128xf32>
    %417 = tpu.matmul %341, %416, %cst_130 {dimension_numbers = #tpu.dot_dimension_numbers<[1], [0], [0], [1], [0, 0, 1, 1], [], []>} : vector<40x40xf32>, vector<40x128xf32>, vector<40x128xf32> -> vector<40x128xf32>
    %418 = arith.addf %417, %349 : vector<40x128xf32>
    %cst_131 = arith.constant 0.000000e+00 : f32
    %419 = vector.broadcast %cst_131 : f32 to vector<40x128xf32>
    %420 = arith.maximumf %418, %419 : vector<40x128xf32>
    %421 = math.absf %418 : vector<40x128xf32>
    %cst_132 = arith.constant 0.000000e+00 : f32
    %422 = vector.broadcast %cst_132 : f32 to vector<40x128xf32>
    %423 = arith.subf %422, %421 : vector<40x128xf32>
    %424 = math.exp %423 : vector<40x128xf32>
    %425 = math.log1p %424 : vector<40x128xf32>
    %426 = arith.addf %420, %425 : vector<40x128xf32>
    %cst_133 = arith.constant dense<0.000000e+00> : vector<16x128xf32>
    %427 = tpu.matmul %342, %426, %cst_133 {dimension_numbers = #tpu.dot_dimension_numbers<[1], [0], [0], [1], [0, 0, 1, 1], [], []>} : vector<16x40xf32>, vector<40x128xf32>, vector<16x128xf32> -> vector<16x128xf32>
    %428 = arith.addf %427, %352 : vector<16x128xf32>
    %cst_134 = arith.constant 0.166666672 : f32
    %429 = vector.broadcast %cst_134 : f32 to vector<16x128xf32>
    %430 = arith.mulf %429, %428 : vector<16x128xf32>
    %431 = arith.addf %390, %430 : vector<16x128xf32>
    %cst_135 = arith.constant 2.500000e-01 : f32
    %432 = vector.broadcast %cst_135 : f32 to vector<16x128xf32>
    %433 = arith.mulf %432, %428 : vector<16x128xf32>
    %434 = arith.addf %338, %433 : vector<16x128xf32>
    %cst_136 = arith.constant dense<0.000000e+00> : vector<40x128xf32>
    %435 = tpu.matmul %339, %434, %cst_136 {dimension_numbers = #tpu.dot_dimension_numbers<[1], [0], [0], [1], [0, 0, 1, 1], [], []>} : vector<40x16xf32>, vector<16x128xf32>, vector<40x128xf32> -> vector<40x128xf32>
    %436 = vector.extract_strided_slice %343 {offsets = [0, 2], sizes = [40, 1], strides = [1, 1]} : vector<40x8xf32> to vector<40x1xf32>
    %437 = vector.shape_cast %436 : vector<40x1xf32> to vector<40x1xf32>
    %438 = vector.broadcast %437 : vector<40x1xf32> to vector<40x128xf32>
    %439 = arith.addf %435, %438 : vector<40x128xf32>
    %cst_137 = arith.constant 0.000000e+00 : f32
    %440 = vector.broadcast %cst_137 : f32 to vector<40x128xf32>
    %441 = arith.maximumf %439, %440 : vector<40x128xf32>
    %442 = math.absf %439 : vector<40x128xf32>
    %cst_138 = arith.constant 0.000000e+00 : f32
    %443 = vector.broadcast %cst_138 : f32 to vector<40x128xf32>
    %444 = arith.subf %443, %442 : vector<40x128xf32>
    %445 = math.exp %444 : vector<40x128xf32>
    %446 = math.log1p %445 : vector<40x128xf32>
    %447 = arith.addf %441, %446 : vector<40x128xf32>
    %cst_139 = arith.constant dense<0.000000e+00> : vector<40x128xf32>
    %448 = tpu.matmul %340, %447, %cst_139 {dimension_numbers = #tpu.dot_dimension_numbers<[1], [0], [0], [1], [0, 0, 1, 1], [], []>} : vector<40x40xf32>, vector<40x128xf32>, vector<40x128xf32> -> vector<40x128xf32>
    %449 = arith.addf %448, %346 : vector<40x128xf32>
    %cst_140 = arith.constant 0.000000e+00 : f32
    %450 = vector.broadcast %cst_140 : f32 to vector<40x128xf32>
    %451 = arith.maximumf %449, %450 : vector<40x128xf32>
    %452 = math.absf %449 : vector<40x128xf32>
    %cst_141 = arith.constant 0.000000e+00 : f32
    %453 = vector.broadcast %cst_141 : f32 to vector<40x128xf32>
    %454 = arith.subf %453, %452 : vector<40x128xf32>
    %455 = math.exp %454 : vector<40x128xf32>
    %456 = math.log1p %455 : vector<40x128xf32>
    %457 = arith.addf %451, %456 : vector<40x128xf32>
    %cst_142 = arith.constant dense<0.000000e+00> : vector<40x128xf32>
    %458 = tpu.matmul %341, %457, %cst_142 {dimension_numbers = #tpu.dot_dimension_numbers<[1], [0], [0], [1], [0, 0, 1, 1], [], []>} : vector<40x40xf32>, vector<40x128xf32>, vector<40x128xf32> -> vector<40x128xf32>
    %459 = arith.addf %458, %349 : vector<40x128xf32>
    %cst_143 = arith.constant 0.000000e+00 : f32
    %460 = vector.broadcast %cst_143 : f32 to vector<40x128xf32>
    %461 = arith.maximumf %459, %460 : vector<40x128xf32>
    %462 = math.absf %459 : vector<40x128xf32>
    %cst_144 = arith.constant 0.000000e+00 : f32
    %463 = vector.broadcast %cst_144 : f32 to vector<40x128xf32>
    %464 = arith.subf %463, %462 : vector<40x128xf32>
    %465 = math.exp %464 : vector<40x128xf32>
    %466 = math.log1p %465 : vector<40x128xf32>
    %467 = arith.addf %461, %466 : vector<40x128xf32>
    %cst_145 = arith.constant dense<0.000000e+00> : vector<16x128xf32>
    %468 = tpu.matmul %342, %467, %cst_145 {dimension_numbers = #tpu.dot_dimension_numbers<[1], [0], [0], [1], [0, 0, 1, 1], [], []>} : vector<16x40xf32>, vector<40x128xf32>, vector<16x128xf32> -> vector<16x128xf32>
    %469 = arith.addf %468, %352 : vector<16x128xf32>
    %cst_146 = arith.constant 0.166666672 : f32
    %470 = vector.broadcast %cst_146 : f32 to vector<16x128xf32>
    %471 = arith.mulf %470, %469 : vector<16x128xf32>
    %472 = arith.addf %431, %471 : vector<16x128xf32>
    %cst_147 = arith.constant 5.000000e-01 : f32
    %473 = vector.broadcast %cst_147 : f32 to vector<16x128xf32>
    %474 = arith.mulf %473, %469 : vector<16x128xf32>
    %475 = arith.addf %338, %474 : vector<16x128xf32>
    %cst_148 = arith.constant dense<0.000000e+00> : vector<40x128xf32>
    %476 = tpu.matmul %339, %475, %cst_148 {dimension_numbers = #tpu.dot_dimension_numbers<[1], [0], [0], [1], [0, 0, 1, 1], [], []>} : vector<40x16xf32>, vector<16x128xf32>, vector<40x128xf32> -> vector<40x128xf32>
    %477 = vector.extract_strided_slice %343 {offsets = [0, 3], sizes = [40, 1], strides = [1, 1]} : vector<40x8xf32> to vector<40x1xf32>
    %478 = vector.shape_cast %477 : vector<40x1xf32> to vector<40x1xf32>
    %479 = vector.broadcast %478 : vector<40x1xf32> to vector<40x128xf32>
    %480 = arith.addf %476, %479 : vector<40x128xf32>
    %cst_149 = arith.constant 0.000000e+00 : f32
    %481 = vector.broadcast %cst_149 : f32 to vector<40x128xf32>
    %482 = arith.maximumf %480, %481 : vector<40x128xf32>
    %483 = math.absf %480 : vector<40x128xf32>
    %cst_150 = arith.constant 0.000000e+00 : f32
    %484 = vector.broadcast %cst_150 : f32 to vector<40x128xf32>
    %485 = arith.subf %484, %483 : vector<40x128xf32>
    %486 = math.exp %485 : vector<40x128xf32>
    %487 = math.log1p %486 : vector<40x128xf32>
    %488 = arith.addf %482, %487 : vector<40x128xf32>
    %cst_151 = arith.constant dense<0.000000e+00> : vector<40x128xf32>
    %489 = tpu.matmul %340, %488, %cst_151 {dimension_numbers = #tpu.dot_dimension_numbers<[1], [0], [0], [1], [0, 0, 1, 1], [], []>} : vector<40x40xf32>, vector<40x128xf32>, vector<40x128xf32> -> vector<40x128xf32>
    %490 = arith.addf %489, %346 : vector<40x128xf32>
    %cst_152 = arith.constant 0.000000e+00 : f32
    %491 = vector.broadcast %cst_152 : f32 to vector<40x128xf32>
    %492 = arith.maximumf %490, %491 : vector<40x128xf32>
    %493 = math.absf %490 : vector<40x128xf32>
    %cst_153 = arith.constant 0.000000e+00 : f32
    %494 = vector.broadcast %cst_153 : f32 to vector<40x128xf32>
    %495 = arith.subf %494, %493 : vector<40x128xf32>
    %496 = math.exp %495 : vector<40x128xf32>
    %497 = math.log1p %496 : vector<40x128xf32>
    %498 = arith.addf %492, %497 : vector<40x128xf32>
    %cst_154 = arith.constant dense<0.000000e+00> : vector<40x128xf32>
    %499 = tpu.matmul %341, %498, %cst_154 {dimension_numbers = #tpu.dot_dimension_numbers<[1], [0], [0], [1], [0, 0, 1, 1], [], []>} : vector<40x40xf32>, vector<40x128xf32>, vector<40x128xf32> -> vector<40x128xf32>
    %500 = arith.addf %499, %349 : vector<40x128xf32>
    %cst_155 = arith.constant 0.000000e+00 : f32
    %501 = vector.broadcast %cst_155 : f32 to vector<40x128xf32>
    %502 = arith.maximumf %500, %501 : vector<40x128xf32>
    %503 = math.absf %500 : vector<40x128xf32>
    %cst_156 = arith.constant 0.000000e+00 : f32
    %504 = vector.broadcast %cst_156 : f32 to vector<40x128xf32>
    %505 = arith.subf %504, %503 : vector<40x128xf32>
    %506 = math.exp %505 : vector<40x128xf32>
    %507 = math.log1p %506 : vector<40x128xf32>
    %508 = arith.addf %502, %507 : vector<40x128xf32>
    %cst_157 = arith.constant dense<0.000000e+00> : vector<16x128xf32>
    %509 = tpu.matmul %342, %508, %cst_157 {dimension_numbers = #tpu.dot_dimension_numbers<[1], [0], [0], [1], [0, 0, 1, 1], [], []>} : vector<16x40xf32>, vector<40x128xf32>, vector<16x128xf32> -> vector<16x128xf32>
    %510 = arith.addf %509, %352 : vector<16x128xf32>
    %cst_158 = arith.constant 0.0833333358 : f32
    %511 = vector.broadcast %cst_158 : f32 to vector<16x128xf32>
    %512 = arith.mulf %511, %510 : vector<16x128xf32>
    %513 = arith.addf %472, %512 : vector<16x128xf32>
    %cst_159 = arith.constant dense<0.000000e+00> : vector<40x128xf32>
    %514 = tpu.matmul %339, %513, %cst_159 {dimension_numbers = #tpu.dot_dimension_numbers<[1], [0], [0], [1], [0, 0, 1, 1], [], []>} : vector<40x16xf32>, vector<16x128xf32>, vector<40x128xf32> -> vector<40x128xf32>
    %515 = vector.extract_strided_slice %343 {offsets = [0, 4], sizes = [40, 1], strides = [1, 1]} : vector<40x8xf32> to vector<40x1xf32>
    %516 = vector.shape_cast %515 : vector<40x1xf32> to vector<40x1xf32>
    %517 = vector.broadcast %516 : vector<40x1xf32> to vector<40x128xf32>
    %518 = arith.addf %514, %517 : vector<40x128xf32>
    %cst_160 = arith.constant 0.000000e+00 : f32
    %519 = vector.broadcast %cst_160 : f32 to vector<40x128xf32>
    %520 = arith.maximumf %518, %519 : vector<40x128xf32>
    %521 = math.absf %518 : vector<40x128xf32>
    %cst_161 = arith.constant 0.000000e+00 : f32
    %522 = vector.broadcast %cst_161 : f32 to vector<40x128xf32>
    %523 = arith.subf %522, %521 : vector<40x128xf32>
    %524 = math.exp %523 : vector<40x128xf32>
    %525 = math.log1p %524 : vector<40x128xf32>
    %526 = arith.addf %520, %525 : vector<40x128xf32>
    %cst_162 = arith.constant dense<0.000000e+00> : vector<40x128xf32>
    %527 = tpu.matmul %340, %526, %cst_162 {dimension_numbers = #tpu.dot_dimension_numbers<[1], [0], [0], [1], [0, 0, 1, 1], [], []>} : vector<40x40xf32>, vector<40x128xf32>, vector<40x128xf32> -> vector<40x128xf32>
    %528 = arith.addf %527, %346 : vector<40x128xf32>
    %cst_163 = arith.constant 0.000000e+00 : f32
    %529 = vector.broadcast %cst_163 : f32 to vector<40x128xf32>
    %530 = arith.maximumf %528, %529 : vector<40x128xf32>
    %531 = math.absf %528 : vector<40x128xf32>
    %cst_164 = arith.constant 0.000000e+00 : f32
    %532 = vector.broadcast %cst_164 : f32 to vector<40x128xf32>
    %533 = arith.subf %532, %531 : vector<40x128xf32>
    %534 = math.exp %533 : vector<40x128xf32>
    %535 = math.log1p %534 : vector<40x128xf32>
    %536 = arith.addf %530, %535 : vector<40x128xf32>
    %cst_165 = arith.constant dense<0.000000e+00> : vector<40x128xf32>
    %537 = tpu.matmul %341, %536, %cst_165 {dimension_numbers = #tpu.dot_dimension_numbers<[1], [0], [0], [1], [0, 0, 1, 1], [], []>} : vector<40x40xf32>, vector<40x128xf32>, vector<40x128xf32> -> vector<40x128xf32>
    %538 = arith.addf %537, %349 : vector<40x128xf32>
    %cst_166 = arith.constant 0.000000e+00 : f32
    %539 = vector.broadcast %cst_166 : f32 to vector<40x128xf32>
    %540 = arith.maximumf %538, %539 : vector<40x128xf32>
    %541 = math.absf %538 : vector<40x128xf32>
    %cst_167 = arith.constant 0.000000e+00 : f32
    %542 = vector.broadcast %cst_167 : f32 to vector<40x128xf32>
    %543 = arith.subf %542, %541 : vector<40x128xf32>
    %544 = math.exp %543 : vector<40x128xf32>
    %545 = math.log1p %544 : vector<40x128xf32>
    %546 = arith.addf %540, %545 : vector<40x128xf32>
    %cst_168 = arith.constant dense<0.000000e+00> : vector<16x128xf32>
    %547 = tpu.matmul %342, %546, %cst_168 {dimension_numbers = #tpu.dot_dimension_numbers<[1], [0], [0], [1], [0, 0, 1, 1], [], []>} : vector<16x40xf32>, vector<40x128xf32>, vector<16x128xf32> -> vector<16x128xf32>
    %548 = arith.addf %547, %352 : vector<16x128xf32>
    %cst_169 = arith.constant 0.0833333358 : f32
    %549 = vector.broadcast %cst_169 : f32 to vector<16x128xf32>
    %550 = arith.mulf %549, %548 : vector<16x128xf32>
    %551 = arith.addf %513, %550 : vector<16x128xf32>
    %cst_170 = arith.constant 2.500000e-01 : f32
    %552 = vector.broadcast %cst_170 : f32 to vector<16x128xf32>
    %553 = arith.mulf %552, %548 : vector<16x128xf32>
    %554 = arith.addf %513, %553 : vector<16x128xf32>
    %cst_171 = arith.constant dense<0.000000e+00> : vector<40x128xf32>
    %555 = tpu.matmul %339, %554, %cst_171 {dimension_numbers = #tpu.dot_dimension_numbers<[1], [0], [0], [1], [0, 0, 1, 1], [], []>} : vector<40x16xf32>, vector<16x128xf32>, vector<40x128xf32> -> vector<40x128xf32>
    %556 = vector.extract_strided_slice %343 {offsets = [0, 5], sizes = [40, 1], strides = [1, 1]} : vector<40x8xf32> to vector<40x1xf32>
    %557 = vector.shape_cast %556 : vector<40x1xf32> to vector<40x1xf32>
    %558 = vector.broadcast %557 : vector<40x1xf32> to vector<40x128xf32>
    %559 = arith.addf %555, %558 : vector<40x128xf32>
    %cst_172 = arith.constant 0.000000e+00 : f32
    %560 = vector.broadcast %cst_172 : f32 to vector<40x128xf32>
    %561 = arith.maximumf %559, %560 : vector<40x128xf32>
    %562 = math.absf %559 : vector<40x128xf32>
    %cst_173 = arith.constant 0.000000e+00 : f32
    %563 = vector.broadcast %cst_173 : f32 to vector<40x128xf32>
    %564 = arith.subf %563, %562 : vector<40x128xf32>
    %565 = math.exp %564 : vector<40x128xf32>
    %566 = math.log1p %565 : vector<40x128xf32>
    %567 = arith.addf %561, %566 : vector<40x128xf32>
    %cst_174 = arith.constant dense<0.000000e+00> : vector<40x128xf32>
    %568 = tpu.matmul %340, %567, %cst_174 {dimension_numbers = #tpu.dot_dimension_numbers<[1], [0], [0], [1], [0, 0, 1, 1], [], []>} : vector<40x40xf32>, vector<40x128xf32>, vector<40x128xf32> -> vector<40x128xf32>
    %569 = arith.addf %568, %346 : vector<40x128xf32>
    %cst_175 = arith.constant 0.000000e+00 : f32
    %570 = vector.broadcast %cst_175 : f32 to vector<40x128xf32>
    %571 = arith.maximumf %569, %570 : vector<40x128xf32>
    %572 = math.absf %569 : vector<40x128xf32>
    %cst_176 = arith.constant 0.000000e+00 : f32
    %573 = vector.broadcast %cst_176 : f32 to vector<40x128xf32>
    %574 = arith.subf %573, %572 : vector<40x128xf32>
    %575 = math.exp %574 : vector<40x128xf32>
    %576 = math.log1p %575 : vector<40x128xf32>
    %577 = arith.addf %571, %576 : vector<40x128xf32>
    %cst_177 = arith.constant dense<0.000000e+00> : vector<40x128xf32>
    %578 = tpu.matmul %341, %577, %cst_177 {dimension_numbers = #tpu.dot_dimension_numbers<[1], [0], [0], [1], [0, 0, 1, 1], [], []>} : vector<40x40xf32>, vector<40x128xf32>, vector<40x128xf32> -> vector<40x128xf32>
    %579 = arith.addf %578, %349 : vector<40x128xf32>
    %cst_178 = arith.constant 0.000000e+00 : f32
    %580 = vector.broadcast %cst_178 : f32 to vector<40x128xf32>
    %581 = arith.maximumf %579, %580 : vector<40x128xf32>
    %582 = math.absf %579 : vector<40x128xf32>
    %cst_179 = arith.constant 0.000000e+00 : f32
    %583 = vector.broadcast %cst_179 : f32 to vector<40x128xf32>
    %584 = arith.subf %583, %582 : vector<40x128xf32>
    %585 = math.exp %584 : vector<40x128xf32>
    %586 = math.log1p %585 : vector<40x128xf32>
    %587 = arith.addf %581, %586 : vector<40x128xf32>
    %cst_180 = arith.constant dense<0.000000e+00> : vector<16x128xf32>
    %588 = tpu.matmul %342, %587, %cst_180 {dimension_numbers = #tpu.dot_dimension_numbers<[1], [0], [0], [1], [0, 0, 1, 1], [], []>} : vector<16x40xf32>, vector<40x128xf32>, vector<16x128xf32> -> vector<16x128xf32>
    %589 = arith.addf %588, %352 : vector<16x128xf32>
    %cst_181 = arith.constant 0.166666672 : f32
    %590 = vector.broadcast %cst_181 : f32 to vector<16x128xf32>
    %591 = arith.mulf %590, %589 : vector<16x128xf32>
    %592 = arith.addf %551, %591 : vector<16x128xf32>
    %cst_182 = arith.constant 2.500000e-01 : f32
    %593 = vector.broadcast %cst_182 : f32 to vector<16x128xf32>
    %594 = arith.mulf %593, %589 : vector<16x128xf32>
    %595 = arith.addf %513, %594 : vector<16x128xf32>
    %cst_183 = arith.constant dense<0.000000e+00> : vector<40x128xf32>
    %596 = tpu.matmul %339, %595, %cst_183 {dimension_numbers = #tpu.dot_dimension_numbers<[1], [0], [0], [1], [0, 0, 1, 1], [], []>} : vector<40x16xf32>, vector<16x128xf32>, vector<40x128xf32> -> vector<40x128xf32>
    %597 = vector.extract_strided_slice %343 {offsets = [0, 6], sizes = [40, 1], strides = [1, 1]} : vector<40x8xf32> to vector<40x1xf32>
    %598 = vector.shape_cast %597 : vector<40x1xf32> to vector<40x1xf32>
    %599 = vector.broadcast %598 : vector<40x1xf32> to vector<40x128xf32>
    %600 = arith.addf %596, %599 : vector<40x128xf32>
    %cst_184 = arith.constant 0.000000e+00 : f32
    %601 = vector.broadcast %cst_184 : f32 to vector<40x128xf32>
    %602 = arith.maximumf %600, %601 : vector<40x128xf32>
    %603 = math.absf %600 : vector<40x128xf32>
    %cst_185 = arith.constant 0.000000e+00 : f32
    %604 = vector.broadcast %cst_185 : f32 to vector<40x128xf32>
    %605 = arith.subf %604, %603 : vector<40x128xf32>
    %606 = math.exp %605 : vector<40x128xf32>
    %607 = math.log1p %606 : vector<40x128xf32>
    %608 = arith.addf %602, %607 : vector<40x128xf32>
    %cst_186 = arith.constant dense<0.000000e+00> : vector<40x128xf32>
    %609 = tpu.matmul %340, %608, %cst_186 {dimension_numbers = #tpu.dot_dimension_numbers<[1], [0], [0], [1], [0, 0, 1, 1], [], []>} : vector<40x40xf32>, vector<40x128xf32>, vector<40x128xf32> -> vector<40x128xf32>
    %610 = arith.addf %609, %346 : vector<40x128xf32>
    %cst_187 = arith.constant 0.000000e+00 : f32
    %611 = vector.broadcast %cst_187 : f32 to vector<40x128xf32>
    %612 = arith.maximumf %610, %611 : vector<40x128xf32>
    %613 = math.absf %610 : vector<40x128xf32>
    %cst_188 = arith.constant 0.000000e+00 : f32
    %614 = vector.broadcast %cst_188 : f32 to vector<40x128xf32>
    %615 = arith.subf %614, %613 : vector<40x128xf32>
    %616 = math.exp %615 : vector<40x128xf32>
    %617 = math.log1p %616 : vector<40x128xf32>
    %618 = arith.addf %612, %617 : vector<40x128xf32>
    %cst_189 = arith.constant dense<0.000000e+00> : vector<40x128xf32>
    %619 = tpu.matmul %341, %618, %cst_189 {dimension_numbers = #tpu.dot_dimension_numbers<[1], [0], [0], [1], [0, 0, 1, 1], [], []>} : vector<40x40xf32>, vector<40x128xf32>, vector<40x128xf32> -> vector<40x128xf32>
    %620 = arith.addf %619, %349 : vector<40x128xf32>
    %cst_190 = arith.constant 0.000000e+00 : f32
    %621 = vector.broadcast %cst_190 : f32 to vector<40x128xf32>
    %622 = arith.maximumf %620, %621 : vector<40x128xf32>
    %623 = math.absf %620 : vector<40x128xf32>
    %cst_191 = arith.constant 0.000000e+00 : f32
    %624 = vector.broadcast %cst_191 : f32 to vector<40x128xf32>
    %625 = arith.subf %624, %623 : vector<40x128xf32>
    %626 = math.exp %625 : vector<40x128xf32>
    %627 = math.log1p %626 : vector<40x128xf32>
    %628 = arith.addf %622, %627 : vector<40x128xf32>
    %cst_192 = arith.constant dense<0.000000e+00> : vector<16x128xf32>
    %629 = tpu.matmul %342, %628, %cst_192 {dimension_numbers = #tpu.dot_dimension_numbers<[1], [0], [0], [1], [0, 0, 1, 1], [], []>} : vector<16x40xf32>, vector<40x128xf32>, vector<16x128xf32> -> vector<16x128xf32>
    %630 = arith.addf %629, %352 : vector<16x128xf32>
    %cst_193 = arith.constant 0.166666672 : f32
    %631 = vector.broadcast %cst_193 : f32 to vector<16x128xf32>
    %632 = arith.mulf %631, %630 : vector<16x128xf32>
    %633 = arith.addf %592, %632 : vector<16x128xf32>
    %cst_194 = arith.constant 5.000000e-01 : f32
    %634 = vector.broadcast %cst_194 : f32 to vector<16x128xf32>
    %635 = arith.mulf %634, %630 : vector<16x128xf32>
    %636 = arith.addf %513, %635 : vector<16x128xf32>
    %cst_195 = arith.constant dense<0.000000e+00> : vector<40x128xf32>
    %637 = tpu.matmul %339, %636, %cst_195 {dimension_numbers = #tpu.dot_dimension_numbers<[1], [0], [0], [1], [0, 0, 1, 1], [], []>} : vector<40x16xf32>, vector<16x128xf32>, vector<40x128xf32> -> vector<40x128xf32>
    %638 = vector.extract_strided_slice %343 {offsets = [0, 7], sizes = [40, 1], strides = [1, 1]} : vector<40x8xf32> to vector<40x1xf32>
    %639 = vector.shape_cast %638 : vector<40x1xf32> to vector<40x1xf32>
    %640 = vector.broadcast %639 : vector<40x1xf32> to vector<40x128xf32>
    %641 = arith.addf %637, %640 : vector<40x128xf32>
    %cst_196 = arith.constant 0.000000e+00 : f32
    %642 = vector.broadcast %cst_196 : f32 to vector<40x128xf32>
    %643 = arith.maximumf %641, %642 : vector<40x128xf32>
    %644 = math.absf %641 : vector<40x128xf32>
    %cst_197 = arith.constant 0.000000e+00 : f32
    %645 = vector.broadcast %cst_197 : f32 to vector<40x128xf32>
    %646 = arith.subf %645, %644 : vector<40x128xf32>
    %647 = math.exp %646 : vector<40x128xf32>
    %648 = math.log1p %647 : vector<40x128xf32>
    %649 = arith.addf %643, %648 : vector<40x128xf32>
    %cst_198 = arith.constant dense<0.000000e+00> : vector<40x128xf32>
    %650 = tpu.matmul %340, %649, %cst_198 {dimension_numbers = #tpu.dot_dimension_numbers<[1], [0], [0], [1], [0, 0, 1, 1], [], []>} : vector<40x40xf32>, vector<40x128xf32>, vector<40x128xf32> -> vector<40x128xf32>
    %651 = arith.addf %650, %346 : vector<40x128xf32>
    %cst_199 = arith.constant 0.000000e+00 : f32
    %652 = vector.broadcast %cst_199 : f32 to vector<40x128xf32>
    %653 = arith.maximumf %651, %652 : vector<40x128xf32>
    %654 = math.absf %651 : vector<40x128xf32>
    %cst_200 = arith.constant 0.000000e+00 : f32
    %655 = vector.broadcast %cst_200 : f32 to vector<40x128xf32>
    %656 = arith.subf %655, %654 : vector<40x128xf32>
    %657 = math.exp %656 : vector<40x128xf32>
    %658 = math.log1p %657 : vector<40x128xf32>
    %659 = arith.addf %653, %658 : vector<40x128xf32>
    %cst_201 = arith.constant dense<0.000000e+00> : vector<40x128xf32>
    %660 = tpu.matmul %341, %659, %cst_201 {dimension_numbers = #tpu.dot_dimension_numbers<[1], [0], [0], [1], [0, 0, 1, 1], [], []>} : vector<40x40xf32>, vector<40x128xf32>, vector<40x128xf32> -> vector<40x128xf32>
    %661 = arith.addf %660, %349 : vector<40x128xf32>
    %cst_202 = arith.constant 0.000000e+00 : f32
    %662 = vector.broadcast %cst_202 : f32 to vector<40x128xf32>
    %663 = arith.maximumf %661, %662 : vector<40x128xf32>
    %664 = math.absf %661 : vector<40x128xf32>
    %cst_203 = arith.constant 0.000000e+00 : f32
    %665 = vector.broadcast %cst_203 : f32 to vector<40x128xf32>
    %666 = arith.subf %665, %664 : vector<40x128xf32>
    %667 = math.exp %666 : vector<40x128xf32>
    %668 = math.log1p %667 : vector<40x128xf32>
    %669 = arith.addf %663, %668 : vector<40x128xf32>
    %cst_204 = arith.constant dense<0.000000e+00> : vector<16x128xf32>
    %670 = tpu.matmul %342, %669, %cst_204 {dimension_numbers = #tpu.dot_dimension_numbers<[1], [0], [0], [1], [0, 0, 1, 1], [], []>} : vector<16x40xf32>, vector<40x128xf32>, vector<16x128xf32> -> vector<16x128xf32>
    %671 = arith.addf %670, %352 : vector<16x128xf32>
    %cst_205 = arith.constant 0.0833333358 : f32
    %672 = vector.broadcast %cst_205 : f32 to vector<16x128xf32>
    %673 = arith.mulf %672, %671 : vector<16x128xf32>
    %674 = arith.addf %633, %673 : vector<16x128xf32>
    %c544 = arith.constant 544 : index
    %c0_206 = arith.constant 0 : index
    %675 = vector.load %arg2[%c544, %c0_206] : memref<560x40xf32, #tpu.memory_space<vmem>>, vector<16x1xf32>
    %676 = vector.shape_cast %675 : vector<16x1xf32> to vector<16x1xf32>
    %677 = vector.broadcast %676 : vector<16x1xf32> to vector<16x128xf32>
    %678 = arith.mulf %674, %677 : vector<16x128xf32>
    %c0_207 = arith.constant 0 : index
    %c0_208 = arith.constant 0 : index
    %679 = vector.load %arg3[%c0_207, %c0_208] : memref<16x128xf32, #tpu.memory_space<vmem>>, vector<16x128xf32>
    tpu.vector_store %arg3[%c0_207, %c0_208], %678 {strides = array<i32>} : memref<16x128xf32, #tpu.memory_space<vmem>>, vector<16x128xf32>,
    return
  }
  func.func @transform_0(%arg0: i32) -> (i32, i32) {
    %c0_i32 = arith.constant 0 : i32
    %c0_i32_0 = arith.constant 0 : i32
    return %c0_i32, %arg0 : i32, i32
  }
  func.func @transform_1(%arg0: i32) -> (i32, i32) {
    %c0_i32 = arith.constant 0 : i32
    %c0_i32_0 = arith.constant 0 : i32
    %c0_i32_1 = arith.constant 0 : i32
    return %c0_i32, %c0_i32_0 : i32, i32
  }
  func.func @transform_2(%arg0: i32) -> (i32, i32) {
    %c0_i32 = arith.constant 0 : i32
    %c0_i32_0 = arith.constant 0 : i32
    return %c0_i32, %arg0 : i32, i32
  }
}

</mosaic_0001>

<bundles_post_ra>
// kernel: augmented_cnf_forward.1
= control target key start
LH: loop header
LB: loop body
LE: loop exit
PB: predicated region body
PF: predicated region fallthrough
CT: control target
= control target key end

     0   :  { %vm131_vm0 = vcmask 130048   ;;  %v16526_v0 = vmov 0.0   ;;  %vm13134_vm1 = vmmov 0   ;;  %v16524_v3 = vmov 0   ;;  %s16521_s0 = inlined_call_operand.vmem [shape: f32[8,128], index: 0, kind: input, shape index: {}]   ;;  %s16522_s1 = inlined_call_operand.vmem [shape: f32[560,40], index: 1, kind: input, shape index: {}]   ;;  %s16523_s2 = inlined_call_operand.vmem [shape: f32[16,128], index: 2, kind: output, shape index: {}]  }
   0x1   :  { %10701 = vmatprep.subr.mxu0 %v16526_v0  ;;  %v13162_v1 = vld [vmem:[%s16521_s0] sm:$0xff]  ;;  %10703 = vmatprep.mubr.msk.f32.mxu0 %vm13134_vm1, %v16526_v0  ;;  %v13178_v4 = vld [vmem:[%s16522_s1 + $0xa8] sm:$0xff]  ;;  %v13184_v5 = vld [vmem:[%s16522_s1 + $0x98] sm:$0xff]  ;;  %vm312_vm7 = vcmask 326656  }
   0x2   :  { %v13169_v2 = vld [vmem:[%s16522_s1] sm:$0xff]  ;;  %10702 = vmatpush3.msra.mxu0 %v13162_v1  ;;  %12021 = vset.pattern.permute.xlu0 %v16524_v3  ;;  %v13191_v6 = vld [vmem:[%s16522_s1 + $0x8] sm:$0xff]  ;;  %v13204_v8 = vld [vmem:[%s16522_s1 + $0x90] sm:$0xff] }
   0x3   :  { %10704 = vmatmul.mubr.msk.f32.vlgmr.msra.gmra.mxu0 %vm131_vm0, %v13169_v2  ;;  %12022 = vset.pattern.permute.xlu1 %v16524_v3  ;;  %v13197_v7 = vld [vmem:[%s16522_s1 + $0xa0] sm:$0xff]  ;;  %v13216_v9 = vld [vmem:[%s16522_s1 + $0x10] sm:$0xff]  ;;  %v13222_v10 = vld [vmem:[%s16522_s1 + $0x88] sm:$0xff] }
   0x4   :  { %10706 = vmatprep.mubr.msk.f32.mxu0 %vm13134_vm1, %v16526_v0  ;;  %128 = vperm.xlu0 %12021, %v13178_v4   ;;  %v38_v11 = vld [vmem:[%s16522_s1 + $0xd0] sm:$0xff]  ;;  %v13235_v12 = vld [vmem:[%s16522_s1 + $0x18] sm:$0xff]  ;;  %v37_v13 = vld [vmem:[%s16522_s1 + $0xc8] sm:$0xff] }
   0x5   :  { %118 = vperm.xlu1 %12022, %v13184_v5   ;;  %10718 = vmatprep.subr.mxu1 %v16526_v0  ;;  %v36_v14 = vld [vmem:[%s16522_s1 + $0xc0] sm:$0xff]  ;;  %v35_v16 = vld [vmem:[%s16522_s1 + $0xb8] sm:$0xff]  ;;  %v34_v17 = vld [vmem:[%s16522_s1 + $0xb0] sm:$0xff] }
   0x6   :  { %10728 = vmatprep.mubr.msk.f32.mxu1 %vm13134_vm1, %v16526_v0  ;;  %10743 = vmatprep.subr.mxu0 %v16526_v0  ;;  %v13251_v15 = vld [vmem:[%s16522_s1 + $0x20] sm:$0xff]  ;;  %v68_v18 = vld [vmem:[%s16522_s1 + $0xf8] sm:$0xff]  ;;  %v67_v19 = vld [vmem:[%s16522_s1 + $0xf0] sm:$0xff] }
   0x7   :  { %10707 = vmatmul.mubr.msk.f32.gmra.mxu0 %vm131_vm0, %v13191_v6  ;;  %v66_v20 = vld [vmem:[%s16522_s1 + $0xe8] sm:$0xff]  ;;  %v65_v21 = vld [vmem:[%s16522_s1 + $0xe0] sm:$0xff]  ;;  %v64_v22 = vld [vmem:[%s16522_s1 + $0xd8] sm:$0xff] }
   0x8   :  { %10709 = vmatprep.mubr.msk.f32.mxu0 %vm13134_vm1, %v16526_v0  ;;  %123 = vperm.xlu0 %12021, %v13197_v7   ;;  %v94_v23 = vld [vmem:[%s16522_s1 + $0x100] sm:$0xff]  ;;  %v95_v24 = vld [vmem:[%s16522_s1 + $0x108] sm:$0xff] }
   0x9   :  { %113 = vperm.xlu1 %12022, %v13204_v8  }
   0xb   :  { %10710 = vmatmul.mubr.msk.f32.gmra.mxu0 %vm131_vm0, %v13216_v9 }
   0xc   :  { %10712 = vmatprep.mubr.msk.f32.mxu0 %vm13134_vm1, %v16526_v0  ;;  %108 = vperm.xlu0 %12021, %v13222_v10  }
   0xd   :  { %61 = vperm.xlu1 %12022, %v38_v11  }
   0xf   :  { %10713 = vmatmul.mubr.msk.f32.gmra.mxu0 %vm131_vm0, %v13235_v12 }
  0x10   :  { %10715 = vmatprep.mubr.msk.f32.mxu0 %vm13134_vm1, %v16526_v0  ;;  %56 = vperm.xlu0 %12021, %v37_v13  }
  0x11   :  { %51 = vperm.xlu1 %12022, %v36_v14  }
  0x13   :  { %10716 = vmatmul.mubr.msk.f32.gmra.mxu0 %vm131_vm0, %v13251_v15 }
  0x14   :  { %46 = vperm.xlu0 %12021, %v35_v16   ;;  %10753 = vmatprep.mubr.msk.f32.mxu0 %vm13134_vm1, %v16526_v0 }
  0x15   :  { %41 = vperm.xlu1 %12022, %v34_v17  }
  0x18   :  { %91 = vperm.xlu0 %12021, %v68_v18  }
  0x19   :  { %86 = vperm.xlu1 %12022, %v67_v19  }
  0x1c   :  { %81 = vperm.xlu0 %12021, %v66_v20  }
  0x1d   :  { %76 = vperm.xlu1 %12022, %v65_v21  }
  0x20   :  { %71 = vperm.xlu0 %12021, %v64_v22  }
  0x21   :  { %98 = vperm.xlu1 %12022, %v94_v23  }
  0x24   :  { %103 = vperm.xlu0 %12021, %v95_v24  }
  0x7f   :  { %v129_v25 = vpop.permute.xlu0 %128 }
  0x80   :  { %v119_v26 = vpop.permute.xlu1 %118 }
  0x83   :  { %v124_v27 = vpop.permute.xlu0 %123 }
  0x84   :  { %v114_v30 = vpop.permute.xlu1 %113 }
  0x87   :  { %v109_v33 = vpop.permute.xlu0 %108 }
  0xc3   :  { %v213_v28 = vpop.f32.mrf.mxu0 }
  0xc4   :  { %v13286_v35 = vadd.f32 %v213_v28, %v109_v33 }
  0xc5   :  { %v10705_v29 = vpop.f32.mrf.mxu0 }
  0xc6   :  { %v242_v40 = vand.u32 2147483647, %v13286_v35 }
  0xc7   :  { %v218_v31 = vpop.f32.mrf.mxu0 }
  0xc8   :  { %v13284_v32 = vadd.f32 %v218_v31, %v114_v30  ;;  %v247_v47 = vsub.f32 0.0, %v242_v40 }
  0xc9   :  { %v10708_v34 = vpop.f32.mrf.mxu0 }
  0xca   :  { %v243_v36 = vand.u32 2147483647, %v13284_v32  ;;  %v252_v55 = vmul.f32 1.442695, %v247_v47 }
  0xcb   :  { %v223_v37 = vpop.f32.mrf.mxu0 }
  0xcc   :  { %v13289_v38 = vadd.f32 %v223_v37, %v119_v26  ;;  %v248_v42 = vsub.f32 0.0, %v243_v36 }
  0xcd   :  { %v10711_v39 = vpop.f32.mrf.mxu0 }
  0xce   :  { %v244_v41 = vand.u32 2147483647, %v13289_v38  ;;  %v254_v50 = vmul.f32 1.442695, %v248_v42 }
  0xcf   :  { %v228_v43 = vpop.f32.mrf.mxu0 }
  0xd0   :  { %v249_v44 = vsub.f32 0.0, %v244_v41  ;;  %v13293_v45 = vadd.f32 %v228_v43, %v124_v27 }
  0xd1   :  { %v10714_v46 = vpop.f32.mrf.mxu0 }
  0xd2   :  { %v256_v48 = vmul.f32 1.442695, %v249_v44  ;;  %v245_v49 = vand.u32 2147483647, %v13293_v45 }
  0xd3   :  { %v233_v51 = vpop.f32.mrf.mxu0 }
  0xd4   :  { %v250_v52 = vsub.f32 0.0, %v245_v49  ;;  %v234_v53 = vadd.f32 %v233_v51, %v129_v25  ;;  %12055 = vpow2.f32 %v256_v48 }
  0xd5   :  { %v10717_v54 = vpop.f32.mrf.mxu0  ;;  %12057 = vpow2.f32 %v254_v50 }
  0xd6   :  { %v258_v56 = vmul.f32 1.442695, %v250_v52  ;;  %v246_v57 = vand.u32 2147483647, %v234_v53  ;;  %v241_v36 = vmax.f32 %v234_v53, 0.0  ;;  %v240_v52 = vmax.f32 %v13293_v45, 0.0 }
  0xd8   :  { %12059 = vpow2.f32 %v258_v56  ;;  %v251_v58 = vsub.f32 0.0, %v246_v57 }
  0xd9   :  { %12061 = vpow2.f32 %v252_v55 }
  0xda   :  { %v260_v59 = vmul.f32 1.442695, %v251_v58  ;;  %v239_v58 = vmax.f32 %v13289_v38, 0.0 }
  0xdc   :  { %12063 = vpow2.f32 %v260_v59 }
  0xe1   :  { %v12056_v60 = vpop.eup %12055 }
  0xe2   :  { %v12058_v61 = vpop.eup %12057  ;;  %v280_v11 = vadd.f32 1.0, %v12056_v60  ;;  %v283_v21 = vmul.f32 -0.5, %v12056_v60  ;;  %v286_v37 = vand.u32 2147483647, %v12056_v60 }
  0xe3   :  { %v271_v14 = vadd.f32 1.0, %v12058_v61  ;;  %v274_v23 = vmul.f32 -0.5, %v12058_v61  ;;  %v277_v47 = vand.u32 2147483647, %v12058_v61 }
  0xe4   :  { %v284_v33 = vadd.f32 1.0, %v283_v21  ;;  %vm287_vm4 = vcmp.lt.f32.partialorder %v286_v37, 0.0004427343 }
  0xe5   :  { %v12060_v62 = vpop.eup %12059  ;;  %v275_v39 = vadd.f32 1.0, %v274_v23  ;;  %vm278_vm5 = vcmp.lt.f32.partialorder %v277_v47, 0.0004427343 }
  0xe6   :  { %v289_v63 = vadd.f32 1.0, %v12060_v62  ;;  %v12062_v13 = vpop.eup %12061  ;;  %v292_v20 = vmul.f32 -0.5, %v12060_v62  ;;  %v295_v29 = vand.u32 2147483647, %v12060_v62  ;;  %v285_v50 = vmul.f32 %v12056_v60, %v284_v33 }
  0xe7   :  { %v262_v18 = vadd.f32 1.0, %v12062_v13  ;;  %v265_v24 = vmul.f32 -0.5, %v12062_v13  ;;  %v268_v53 = vand.u32 2147483647, %v12062_v13  ;;  %v276_v56 = vmul.f32 %v12058_v61, %v275_v39 }
  0xe8   :  { %12065 = vlog2.f32 %v289_v63  ;;  %v293_v26 = vadd.f32 1.0, %v292_v20  ;;  %vm296_vm3 = vcmp.lt.f32.partialorder %v295_v29, 0.0004427343  ;;  %v238_v60 = vmax.f32 %v13284_v32, 0.0  ;;  %v13316_v32 = vld [vmem:[%s16522_s1 + $0x30] sm:$0xff] }
  0xe9   :  { %v12064_v16 = vpop.eup %12063  ;;  %12067 = vlog2.f32 %v280_v11  ;;  %v266_v40 = vadd.f32 1.0, %v265_v24  ;;  %vm269_vm6 = vcmp.lt.f32.partialorder %v268_v53, 0.0004427343  ;;  %v237_v61 = vmax.f32 %v13286_v35, 0.0  ;;  %v13325_v35 = vld [vmem:[%s16522_s1 + $0x38] sm:$0xff] }
  0xea   :  { %v298_v17 = vadd.f32 1.0, %v12064_v16  ;;  %12069 = vlog2.f32 %v271_v14  ;;  %v301_v19 = vmul.f32 -0.5, %v12064_v16  ;;  %v304_v28 = vand.u32 2147483647, %v12064_v16 }
  0xeb   :  { %v294_v43 = vmul.f32 %v12060_v62, %v293_v26  ;;  %v267_v63 = vmul.f32 %v12062_v13, %v266_v40  ;;  %v13306_v13 = vld [vmem:[%s16522_s1 + $0x28] sm:$0xff] }
  0xec   :  { %12071 = vlog2.f32 %v298_v17  ;;  %v302_v25 = vadd.f32 1.0, %v301_v19  ;;  %vm305_vm2 = vcmp.lt.f32.partialorder %v304_v28, 0.0004427343  ;;  %v13343_v17 = vld [vmem:[%s16522_s1 + $0x48] sm:$0xff]  ;;  %v13349_v19 = vpop.permute.xlu0 %56 }
  0xed   :  { %12073 = vlog2.f32 %v262_v18  ;;  %v13347_v18 = vpop.permute.xlu1 %61  ;;  %16619 = vst [vmem:[#allocation3_spill] sm:$0xff] %v13349_v19 }
  0xee   :  { %v303_v42 = vmul.f32 %v12064_v16, %v302_v25  ;;  %v13334_v16 = vld [vmem:[%s16522_s1 + $0x40] sm:$0xff]  ;;  %16618 = vst [vmem:[#allocation2_spill] sm:$0xff] %v13347_v18 }
  0xf0   :  { %v13353_v23 = vpop.permute.xlu0 %46 }
  0xf1   :  { %v13351_v21 = vpop.permute.xlu1 %51  ;;  %16621 = vst [vmem:[#allocation5_spill] sm:$0xff] %v13353_v23 }
  0xf2   :  { %16620 = vst [vmem:[#allocation4_spill] sm:$0xff] %v13351_v21 }
  0xf5   :  { %v12066_v22 = vpop.eup %12065 }
  0xf6   :  { %v12068_v27 = vpop.eup %12067  ;;  %v291_v31 = vmul.f32 0.6931472, %v12066_v22 }
  0xf7   :  { %v12070_v30 = vpop.eup %12069  ;;  %v282_v44 = vmul.f32 0.6931472, %v12068_v27  ;;  %v13358_v27 = vpop.permute.xlu1 %41 }
  0xf8   :  { %v297_v49 = vsel %vm296_vm3, %v294_v43, %v291_v31  ;;  %v273_v51 = vmul.f32 0.6931472, %v12070_v30  ;;  %16622 = vst [vmem:[#allocation6_spill] sm:$0xff] %v13358_v27 }
  0xf9   :  { %v12072_v34 = vpop.eup %12071  ;;  %v288_v55 = vsel %vm287_vm4, %v285_v50, %v282_v44  ;;  %v310_v59 = vadd.f32 %v297_v49, %v240_v52 }
  0xfa   :  { %v300_v41 = vmul.f32 0.6931472, %v12072_v34  ;;  %v12074_v46 = vpop.eup %12073  ;;  %v279_v62 = vsel %vm278_vm5, %v276_v56, %v273_v51  ;;  %v309_v11 = vadd.f32 %v288_v55, %v239_v58 }
  0xfb   :  { %v264_v57 = vmul.f32 0.6931472, %v12074_v46  ;;  %v308_v14 = vadd.f32 %v279_v62, %v238_v60 }
  0xfc   :  { %v306_v48 = vsel %vm305_vm2, %v303_v42, %v300_v41 }
  0xfd   :  { %v311_v54 = vadd.f32 %v306_v48, %v241_v36  ;;  %v270_v45 = vsel %vm269_vm6, %v267_v63, %v264_v57 }
  0xfe   :  { %v307_v38 = vadd.f32 %v270_v45, %v237_v61 }
  0xff   :  { %10719 = vmatpush3.msra.mxu1 %v311_v54 }
 0x100   :  { %10720 = vmatprep.subr.mxu1 %v16526_v0 }
 0x101   :  { %10721 = vmatpush3.msra.mxu1 %v310_v59 }
 0x102   :  { %10722 = vmatprep.subr.mxu1 %v16526_v0 }
 0x103   :  { %10723 = vmatpush3.msra.mxu1 %v309_v11 }
 0x104   :  { %10724 = vmatprep.subr.mxu1 %v16526_v0 }
 0x105   :  { %10725 = vmatpush3.msra.mxu1 %v308_v14 }
 0x106   :  { %10726 = vmatprep.subr.mxu1 %v16526_v0 }
 0x107   :  { %10727 = vmatpush3.msra.mxu1 %v307_v38 }
 0x108   :  { %10729 = vmatmul.mubr.msk.f32.vlgmr.msra.gmra.mxu1 %vm312_vm7, %v13306_v13 }
 0x109   :  { %10731 = vmatprep.mubr.msk.f32.mxu1 %vm13134_vm1, %v16526_v0 }
 0x10c   :  { %10732 = vmatmul.mubr.msk.f32.gmra.mxu1 %vm312_vm7, %v13316_v32 }
 0x10d   :  { %10734 = vmatprep.mubr.msk.f32.mxu1 %vm13134_vm1, %v16526_v0 }
 0x110   :  { %10735 = vmatmul.mubr.msk.f32.gmra.mxu1 %vm312_vm7, %v13325_v35 }
 0x111   :  { %10737 = vmatprep.mubr.msk.f32.mxu1 %vm13134_vm1, %v16526_v0 }
 0x114   :  { %10738 = vmatmul.mubr.msk.f32.gmra.mxu1 %vm312_vm7, %v13334_v16 }
 0x115   :  { %10740 = vmatprep.mubr.msk.f32.mxu1 %vm13134_vm1, %v16526_v0 }
 0x118   :  { %10741 = vmatmul.mubr.msk.f32.gmra.mxu1 %vm312_vm7, %v13343_v17 }
 0x1c8   :  { %v394_v20 = vpop.f32.mrf.mxu1 }
 0x1c9   :  { %v13362_v29 = vadd.f32 %v394_v20, %v13358_v27 }
 0x1ca   :  { %v10730_v22 = vpop.f32.mrf.mxu1 }
 0x1cb   :  { %v423_v37 = vand.u32 2147483647, %v13362_v29 }
 0x1cc   :  { %v399_v24 = vpop.f32.mrf.mxu1 }
 0x1cd   :  { %v13356_v25 = vadd.f32 %v399_v24, %v13353_v23  ;;  %v428_v46 = vsub.f32 0.0, %v423_v37 }
 0x1ce   :  { %v10733_v26 = vpop.f32.mrf.mxu1 }
 0x1cf   :  { %v424_v28 = vand.u32 2147483647, %v13356_v25  ;;  %v433_v53 = vmul.f32 1.442695, %v428_v46 }
 0x1d0   :  { %v404_v30 = vpop.f32.mrf.mxu1 }
 0x1d1   :  { %v13365_v31 = vadd.f32 %v404_v30, %v13351_v21  ;;  %v429_v34 = vsub.f32 0.0, %v424_v28 }
 0x1d2   :  { %v10736_v33 = vpop.f32.mrf.mxu1 }
 0x1d3   :  { %v425_v36 = vand.u32 2147483647, %v13365_v31  ;;  %v435_v43 = vmul.f32 1.442695, %v429_v34 }
 0x1d4   :  { %v409_v39 = vpop.f32.mrf.mxu1 }
 0x1d5   :  { %v430_v40 = vsub.f32 0.0, %v425_v36  ;;  %v13370_v41 = vadd.f32 %v409_v39, %v13349_v19  ;;  %12075 = vpow2.f32 %v435_v43 }
 0x1d6   :  { %v10739_v42 = vpop.f32.mrf.mxu1 }
 0x1d7   :  { %v426_v44 = vand.u32 2147483647, %v13370_v41  ;;  %v437_v47 = vmul.f32 1.442695, %v430_v40 }
 0x1d8   :  { %v414_v48 = vpop.f32.mrf.mxu1 }
 0x1d9   :  { %v431_v49 = vsub.f32 0.0, %v426_v44  ;;  %v415_v50 = vadd.f32 %v414_v48, %v13347_v18  ;;  %12077 = vpow2.f32 %v437_v47 }
 0x1da   :  { %v10742_v51 = vpop.f32.mrf.mxu1 }
 0x1db   :  { %v439_v52 = vmul.f32 1.442695, %v431_v49  ;;  %v427_v54 = vand.u32 2147483647, %v415_v50  ;;  %v422_v48 = vmax.f32 %v415_v50, 0.0 }
 0x1dd   :  { %12079 = vpow2.f32 %v439_v52  ;;  %v432_v55 = vsub.f32 0.0, %v427_v54 }
 0x1de   :  { %12081 = vpow2.f32 %v433_v53 }
 0x1df   :  { %v441_v56 = vmul.f32 1.442695, %v432_v55 }
 0x1e1   :  { %12083 = vpow2.f32 %v441_v56 }
 0x1e2   :  { %v12076_v57 = vpop.eup %12075 }
 0x1e3   :  { %v452_v11 = vadd.f32 1.0, %v12076_v57  ;;  %v455_v28 = vmul.f32 -0.5, %v12076_v57  ;;  %v458_v55 = vand.u32 2147483647, %v12076_v57 }
 0x1e5   :  { %v456_v46 = vadd.f32 1.0, %v455_v28  ;;  %vm459_vm11 = vcmp.lt.f32.partialorder %v458_v55, 0.0004427343 }
 0x1e6   :  { %v12078_v58 = vpop.eup %12077 }
 0x1e7   :  { %v461_v63 = vadd.f32 1.0, %v12078_v58  ;;  %v464_v22 = vmul.f32 -0.5, %v12078_v58  ;;  %v467_v47 = vand.u32 2147483647, %v12078_v58 }
 0x1e9   :  { %v465_v40 = vadd.f32 1.0, %v464_v22  ;;  %vm468_vm10 = vcmp.lt.f32.partialorder %v467_v47, 0.0004427343  ;;  %v457_v22 = vmul.f32 %v12076_v57, %v456_v46 }
 0x1ea   :  { %v12080_v59 = vpop.eup %12079 }
 0x1eb   :  { %v470_v62 = vadd.f32 1.0, %v12080_v59  ;;  %v12082_v60 = vpop.eup %12081  ;;  %v473_v38 = vmul.f32 -0.5, %v12080_v59  ;;  %v476_v36 = vand.u32 2147483647, %v12080_v59 }
 0x1ec   :  { %v443_v61 = vadd.f32 1.0, %v12082_v60  ;;  %v446_v26 = vmul.f32 -0.5, %v12082_v60 }
 0x1ed   :  { %12085 = vlog2.f32 %v470_v62  ;;  %v474_v30 = vadd.f32 1.0, %v473_v38  ;;  %vm477_vm8 = vcmp.lt.f32.partialorder %v476_v36, 0.0004427343  ;;  %v466_v62 = vmul.f32 %v12078_v58, %v465_v40  ;;  %v13431_v36 = vld [vmem:[%s16522_s1 + $0x78] sm:$0xff] }
 0x1ee   :  { %v12084_v45 = vpop.eup %12083  ;;  %12087 = vlog2.f32 %v461_v63  ;;  %v447_v44 = vadd.f32 1.0, %v446_v26  ;;  %v419_v58 = vmax.f32 %v13356_v25, 0.0  ;;  %v13395_v25 = vld [vmem:[%s16522_s1 + $0x58] sm:$0xff]  ;;  %10778 = vmatprep.mubr.msk.f32.mxu1 %vm312_vm7, %v13431_v36 }
 0x1ef   :  { %v479_v14 = vadd.f32 1.0, %v12084_v45  ;;  %12089 = vlog2.f32 %v452_v11  ;;  %v482_v20 = vmul.f32 -0.5, %v12084_v45  ;;  %v485_v37 = vand.u32 2147483647, %v12084_v45 }
 0x1f0   :  { %v475_v51 = vmul.f32 %v12080_v59, %v474_v30  ;;  %v420_v59 = vmax.f32 %v13365_v31, 0.0 }
 0x1f1   :  { %12091 = vlog2.f32 %v479_v14  ;;  %v483_v33 = vadd.f32 1.0, %v482_v20  ;;  %vm486_vm9 = vcmp.lt.f32.partialorder %v485_v37, 0.0004427343  ;;  %v421_v14 = vmax.f32 %v13370_v41, 0.0  ;;  %v13435_v37 = vpop.permute.xlu0 %91 }
 0x1f2   :  { %12093 = vlog2.f32 %v443_v61  ;;  %v449_v61 = vand.u32 2147483647, %v12082_v60  ;;  %v418_v41 = vmax.f32 %v13362_v29, 0.0  ;;  %v13404_v29 = vld [vmem:[%s16522_s1 + $0x60] sm:$0xff]  ;;  %16624 = vst [vmem:[#allocation8_spill] sm:$0xff] %v13435_v37 }
 0x1f3   :  { %v484_v54 = vmul.f32 %v12084_v45, %v483_v33  ;;  %v13413_v33 = vld [vmem:[%s16522_s1 + $0x68] sm:$0xff] }
 0x1f4   :  { %vm450_vm12 = vcmp.lt.f32.partialorder %v449_v61, 0.0004427343 }
 0x1f5   :  { %v13439_v40 = vpop.permute.xlu0 %81 }
 0x1f6   :  { %16626 = vst [vmem:[#allocation10_spill] sm:$0xff] %v13439_v40 }
 0x1fa   :  { %v12086_v24 = vpop.eup %12085 }
 0x1fb   :  { %v12088_v34 = vpop.eup %12087  ;;  %v472_v42 = vmul.f32 0.6931472, %v12086_v24  ;;  %v448_v24 = vmul.f32 %v12082_v60, %v447_v44  ;;  %v13384_v60 = vld [vmem:[%s16522_s1 + $0x50] sm:$0xff] }
 0x1fc   :  { %v12090_v39 = vpop.eup %12089  ;;  %v463_v49 = vmul.f32 0.6931472, %v12088_v34  ;;  %v13422_v34 = vld [vmem:[%s16522_s1 + $0x70] sm:$0xff] }
 0x1fd   :  { %v454_v56 = vmul.f32 0.6931472, %v12090_v39  ;;  %v478_v63 = vsel %vm477_vm8, %v475_v51, %v472_v42  ;;  %16623 = vst [vmem:[#allocation7_spill] sm:$0xff] %v13422_v34  ;;  %v13437_v39 = vpop.permute.xlu1 %86 }
 0x1fe   :  { %v12092_v43 = vpop.eup %12091  ;;  %v469_v50 = vsel %vm468_vm10, %v466_v62, %v463_v49  ;;  %v491_v45 = vadd.f32 %v478_v63, %v421_v14  ;;  %16625 = vst [vmem:[#allocation9_spill] sm:$0xff] %v13437_v39 }
 0x1ff   :  { %v481_v52 = vmul.f32 0.6931472, %v12092_v43  ;;  %v12094_v53 = vpop.eup %12093  ;;  %v460_v26 = vsel %vm459_vm11, %v457_v22, %v454_v56  ;;  %v490_v28 = vadd.f32 %v469_v50, %v420_v59 }
 0x200   :  { %v445_v20 = vmul.f32 0.6931472, %v12094_v53  ;;  %v489_v57 = vadd.f32 %v460_v26, %v419_v58 }
 0x201   :  { %v487_v11 = vsel %vm486_vm9, %v484_v54, %v481_v52  ;;  %v13441_v44 = vpop.permute.xlu1 %76 }
 0x202   :  { %v492_v38 = vadd.f32 %v487_v11, %v422_v48  ;;  %v451_v30 = vsel %vm450_vm12, %v448_v24, %v445_v20  ;;  %16627 = vst [vmem:[#allocation11_spill] sm:$0xff] %v13441_v44  ;;  %v13446_v48 = vpop.permute.xlu0 %71 }
 0x203   :  { %v488_v31 = vadd.f32 %v451_v30, %v418_v41  ;;  %16628 = vst [vmem:[#allocation12_spill] sm:$0xff] %v13446_v48 }
 0x204   :  { %10744 = vmatpush3.msra.mxu0 %v492_v38 }
 0x205   :  { %10745 = vmatprep.subr.mxu0 %v16526_v0 }
 0x206   :  { %10746 = vmatpush3.msra.mxu0 %v491_v45 }
 0x207   :  { %10747 = vmatprep.subr.mxu0 %v16526_v0 }
 0x208   :  { %10748 = vmatpush3.msra.mxu0 %v490_v28 }
 0x209   :  { %10749 = vmatprep.subr.mxu0 %v16526_v0 }
 0x20a   :  { %10750 = vmatpush3.msra.mxu0 %v489_v57 }
 0x20b   :  { %10751 = vmatprep.subr.mxu0 %v16526_v0 }
 0x20c   :  { %10752 = vmatpush3.msra.mxu0 %v488_v31 }
 0x20d   :  { %10754 = vmatmul.mubr.msk.f32.vlgmr.msra.gmra.mxu0 %vm312_vm7, %v13384_v60  ;;  %10800 = vmatprep.subr.mxu0 %v16526_v0 }
 0x20e   :  { %10756 = vmatprep.mubr.msk.f32.mxu0 %vm13134_vm1, %v16526_v0 }
 0x211   :  { %10757 = vmatmul.mubr.msk.f32.gmra.mxu0 %vm312_vm7, %v13395_v25 }
 0x212   :  { %10759 = vmatprep.mubr.msk.f32.mxu0 %vm13134_vm1, %v16526_v0 }
 0x215   :  { %10760 = vmatmul.mubr.msk.f32.gmra.mxu0 %vm312_vm7, %v13404_v29 }
 0x216   :  { %10762 = vmatprep.mubr.msk.f32.mxu0 %vm13134_vm1, %v16526_v0 }
 0x219   :  { %10763 = vmatmul.mubr.msk.f32.gmra.mxu0 %vm312_vm7, %v13413_v33 }
 0x21a   :  { %10765 = vmatprep.mubr.msk.f32.mxu0 %vm13134_vm1, %v16526_v0 }
 0x21d   :  { %10766 = vmatmul.mubr.msk.f32.gmra.mxu0 %vm312_vm7, %v13422_v34 }
 0x21e   :  { %10810 = vmatprep.mubr.msk.f32.mxu0 %vm13134_vm1, %v16526_v0 }
 0x2cd   :  { %v574_v42 = vpop.f32.mrf.mxu0 }
 0x2ce   :  { %v13449_v51 = vadd.f32 %v574_v42, %v13446_v48 }
 0x2cf   :  { %v10755_v43 = vpop.f32.mrf.mxu0 }
 0x2d0   :  { %v603_v56 = vand.u32 2147483647, %v13449_v51 }
 0x2d1   :  { %v579_v46 = vpop.f32.mrf.mxu0 }
 0x2d2   :  { %v13444_v47 = vadd.f32 %v579_v46, %v13441_v44  ;;  %v608_v20 = vsub.f32 0.0, %v603_v56 }
 0x2d3   :  { %v10758_v49 = vpop.f32.mrf.mxu0 }
 0x2d4   :  { %v604_v52 = vand.u32 2147483647, %v13444_v47  ;;  %v613_v28 = vmul.f32 1.442695, %v608_v20 }
 0x2d5   :  { %v584_v54 = vpop.f32.mrf.mxu0 }
 0x2d6   :  { %v13453_v53 = vadd.f32 %v584_v54, %v13439_v40  ;;  %v609_v63 = vsub.f32 0.0, %v604_v52 }
 0x2d7   :  { %v10761_v55 = vpop.f32.mrf.mxu0 }
 0x2d8   :  { %v605_v62 = vand.u32 2147483647, %v13453_v53  ;;  %v615_v59 = vmul.f32 1.442695, %v609_v63 }
 0x2d9   :  { %v589_v11 = vpop.f32.mrf.mxu0 }
 0x2da   :  { %v610_v61 = vsub.f32 0.0, %v605_v62  ;;  %v13458_v14 = vadd.f32 %v589_v11, %v13437_v39 }
 0x2db   :  { %v10764_v38 = vpop.f32.mrf.mxu0 }
 0x2dc   :  { %v617_v22 = vmul.f32 1.442695, %v610_v61  ;;  %v606_v50 = vand.u32 2147483647, %v13458_v14 }
 0x2dd   :  { %v594_v45 = vpop.f32.mrf.mxu0 }
 0x2de   :  { %v611_v24 = vsub.f32 0.0, %v606_v50  ;;  %v595_v26 = vadd.f32 %v594_v45, %v13435_v37  ;;  %12095 = vpow2.f32 %v617_v22 }
 0x2df   :  { %v10767_v58 = vpop.f32.mrf.mxu0  ;;  %12097 = vpow2.f32 %v615_v59 }
 0x2e0   :  { %v619_v30 = vmul.f32 1.442695, %v611_v24  ;;  %v607_v41 = vand.u32 2147483647, %v595_v26 }
 0x2e2   :  { %12099 = vpow2.f32 %v619_v30  ;;  %v612_v57 = vsub.f32 0.0, %v607_v41 }
 0x2e3   :  { %12101 = vpow2.f32 %v613_v28 }
 0x2e4   :  { %v621_v31 = vmul.f32 1.442695, %v612_v57 }
 0x2e6   :  { %12103 = vpow2.f32 %v621_v31 }
 0x2eb   :  { %v12096_v42 = vpop.eup %12095 }
 0x2ec   :  { %v12098_v43 = vpop.eup %12097  ;;  %v641_v52 = vadd.f32 1.0, %v12096_v42  ;;  %v644_v38 = vmul.f32 -0.5, %v12096_v42 }
 0x2ed   :  { %v632_v55 = vadd.f32 1.0, %v12098_v43  ;;  %v635_v22 = vmul.f32 -0.5, %v12098_v43 }
 0x2ee   :  { %v645_v57 = vadd.f32 1.0, %v644_v38 }
 0x2ef   :  { %v12100_v46 = vpop.eup %12099 }
 0x2f0   :  { %v650_v49 = vadd.f32 1.0, %v12100_v46  ;;  %v12102_v54 = vpop.eup %12101  ;;  %v653_v61 = vmul.f32 -0.5, %v12100_v46  ;;  %v656_v28 = vand.u32 2147483647, %v12100_v46  ;;  %v646_v48 = vmul.f32 %v12096_v42, %v645_v57 }
 0x2f1   :  { %v623_v63 = vadd.f32 1.0, %v12102_v54  ;;  %v626_v50 = vmul.f32 -0.5, %v12102_v54 }
 0x2f2   :  { %12105 = vlog2.f32 %v650_v49  ;;  %v654_v45 = vadd.f32 1.0, %v653_v61  ;;  %v602_v49 = vmax.f32 %v595_v26, 0.0  ;;  %vm657_vm14 = vcmp.lt.f32.partialorder %v656_v28, 0.0004427343 }
 0x2f3   :  { %v12104_v56 = vpop.eup %12103  ;;  %12107 = vlog2.f32 %v641_v52  ;;  %v647_v52 = vand.u32 2147483647, %v12096_v42  ;;  %v629_v26 = vand.u32 2147483647, %v12102_v54  ;;  %v598_v42 = vmax.f32 %v13449_v51, 0.0 }
 0x2f4   :  { %v659_v62 = vadd.f32 1.0, %v12104_v56  ;;  %12109 = vlog2.f32 %v632_v55  ;;  %v662_v11 = vmul.f32 -0.5, %v12104_v56  ;;  %v665_v58 = vand.u32 2147483647, %v12104_v56 }
 0x2f5   :  { %v636_v55 = vadd.f32 1.0, %v635_v22  ;;  %v655_v0 = vmul.f32 %v12100_v46, %v654_v45  ;;  %vm648_vm15 = vcmp.lt.f32.partialorder %v647_v52, 0.0004427343  ;;  %vm630_vm3 = vcmp.lt.f32.partialorder %v629_v26, 0.0004427343 }
 0x2f6   :  { %12111 = vlog2.f32 %v659_v62  ;;  %v663_v59 = vadd.f32 1.0, %v662_v11  ;;  %v627_v62 = vadd.f32 1.0, %v626_v50  ;;  %vm666_vm13 = vcmp.lt.f32.partialorder %v665_v58, 0.0004427343 }
 0x2f7   :  { %12113 = vlog2.f32 %v623_v63  ;;  %v638_v11 = vand.u32 2147483647, %v12098_v43  ;;  %v637_v22 = vmul.f32 %v12098_v43, %v636_v55 }
 0x2f8   :  { %v664_v3 = vmul.f32 %v12104_v56, %v663_v59  ;;  %v600_v56 = vmax.f32 %v13453_v53, 0.0  ;;  %v628_v45 = vmul.f32 %v12102_v54, %v627_v62  ;;  %v13488_v53 = vpop.permute.xlu1 %98 }
 0x2f9   :  { %vm639_vm2 = vcmp.lt.f32.partialorder %v638_v11, 0.0004427343 }
 0x2ff   :  { %v12106_v20 = vpop.eup %12105 }
 0x300   :  { %v12108_v24 = vpop.eup %12107  ;;  %v652_v41 = vmul.f32 0.6931472, %v12106_v20  ;;  %v601_v20 = vmax.f32 %v13458_v14, 0.0 }
 0x301   :  { %v12110_v30 = vpop.eup %12109  ;;  %v643_v37 = vmul.f32 0.6931472, %v12108_v24 }
 0x302   :  { %v658_v40 = vsel %vm657_vm14, %v655_v0, %v652_v41  ;;  %v634_v44 = vmul.f32 0.6931472, %v12110_v30  ;;  %v599_v0 = vmax.f32 %v13444_v47, 0.0  ;;  %v13483_v47 = vpop.permute.xlu0 %103 }
 0x303   :  { %v12112_v31 = vpop.eup %12111  ;;  %v649_v34 = vsel %vm648_vm15, %v646_v48, %v643_v37  ;;  %v671_v46 = vadd.f32 %v658_v40, %v601_v20  ;;  %v13469_v40 = vld [vmem:[%s16522_s1 + $0x80] sm:$0xff] }
 0x304   :  { %v661_v63 = vmul.f32 0.6931472, %v12112_v31  ;;  %v12114_v39 = vpop.eup %12113  ;;  %v640_v59 = vsel %vm639_vm2, %v637_v22, %v634_v44  ;;  %v16541_v44 = vmov 1  }
 0x305   :  { %v625_v50 = vmul.f32 0.6931472, %v12114_v39  ;;  %v669_v37 = vadd.f32 %v640_v59, %v599_v0  ;;  %12023 = vset.pattern.permute.xlu1 %v16541_v44  ;;  %12024 = vset.pattern.permute.xlu0 %v16541_v44 }
 0x306   :  { %v667_v61 = vsel %vm666_vm13, %v664_v3, %v661_v63  ;;  %v670_v3 = vadd.f32 %v649_v34, %v600_v56  ;;  %v16629_v34 = vmov 0.0   ;;  %779 = vperm.xlu1 %12023, %v13178_v4   ;;  %775 = vperm.xlu0 %12024, %v13197_v7  }
 0x307   :  { %v672_v38 = vadd.f32 %v667_v61, %v602_v49  ;;  %v631_v14 = vsel %vm630_vm3, %v628_v45, %v625_v50 }
 0x308   :  { %v668_v39 = vadd.f32 %v631_v14, %v598_v42 }
 0x309   :  { %10768 = vmatprep.subr.mxu1 %v672_v38 }
 0x30a   :  { %10769 = vmatpush3.msra.mxu1 %v672_v38  ;;  %771 = vperm.xlu1 %12023, %v13184_v5  }
 0x30b   :  { %10770 = vmatprep.subr.mxu1 %v671_v46  ;;  %763 = vperm.xlu0 %12024, %v13222_v10  }
 0x30c   :  { %10771 = vmatpush3.msra.mxu1 %v671_v46 }
 0x30d   :  { %10772 = vmatprep.subr.mxu1 %v670_v3 }
 0x30e   :  { %10773 = vmatpush3.msra.mxu1 %v670_v3  ;;  %767 = vperm.xlu1 %12023, %v13204_v8  }
 0x30f   :  { %10774 = vmatprep.subr.mxu1 %v669_v37 }
 0x310   :  { %10775 = vmatpush3.msra.mxu1 %v669_v37 }
 0x311   :  { %10776 = vmatprep.subr.mxu1 %v668_v39 }
 0x312   :  { %10777 = vmatpush3.msra.mxu1 %v668_v39 }
 0x313   :  { %10779 = vmatmul.mubr.msk.f32.vlgmr.msra.gmra.mxu1 %vm312_vm7, %v13469_v40  ;;  %10781 = vmatprep.subr.mxu1 %v16629_v34 }
 0x314   :  { %10785 = vmatprep.mubr.msk.f32.mxu1 %vm13134_vm1, %v16629_v34 }
 0x3d3   :  { %v10780_v48 = vpop.f32.mrf.mxu1 }
 0x3d4   :  { %v13486_v51 = vadd.f32 %v10780_v48, %v13483_v47 }
 0x3d5   :  { %v745_v43 = vpop.f32.mrf.mxu1 }
 0x3d6   :  { %v759_v54 = vmul.f32 0.25, %v13486_v51  ;;  %v13492_v4 = vadd.f32 %v745_v43, %v13488_v53 }
 0x3d8   :  { %v758_v5 = vmul.f32 0.25, %v13492_v4  ;;  %10782 = vmatpush3.msra.mxu1 %v759_v54 }
 0x3d9   :  { %10783 = vmatprep.subr.mxu1 %v16629_v34 }
 0x3da   :  { %v760_v7 = vadd.f32 %v758_v5, %v13162_v1  ;;  %v780_v1 = vpop.permute.xlu1 %779 }
 0x3dc   :  { %10784 = vmatpush3.msra.mxu1 %v760_v7 }
 0x3dd   :  { %10786 = vmatmul.mubr.msk.f32.vlgmr.msra.gmra.mxu1 %vm131_vm0, %v13169_v2  ;;  %10825 = vmatprep.subr.mxu1 %v16629_v34 }
 0x3de   :  { %10788 = vmatprep.mubr.msk.f32.mxu1 %vm13134_vm1, %v16629_v34  ;;  %v772_v2 = vpop.permute.xlu1 %771 }
 0x3e1   :  { %10789 = vmatmul.mubr.msk.f32.gmra.mxu1 %vm131_vm0, %v13191_v6  ;;  %v776_v6 = vpop.permute.xlu0 %775 }
 0x3e2   :  { %10791 = vmatprep.mubr.msk.f32.mxu1 %vm13134_vm1, %v16629_v34  ;;  %v768_v10 = vpop.permute.xlu1 %767 }
 0x3e5   :  { %10792 = vmatmul.mubr.msk.f32.gmra.mxu1 %vm131_vm0, %v13216_v9  ;;  %v764_v58 = vpop.permute.xlu0 %763 }
 0x3e6   :  { %10794 = vmatprep.mubr.msk.f32.mxu1 %vm13134_vm1, %v16629_v34 }
 0x3e9   :  { %10795 = vmatmul.mubr.msk.f32.gmra.mxu1 %vm131_vm0, %v13235_v12 }
 0x3ea   :  { %10797 = vmatprep.mubr.msk.f32.mxu1 %vm13134_vm1, %v16629_v34 }
 0x3ed   :  { %10798 = vmatmul.mubr.msk.f32.gmra.mxu1 %vm131_vm0, %v13251_v15 }
 0x3ee   :  { %10835 = vmatprep.mubr.msk.f32.mxu1 %vm13134_vm1, %v16629_v34 }
 0x49d   :  { %v848_v8 = vpop.f32.mrf.mxu1 }
 0x49e   :  { %v13521_v41 = vadd.f32 %v848_v8, %v764_v58 }
 0x49f   :  { %v10787_v9 = vpop.f32.mrf.mxu1 }
 0x4a0   :  { %v877_v55 = vand.u32 2147483647, %v13521_v41 }
 0x4a1   :  { %v853_v24 = vpop.f32.mrf.mxu1 }
 0x4a2   :  { %v13518_v28 = vadd.f32 %v853_v24, %v768_v10  ;;  %v882_v26 = vsub.f32 0.0, %v877_v55 }
 0x4a3   :  { %v10790_v12 = vpop.f32.mrf.mxu1 }
 0x4a4   :  { %v878_v30 = vand.u32 2147483647, %v13518_v28  ;;  %v887_v3 = vmul.f32 1.442695, %v882_v26 }
 0x4a5   :  { %v858_v57 = vpop.f32.mrf.mxu1 }
 0x4a6   :  { %v13523_v15 = vadd.f32 %v858_v57, %v772_v2  ;;  %v883_v49 = vsub.f32 0.0, %v878_v30 }
 0x4a7   :  { %v10793_v31 = vpop.f32.mrf.mxu1 }
 0x4a8   :  { %v879_v52 = vand.u32 2147483647, %v13523_v15  ;;  %v889_v20 = vmul.f32 1.442695, %v883_v49 }
 0x4a9   :  { %v863_v62 = vpop.f32.mrf.mxu1 }
 0x4aa   :  { %v884_v63 = vsub.f32 0.0, %v879_v52  ;;  %v13527_v11 = vadd.f32 %v863_v62, %v776_v6  ;;  %12115 = vpow2.f32 %v889_v20 }
 0x4ab   :  { %v10796_v61 = vpop.f32.mrf.mxu1 }
 0x4ac   :  { %v880_v38 = vand.u32 2147483647, %v13527_v11  ;;  %v891_v22 = vmul.f32 1.442695, %v884_v63 }
 0x4ad   :  { %v868_v50 = vpop.f32.mrf.mxu1 }
 0x4ae   :  { %v885_v56 = vsub.f32 0.0, %v880_v38  ;;  %v869_v46 = vadd.f32 %v868_v50, %v780_v1  ;;  %12117 = vpow2.f32 %v891_v22 }
 0x4af   :  { %v10799_v59 = vpop.f32.mrf.mxu1 }
 0x4b0   :  { %v893_v45 = vmul.f32 1.442695, %v885_v56  ;;  %v881_v0 = vand.u32 2147483647, %v869_v46  ;;  %v876_v22 = vmax.f32 %v869_v46, 0.0 }
 0x4b2   :  { %12119 = vpow2.f32 %v893_v45  ;;  %v886_v14 = vsub.f32 0.0, %v881_v0 }
 0x4b3   :  { %12121 = vpow2.f32 %v887_v3 }
 0x4b4   :  { %v895_v42 = vmul.f32 1.442695, %v886_v14 }
 0x4b6   :  { %12123 = vpow2.f32 %v895_v42 }
 0x4b7   :  { %v12116_v37 = vpop.eup %12115 }
 0x4b8   :  { %v906_v7 = vadd.f32 1.0, %v12116_v37  ;;  %v909_v12 = vmul.f32 -0.5, %v12116_v37  ;;  %v912_v3 = vand.u32 2147483647, %v12116_v37 }
 0x4ba   :  { %v910_v38 = vadd.f32 1.0, %v909_v12  ;;  %vm913_vm8 = vcmp.lt.f32.partialorder %v912_v3, 0.0004427343 }
 0x4bb   :  { %v12118_v39 = vpop.eup %12117 }
 0x4bc   :  { %v915_v54 = vadd.f32 1.0, %v12118_v39  ;;  %v918_v10 = vmul.f32 -0.5, %v12118_v39  ;;  %v921_v26 = vand.u32 2147483647, %v12118_v39 }
 0x4be   :  { %v919_v62 = vadd.f32 1.0, %v918_v10  ;;  %vm922_vm6 = vcmp.lt.f32.partialorder %v921_v26, 0.0004427343 }
 0x4bf   :  { %v12120_v48 = vpop.eup %12119 }
 0x4c0   :  { %v924_v43 = vadd.f32 1.0, %v12120_v48  ;;  %v12122_v5 = vpop.eup %12121  ;;  %v927_v8 = vmul.f32 -0.5, %v12120_v48  ;;  %v930_v49 = vand.u32 2147483647, %v12120_v48  ;;  %v920_v42 = vmul.f32 %v12118_v39, %v919_v62 }
 0x4c1   :  { %v897_v2 = vadd.f32 1.0, %v12122_v5  ;;  %v900_v58 = vmul.f32 -0.5, %v12122_v5  ;;  %v873_v39 = vmax.f32 %v13518_v28, 0.0 }
 0x4c2   :  { %12125 = vlog2.f32 %v924_v43  ;;  %v928_v30 = vadd.f32 1.0, %v927_v8  ;;  %vm931_vm4 = vcmp.lt.f32.partialorder %v930_v49, 0.0004427343 }
 0x4c3   :  { %v12124_v1 = vpop.eup %12123  ;;  %12127 = vlog2.f32 %v915_v54  ;;  %v901_v20 = vadd.f32 1.0, %v900_v58 }
 0x4c4   :  { %v933_v6 = vadd.f32 1.0, %v12124_v1  ;;  %12129 = vlog2.f32 %v906_v7  ;;  %v936_v9 = vmul.f32 -0.5, %v12124_v1  ;;  %v939_v52 = vand.u32 2147483647, %v12124_v1 }
 0x4c5   :  { %v929_v56 = vmul.f32 %v12120_v48, %v928_v30  ;;  %v903_v7 = vand.u32 2147483647, %v12122_v5  ;;  %v874_v48 = vmax.f32 %v13523_v15, 0.0  ;;  %v902_v10 = vmul.f32 %v12122_v5, %v901_v20 }
 0x4c6   :  { %12131 = vlog2.f32 %v933_v6  ;;  %v937_v57 = vadd.f32 1.0, %v936_v9  ;;  %vm940_vm5 = vcmp.lt.f32.partialorder %v939_v52, 0.0004427343  ;;  %v911_v9 = vmul.f32 %v12116_v37, %v910_v38 }
 0x4c7   :  { %12133 = vlog2.f32 %v897_v2  ;;  %v875_v2 = vmax.f32 %v13527_v11, 0.0  ;;  %vm904_vm9 = vcmp.lt.f32.partialorder %v903_v7, 0.0004427343  ;;  %v872_v11 = vmax.f32 %v13521_v41, 0.0 }
 0x4c8   :  { %v938_v45 = vmul.f32 %v12124_v1, %v937_v57 }
 0x4cf   :  { %v12126_v24 = vpop.eup %12125 }
 0x4d0   :  { %v12128_v31 = vpop.eup %12127  ;;  %v926_v63 = vmul.f32 0.6931472, %v12126_v24 }
 0x4d1   :  { %v12130_v55 = vpop.eup %12129  ;;  %v917_v50 = vmul.f32 0.6931472, %v12128_v31 }
 0x4d2   :  { %v908_v14 = vmul.f32 0.6931472, %v12130_v55  ;;  %v932_v43 = vsel %vm931_vm4, %v929_v56, %v926_v63 }
 0x4d3   :  { %v12132_v61 = vpop.eup %12131  ;;  %v923_v46 = vsel %vm922_vm6, %v920_v42, %v917_v50  ;;  %v945_v1 = vadd.f32 %v932_v43, %v875_v2 }
 0x4d4   :  { %v935_v59 = vmul.f32 0.6931472, %v12132_v61  ;;  %v12134_v0 = vpop.eup %12133  ;;  %v914_v24 = vsel %vm913_vm8, %v911_v9, %v908_v14  ;;  %v944_v58 = vadd.f32 %v923_v46, %v874_v48 }
 0x4d5   :  { %v899_v8 = vmul.f32 0.6931472, %v12134_v0  ;;  %v943_v37 = vadd.f32 %v914_v24, %v873_v39 }
 0x4d6   :  { %v941_v54 = vsel %vm940_vm5, %v938_v45, %v935_v59 }
 0x4d7   :  { %v946_v6 = vadd.f32 %v941_v54, %v876_v22  ;;  %v905_v12 = vsel %vm904_vm9, %v902_v10, %v899_v8 }
 0x4d8   :  { %v942_v15 = vadd.f32 %v905_v12, %v872_v11 }
 0x4d9   :  { %10801 = vmatpush3.msra.mxu0 %v946_v6 }
 0x4da   :  { %10802 = vmatprep.subr.mxu0 %v16629_v34 }
 0x4db   :  { %10803 = vmatpush3.msra.mxu0 %v945_v1 }
 0x4dc   :  { %10804 = vmatprep.subr.mxu0 %v16629_v34 }
 0x4dd   :  { %10805 = vmatpush3.msra.mxu0 %v944_v58 }
 0x4de   :  { %10806 = vmatprep.subr.mxu0 %v16629_v34 }
 0x4df   :  { %10807 = vmatpush3.msra.mxu0 %v943_v37 }
 0x4e0   :  { %10808 = vmatprep.subr.mxu0 %v16629_v34 }
 0x4e1   :  { %10809 = vmatpush3.msra.mxu0 %v942_v15 }
 0x4e2   :  { %10811 = vmatmul.mubr.msk.f32.vlgmr.msra.gmra.mxu0 %vm312_vm7, %v13306_v13 }
 0x4e3   :  { %10813 = vmatprep.mubr.msk.f32.mxu0 %vm13134_vm1, %v16629_v34 }
 0x4e6   :  { %10814 = vmatmul.mubr.msk.f32.gmra.mxu0 %vm312_vm7, %v13316_v32 }
 0x4e7   :  { %10816 = vmatprep.mubr.msk.f32.mxu0 %vm13134_vm1, %v16629_v34 }
 0x4ea   :  { %10817 = vmatmul.mubr.msk.f32.gmra.mxu0 %vm312_vm7, %v13325_v35 }
 0x4eb   :  { %10819 = vmatprep.mubr.msk.f32.mxu0 %vm13134_vm1, %v16629_v34 }
 0x4ee   :  { %10820 = vmatmul.mubr.msk.f32.gmra.mxu0 %vm312_vm7, %v13334_v16 }
 0x4ef   :  { %10822 = vmatprep.mubr.msk.f32.mxu0 %vm13134_vm1, %v16629_v34 }
 0x4f2   :  { %10823 = vmatmul.mubr.msk.f32.gmra.mxu0 %vm312_vm7, %v13343_v17 }
 0x4f3   :  { %10860 = vmatprep.mubr.msk.f32.mxu0 %vm312_vm7, %v13431_v36 }
 0x5a2   :  { %v1013_v13 = vpop.f32.mrf.mxu0 }
 0x5a3   :  { %v13563_v16 = vadd.f32 %v1013_v13, %v13358_v27 }
 0x5a4   :  { %v10812_v32 = vpop.f32.mrf.mxu0 }
 0x5a5   :  { %v1042_v49 = vand.u32 2147483647, %v13563_v16 }
 0x5a6   :  { %v1018_v28 = vpop.f32.mrf.mxu0 }
 0x5a7   :  { %v13559_v35 = vadd.f32 %v1018_v28, %v13353_v23  ;;  %v1047_v38 = vsub.f32 0.0, %v1042_v49 }
 0x5a8   :  { %v10815_v41 = vpop.f32.mrf.mxu0 }
 0x5a9   :  { %v1043_v5 = vand.u32 2147483647, %v13559_v35  ;;  %v1052_v3 = vmul.f32 1.442695, %v1047_v38 }
 0x5aa   :  { %v1023_v30 = vpop.f32.mrf.mxu0 }
 0x5ab   :  { %v13566_v57 = vadd.f32 %v1023_v30, %v13351_v21  ;;  %v1048_v31 = vsub.f32 0.0, %v1043_v5 }
 0x5ac   :  { %v10818_v17 = vpop.f32.mrf.mxu0 }
 0x5ad   :  { %v1044_v36 = vand.u32 2147483647, %v13566_v57  ;;  %v1054_v61 = vmul.f32 1.442695, %v1048_v31 }
 0x5ae   :  { %v1028_v52 = vpop.f32.mrf.mxu0 }
 0x5af   :  { %v1049_v55 = vsub.f32 0.0, %v1044_v36  ;;  %v13571_v62 = vadd.f32 %v1028_v52, %v13349_v19  ;;  %12135 = vpow2.f32 %v1054_v61 }
 0x5b0   :  { %v10821_v63 = vpop.f32.mrf.mxu0 }
 0x5b1   :  { %v1045_v20 = vand.u32 2147483647, %v13571_v62  ;;  %v1056_v26 = vmul.f32 1.442695, %v1049_v55 }
 0x5b2   :  { %v1033_v22 = vpop.f32.mrf.mxu0 }
 0x5b3   :  { %v1050_v50 = vsub.f32 0.0, %v1045_v20  ;;  %v1034_v56 = vadd.f32 %v1033_v22, %v13347_v18  ;;  %12137 = vpow2.f32 %v1056_v26 }
 0x5b4   :  { %v10824_v59 = vpop.f32.mrf.mxu0 }
 0x5b5   :  { %v1058_v45 = vmul.f32 1.442695, %v1050_v50  ;;  %v1046_v0 = vand.u32 2147483647, %v1034_v56  ;;  %v1041_v52 = vmax.f32 %v1034_v56, 0.0 }
 0x5b7   :  { %12139 = vpow2.f32 %v1058_v45  ;;  %v1051_v14 = vsub.f32 0.0, %v1046_v0 }
 0x5b8   :  { %12141 = vpow2.f32 %v1052_v3  ;;  %v1040_v3 = vmax.f32 %v13571_v62, 0.0  ;;  %v1037_v62 = vmax.f32 %v13563_v16, 0.0 }
 0x5b9   :  { %v1060_v42 = vmul.f32 1.442695, %v1051_v14 }
 0x5bb   :  { %12143 = vpow2.f32 %v1060_v42 }
 0x5bc   :  { %v12136_v43 = vpop.eup %12135 }
 0x5bd   :  { %v1071_v9 = vadd.f32 1.0, %v12136_v43  ;;  %v1074_v11 = vmul.f32 -0.5, %v12136_v43  ;;  %v1077_v26 = vand.u32 2147483647, %v12136_v43 }
 0x5bf   :  { %v1075_v36 = vadd.f32 1.0, %v1074_v11  ;;  %vm1078_vm13 = vcmp.lt.f32.partialorder %v1077_v26, 0.0004427343 }
 0x5c0   :  { %v12138_v54 = vpop.eup %12137 }
 0x5c1   :  { %v1080_v6 = vadd.f32 1.0, %v12138_v54  ;;  %v1083_v39 = vmul.f32 -0.5, %v12138_v54  ;;  %v1086_v49 = vand.u32 2147483647, %v12138_v54 }
 0x5c3   :  { %v1084_v5 = vadd.f32 1.0, %v1083_v39  ;;  %vm1087_vm12 = vcmp.lt.f32.partialorder %v1086_v49, 0.0004427343 }
 0x5c4   :  { %v12140_v7 = vpop.eup %12139 }
 0x5c5   :  { %v1089_v2 = vadd.f32 1.0, %v12140_v7  ;;  %v12142_v8 = vpop.eup %12141  ;;  %v1092_v10 = vmul.f32 -0.5, %v12140_v7  ;;  %v1095_v32 = vand.u32 2147483647, %v12140_v7  ;;  %v1085_v50 = vmul.f32 %v12138_v54, %v1084_v5  ;;  %v16634_v5 = vld [vmem:[#allocation9_spill] sm:$0xff] }
 0x5c6   :  { %v1062_v48 = vadd.f32 1.0, %v12142_v8  ;;  %v1065_v12 = vmul.f32 -0.5, %v12142_v8  ;;  %v1068_v0 = vand.u32 2147483647, %v12142_v8  ;;  %v1038_v54 = vmax.f32 %v13559_v35, 0.0 }
 0x5c7   :  { %12145 = vlog2.f32 %v1089_v2  ;;  %v1093_v37 = vadd.f32 1.0, %v1092_v10  ;;  %vm1096_vm10 = vcmp.lt.f32.partialorder %v1095_v32, 0.0004427343  ;;  %v1076_v2 = vmul.f32 %v12136_v43, %v1075_v36 }
 0x5c8   :  { %v12144_v46 = vpop.eup %12143  ;;  %12147 = vlog2.f32 %v1080_v6  ;;  %v1066_v31 = vadd.f32 1.0, %v1065_v12  ;;  %vm1069_vm14 = vcmp.lt.f32.partialorder %v1068_v0, 0.0004427343  ;;  %v16633_v12 = vld [vmem:[#allocation10_spill] sm:$0xff] }
 0x5c9   :  { %v1098_v1 = vadd.f32 1.0, %v12144_v46  ;;  %12149 = vlog2.f32 %v1071_v9  ;;  %v1101_v24 = vmul.f32 -0.5, %v12144_v46  ;;  %v1104_v28 = vand.u32 2147483647, %v12144_v46 }
 0x5ca   :  { %v1094_v63 = vmul.f32 %v12140_v7, %v1093_v37  ;;  %v1039_v7 = vmax.f32 %v13566_v57, 0.0  ;;  %v1067_v9 = vmul.f32 %v12142_v8, %v1066_v31  ;;  %v16631_v8 = vld [vmem:[#allocation11_spill] sm:$0xff] }
 0x5cb   :  { %12151 = vlog2.f32 %v1098_v1  ;;  %v1102_v15 = vadd.f32 1.0, %v1101_v24  ;;  %vm1105_vm11 = vcmp.lt.f32.partialorder %v1104_v28, 0.0004427343  ;;  %v16632_v24 = vld [vmem:[#allocation12_spill] sm:$0xff] }
 0x5cc   :  { %12153 = vlog2.f32 %v1062_v48 }
 0x5cd   :  { %v1103_v20 = vmul.f32 %v12144_v46, %v1102_v15 }
 0x5d4   :  { %v12146_v58 = vpop.eup %12145 }
 0x5d5   :  { %v12148_v13 = vpop.eup %12147  ;;  %v1091_v30 = vmul.f32 0.6931472, %v12146_v58 }
 0x5d6   :  { %v12150_v41 = vpop.eup %12149  ;;  %v1082_v55 = vmul.f32 0.6931472, %v12148_v13 }
 0x5d7   :  { %v1073_v22 = vmul.f32 0.6931472, %v12150_v41  ;;  %v1097_v59 = vsel %vm1096_vm10, %v1094_v63, %v1091_v30 }
 0x5d8   :  { %v12152_v17 = vpop.eup %12151  ;;  %v1088_v56 = vsel %vm1087_vm12, %v1085_v50, %v1082_v55  ;;  %v1110_v6 = vadd.f32 %v1097_v59, %v1040_v3 }
 0x5d9   :  { %v1100_v61 = vmul.f32 0.6931472, %v12152_v17  ;;  %v12154_v38 = vpop.eup %12153  ;;  %v1079_v46 = vsel %vm1078_vm13, %v1076_v2, %v1073_v22  ;;  %v1109_v48 = vadd.f32 %v1088_v56, %v1039_v7 }
 0x5da   :  { %v1064_v42 = vmul.f32 0.6931472, %v12154_v38  ;;  %v1108_v43 = vadd.f32 %v1079_v46, %v1038_v54 }
 0x5db   :  { %v1106_v45 = vsel %vm1105_vm11, %v1103_v20, %v1100_v61  ;;  %v16635_v61 = vld [vmem:[#allocation8_spill] sm:$0xff] }
 0x5dc   :  { %v1111_v14 = vadd.f32 %v1106_v45, %v1041_v52  ;;  %v1070_v1 = vsel %vm1069_vm14, %v1067_v9, %v1064_v42 }
 0x5dd   :  { %v1107_v57 = vadd.f32 %v1070_v1, %v1037_v62 }
 0x5de   :  { %10826 = vmatpush3.msra.mxu1 %v1111_v14 }
 0x5df   :  { %10827 = vmatprep.subr.mxu1 %v16629_v34 }
 0x5e0   :  { %10828 = vmatpush3.msra.mxu1 %v1110_v6 }
 0x5e1   :  { %10829 = vmatprep.subr.mxu1 %v16629_v34 }
 0x5e2   :  { %10830 = vmatpush3.msra.mxu1 %v1109_v48 }
 0x5e3   :  { %10831 = vmatprep.subr.mxu1 %v16629_v34 }
 0x5e4   :  { %10832 = vmatpush3.msra.mxu1 %v1108_v43 }
 0x5e5   :  { %10833 = vmatprep.subr.mxu1 %v16629_v34 }
 0x5e6   :  { %10834 = vmatpush3.msra.mxu1 %v1107_v57 }
 0x5e7   :  { %10836 = vmatmul.mubr.msk.f32.vlgmr.msra.gmra.mxu1 %vm312_vm7, %v13384_v60  ;;  %10882 = vmatprep.subr.mxu1 %v16629_v34  ;;  %v16630_v60 = vld [vmem:[#allocation7_spill] sm:$0xff] }
 0x5e8   :  { %10838 = vmatprep.mubr.msk.f32.mxu1 %vm13134_vm1, %v16629_v34 }
 0x5eb   :  { %10839 = vmatmul.mubr.msk.f32.gmra.mxu1 %vm312_vm7, %v13395_v25 }
 0x5ec   :  { %10841 = vmatprep.mubr.msk.f32.mxu1 %vm13134_vm1, %v16629_v34 }
 0x5ef   :  { %10842 = vmatmul.mubr.msk.f32.gmra.mxu1 %vm312_vm7, %v13404_v29 }
 0x5f0   :  { %10844 = vmatprep.mubr.msk.f32.mxu1 %vm13134_vm1, %v16629_v34 }
 0x5f3   :  { %10845 = vmatmul.mubr.msk.f32.gmra.mxu1 %vm312_vm7, %v13413_v33 }
 0x5f4   :  { %10847 = vmatprep.mubr.msk.f32.mxu1 %vm13134_vm1, %v16629_v34 }
 0x5f7   :  { %10848 = vmatmul.mubr.msk.f32.gmra.mxu1 %vm312_vm7, %v16630_v60 }
 0x5f8   :  { %10892 = vmatprep.mubr.msk.f32.mxu1 %vm13134_vm1, %v16629_v34 }
 0x6a7   :  { %v1178_v25 = vpop.f32.mrf.mxu1 }
 0x6a8   :  { %v13608_v39 = vadd.f32 %v1178_v25, %v16632_v24 }
 0x6a9   :  { %v10837_v35 = vpop.f32.mrf.mxu1 }
 0x6aa   :  { %v1207_v15 = vand.u32 2147483647, %v13608_v39 }
 0x6ab   :  { %v1183_v16 = vpop.f32.mrf.mxu1 }
 0x6ac   :  { %v13605_v29 = vadd.f32 %v1183_v16, %v16631_v8  ;;  %v1212_v31 = vsub.f32 0.0, %v1207_v15 }
 0x6ad   :  { %v10840_v10 = vpop.f32.mrf.mxu1 }
 0x6ae   :  { %v1208_v33 = vand.u32 2147483647, %v13605_v29  ;;  %v1217_v26 = vmul.f32 1.442695, %v1212_v31 }
 0x6af   :  { %v1188_v58 = vpop.f32.mrf.mxu1 }
 0x6b0   :  { %v13612_v11 = vadd.f32 %v1188_v58, %v16633_v12  ;;  %v1213_v32 = vsub.f32 0.0, %v1208_v33 }
 0x6b1   :  { %v10843_v37 = vpop.f32.mrf.mxu1 }
 0x6b2   :  { %v1209_v13 = vand.u32 2147483647, %v13612_v11  ;;  %v1219_v52 = vmul.f32 1.442695, %v1213_v32 }
 0x6b3   :  { %v1193_v28 = vpop.f32.mrf.mxu1 }
 0x6b4   :  { %v1214_v41 = vsub.f32 0.0, %v1209_v13  ;;  %v13617_v30 = vadd.f32 %v1193_v28, %v16634_v5 }
 0x6b5   :  { %v10846_v17 = vpop.f32.mrf.mxu1 }
 0x6b6   :  { %v1221_v36 = vmul.f32 1.442695, %v1214_v41  ;;  %v1210_v49 = vand.u32 2147483647, %v13617_v30 }
 0x6b7   :  { %v1198_v55 = vpop.f32.mrf.mxu1 }
 0x6b8   :  { %v1215_v63 = vsub.f32 0.0, %v1210_v49  ;;  %v1199_v20 = vadd.f32 %v1198_v55, %v16635_v61  ;;  %12155 = vpow2.f32 %v1221_v36 }
 0x6b9   :  { %v10849_v38 = vpop.f32.mrf.mxu1  ;;  %12157 = vpow2.f32 %v1219_v52 }
 0x6ba   :  { %v1223_v22 = vmul.f32 1.442695, %v1215_v63  ;;  %v1211_v50 = vand.u32 2147483647, %v1199_v20  ;;  %v1206_v13 = vmax.f32 %v1199_v20, 0.0 }
 0x6bc   :  { %12159 = vpow2.f32 %v1223_v22  ;;  %v1216_v59 = vsub.f32 0.0, %v1211_v50  ;;  %v1205_v50 = vmax.f32 %v13617_v30, 0.0 }
 0x6bd   :  { %12161 = vpow2.f32 %v1217_v26 }
 0x6be   :  { %v1225_v45 = vmul.f32 1.442695, %v1216_v59 }
 0x6c0   :  { %12163 = vpow2.f32 %v1225_v45 }
 0x6c5   :  { %v12156_v0 = vpop.eup %12155 }
 0x6c6   :  { %v12158_v3 = vpop.eup %12157  ;;  %v1245_v2 = vadd.f32 1.0, %v12156_v0  ;;  %v1248_v1 = vmul.f32 -0.5, %v12156_v0  ;;  %v1251_v32 = vand.u32 2147483647, %v12156_v0 }
 0x6c7   :  { %v1236_v7 = vadd.f32 1.0, %v12158_v3  ;;  %v1239_v43 = vmul.f32 -0.5, %v12158_v3  ;;  %v1242_v55 = vand.u32 2147483647, %v12158_v3 }
 0x6c8   :  { %v1249_v37 = vadd.f32 1.0, %v1248_v1  ;;  %vm1252_vm3 = vcmp.lt.f32.partialorder %v1251_v32, 0.0004427343  ;;  %v13659_v1 = vld [vmem:[%s16522_s1 + $0x90] sm:$0xff]  ;;  %v13681_v32 = vld [vmem:[%s16522_s1] sm:$0xff] }
 0x6c9   :  { %v12160_v14 = vpop.eup %12159  ;;  %v1240_v28 = vadd.f32 1.0, %v1239_v43  ;;  %vm1243_vm4 = vcmp.lt.f32.partialorder %v1242_v55, 0.0004427343  ;;  %v754_v43 = vmul.f32 0.083333336, %v13492_v4 }
 0x6ca   :  { %v1254_v42 = vadd.f32 1.0, %v12160_v14  ;;  %v12162_v56 = vpop.eup %12161  ;;  %v1257_v48 = vmul.f32 -0.5, %v12160_v14  ;;  %v1260_v10 = vand.u32 2147483647, %v12160_v14  ;;  %v1250_v26 = vmul.f32 %v12156_v0, %v1249_v37 }
 0x6cb   :  { %v1227_v46 = vadd.f32 1.0, %v12162_v56  ;;  %v1230_v57 = vmul.f32 -0.5, %v12162_v56  ;;  %v1233_v20 = vand.u32 2147483647, %v12162_v56 }
 0x6cc   :  { %12165 = vlog2.f32 %v1254_v42  ;;  %v1258_v25 = vadd.f32 1.0, %v1257_v48  ;;  %vm1261_vm2 = vcmp.lt.f32.partialorder %v1260_v10, 0.0004427343  ;;  %v1241_v42 = vmul.f32 %v12158_v3, %v1240_v28  ;;  %v13653_v48 = vld [vmem:[%s16522_s1 + $0x88] sm:$0xff] }
 0x6cd   :  { %v12164_v6 = vpop.eup %12163  ;;  %12167 = vlog2.f32 %v1245_v2  ;;  %v1231_v41 = vadd.f32 1.0, %v1230_v57  ;;  %vm1234_vm5 = vcmp.lt.f32.partialorder %v1233_v20, 0.0004427343  ;;  %v13691_v28 = vld [vmem:[%s16522_s1 + $0x8] sm:$0xff] }
 0x6ce   :  { %v1263_v9 = vadd.f32 1.0, %v12164_v6  ;;  %12169 = vlog2.f32 %v1236_v7  ;;  %v1266_v54 = vmul.f32 -0.5, %v12164_v6  ;;  %v1269_v16 = vand.u32 2147483647, %v12164_v6 }
 0x6cf   :  { %v1259_v36 = vmul.f32 %v12160_v14, %v1258_v25  ;;  %v1204_v7 = vmax.f32 %v13612_v11, 0.0  ;;  %v755_v25 = vmul.f32 0.083333336, %v13486_v51 }
 0x6d0   :  { %12171 = vlog2.f32 %v1263_v9  ;;  %v1267_v60 = vadd.f32 1.0, %v1266_v54  ;;  %vm1270_vm15 = vcmp.lt.f32.partialorder %v1269_v16, 0.0004427343  ;;  %v1232_v9 = vmul.f32 %v12162_v56, %v1231_v41  ;;  %v13647_v56 = vld [vmem:[%s16522_s1 + $0x98] sm:$0xff]  ;;  %v13700_v41 = vld [vmem:[%s16522_s1 + $0x10] sm:$0xff] }
 0x6d1   :  { %12173 = vlog2.f32 %v1227_v46  ;;  %v1203_v46 = vmax.f32 %v13605_v29, 0.0  ;;  %v1202_v54 = vmax.f32 %v13608_v39, 0.0  ;;  %v16539_v29 = vmov 2   ;;  %v13635_v39 = vld [vmem:[%s16522_s1 + $0xa8] sm:$0xff] }
 0x6d2   :  { %v1268_v31 = vmul.f32 %v12164_v6, %v1267_v60  ;;  %12025 = vset.pattern.permute.xlu1 %v16539_v29  ;;  %12026 = vset.pattern.permute.xlu0 %v16539_v29 }
 0x6d3   :  { %1377 = vperm.xlu1 %12025, %v13635_v39  }
 0x6d7   :  { %1369 = vperm.xlu1 %12025, %v13647_v56  }
 0x6d9   :  { %v12166_v62 = vpop.eup %12165 }
 0x6da   :  { %v12168_v35 = vpop.eup %12167  ;;  %v1256_v58 = vmul.f32 0.6931472, %v12166_v62 }
 0x6db   :  { %v12170_v33 = vpop.eup %12169  ;;  %v1247_v49 = vmul.f32 0.6931472, %v12168_v35  ;;  %1365 = vperm.xlu1 %12025, %v13659_v1  }
 0x6dc   :  { %v1262_v38 = vsel %vm1261_vm2, %v1259_v36, %v1256_v58  ;;  %v1238_v22 = vmul.f32 0.6931472, %v12170_v33  ;;  %v13669_v33 = vld [vmem:[%s16521_s0] sm:$0xff] }
 0x6dd   :  { %v12172_v15 = vpop.eup %12171  ;;  %v1253_v45 = vsel %vm1252_vm3, %v1250_v26, %v1247_v49  ;;  %v1275_v14 = vadd.f32 %v1262_v38, %v1205_v50  ;;  %v756_v58 = vadd.f32 %v13669_v33, %v754_v43 }
 0x6de   :  { %v1265_v17 = vmul.f32 0.6931472, %v12172_v15  ;;  %v12174_v52 = vpop.eup %12173  ;;  %v1244_v6 = vsel %vm1243_vm4, %v1241_v42, %v1238_v22  ;;  %v1274_v0 = vadd.f32 %v1253_v45, %v1204_v7 }
 0x6df   :  { %v1229_v2 = vmul.f32 0.6931472, %v12174_v52  ;;  %v1273_v3 = vadd.f32 %v1244_v6, %v1203_v46 }
 0x6e0   :  { %v1271_v63 = vsel %vm1270_vm15, %v1268_v31, %v1265_v17  ;;  %v13709_v17 = vld [vmem:[%s16522_s1 + $0x18] sm:$0xff]  ;;  %v13718_v31 = vld [vmem:[%s16522_s1 + $0x20] sm:$0xff] }
 0x6e1   :  { %v1276_v59 = vadd.f32 %v1271_v63, %v1206_v13  ;;  %v1235_v30 = vsel %vm1234_vm5, %v1232_v9, %v1229_v2 }
 0x6e2   :  { %v1272_v11 = vadd.f32 %v1235_v30, %v1202_v54 }
 0x6e3   :  { %10850 = vmatprep.subr.mxu0 %v1276_v59 }
 0x6e4   :  { %10851 = vmatpush3.msra.mxu0 %v1276_v59 }
 0x6e5   :  { %10852 = vmatprep.subr.mxu0 %v1275_v14 }
 0x6e6   :  { %10853 = vmatpush3.msra.mxu0 %v1275_v14 }
 0x6e7   :  { %10854 = vmatprep.subr.mxu0 %v1274_v0 }
 0x6e8   :  { %10855 = vmatpush3.msra.mxu0 %v1274_v0 }
 0x6e9   :  { %10856 = vmatprep.subr.mxu0 %v1273_v3 }
 0x6ea   :  { %10857 = vmatpush3.msra.mxu0 %v1273_v3 }
 0x6eb   :  { %10858 = vmatprep.subr.mxu0 %v1272_v11 }
 0x6ec   :  { %10859 = vmatpush3.msra.mxu0 %v1272_v11 }
 0x6ed   :  { %10861 = vmatmul.mubr.msk.f32.vlgmr.msra.gmra.mxu0 %vm312_vm7, %v13469_v40  ;;  %10863 = vmatprep.subr.mxu0 %v16629_v34  ;;  %v13641_v40 = vld [vmem:[%s16522_s1 + $0xa0] sm:$0xff] }
 0x6ee   :  { %10867 = vmatprep.mubr.msk.f32.mxu0 %vm13134_vm1, %v16629_v34  ;;  %1373 = vperm.xlu0 %12026, %v13641_v40  }
 0x6f2   :  { %1361 = vperm.xlu0 %12026, %v13653_v48  }
 0x74e   :  { %v1378_v36 = vpop.permute.xlu1 %1377 }
 0x752   :  { %v1370_v49 = vpop.permute.xlu1 %1369 }
 0x756   :  { %v1366_v38 = vpop.permute.xlu1 %1365 }
 0x769   :  { %v1374_v52 = vpop.permute.xlu0 %1373 }
 0x76d   :  { %v1362_v22 = vpop.permute.xlu0 %1361 }
 0x7ad   :  { %v10862_v62 = vpop.f32.mrf.mxu0 }
 0x7ae   :  { %v1349_v57 = vadd.f32 %v10862_v62, %v13483_v47 }
 0x7af   :  { %v1343_v60 = vpop.f32.mrf.mxu0 }
 0x7b0   :  { %v1353_v35 = vmul.f32 0.16666667, %v1349_v57  ;;  %v1357_v16 = vmul.f32 0.25, %v1349_v57  ;;  %v1344_v10 = vadd.f32 %v1343_v60, %v13488_v53 }
 0x7b2   :  { %v13672_v37 = vadd.f32 %v1353_v35, %v755_v25  ;;  %v1352_v15 = vmul.f32 0.16666667, %v1344_v10  ;;  %v1356_v4 = vmul.f32 0.25, %v1344_v10  ;;  %10864 = vmatpush3.msra.mxu0 %v1357_v16 }
 0x7b3   :  { %10865 = vmatprep.subr.mxu0 %v16629_v34 }
 0x7b4   :  { %v13675_v13 = vadd.f32 %v1352_v15, %v756_v58  ;;  %v1358_v51 = vadd.f32 %v13669_v33, %v1356_v4 }
 0x7b6   :  { %10866 = vmatpush3.msra.mxu0 %v1358_v51 }
 0x7b7   :  { %10868 = vmatmul.mubr.msk.f32.vlgmr.msra.gmra.mxu0 %vm131_vm0, %v13681_v32  ;;  %10907 = vmatprep.subr.mxu0 %v16629_v34 }
 0x7b8   :  { %10870 = vmatprep.mubr.msk.f32.mxu0 %vm13134_vm1, %v16629_v34 }
 0x7bb   :  { %10871 = vmatmul.mubr.msk.f32.gmra.mxu0 %vm131_vm0, %v13691_v28 }
 0x7bc   :  { %10873 = vmatprep.mubr.msk.f32.mxu0 %vm13134_vm1, %v16629_v34 }
 0x7bf   :  { %10874 = vmatmul.mubr.msk.f32.gmra.mxu0 %vm131_vm0, %v13700_v41 }
 0x7c0   :  { %10876 = vmatprep.mubr.msk.f32.mxu0 %vm13134_vm1, %v16629_v34 }
 0x7c3   :  { %10877 = vmatmul.mubr.msk.f32.gmra.mxu0 %vm131_vm0, %v13709_v17 }
 0x7c4   :  { %10879 = vmatprep.mubr.msk.f32.mxu0 %vm13134_vm1, %v16629_v34 }
 0x7c7   :  { %10880 = vmatmul.mubr.msk.f32.gmra.mxu0 %vm131_vm0, %v13718_v31 }
 0x7c8   :  { %10917 = vmatprep.mubr.msk.f32.mxu0 %vm13134_vm1, %v16629_v34 }
 0x877   :  { %v1446_v55 = vpop.f32.mrf.mxu0 }
 0x878   :  { %v13727_v45 = vadd.f32 %v1446_v55, %v1362_v22 }
 0x879   :  { %v10869_v63 = vpop.f32.mrf.mxu0 }
 0x87a   :  { %v1475_v9 = vand.u32 2147483647, %v13727_v45 }
 0x87b   :  { %v1451_v26 = vpop.f32.mrf.mxu0 }
 0x87c   :  { %v13724_v50 = vadd.f32 %v1451_v26, %v1366_v38  ;;  %v1480_v62 = vsub.f32 0.0, %v1475_v9 }
 0x87d   :  { %v10872_v59 = vpop.f32.mrf.mxu0 }
 0x87e   :  { %v1476_v20 = vand.u32 2147483647, %v13724_v50  ;;  %v1485_v58 = vmul.f32 1.442695, %v1480_v62 }
 0x87f   :  { %v1456_v42 = vpop.f32.mrf.mxu0 }
 0x880   :  { %v13729_v2 = vadd.f32 %v1456_v42, %v1370_v49  ;;  %v1481_v14 = vsub.f32 0.0, %v1476_v20 }
 0x881   :  { %v10875_v7 = vpop.f32.mrf.mxu0 }
 0x882   :  { %v1477_v6 = vand.u32 2147483647, %v13729_v2  ;;  %v1487_v3 = vmul.f32 1.442695, %v1481_v14 }
 0x883   :  { %v1461_v46 = vpop.f32.mrf.mxu0 }
 0x884   :  { %v1482_v0 = vsub.f32 0.0, %v1477_v6  ;;  %v13733_v30 = vadd.f32 %v1461_v46, %v1374_v52  ;;  %12175 = vpow2.f32 %v1487_v3 }
 0x885   :  { %v10878_v54 = vpop.f32.mrf.mxu0 }
 0x886   :  { %v1478_v11 = vand.u32 2147483647, %v13733_v30  ;;  %v1489_v43 = vmul.f32 1.442695, %v1482_v0 }
 0x887   :  { %v1466_v57 = vpop.f32.mrf.mxu0 }
 0x888   :  { %v1483_v60 = vsub.f32 0.0, %v1478_v11  ;;  %v1467_v25 = vadd.f32 %v1466_v57, %v1378_v36  ;;  %12177 = vpow2.f32 %v1489_v43 }
 0x889   :  { %v10881_v35 = vpop.f32.mrf.mxu0 }
 0x88a   :  { %v1491_v16 = vmul.f32 1.442695, %v1483_v60  ;;  %v1479_v10 = vand.u32 2147483647, %v1467_v25 }
 0x88c   :  { %12179 = vpow2.f32 %v1491_v16  ;;  %v1484_v15 = vsub.f32 0.0, %v1479_v10 }
 0x88d   :  { %12181 = vpow2.f32 %v1485_v58  ;;  %v1474_v58 = vmax.f32 %v1467_v25, 0.0 }
 0x88e   :  { %v1493_v4 = vmul.f32 1.442695, %v1484_v15 }
 0x890   :  { %12183 = vpow2.f32 %v1493_v4 }
 0x891   :  { %v12176_v51 = vpop.eup %12175 }
 0x892   :  { %v1504_v26 = vadd.f32 1.0, %v12176_v51  ;;  %v1507_v9 = vmul.f32 -0.5, %v12176_v51 }
 0x894   :  { %v1508_v16 = vadd.f32 1.0, %v1507_v9 }
 0x895   :  { %v12178_v49 = vpop.eup %12177 }
 0x896   :  { %v1513_v63 = vadd.f32 1.0, %v12178_v49  ;;  %v1516_v7 = vmul.f32 -0.5, %v12178_v49  ;;  %v1519_v10 = vand.u32 2147483647, %v12178_v49  ;;  %v1509_v9 = vmul.f32 %v12176_v51, %v1508_v16 }
 0x898   :  { %v1517_v43 = vadd.f32 1.0, %v1516_v7  ;;  %vm1520_vm9 = vcmp.lt.f32.partialorder %v1519_v10, 0.0004427343  ;;  %v1473_v7 = vmax.f32 %v13733_v30, 0.0 }
 0x899   :  { %v12180_v52 = vpop.eup %12179 }
 0x89a   :  { %v1522_v55 = vadd.f32 1.0, %v12180_v52  ;;  %v12182_v38 = vpop.eup %12181  ;;  %v1525_v20 = vmul.f32 -0.5, %v12180_v52  ;;  %v1528_v3 = vand.u32 2147483647, %v12180_v52 }
 0x89b   :  { %v1495_v22 = vadd.f32 1.0, %v12182_v38  ;;  %v1498_v6 = vmul.f32 -0.5, %v12182_v38  ;;  %v1501_v44 = vand.u32 2147483647, %v12182_v38 }
 0x89c   :  { %12185 = vlog2.f32 %v1522_v55  ;;  %v1526_v46 = vadd.f32 1.0, %v1525_v20  ;;  %vm1529_vm6 = vcmp.lt.f32.partialorder %v1528_v3, 0.0004427343  ;;  %v1518_v20 = vmul.f32 %v12178_v49, %v1517_v43 }
 0x89d   :  { %v12184_v36 = vpop.eup %12183  ;;  %12187 = vlog2.f32 %v1513_v63  ;;  %v1499_v35 = vadd.f32 1.0, %v1498_v6  ;;  %vm1502_vm11 = vcmp.lt.f32.partialorder %v1501_v44, 0.0004427343  ;;  %v1471_v49 = vmax.f32 %v13724_v50, 0.0  ;;  %v13747_v44 = vld [vmem:[%s16522_s1 + $0x28] sm:$0xff]  ;;  %v13756_v50 = vld [vmem:[%s16522_s1 + $0x30] sm:$0xff] }
 0x89e   :  { %v1531_v59 = vadd.f32 1.0, %v12184_v36  ;;  %12189 = vlog2.f32 %v1504_v26  ;;  %v1534_v42 = vmul.f32 -0.5, %v12184_v36  ;;  %v1537_v11 = vand.u32 2147483647, %v12184_v36 }
 0x89f   :  { %v1527_v4 = vmul.f32 %v12180_v52, %v1526_v46  ;;  %v1472_v52 = vmax.f32 %v13729_v2, 0.0  ;;  %v1500_v46 = vmul.f32 %v12182_v38, %v1499_v35  ;;  %v13783_v38 = vld [vmem:[%s16522_s1 + $0x48] sm:$0xff] }
 0x8a0   :  { %12191 = vlog2.f32 %v1531_v59  ;;  %v1535_v0 = vadd.f32 1.0, %v1534_v42  ;;  %vm1538_vm8 = vcmp.lt.f32.partialorder %v1537_v11, 0.0004427343  ;;  %v13790_v11 = vld [vmem:[%s16522_s1 + $0x78] sm:$0xff] }
 0x8a1   :  { %12193 = vlog2.f32 %v1495_v22  ;;  %v1510_v22 = vand.u32 2147483647, %v12176_v51  ;;  %v13774_v51 = vld [vmem:[%s16522_s1 + $0x40] sm:$0xff]  ;;  %16636 = vst [vmem:[#allocation7_spill] sm:$0xff] %v13790_v11 }
 0x8a2   :  { %v1536_v63 = vmul.f32 %v12184_v36, %v1535_v0 }
 0x8a3   :  { %vm1511_vm10 = vcmp.lt.f32.partialorder %v1510_v22, 0.0004427343 }
 0x8a9   :  { %v12186_v14 = vpop.eup %12185 }
 0x8aa   :  { %v12188_v54 = vpop.eup %12187  ;;  %v1524_v57 = vmul.f32 0.6931472, %v12186_v14 }
 0x8ab   :  { %v12190_v62 = vpop.eup %12189  ;;  %v1515_v15 = vmul.f32 0.6931472, %v12188_v54 }
 0x8ac   :  { %v1506_v59 = vmul.f32 0.6931472, %v12190_v62  ;;  %v1530_v42 = vsel %vm1529_vm6, %v1527_v4, %v1524_v57 }
 0x8ad   :  { %v12192_v60 = vpop.eup %12191  ;;  %v1521_v25 = vsel %vm1520_vm9, %v1518_v20, %v1515_v15  ;;  %v1543_v36 = vadd.f32 %v1530_v42, %v1473_v7 }
 0x8ae   :  { %v1533_v55 = vmul.f32 0.6931472, %v12192_v60  ;;  %v12194_v26 = vpop.eup %12193  ;;  %v1512_v0 = vsel %vm1511_vm10, %v1509_v9, %v1506_v59  ;;  %v1542_v54 = vadd.f32 %v1521_v25, %v1472_v52 }
 0x8af   :  { %v1497_v6 = vmul.f32 0.6931472, %v12194_v26  ;;  %v1541_v30 = vadd.f32 %v1512_v0, %v1471_v49 }
 0x8b0   :  { %v1539_v29 = vsel %vm1538_vm8, %v1536_v63, %v1533_v55 }
 0x8b1   :  { %v1544_v14 = vadd.f32 %v1539_v29, %v1474_v58  ;;  %v1503_v3 = vsel %vm1502_vm11, %v1500_v46, %v1497_v6  ;;  %v1470_v29 = vmax.f32 %v13727_v45, 0.0  ;;  %v13765_v45 = vld [vmem:[%s16522_s1 + $0x38] sm:$0xff] }
 0x8b3   :  { %10883 = vmatpush3.msra.mxu1 %v1544_v14  ;;  %v1540_v2 = vadd.f32 %v1503_v3, %v1470_v29 }
 0x8b4   :  { %10884 = vmatprep.subr.mxu1 %v16629_v34 }
 0x8b5   :  { %10885 = vmatpush3.msra.mxu1 %v1543_v36 }
 0x8b6   :  { %10886 = vmatprep.subr.mxu1 %v16629_v34 }
 0x8b7   :  { %10887 = vmatpush3.msra.mxu1 %v1542_v54 }
 0x8b8   :  { %10888 = vmatprep.subr.mxu1 %v16629_v34 }
 0x8b9   :  { %10889 = vmatpush3.msra.mxu1 %v1541_v30 }
 0x8ba   :  { %10890 = vmatprep.subr.mxu1 %v16629_v34 }
 0x8bb   :  { %10891 = vmatpush3.msra.mxu1 %v1540_v2 }
 0x8bc   :  { %10893 = vmatmul.mubr.msk.f32.vlgmr.msra.gmra.mxu1 %vm312_vm7, %v13747_v44 }
 0x8bd   :  { %10895 = vmatprep.mubr.msk.f32.mxu1 %vm13134_vm1, %v16629_v34 }
 0x8c0   :  { %10896 = vmatmul.mubr.msk.f32.gmra.mxu1 %vm312_vm7, %v13756_v50 }
 0x8c1   :  { %10898 = vmatprep.mubr.msk.f32.mxu1 %vm13134_vm1, %v16629_v34 }
 0x8c4   :  { %10899 = vmatmul.mubr.msk.f32.gmra.mxu1 %vm312_vm7, %v13765_v45 }
 0x8c5   :  { %10901 = vmatprep.mubr.msk.f32.mxu1 %vm13134_vm1, %v16629_v34 }
 0x8c8   :  { %10902 = vmatmul.mubr.msk.f32.gmra.mxu1 %vm312_vm7, %v13774_v51 }
 0x8c9   :  { %10904 = vmatprep.mubr.msk.f32.mxu1 %vm13134_vm1, %v16629_v34 }
 0x8cc   :  { %10905 = vmatmul.mubr.msk.f32.gmra.mxu1 %vm312_vm7, %v13783_v38 }
 0x8cd   :  { %10942 = vmatprep.mubr.msk.f32.mxu1 %vm312_vm7, %v13790_v11 }
 0x97c   :  { %v1611_v62 = vpop.f32.mrf.mxu1 }
 0x97d   :  { %v13799_v10 = vadd.f32 %v1611_v62, %v13358_v27 }
 0x97e   :  { %v10894_v43 = vpop.f32.mrf.mxu1 }
 0x97f   :  { %v1640_v26 = vand.u32 2147483647, %v13799_v10 }
 0x980   :  { %v1616_v57 = vpop.f32.mrf.mxu1 }
 0x981   :  { %v13795_v60 = vadd.f32 %v1616_v57, %v13353_v23  ;;  %v1645_v6 = vsub.f32 0.0, %v1640_v26 }
 0x982   :  { %v10897_v35 = vpop.f32.mrf.mxu1 }
 0x983   :  { %v1641_v16 = vand.u32 2147483647, %v13795_v60  ;;  %v1650_v54 = vmul.f32 1.442695, %v1645_v6 }
 0x984   :  { %v1621_v58 = vpop.f32.mrf.mxu1 }
 0x985   :  { %v13802_v15 = vadd.f32 %v1621_v58, %v13351_v21  ;;  %v1646_v55 = vsub.f32 0.0, %v1641_v16 }
 0x986   :  { %v10900_v4 = vpop.f32.mrf.mxu1 }
 0x987   :  { %v1642_v63 = vand.u32 2147483647, %v13802_v15  ;;  %v1652_v7 = vmul.f32 1.442695, %v1646_v55 }
 0x988   :  { %v1626_v22 = vpop.f32.mrf.mxu1 }
 0x989   :  { %v1647_v59 = vsub.f32 0.0, %v1642_v63  ;;  %v13807_v20 = vadd.f32 %v1626_v22, %v13349_v19  ;;  %12195 = vpow2.f32 %v1652_v7 }
 0x98a   :  { %v10903_v42 = vpop.f32.mrf.mxu1 }
 0x98b   :  { %v1643_v14 = vand.u32 2147483647, %v13807_v20  ;;  %v1654_v9 = vmul.f32 1.442695, %v1647_v59 }
 0x98c   :  { %v1631_v25 = vpop.f32.mrf.mxu1 }
 0x98d   :  { %v1648_v52 = vsub.f32 0.0, %v1643_v14  ;;  %v1632_v36 = vadd.f32 %v1631_v25, %v13347_v18  ;;  %12197 = vpow2.f32 %v1654_v9 }
 0x98e   :  { %v10906_v46 = vpop.f32.mrf.mxu1 }
 0x98f   :  { %v1656_v0 = vmul.f32 1.442695, %v1648_v52  ;;  %v1644_v49 = vand.u32 2147483647, %v1632_v36 }
 0x991   :  { %12199 = vpow2.f32 %v1656_v0  ;;  %v1649_v3 = vsub.f32 0.0, %v1644_v49 }
 0x992   :  { %12201 = vpow2.f32 %v1650_v54 }
 0x993   :  { %v1658_v29 = vmul.f32 1.442695, %v1649_v3 }
 0x995   :  { %12203 = vpow2.f32 %v1658_v29 }
 0x996   :  { %v12196_v30 = vpop.eup %12195 }
 0x997   :  { %v1669_v16 = vadd.f32 1.0, %v12196_v30  ;;  %v1672_v7 = vmul.f32 -0.5, %v12196_v30  ;;  %v1675_v21 = vand.u32 2147483647, %v12196_v30 }
 0x999   :  { %v1673_v29 = vadd.f32 1.0, %v1672_v7  ;;  %vm1676_vm15 = vcmp.lt.f32.partialorder %v1675_v21, 0.0004427343 }
 0x99a   :  { %v12198_v2 = vpop.eup %12197 }
 0x99b   :  { %v1678_v57 = vadd.f32 1.0, %v12198_v2  ;;  %v1681_v22 = vmul.f32 -0.5, %v12198_v2  ;;  %v1674_v7 = vmul.f32 %v12196_v30, %v1673_v29 }
 0x99d   :  { %v1682_v0 = vadd.f32 1.0, %v1681_v22  ;;  %v1638_v22 = vmax.f32 %v13807_v20, 0.0 }
 0x99e   :  { %v12200_v62 = vpop.eup %12199 }
 0x99f   :  { %v1687_v43 = vadd.f32 1.0, %v12200_v62  ;;  %v12202_v35 = vpop.eup %12201  ;;  %v1690_v63 = vmul.f32 -0.5, %v12200_v62  ;;  %v1693_v25 = vand.u32 2147483647, %v12200_v62 }
 0x9a0   :  { %v1660_v4 = vadd.f32 1.0, %v12202_v35  ;;  %v1663_v42 = vmul.f32 -0.5, %v12202_v35  ;;  %v1666_v11 = vand.u32 2147483647, %v12202_v35 }
 0x9a1   :  { %12205 = vlog2.f32 %v1687_v43  ;;  %v1691_v14 = vadd.f32 1.0, %v1690_v63  ;;  %v1684_v43 = vand.u32 2147483647, %v12198_v2  ;;  %vm1694_vm12 = vcmp.lt.f32.partialorder %v1693_v25, 0.0004427343 }
 0x9a2   :  { %v12204_v58 = vpop.eup %12203  ;;  %12207 = vlog2.f32 %v1678_v57  ;;  %v1664_v3 = vadd.f32 1.0, %v1663_v42  ;;  %v1639_v57 = vmax.f32 %v1632_v36, 0.0  ;;  %vm1667_vm2 = vcmp.lt.f32.partialorder %v1666_v11, 0.0004427343  ;;  %v13832_v11 = vld [vmem:[%s16522_s1 + $0x58] sm:$0xff] }
 0x9a3   :  { %v1696_v55 = vadd.f32 1.0, %v12204_v58  ;;  %12209 = vlog2.f32 %v1669_v16  ;;  %v1699_v26 = vmul.f32 -0.5, %v12204_v58  ;;  %v1702_v52 = vand.u32 2147483647, %v12204_v58 }
 0x9a4   :  { %vm1685_vm14 = vcmp.lt.f32.partialorder %v1684_v43, 0.0004427343 }
 0x9a5   :  { %12211 = vlog2.f32 %v1696_v55  ;;  %v1700_v6 = vadd.f32 1.0, %v1699_v26  ;;  %vm1703_vm13 = vcmp.lt.f32.partialorder %v1702_v52, 0.0004427343  ;;  %v1683_v26 = vmul.f32 %v12198_v2, %v1682_v0 }
 0x9a6   :  { %12213 = vlog2.f32 %v1660_v4  ;;  %v1692_v4 = vmul.f32 %v12200_v62, %v1691_v14  ;;  %v1637_v62 = vmax.f32 %v13802_v15, 0.0  ;;  %v1665_v14 = vmul.f32 %v12202_v35, %v1664_v3  ;;  %v13859_v15 = vld [vmem:[%s16522_s1 + $0x70] sm:$0xff] }
 0x9a7   :  { %v1701_v18 = vmul.f32 %v12204_v58, %v1700_v6 }
 0x9ae   :  { %v12206_v59 = vpop.eup %12205 }
 0x9af   :  { %v12208_v9 = vpop.eup %12207  ;;  %v1689_v49 = vmul.f32 0.6931472, %v12206_v59 }
 0x9b0   :  { %v12210_v46 = vpop.eup %12209  ;;  %v1680_v16 = vmul.f32 0.6931472, %v12208_v9 }
 0x9b1   :  { %v1671_v63 = vmul.f32 0.6931472, %v12210_v46  ;;  %v1695_v27 = vsel %vm1694_vm12, %v1692_v4, %v1689_v49 }
 0x9b2   :  { %v12212_v54 = vpop.eup %12211  ;;  %v1686_v36 = vsel %vm1685_vm14, %v1683_v26, %v1680_v16  ;;  %v1708_v58 = vadd.f32 %v1695_v27, %v1638_v22  ;;  %v13822_v27 = vld [vmem:[%s16522_s1 + $0x50] sm:$0xff] }
 0x9b3   :  { %v1698_v55 = vmul.f32 0.6931472, %v12212_v54  ;;  %v12214_v19 = vpop.eup %12213  ;;  %v1677_v6 = vsel %vm1676_vm15, %v1674_v7, %v1671_v63  ;;  %v1707_v2 = vadd.f32 %v1686_v36, %v1637_v62 }
 0x9b4   :  { %v1662_v42 = vmul.f32 0.6931472, %v12214_v19  ;;  %v1635_v19 = vmax.f32 %v13799_v10, 0.0  ;;  %v13850_v10 = vld [vmem:[%s16522_s1 + $0x68] sm:$0xff] }
 0x9b5   :  { %v1704_v23 = vsel %vm1703_vm13, %v1701_v18, %v1698_v55  ;;  %v1636_v18 = vmax.f32 %v13795_v60, 0.0  ;;  %v13841_v60 = vld [vmem:[%s16522_s1 + $0x60] sm:$0xff] }
 0x9b6   :  { %v1709_v59 = vadd.f32 %v1704_v23, %v1639_v57  ;;  %v1668_v9 = vsel %vm1667_vm2, %v1665_v14, %v1662_v42 }
 0x9b7   :  { %v1706_v23 = vadd.f32 %v1677_v6, %v1636_v18  ;;  %v1705_v21 = vadd.f32 %v1668_v9, %v1635_v19 }
 0x9b8   :  { %10908 = vmatpush3.msra.mxu0 %v1709_v59 }
 0x9b9   :  { %10909 = vmatprep.subr.mxu0 %v16629_v34 }
 0x9ba   :  { %10910 = vmatpush3.msra.mxu0 %v1708_v58 }
 0x9bb   :  { %10911 = vmatprep.subr.mxu0 %v16629_v34 }
 0x9bc   :  { %10912 = vmatpush3.msra.mxu0 %v1707_v2 }
 0x9bd   :  { %10913 = vmatprep.subr.mxu0 %v16629_v34 }
 0x9be   :  { %10914 = vmatpush3.msra.mxu0 %v1706_v23 }
 0x9bf   :  { %10915 = vmatprep.subr.mxu0 %v16629_v34 }
 0x9c0   :  { %10916 = vmatpush3.msra.mxu0 %v1705_v21 }
 0x9c1   :  { %10918 = vmatmul.mubr.msk.f32.vlgmr.msra.gmra.mxu0 %vm312_vm7, %v13822_v27  ;;  %10964 = vmatprep.subr.mxu0 %v16629_v34 }
 0x9c2   :  { %10920 = vmatprep.mubr.msk.f32.mxu0 %vm13134_vm1, %v16629_v34 }
 0x9c5   :  { %10921 = vmatmul.mubr.msk.f32.gmra.mxu0 %vm312_vm7, %v13832_v11 }
 0x9c6   :  { %10923 = vmatprep.mubr.msk.f32.mxu0 %vm13134_vm1, %v16629_v34 }
 0x9c9   :  { %10924 = vmatmul.mubr.msk.f32.gmra.mxu0 %vm312_vm7, %v13841_v60 }
 0x9ca   :  { %10926 = vmatprep.mubr.msk.f32.mxu0 %vm13134_vm1, %v16629_v34 }
 0x9cd   :  { %10927 = vmatmul.mubr.msk.f32.gmra.mxu0 %vm312_vm7, %v13850_v10 }
 0x9ce   :  { %10929 = vmatprep.mubr.msk.f32.mxu0 %vm13134_vm1, %v16629_v34 }
 0x9d1   :  { %10930 = vmatmul.mubr.msk.f32.gmra.mxu0 %vm312_vm7, %v13859_v15 }
 0x9d2   :  { %10974 = vmatprep.mubr.msk.f32.mxu0 %vm13134_vm1, %v16629_v34 }
 0xa81   :  { %v1776_v20 = vpop.f32.mrf.mxu0 }
 0xa82   :  { %v13869_v46 = vadd.f32 %v1776_v20, %v16632_v24 }
 0xa83   :  { %v10919_v30 = vpop.f32.mrf.mxu0 }
 0xa84   :  { %v1805_v29 = vand.u32 2147483647, %v13869_v46 }
 0xa85   :  { %v1781_v35 = vpop.f32.mrf.mxu0 }
 0xa86   :  { %v13866_v25 = vadd.f32 %v1781_v35, %v16631_v8  ;;  %v1810_v26 = vsub.f32 0.0, %v1805_v29 }
 0xa87   :  { %v10922_v52 = vpop.f32.mrf.mxu0 }
 0xa88   :  { %v1806_v0 = vand.u32 2147483647, %v13866_v25  ;;  %v1815_v14 = vmul.f32 1.442695, %v1810_v26 }
 0xa89   :  { %v1786_v49 = vpop.f32.mrf.mxu0 }
 0xa8a   :  { %v13873_v54 = vadd.f32 %v1786_v49, %v16633_v12  ;;  %v1811_v57 = vsub.f32 0.0, %v1806_v0 }
 0xa8b   :  { %v10925_v3 = vpop.f32.mrf.mxu0 }
 0xa8c   :  { %v1807_v43 = vand.u32 2147483647, %v13873_v54  ;;  %v1817_v42 = vmul.f32 1.442695, %v1811_v57 }
 0xa8d   :  { %v1791_v16 = vpop.f32.mrf.mxu0 }
 0xa8e   :  { %v1812_v4 = vsub.f32 0.0, %v1807_v43  ;;  %v13878_v55 = vadd.f32 %v1791_v16, %v16634_v5 }
 0xa8f   :  { %v10928_v63 = vpop.f32.mrf.mxu0 }
 0xa90   :  { %v1819_v22 = vmul.f32 1.442695, %v1812_v4  ;;  %v1808_v59 = vand.u32 2147483647, %v13878_v55 }
 0xa91   :  { %v1796_v7 = vpop.f32.mrf.mxu0 }
 0xa92   :  { %v1813_v36 = vsub.f32 0.0, %v1808_v59  ;;  %v1797_v62 = vadd.f32 %v1796_v7, %v16635_v61  ;;  %12215 = vpow2.f32 %v1819_v22 }
 0xa93   :  { %v10931_v58 = vpop.f32.mrf.mxu0  ;;  %12217 = vpow2.f32 %v1817_v42 }
 0xa94   :  { %v1821_v6 = vmul.f32 1.442695, %v1813_v36  ;;  %v1809_v18 = vand.u32 2147483647, %v1797_v62 }
 0xa96   :  { %12219 = vpow2.f32 %v1821_v6  ;;  %v1814_v2 = vsub.f32 0.0, %v1809_v18  ;;  %v1804_v18 = vmax.f32 %v1797_v62, 0.0 }
 0xa97   :  { %12221 = vpow2.f32 %v1815_v14 }
 0xa98   :  { %v1823_v9 = vmul.f32 1.442695, %v1814_v2 }
 0xa9a   :  { %12223 = vpow2.f32 %v1823_v9 }
 0xa9f   :  { %v12216_v19 = vpop.eup %12215 }
 0xaa0   :  { %v12218_v23 = vpop.eup %12217  ;;  %v1843_v30 = vadd.f32 1.0, %v12216_v19  ;;  %v1846_v57 = vmul.f32 -0.5, %v12216_v19  ;;  %v1849_v2 = vand.u32 2147483647, %v12216_v19 }
 0xaa1   :  { %v1834_v52 = vadd.f32 1.0, %v12218_v23  ;;  %v1837_v4 = vmul.f32 -0.5, %v12218_v23 }
 0xaa2   :  { %v1847_v14 = vadd.f32 1.0, %v1846_v57  ;;  %vm1850_vm5 = vcmp.lt.f32.partialorder %v1849_v2, 0.0004427343 }
 0xaa3   :  { %v12220_v21 = vpop.eup %12219  ;;  %v1838_v9 = vadd.f32 1.0, %v1837_v4 }
 0xaa4   :  { %v1852_v20 = vadd.f32 1.0, %v12220_v21  ;;  %v12222_v35 = vpop.eup %12221  ;;  %v1855_v43 = vmul.f32 -0.5, %v12220_v21  ;;  %v1858_v7 = vand.u32 2147483647, %v12220_v21  ;;  %v1848_v12 = vmul.f32 %v12216_v19, %v1847_v14 }
 0xaa5   :  { %v1825_v3 = vadd.f32 1.0, %v12222_v35  ;;  %v1828_v63 = vmul.f32 -0.5, %v12222_v35  ;;  %v1831_v62 = vand.u32 2147483647, %v12222_v35  ;;  %v1839_v4 = vmul.f32 %v12218_v23, %v1838_v9 }
 0xaa6   :  { %12225 = vlog2.f32 %v1852_v20  ;;  %v1856_v22 = vadd.f32 1.0, %v1855_v43  ;;  %vm1859_vm4 = vcmp.lt.f32.partialorder %v1858_v7, 0.0004427343 }
 0xaa7   :  { %v12224_v0 = vpop.eup %12223  ;;  %12227 = vlog2.f32 %v1843_v30  ;;  %v1829_v20 = vadd.f32 1.0, %v1828_v63  ;;  %vm1832_vm8 = vcmp.lt.f32.partialorder %v1831_v62, 0.0004427343 }
 0xaa8   :  { %v1861_v49 = vadd.f32 1.0, %v12224_v0  ;;  %12229 = vlog2.f32 %v1834_v52  ;;  %v1864_v29 = vmul.f32 -0.5, %v12224_v0  ;;  %v1867_v42 = vand.u32 2147483647, %v12224_v0 }
 0xaaa   :  { %12231 = vlog2.f32 %v1861_v49  ;;  %v1865_v26 = vadd.f32 1.0, %v1864_v29  ;;  %v1857_v49 = vmul.f32 %v12220_v21, %v1856_v22  ;;  %vm1868_vm3 = vcmp.lt.f32.partialorder %v1867_v42, 0.0004427343 }
 0xaab   :  { %12233 = vlog2.f32 %v1825_v3  ;;  %v1840_v29 = vand.u32 2147483647, %v12218_v23  ;;  %v1830_v22 = vmul.f32 %v12222_v35, %v1829_v20  ;;  %v1800_v42 = vmax.f32 %v13869_v46, 0.0 }
 0xaac   :  { %v1866_v52 = vmul.f32 %v12224_v0, %v1865_v26  ;;  %v1802_v0 = vmax.f32 %v13873_v54, 0.0 }
 0xaad   :  { %vm1841_vm6 = vcmp.lt.f32.partialorder %v1840_v29, 0.0004427343 }
 0xab3   :  { %v12226_v16 = vpop.eup %12225 }
 0xab4   :  { %v12228_v59 = vpop.eup %12227  ;;  %v1854_v58 = vmul.f32 0.6931472, %v12226_v16  ;;  %v1803_v16 = vmax.f32 %v13878_v55, 0.0 }
 0xab5   :  { %v12230_v36 = vpop.eup %12229  ;;  %v1845_v3 = vmul.f32 0.6931472, %v12228_v59  ;;  %v1801_v59 = vmax.f32 %v13866_v25, 0.0 }
 0xab6   :  { %v1860_v5 = vsel %vm1859_vm4, %v1857_v49, %v1854_v58  ;;  %v1836_v24 = vmul.f32 0.6931472, %v12230_v36 }
 0xab7   :  { %v12232_v6 = vpop.eup %12231  ;;  %v1851_v8 = vsel %vm1850_vm5, %v1848_v12, %v1845_v3  ;;  %v1873_v21 = vadd.f32 %v1860_v5, %v1803_v16 }
 0xab8   :  { %v1863_v30 = vmul.f32 0.6931472, %v12232_v6  ;;  %v12234_v61 = vpop.eup %12233  ;;  %v1842_v26 = vsel %vm1841_vm6, %v1839_v4, %v1836_v24  ;;  %v1872_v19 = vadd.f32 %v1851_v8, %v1802_v0  ;;  %v13889_v24 = vld [vmem:[%s16522_s1 + $0x80] sm:$0xff]  ;;  %v16561_v8 = vmov 3  }
 0xab9   :  { %v1827_v63 = vmul.f32 0.6931472, %v12234_v61  ;;  %v1871_v12 = vadd.f32 %v1842_v26, %v1801_v59  ;;  %12027 = vset.pattern.permute.xlu1 %v16561_v8  ;;  %12028 = vset.pattern.permute.xlu0 %v16561_v8 }
 0xaba   :  { %v1869_v43 = vsel %vm1868_vm3, %v1866_v52, %v1863_v30  ;;  %1975 = vperm.xlu1 %12027, %v13635_v39   ;;  %1971 = vperm.xlu0 %12028, %v13641_v40  }
 0xabb   :  { %v1874_v57 = vadd.f32 %v1869_v43, %v1804_v18  ;;  %v1833_v55 = vsel %vm1832_vm8, %v1830_v22, %v1827_v63 }
 0xabc   :  { %v1870_v61 = vadd.f32 %v1833_v55, %v1800_v42 }
 0xabd   :  { %10932 = vmatprep.subr.mxu1 %v1874_v57 }
 0xabe   :  { %10933 = vmatpush3.msra.mxu1 %v1874_v57  ;;  %1967 = vperm.xlu1 %12027, %v13647_v56  }
 0xabf   :  { %10934 = vmatprep.subr.mxu1 %v1873_v21  ;;  %1959 = vperm.xlu0 %12028, %v13653_v48  }
 0xac0   :  { %10935 = vmatpush3.msra.mxu1 %v1873_v21 }
 0xac1   :  { %10936 = vmatprep.subr.mxu1 %v1872_v19 }
 0xac2   :  { %10937 = vmatpush3.msra.mxu1 %v1872_v19  ;;  %1963 = vperm.xlu1 %12027, %v13659_v1  }
 0xac3   :  { %10938 = vmatprep.subr.mxu1 %v1871_v12 }
 0xac4   :  { %10939 = vmatpush3.msra.mxu1 %v1871_v12 }
 0xac5   :  { %10940 = vmatprep.subr.mxu1 %v1870_v61 }
 0xac6   :  { %10941 = vmatpush3.msra.mxu1 %v1870_v61 }
 0xac7   :  { %10943 = vmatmul.mubr.msk.f32.vlgmr.msra.gmra.mxu1 %vm312_vm7, %v13889_v24  ;;  %10945 = vmatprep.subr.mxu1 %v16629_v34 }
 0xac8   :  { %10949 = vmatprep.mubr.msk.f32.mxu1 %vm13134_vm1, %v16629_v34 }
 0xb35   :  { %v1976_v48 = vpop.permute.xlu1 %1975 }
 0xb39   :  { %v1968_v1 = vpop.permute.xlu1 %1967 }
 0xb87   :  { %v10944_v5 = vpop.f32.mrf.mxu1 }
 0xb88   :  { %v1947_v25 = vadd.f32 %v10944_v5, %v13483_v47 }
 0xb89   :  { %v1941_v46 = vpop.f32.mrf.mxu1 }
 0xb8a   :  { %v1951_v54 = vmul.f32 0.16666667, %v1947_v25  ;;  %v1955_v23 = vmul.f32 0.5, %v1947_v25  ;;  %v1942_v35 = vadd.f32 %v1941_v46, %v13488_v53 }
 0xb8c   :  { %v13906_v7 = vadd.f32 %v1951_v54, %v13672_v37  ;;  %v1950_v39 = vmul.f32 0.16666667, %v1942_v35  ;;  %v1954_v36 = vmul.f32 0.5, %v1942_v35  ;;  %10946 = vmatpush3.msra.mxu1 %v1955_v23 }
 0xb8d   :  { %10947 = vmatprep.subr.mxu1 %v16629_v34 }
 0xb8e   :  { %v13910_v40 = vadd.f32 %v1950_v39, %v13675_v13  ;;  %v1956_v56 = vadd.f32 %v13669_v33, %v1954_v36  ;;  %v1972_v33 = vpop.permute.xlu0 %1971 }
 0xb90   :  { %10948 = vmatpush3.msra.mxu1 %v1956_v56 }
 0xb91   :  { %10950 = vmatmul.mubr.msk.f32.vlgmr.msra.gmra.mxu1 %vm131_vm0, %v13681_v32  ;;  %10989 = vmatprep.subr.mxu1 %v16629_v34  ;;  %v1964_v32 = vpop.permute.xlu1 %1963 }
 0xb92   :  { %10952 = vmatprep.mubr.msk.f32.mxu1 %vm13134_vm1, %v16629_v34 }
 0xb95   :  { %10953 = vmatmul.mubr.msk.f32.gmra.mxu1 %vm131_vm0, %v13691_v28 }
 0xb96   :  { %10955 = vmatprep.mubr.msk.f32.mxu1 %vm13134_vm1, %v16629_v34 }
 0xb99   :  { %10956 = vmatmul.mubr.msk.f32.gmra.mxu1 %vm131_vm0, %v13700_v41  ;;  %v1960_v41 = vpop.permute.xlu0 %1959 }
 0xb9a   :  { %10958 = vmatprep.mubr.msk.f32.mxu1 %vm13134_vm1, %v16629_v34 }
 0xb9d   :  { %10959 = vmatmul.mubr.msk.f32.gmra.mxu1 %vm131_vm0, %v13709_v17 }
 0xb9e   :  { %10961 = vmatprep.mubr.msk.f32.mxu1 %vm13134_vm1, %v16629_v34 }
 0xba1   :  { %10962 = vmatmul.mubr.msk.f32.gmra.mxu1 %vm131_vm0, %v13718_v31 }
 0xba2   :  { %10999 = vmatprep.mubr.msk.f32.mxu1 %vm13134_vm1, %v16629_v34 }
 0xc51   :  { %v2044_v37 = vpop.f32.mrf.mxu1 }
 0xc52   :  { %v13937_v6 = vadd.f32 %v2044_v37, %v1960_v41 }
 0xc53   :  { %v10951_v13 = vpop.f32.mrf.mxu1 }
 0xc54   :  { %v2073_v30 = vand.u32 2147483647, %v13937_v6 }
 0xc55   :  { %v2049_v28 = vpop.f32.mrf.mxu1 }
 0xc56   :  { %v13934_v58 = vadd.f32 %v2049_v28, %v1964_v32  ;;  %v2078_v57 = vsub.f32 0.0, %v2073_v30 }
 0xc57   :  { %v10954_v17 = vpop.f32.mrf.mxu1 }
 0xc58   :  { %v2074_v14 = vand.u32 2147483647, %v13934_v58  ;;  %v2083_v59 = vmul.f32 1.442695, %v2078_v57 }
 0xc59   :  { %v2054_v18 = vpop.f32.mrf.mxu1 }
 0xc5a   :  { %v13939_v31 = vadd.f32 %v2054_v18, %v1968_v1  ;;  %v2079_v9 = vsub.f32 0.0, %v2074_v14 }
 0xc5b   :  { %v10957_v2 = vpop.f32.mrf.mxu1 }
 0xc5c   :  { %v2075_v20 = vand.u32 2147483647, %v13939_v31  ;;  %v2085_v43 = vmul.f32 1.442695, %v2079_v9 }
 0xc5d   :  { %v2059_v52 = vpop.f32.mrf.mxu1 }
 0xc5e   :  { %v2080_v49 = vsub.f32 0.0, %v2075_v20  ;;  %v13943_v3 = vadd.f32 %v2059_v52, %v1972_v33  ;;  %12235 = vpow2.f32 %v2085_v43 }
 0xc5f   :  { %v10960_v29 = vpop.f32.mrf.mxu1 }
 0xc60   :  { %v2076_v16 = vand.u32 2147483647, %v13943_v3  ;;  %v2087_v62 = vmul.f32 1.442695, %v2080_v49 }
 0xc61   :  { %v2064_v4 = vpop.f32.mrf.mxu1 }
 0xc62   :  { %v2081_v63 = vsub.f32 0.0, %v2076_v16  ;;  %v2065_v0 = vadd.f32 %v2064_v4, %v1976_v48  ;;  %12237 = vpow2.f32 %v2087_v62 }
 0xc63   :  { %v10963_v21 = vpop.f32.mrf.mxu1 }
 0xc64   :  { %v2089_v26 = vmul.f32 1.442695, %v2081_v63  ;;  %v2077_v22 = vand.u32 2147483647, %v2065_v0  ;;  %v2072_v49 = vmax.f32 %v2065_v0, 0.0 }
 0xc66   :  { %12239 = vpow2.f32 %v2089_v26  ;;  %v2082_v19 = vsub.f32 0.0, %v2077_v22 }
 0xc67   :  { %12241 = vpow2.f32 %v2083_v59 }
 0xc68   :  { %v2091_v55 = vmul.f32 1.442695, %v2082_v19  ;;  %v2071_v19 = vmax.f32 %v13943_v3, 0.0  ;;  %v2068_v3 = vmax.f32 %v13937_v6, 0.0 }
 0xc6a   :  { %12243 = vpow2.f32 %v2091_v55 }
 0xc6b   :  { %v12236_v42 = vpop.eup %12235 }
 0xc6c   :  { %v2102_v54 = vadd.f32 1.0, %v12236_v42  ;;  %v2105_v37 = vmul.f32 -0.5, %v12236_v42  ;;  %v2108_v4 = vand.u32 2147483647, %v12236_v42 }
 0xc6e   :  { %v2106_v30 = vadd.f32 1.0, %v2105_v37  ;;  %vm2109_vm12 = vcmp.lt.f32.partialorder %v2108_v4, 0.0004427343  ;;  %v16640_v37 = vld [vmem:[#allocation4_spill] sm:$0xff] }
 0xc6f   :  { %v12238_v12 = vpop.eup %12237 }
 0xc70   :  { %v2111_v25 = vadd.f32 1.0, %v12238_v12  ;;  %v2114_v48 = vmul.f32 -0.5, %v12238_v12  ;;  %v2117_v52 = vand.u32 2147483647, %v12238_v12 }
 0xc72   :  { %v2115_v18 = vadd.f32 1.0, %v2114_v48  ;;  %vm2118_vm11 = vcmp.lt.f32.partialorder %v2117_v52, 0.0004427343 }
 0xc73   :  { %v12240_v61 = vpop.eup %12239 }
 0xc74   :  { %v2120_v5 = vadd.f32 1.0, %v12240_v61  ;;  %v12242_v46 = vpop.eup %12241  ;;  %v2123_v36 = vmul.f32 -0.5, %v12240_v61  ;;  %v2126_v41 = vand.u32 2147483647, %v12240_v61  ;;  %v2116_v21 = vmul.f32 %v12238_v12, %v2115_v18  ;;  %v16641_v18 = vld [vmem:[#allocation3_spill] sm:$0xff] }
 0xc75   :  { %v2093_v35 = vadd.f32 1.0, %v12242_v46  ;;  %v2096_v33 = vmul.f32 -0.5, %v12242_v46  ;;  %v2099_v59 = vand.u32 2147483647, %v12242_v46  ;;  %v2069_v12 = vmax.f32 %v13934_v58, 0.0 }
 0xc76   :  { %12245 = vlog2.f32 %v2120_v5  ;;  %v2124_v13 = vadd.f32 1.0, %v2123_v36  ;;  %vm2127_vm9 = vcmp.lt.f32.partialorder %v2126_v41, 0.0004427343 }
 0xc77   :  { %v12244_v23 = vpop.eup %12243  ;;  %12247 = vlog2.f32 %v2111_v25  ;;  %v2097_v20 = vadd.f32 1.0, %v2096_v33  ;;  %v2107_v25 = vmul.f32 %v12236_v42, %v2106_v30  ;;  %vm2100_vm13 = vcmp.lt.f32.partialorder %v2099_v59, 0.0004427343 }
 0xc78   :  { %v2129_v39 = vadd.f32 1.0, %v12244_v23  ;;  %12249 = vlog2.f32 %v2102_v54  ;;  %v2132_v56 = vmul.f32 -0.5, %v12244_v23  ;;  %v2135_v17 = vand.u32 2147483647, %v12244_v23 }
 0xc79   :  { %v2125_v43 = vmul.f32 %v12240_v61, %v2124_v13  ;;  %v2070_v61 = vmax.f32 %v13939_v31, 0.0 }
 0xc7a   :  { %12251 = vlog2.f32 %v2129_v39  ;;  %v2133_v32 = vadd.f32 1.0, %v2132_v56  ;;  %vm2136_vm10 = vcmp.lt.f32.partialorder %v2135_v17, 0.0004427343 }
 0xc7b   :  { %12253 = vlog2.f32 %v2093_v35 }
 0xc7c   :  { %v2134_v57 = vmul.f32 %v12244_v23, %v2133_v32  ;;  %v2098_v23 = vmul.f32 %v12242_v46, %v2097_v20  ;;  %v16638_v46 = vld [vmem:[#allocation5_spill] sm:$0xff] }
 0xc83   :  { %v12246_v1 = vpop.eup %12245 }
 0xc84   :  { %v12248_v28 = vpop.eup %12247  ;;  %v2122_v2 = vmul.f32 0.6931472, %v12246_v1  ;;  %v16639_v1 = vld [vmem:[#allocation6_spill] sm:$0xff] }
 0xc85   :  { %v12250_v14 = vpop.eup %12249  ;;  %v2113_v29 = vmul.f32 0.6931472, %v12248_v28 }
 0xc86   :  { %v2104_v63 = vmul.f32 0.6931472, %v12250_v14  ;;  %v2128_v26 = vsel %vm2127_vm9, %v2125_v43, %v2122_v2 }
 0xc87   :  { %v12252_v9 = vpop.eup %12251  ;;  %v2119_v0 = vsel %vm2118_vm11, %v2116_v21, %v2113_v29  ;;  %v2141_v54 = vadd.f32 %v2128_v26, %v2071_v19 }
 0xc88   :  { %v2131_v16 = vmul.f32 0.6931472, %v12252_v9  ;;  %v12254_v62 = vpop.eup %12253  ;;  %v2110_v35 = vsel %vm2109_vm12, %v2107_v25, %v2104_v63  ;;  %v2140_v39 = vadd.f32 %v2119_v0, %v2070_v61 }
 0xc89   :  { %v2095_v5 = vmul.f32 0.6931472, %v12254_v62  ;;  %v2139_v42 = vadd.f32 %v2110_v35, %v2069_v12 }
 0xc8a   :  { %v2137_v22 = vsel %vm2136_vm10, %v2134_v57, %v2131_v16  ;;  %v16642_v16 = vld [vmem:[#allocation2_spill] sm:$0xff] }
 0xc8b   :  { %v2142_v55 = vadd.f32 %v2137_v22, %v2072_v49  ;;  %v2101_v36 = vsel %vm2100_vm13, %v2098_v23, %v2095_v5 }
 0xc8c   :  { %v2138_v31 = vadd.f32 %v2101_v36, %v2068_v3 }
 0xc8d   :  { %10965 = vmatpush3.msra.mxu0 %v2142_v55 }
 0xc8e   :  { %10966 = vmatprep.subr.mxu0 %v16629_v34 }
 0xc8f   :  { %10967 = vmatpush3.msra.mxu0 %v2141_v54 }
 0xc90   :  { %10968 = vmatprep.subr.mxu0 %v16629_v34 }
 0xc91   :  { %10969 = vmatpush3.msra.mxu0 %v2140_v39 }
 0xc92   :  { %10970 = vmatprep.subr.mxu0 %v16629_v34 }
 0xc93   :  { %10971 = vmatpush3.msra.mxu0 %v2139_v42 }
 0xc94   :  { %10972 = vmatprep.subr.mxu0 %v16629_v34 }
 0xc95   :  { %10973 = vmatpush3.msra.mxu0 %v2138_v31 }
 0xc96   :  { %10975 = vmatmul.mubr.msk.f32.vlgmr.msra.gmra.mxu0 %vm312_vm7, %v13747_v44  ;;  %v16637_v44 = vld [vmem:[#allocation7_spill] sm:$0xff] }
 0xc97   :  { %10977 = vmatprep.mubr.msk.f32.mxu0 %vm13134_vm1, %v16629_v34 }
 0xc9a   :  { %10978 = vmatmul.mubr.msk.f32.gmra.mxu0 %vm312_vm7, %v13756_v50 }
 0xc9b   :  { %10980 = vmatprep.mubr.msk.f32.mxu0 %vm13134_vm1, %v16629_v34 }
 0xc9e   :  { %10981 = vmatmul.mubr.msk.f32.gmra.mxu0 %vm312_vm7, %v13765_v45 }
 0xc9f   :  { %10983 = vmatprep.mubr.msk.f32.mxu0 %vm13134_vm1, %v16629_v34 }
 0xca2   :  { %10984 = vmatmul.mubr.msk.f32.gmra.mxu0 %vm312_vm7, %v13774_v51 }
 0xca3   :  { %10986 = vmatprep.mubr.msk.f32.mxu0 %vm13134_vm1, %v16629_v34 }
 0xca6   :  { %10987 = vmatmul.mubr.msk.f32.gmra.mxu0 %vm312_vm7, %v13783_v38 }
 0xca7   :  { %11024 = vmatprep.mubr.msk.f32.mxu0 %vm312_vm7, %v16637_v44 }
 0xd56   :  { %v2209_v50 = vpop.f32.mrf.mxu0 }
 0xd57   :  { %v13979_v51 = vadd.f32 %v2209_v50, %v16639_v1 }
 0xd58   :  { %v10976_v58 = vpop.f32.mrf.mxu0 }
 0xd59   :  { %v2238_v41 = vand.u32 2147483647, %v13979_v51 }
 0xd5a   :  { %v2214_v6 = vpop.f32.mrf.mxu0 }
 0xd5b   :  { %v13975_v45 = vadd.f32 %v2214_v6, %v16638_v46  ;;  %v2243_v52 = vsub.f32 0.0, %v2238_v41 }
 0xd5c   :  { %v10979_v56 = vpop.f32.mrf.mxu0 }
 0xd5d   :  { %v2239_v48 = vand.u32 2147483647, %v13975_v45  ;;  %v2248_v21 = vmul.f32 1.442695, %v2243_v52 }
 0xd5e   :  { %v2219_v33 = vpop.f32.mrf.mxu0 }
 0xd5f   :  { %v13982_v13 = vadd.f32 %v2219_v33, %v16640_v37  ;;  %v2244_v32 = vsub.f32 0.0, %v2239_v48 }
 0xd60   :  { %v10982_v38 = vpop.f32.mrf.mxu0 }
 0xd61   :  { %v2240_v28 = vand.u32 2147483647, %v13982_v13  ;;  %v2250_v20 = vmul.f32 1.442695, %v2244_v32 }
 0xd62   :  { %v2224_v17 = vpop.f32.mrf.mxu0 }
 0xd63   :  { %v2245_v14 = vsub.f32 0.0, %v2240_v28  ;;  %v13987_v2 = vadd.f32 %v2224_v17, %v16641_v18  ;;  %12255 = vpow2.f32 %v2250_v20 }
 0xd64   :  { %v10985_v9 = vpop.f32.mrf.mxu0 }
 0xd65   :  { %v2241_v30 = vand.u32 2147483647, %v13987_v2  ;;  %v2252_v49 = vmul.f32 1.442695, %v2245_v14 }
 0xd66   :  { %v2229_v29 = vpop.f32.mrf.mxu0 }
 0xd67   :  { %v2246_v43 = vsub.f32 0.0, %v2241_v30  ;;  %v2230_v57 = vadd.f32 %v2229_v29, %v16642_v16  ;;  %12257 = vpow2.f32 %v2252_v49 }
 0xd68   :  { %v10988_v62 = vpop.f32.mrf.mxu0 }
 0xd69   :  { %v2254_v4 = vmul.f32 1.442695, %v2246_v43  ;;  %v2242_v63 = vand.u32 2147483647, %v2230_v57  ;;  %v2237_v14 = vmax.f32 %v2230_v57, 0.0 }
 0xd6b   :  { %12259 = vpow2.f32 %v2254_v4  ;;  %v2247_v26 = vsub.f32 0.0, %v2242_v63 }
 0xd6c   :  { %12261 = vpow2.f32 %v2248_v21 }
 0xd6d   :  { %v2256_v22 = vmul.f32 1.442695, %v2247_v26  ;;  %v2236_v26 = vmax.f32 %v13987_v2, 0.0  ;;  %v2233_v2 = vmax.f32 %v13979_v51, 0.0  ;;  %v16643_v51 = vld [vmem:[#allocation11_spill] sm:$0xff] }
 0xd6f   :  { %12263 = vpow2.f32 %v2256_v22 }
 0xd70   :  { %v12256_v59 = vpop.eup %12255 }
 0xd71   :  { %v2267_v61 = vadd.f32 1.0, %v12256_v59  ;;  %v2270_v31 = vmul.f32 -0.5, %v12256_v59  ;;  %v2273_v29 = vand.u32 2147483647, %v12256_v59 }
 0xd73   :  { %v2271_v41 = vadd.f32 1.0, %v2270_v31  ;;  %vm2274_vm3 = vcmp.lt.f32.partialorder %v2273_v29, 0.0004427343 }
 0xd74   :  { %v12258_v19 = vpop.eup %12257 }
 0xd75   :  { %v2276_v25 = vadd.f32 1.0, %v12258_v19  ;;  %v2279_v36 = vmul.f32 -0.5, %v12258_v19  ;;  %v2282_v17 = vand.u32 2147483647, %v12258_v19 }
 0xd77   :  { %v2280_v33 = vadd.f32 1.0, %v2279_v36  ;;  %vm2283_vm2 = vcmp.lt.f32.partialorder %v2282_v17, 0.0004427343 }
 0xd78   :  { %v12260_v55 = vpop.eup %12259 }
 0xd79   :  { %v2285_v5 = vadd.f32 1.0, %v12260_v55  ;;  %v12262_v0 = vpop.eup %12261  ;;  %v2288_v12 = vmul.f32 -0.5, %v12260_v55  ;;  %v2291_v6 = vand.u32 2147483647, %v12260_v55  ;;  %v2281_v62 = vmul.f32 %v12258_v19, %v2280_v33 }
 0xd7a   :  { %v2258_v23 = vadd.f32 1.0, %v12262_v0  ;;  %v2261_v42 = vmul.f32 -0.5, %v12262_v0  ;;  %v2264_v21 = vand.u32 2147483647, %v12262_v0  ;;  %v2234_v19 = vmax.f32 %v13975_v45, 0.0 }
 0xd7b   :  { %12265 = vlog2.f32 %v2285_v5  ;;  %v2289_v44 = vadd.f32 1.0, %v2288_v12  ;;  %vm2292_vm14 = vcmp.lt.f32.partialorder %v2291_v6, 0.0004427343 }
 0xd7c   :  { %v12264_v54 = vpop.eup %12263  ;;  %12267 = vlog2.f32 %v2276_v25  ;;  %v2262_v28 = vadd.f32 1.0, %v2261_v42  ;;  %v2272_v25 = vmul.f32 %v12256_v59, %v2271_v41  ;;  %vm2265_vm4 = vcmp.lt.f32.partialorder %v2264_v21, 0.0004427343  ;;  %v16645_v42 = vld [vmem:[#allocation10_spill] sm:$0xff] }
 0xd7d   :  { %v2294_v35 = vadd.f32 1.0, %v12264_v54  ;;  %12269 = vlog2.f32 %v2267_v61  ;;  %v2297_v39 = vmul.f32 -0.5, %v12264_v54  ;;  %v2300_v56 = vand.u32 2147483647, %v12264_v54 }
 0xd7e   :  { %v2290_v20 = vmul.f32 %v12260_v55, %v2289_v44  ;;  %v2235_v55 = vmax.f32 %v13982_v13, 0.0 }
 0xd7f   :  { %12271 = vlog2.f32 %v2294_v35  ;;  %v2298_v50 = vadd.f32 1.0, %v2297_v39  ;;  %vm2301_vm15 = vcmp.lt.f32.partialorder %v2300_v56, 0.0004427343  ;;  %v16644_v39 = vld [vmem:[#allocation12_spill] sm:$0xff] }
 0xd80   :  { %12273 = vlog2.f32 %v2258_v23 }
 0xd81   :  { %v2299_v52 = vmul.f32 %v12264_v54, %v2298_v50  ;;  %v2263_v54 = vmul.f32 %v12262_v0, %v2262_v28 }
 0xd88   :  { %v12266_v3 = vpop.eup %12265 }
 0xd89   :  { %v12268_v58 = vpop.eup %12267  ;;  %v2287_v38 = vmul.f32 0.6931472, %v12266_v3 }
 0xd8a   :  { %v12270_v48 = vpop.eup %12269  ;;  %v2278_v9 = vmul.f32 0.6931472, %v12268_v58 }
 0xd8b   :  { %v2269_v43 = vmul.f32 0.6931472, %v12270_v48  ;;  %v2293_v4 = vsel %vm2292_vm14, %v2290_v20, %v2287_v38  ;;  %v16646_v48 = vld [vmem:[#allocation9_spill] sm:$0xff]  ;;  %v16647_v20 = vld [vmem:[#allocation8_spill] sm:$0xff] }
 0xd8c   :  { %v12272_v32 = vpop.eup %12271  ;;  %v2284_v57 = vsel %vm2283_vm2, %v2281_v62, %v2278_v9  ;;  %v2306_v61 = vadd.f32 %v2293_v4, %v2236_v26 }
 0xd8d   :  { %v2296_v30 = vmul.f32 0.6931472, %v12272_v32  ;;  %v12274_v49 = vpop.eup %12273  ;;  %v2275_v23 = vsel %vm2274_vm3, %v2272_v25, %v2269_v43  ;;  %v2305_v35 = vadd.f32 %v2284_v57, %v2235_v55 }
 0xd8e   :  { %v2260_v5 = vmul.f32 0.6931472, %v12274_v49  ;;  %v2304_v59 = vadd.f32 %v2275_v23, %v2234_v19 }
 0xd8f   :  { %v2302_v63 = vsel %vm2301_vm15, %v2299_v52, %v2296_v30 }
 0xd90   :  { %v2307_v22 = vadd.f32 %v2302_v63, %v2237_v14  ;;  %v2266_v12 = vsel %vm2265_vm4, %v2263_v54, %v2260_v5 }
 0xd91   :  { %v2303_v13 = vadd.f32 %v2266_v12, %v2233_v2 }
 0xd92   :  { %10990 = vmatpush3.msra.mxu1 %v2307_v22 }
 0xd93   :  { %10991 = vmatprep.subr.mxu1 %v16629_v34 }
 0xd94   :  { %10992 = vmatpush3.msra.mxu1 %v2306_v61 }
 0xd95   :  { %10993 = vmatprep.subr.mxu1 %v16629_v34 }
 0xd96   :  { %10994 = vmatpush3.msra.mxu1 %v2305_v35 }
 0xd97   :  { %10995 = vmatprep.subr.mxu1 %v16629_v34 }
 0xd98   :  { %10996 = vmatpush3.msra.mxu1 %v2304_v59 }
 0xd99   :  { %10997 = vmatprep.subr.mxu1 %v16629_v34 }
 0xd9a   :  { %10998 = vmatpush3.msra.mxu1 %v2303_v13 }
 0xd9b   :  { %11000 = vmatmul.mubr.msk.f32.vlgmr.msra.gmra.mxu1 %vm312_vm7, %v13822_v27  ;;  %11046 = vmatprep.subr.mxu1 %v16629_v34 }
 0xd9c   :  { %11002 = vmatprep.mubr.msk.f32.mxu1 %vm13134_vm1, %v16629_v34 }
 0xd9f   :  { %11003 = vmatmul.mubr.msk.f32.gmra.mxu1 %vm312_vm7, %v13832_v11 }
 0xda0   :  { %11005 = vmatprep.mubr.msk.f32.mxu1 %vm13134_vm1, %v16629_v34 }
 0xda3   :  { %11006 = vmatmul.mubr.msk.f32.gmra.mxu1 %vm312_vm7, %v13841_v60 }
 0xda4   :  { %11008 = vmatprep.mubr.msk.f32.mxu1 %vm13134_vm1, %v16629_v34 }
 0xda7   :  { %11009 = vmatmul.mubr.msk.f32.gmra.mxu1 %vm312_vm7, %v13850_v10 }
 0xda8   :  { %11011 = vmatprep.mubr.msk.f32.mxu1 %vm13134_vm1, %v16629_v34 }
 0xdab   :  { %11012 = vmatmul.mubr.msk.f32.gmra.mxu1 %vm312_vm7, %v13859_v15 }
 0xdac   :  { %11056 = vmatprep.mubr.msk.f32.mxu1 %vm13134_vm1, %v16629_v34 }
 0xe5b   :  { %v2374_v27 = vpop.f32.mrf.mxu1 }
 0xe5c   :  { %v14024_v36 = vadd.f32 %v2374_v27, %v16644_v39 }
 0xe5d   :  { %v11001_v11 = vpop.f32.mrf.mxu1 }
 0xe5e   :  { %v2403_v44 = vand.u32 2147483647, %v14024_v36 }
 0xe5f   :  { %v2379_v45 = vpop.f32.mrf.mxu1 }
 0xe60   :  { %v14021_v60 = vadd.f32 %v2379_v45, %v16643_v51  ;;  %v2408_v32 = vsub.f32 0.0, %v2403_v44 }
 0xe61   :  { %v11004_v0 = vpop.f32.mrf.mxu1 }
 0xe62   :  { %v2404_v10 = vand.u32 2147483647, %v14021_v60  ;;  %v2413_v49 = vmul.f32 1.442695, %v2408_v32 }
 0xe63   :  { %v2384_v3 = vpop.f32.mrf.mxu1 }
 0xe64   :  { %v14028_v31 = vadd.f32 %v2384_v3, %v16645_v42  ;;  %v2409_v58 = vsub.f32 0.0, %v2404_v10 }
 0xe65   :  { %v11007_v15 = vpop.f32.mrf.mxu1 }
 0xe66   :  { %v2405_v50 = vand.u32 2147483647, %v14028_v31  ;;  %v2415_v17 = vmul.f32 1.442695, %v2409_v58 }
 0xe67   :  { %v2389_v6 = vpop.f32.mrf.mxu1 }
 0xe68   :  { %v2410_v56 = vsub.f32 0.0, %v2405_v50  ;;  %v14033_v33 = vadd.f32 %v2389_v6, %v16646_v48 }
 0xe69   :  { %v11010_v38 = vpop.f32.mrf.mxu1 }
 0xe6a   :  { %v2417_v28 = vmul.f32 1.442695, %v2410_v56  ;;  %v2406_v41 = vand.u32 2147483647, %v14033_v33 }
 0xe6b   :  { %v2394_v14 = vpop.f32.mrf.mxu1 }
 0xe6c   :  { %v2411_v9 = vsub.f32 0.0, %v2406_v41  ;;  %v2395_v30 = vadd.f32 %v2394_v14, %v16647_v20  ;;  %12275 = vpow2.f32 %v2417_v28 }
 0xe6d   :  { %v11013_v52 = vpop.f32.mrf.mxu1  ;;  %12277 = vpow2.f32 %v2415_v17 }
 0xe6e   :  { %v2419_v29 = vmul.f32 1.442695, %v2411_v9  ;;  %v2407_v43 = vand.u32 2147483647, %v2395_v30  ;;  %v2402_v50 = vmax.f32 %v2395_v30, 0.0 }
 0xe70   :  { %12279 = vpow2.f32 %v2419_v29  ;;  %v2412_v62 = vsub.f32 0.0, %v2407_v43  ;;  %v2401_v43 = vmax.f32 %v14033_v33, 0.0 }
 0xe71   :  { %12281 = vpow2.f32 %v2413_v49 }
 0xe72   :  { %v2421_v4 = vmul.f32 1.442695, %v2412_v62 }
 0xe74   :  { %12283 = vpow2.f32 %v2421_v4 }
 0xe79   :  { %v12276_v63 = vpop.eup %12275 }
 0xe7a   :  { %v12278_v21 = vpop.eup %12277  ;;  %v2441_v5 = vadd.f32 1.0, %v12276_v63  ;;  %v2444_v35 = vmul.f32 -0.5, %v12276_v63  ;;  %v2447_v58 = vand.u32 2147483647, %v12276_v63 }
 0xe7b   :  { %v2432_v57 = vadd.f32 1.0, %v12278_v21  ;;  %v2435_v2 = vmul.f32 -0.5, %v12278_v21  ;;  %v2438_v14 = vand.u32 2147483647, %v12278_v21 }
 0xe7c   :  { %v2445_v15 = vadd.f32 1.0, %v2444_v35  ;;  %vm2448_vm8 = vcmp.lt.f32.partialorder %v2447_v58, 0.0004427343  ;;  %v14075_v35 = vld [vmem:[%s16522_s1 + $0x90] sm:$0xff] }
 0xe7d   :  { %v12280_v26 = vpop.eup %12279  ;;  %v2436_v6 = vadd.f32 1.0, %v2435_v2  ;;  %vm2439_vm9 = vcmp.lt.f32.partialorder %v2438_v14, 0.0004427343 }
 0xe7e   :  { %v2450_v22 = vadd.f32 1.0, %v12280_v26  ;;  %v12282_v25 = vpop.eup %12281  ;;  %v2453_v19 = vmul.f32 -0.5, %v12280_v26  ;;  %v2456_v0 = vand.u32 2147483647, %v12280_v26  ;;  %v2446_v49 = vmul.f32 %v12276_v63, %v2445_v15  ;;  %v14129_v15 = vld [vmem:[%s16522_s1 + $0x20] sm:$0xff] }
 0xe7f   :  { %v2423_v54 = vadd.f32 1.0, %v12282_v25  ;;  %v2426_v59 = vmul.f32 -0.5, %v12282_v25  ;;  %v2429_v30 = vand.u32 2147483647, %v12282_v25 }
 0xe80   :  { %12285 = vlog2.f32 %v2450_v22  ;;  %v2454_v27 = vadd.f32 1.0, %v2453_v19  ;;  %vm2457_vm6 = vcmp.lt.f32.partialorder %v2456_v0, 0.0004427343  ;;  %v2437_v22 = vmul.f32 %v12278_v21, %v2436_v6  ;;  %v14069_v19 = vld [vmem:[%s16522_s1 + $0x88] sm:$0xff] }
 0xe81   :  { %v12284_v55 = vpop.eup %12283  ;;  %12287 = vlog2.f32 %v2441_v5  ;;  %v2427_v56 = vadd.f32 1.0, %v2426_v59  ;;  %vm2430_vm10 = vcmp.lt.f32.partialorder %v2429_v30, 0.0004427343 }
 0xe82   :  { %v2459_v61 = vadd.f32 1.0, %v12284_v55  ;;  %12289 = vlog2.f32 %v2432_v57  ;;  %v2462_v23 = vmul.f32 -0.5, %v12284_v55  ;;  %v2465_v45 = vand.u32 2147483647, %v12284_v55 }
 0xe83   :  { %v2455_v28 = vmul.f32 %v12280_v26, %v2454_v27  ;;  %v2400_v57 = vmax.f32 %v14028_v31, 0.0 }
 0xe84   :  { %12291 = vlog2.f32 %v2459_v61  ;;  %v2463_v13 = vadd.f32 1.0, %v2462_v23  ;;  %vm2466_vm5 = vcmp.lt.f32.partialorder %v2465_v45, 0.0004427343  ;;  %v2428_v61 = vmul.f32 %v12282_v25, %v2427_v56  ;;  %v14063_v25 = vld [vmem:[%s16522_s1 + $0x98] sm:$0xff] }
 0xe85   :  { %12293 = vlog2.f32 %v2423_v54  ;;  %v2399_v54 = vmax.f32 %v14021_v60, 0.0  ;;  %v2398_v23 = vmax.f32 %v14024_v36, 0.0  ;;  %v16559_v60 = vmov 4   ;;  %v14051_v36 = vld [vmem:[%s16522_s1 + $0xa8] sm:$0xff] }
 0xe86   :  { %v2464_v32 = vmul.f32 %v12284_v55, %v2463_v13  ;;  %12029 = vset.pattern.permute.xlu1 %v16559_v60  ;;  %12030 = vset.pattern.permute.xlu0 %v16559_v60 }
 0xe87   :  { %2569 = vperm.xlu1 %12029, %v14051_v36  }
 0xe8b   :  { %2561 = vperm.xlu1 %12029, %v14063_v25  }
 0xe8d   :  { %v12286_v12 = vpop.eup %12285 }
 0xe8e   :  { %v12288_v11 = vpop.eup %12287  ;;  %v2452_v3 = vmul.f32 0.6931472, %v12286_v12 }
 0xe8f   :  { %v12290_v10 = vpop.eup %12289  ;;  %v2443_v41 = vmul.f32 0.6931472, %v12288_v11  ;;  %2557 = vperm.xlu1 %12029, %v14075_v35  }
 0xe90   :  { %v2458_v52 = vsel %vm2457_vm6, %v2455_v28, %v2452_v3  ;;  %v2434_v29 = vmul.f32 0.6931472, %v12290_v10  ;;  %v14092_v10 = vld [vmem:[%s16522_s1] sm:$0xff]  ;;  %v14120_v3 = vld [vmem:[%s16522_s1 + $0x18] sm:$0xff] }
 0xe91   :  { %v12292_v44 = vpop.eup %12291  ;;  %v2449_v4 = vsel %vm2448_vm8, %v2446_v49, %v2443_v41  ;;  %v2471_v26 = vadd.f32 %v2458_v52, %v2401_v43 }
 0xe92   :  { %v2461_v38 = vmul.f32 0.6931472, %v12292_v44  ;;  %v12294_v17 = vpop.eup %12293  ;;  %v2440_v55 = vsel %vm2439_vm9, %v2437_v22, %v2434_v29  ;;  %v2470_v63 = vadd.f32 %v2449_v4, %v2400_v57 }
 0xe93   :  { %v2425_v5 = vmul.f32 0.6931472, %v12294_v17  ;;  %v2469_v21 = vadd.f32 %v2440_v55, %v2399_v54 }
 0xe94   :  { %v2467_v9 = vsel %vm2466_vm5, %v2464_v32, %v2461_v38 }
 0xe95   :  { %v2472_v62 = vadd.f32 %v2467_v9, %v2402_v50  ;;  %v2431_v33 = vsel %vm2430_vm10, %v2428_v61, %v2425_v5 }
 0xe96   :  { %v2468_v31 = vadd.f32 %v2431_v33, %v2398_v23 }
 0xe97   :  { %11014 = vmatprep.subr.mxu0 %v2472_v62 }
 0xe98   :  { %11015 = vmatpush3.msra.mxu0 %v2472_v62 }
 0xe99   :  { %11016 = vmatprep.subr.mxu0 %v2471_v26 }
 0xe9a   :  { %11017 = vmatpush3.msra.mxu0 %v2471_v26 }
 0xe9b   :  { %11018 = vmatprep.subr.mxu0 %v2470_v63 }
 0xe9c   :  { %11019 = vmatpush3.msra.mxu0 %v2470_v63 }
 0xe9d   :  { %11020 = vmatprep.subr.mxu0 %v2469_v21 }
 0xe9e   :  { %11021 = vmatpush3.msra.mxu0 %v2469_v21 }
 0xe9f   :  { %11022 = vmatprep.subr.mxu0 %v2468_v31 }
 0xea0   :  { %11023 = vmatpush3.msra.mxu0 %v2468_v31 }
 0xea1   :  { %11025 = vmatmul.mubr.msk.f32.vlgmr.msra.gmra.mxu0 %vm312_vm7, %v13889_v24  ;;  %11027 = vmatprep.subr.mxu0 %v16629_v34  ;;  %v14057_v24 = vld [vmem:[%s16522_s1 + $0xa0] sm:$0xff] }
 0xea2   :  { %11031 = vmatprep.mubr.msk.f32.mxu0 %vm13134_vm1, %v16629_v34  ;;  %2565 = vperm.xlu0 %12030, %v14057_v24  }
 0xea6   :  { %2553 = vperm.xlu0 %12030, %v14069_v19  }
 0xf02   :  { %v2570_v44 = vpop.permute.xlu1 %2569 }
 0xf06   :  { %v2562_v50 = vpop.permute.xlu1 %2561 }
 0xf0a   :  { %v2558_v38 = vpop.permute.xlu1 %2557 }
 0xf1d   :  { %v2566_v58 = vpop.permute.xlu0 %2565 }
 0xf21   :  { %v2554_v28 = vpop.permute.xlu0 %2553 }
 0xf61   :  { %v11026_v12 = vpop.f32.mrf.mxu0 }
 0xf62   :  { %v2545_v2 = vadd.f32 %v11026_v12, %v13483_v47 }
 0xf63   :  { %v2539_v59 = vpop.f32.mrf.mxu0 }
 0xf64   :  { %v2549_v13 = vmul.f32 0.083333336, %v2545_v2  ;;  %v2540_v27 = vadd.f32 %v2539_v59, %v13488_v53 }
 0xf66   :  { %v14081_v11 = vadd.f32 %v2549_v13, %v13906_v7  ;;  %v2548_v45 = vmul.f32 0.083333336, %v2540_v27  ;;  %v14102_v7 = vld [vmem:[%s16522_s1 + $0x8] sm:$0xff] }
 0xf68   :  { %v14084_v0 = vadd.f32 %v2548_v45, %v13910_v40  ;;  %11028 = vmatpush3.msra.mxu0 %v14081_v11  ;;  %v14111_v40 = vld [vmem:[%s16522_s1 + $0x10] sm:$0xff] }
 0xf69   :  { %11029 = vmatprep.subr.mxu0 %v16629_v34 }
 0xf6a   :  { %11030 = vmatpush3.msra.mxu0 %v14084_v0 }
 0xf6b   :  { %11032 = vmatmul.mubr.msk.f32.vlgmr.msra.gmra.mxu0 %vm131_vm0, %v14092_v10  ;;  %11071 = vmatprep.subr.mxu0 %v16629_v34 }
 0xf6c   :  { %11034 = vmatprep.mubr.msk.f32.mxu0 %vm13134_vm1, %v16629_v34 }
 0xf6f   :  { %11035 = vmatmul.mubr.msk.f32.gmra.mxu0 %vm131_vm0, %v14102_v7 }
 0xf70   :  { %11037 = vmatprep.mubr.msk.f32.mxu0 %vm13134_vm1, %v16629_v34 }
 0xf73   :  { %11038 = vmatmul.mubr.msk.f32.gmra.mxu0 %vm131_vm0, %v14111_v40 }
 0xf74   :  { %11040 = vmatprep.mubr.msk.f32.mxu0 %vm13134_vm1, %v16629_v34 }
 0xf77   :  { %11041 = vmatmul.mubr.msk.f32.gmra.mxu0 %vm131_vm0, %v14120_v3 }
 0xf78   :  { %11043 = vmatprep.mubr.msk.f32.mxu0 %vm13134_vm1, %v16629_v34 }
 0xf7b   :  { %11044 = vmatmul.mubr.msk.f32.gmra.mxu0 %vm131_vm0, %v14129_v15 }
 0xf7c   :  { %11081 = vmatprep.mubr.msk.f32.mxu0 %vm13134_vm1, %v16629_v34 }
0x102b   :  { %v2638_v6 = vpop.f32.mrf.mxu0 }
0x102c   :  { %v14138_v9 = vadd.f32 %v2638_v6, %v2554_v28 }
0x102d   :  { %v11033_v56 = vpop.f32.mrf.mxu0 }
0x102e   :  { %v2667_v30 = vand.u32 2147483647, %v14138_v9 }
0x102f   :  { %v2643_v32 = vpop.f32.mrf.mxu0 }
0x1030   :  { %v14135_v41 = vadd.f32 %v2643_v32, %v2558_v38  ;;  %v2672_v61 = vsub.f32 0.0, %v2667_v30 }
0x1031   :  { %v11036_v17 = vpop.f32.mrf.mxu0 }
0x1032   :  { %v2668_v14 = vand.u32 2147483647, %v14135_v41  ;;  %v2677_v2 = vmul.f32 1.442695, %v2672_v61 }
0x1033   :  { %v2648_v52 = vpop.f32.mrf.mxu0 }
0x1034   :  { %v14140_v49 = vadd.f32 %v2648_v52, %v2562_v50  ;;  %v2673_v43 = vsub.f32 0.0, %v2668_v14 }
0x1035   :  { %v11039_v29 = vpop.f32.mrf.mxu0 }
0x1036   :  { %v2669_v62 = vand.u32 2147483647, %v14140_v49  ;;  %v2679_v26 = vmul.f32 1.442695, %v2673_v43 }
0x1037   :  { %v2653_v4 = vpop.f32.mrf.mxu0 }
0x1038   :  { %v2674_v22 = vsub.f32 0.0, %v2669_v62  ;;  %v14144_v5 = vadd.f32 %v2653_v4, %v2566_v58  ;;  %12295 = vpow2.f32 %v2679_v26 }
0x1039   :  { %v11042_v57 = vpop.f32.mrf.mxu0 }
0x103a   :  { %v2670_v55 = vand.u32 2147483647, %v14144_v5  ;;  %v2681_v54 = vmul.f32 1.442695, %v2674_v22 }
0x103b   :  { %v2658_v63 = vpop.f32.mrf.mxu0 }
0x103c   :  { %v2675_v33 = vsub.f32 0.0, %v2670_v55  ;;  %v2659_v23 = vadd.f32 %v2658_v63, %v2570_v44  ;;  %12297 = vpow2.f32 %v2681_v54 }
0x103d   :  { %v11045_v21 = vpop.f32.mrf.mxu0 }
0x103e   :  { %v2683_v31 = vmul.f32 1.442695, %v2675_v33  ;;  %v2671_v12 = vand.u32 2147483647, %v2659_v23 }
0x1040   :  { %12299 = vpow2.f32 %v2683_v31  ;;  %v2676_v59 = vsub.f32 0.0, %v2671_v12  ;;  %v2666_v12 = vmax.f32 %v2659_v23, 0.0 }
0x1041   :  { %12301 = vpow2.f32 %v2677_v2 }
0x1042   :  { %v2685_v13 = vmul.f32 1.442695, %v2676_v59 }
0x1044   :  { %12303 = vpow2.f32 %v2685_v13 }
0x1045   :  { %v12296_v27 = vpop.eup %12295 }
0x1046   :  { %v2696_v38 = vadd.f32 1.0, %v12296_v27  ;;  %v2699_v62 = vmul.f32 -0.5, %v12296_v27 }
0x1048   :  { %v2700_v21 = vadd.f32 1.0, %v2699_v62 }
0x1049   :  { %v12298_v45 = vpop.eup %12297 }
0x104a   :  { %v2705_v6 = vadd.f32 1.0, %v12298_v45  ;;  %v2708_v52 = vmul.f32 -0.5, %v12298_v45  ;;  %v2711_v31 = vand.u32 2147483647, %v12298_v45  ;;  %v2701_v62 = vmul.f32 %v12296_v27, %v2700_v21 }
0x104c   :  { %v2709_v61 = vadd.f32 1.0, %v2708_v52  ;;  %vm2712_vm13 = vcmp.lt.f32.partialorder %v2711_v31, 0.0004427343  ;;  %v2665_v52 = vmax.f32 %v14144_v5, 0.0  ;;  %v2662_v5 = vmax.f32 %v14138_v9, 0.0  ;;  %v14176_v9 = vld [vmem:[%s16522_s1 + $0x38] sm:$0xff] }
0x104d   :  { %v12300_v50 = vpop.eup %12299 }
0x104e   :  { %v2714_v58 = vadd.f32 1.0, %v12300_v50  ;;  %v12302_v56 = vpop.eup %12301  ;;  %v2717_v17 = vmul.f32 -0.5, %v12300_v50  ;;  %v2720_v57 = vand.u32 2147483647, %v12300_v50 }
0x104f   :  { %v2687_v32 = vadd.f32 1.0, %v12302_v56  ;;  %v2690_v43 = vmul.f32 -0.5, %v12302_v56  ;;  %v2693_v60 = vand.u32 2147483647, %v12302_v56 }
0x1050   :  { %12305 = vlog2.f32 %v2714_v58  ;;  %v2718_v30 = vadd.f32 1.0, %v2717_v17  ;;  %vm2721_vm11 = vcmp.lt.f32.partialorder %v2720_v57, 0.0004427343 }
0x1051   :  { %v12304_v44 = vpop.eup %12303  ;;  %12307 = vlog2.f32 %v2705_v6  ;;  %v2691_v33 = vadd.f32 1.0, %v2690_v43  ;;  %vm2694_vm15 = vcmp.lt.f32.partialorder %v2693_v60, 0.0004427343  ;;  %v14158_v60 = vld [vmem:[%s16522_s1 + $0x28] sm:$0xff] }
0x1052   :  { %v2723_v28 = vadd.f32 1.0, %v12304_v44  ;;  %12309 = vlog2.f32 %v2696_v38  ;;  %v2726_v14 = vmul.f32 -0.5, %v12304_v44  ;;  %v2729_v26 = vand.u32 2147483647, %v12304_v44 }
0x1053   :  { %v2719_v59 = vmul.f32 %v12300_v50, %v2718_v30  ;;  %v2702_v38 = vand.u32 2147483647, %v12296_v27  ;;  %v2664_v50 = vmax.f32 %v14140_v49, 0.0  ;;  %v2692_v30 = vmul.f32 %v12302_v56, %v2691_v33  ;;  %v14185_v56 = vld [vmem:[%s16522_s1 + $0x40] sm:$0xff] }
0x1054   :  { %12311 = vlog2.f32 %v2723_v28  ;;  %v2727_v4 = vadd.f32 1.0, %v2726_v14  ;;  %vm2730_vm12 = vcmp.lt.f32.partialorder %v2729_v26, 0.0004427343  ;;  %v2710_v28 = vmul.f32 %v12298_v45, %v2709_v61  ;;  %v14194_v26 = vld [vmem:[%s16522_s1 + $0x48] sm:$0xff] }
0x1055   :  { %12313 = vlog2.f32 %v2687_v32  ;;  %vm2703_vm14 = vcmp.lt.f32.partialorder %v2702_v38, 0.0004427343  ;;  %v2663_v45 = vmax.f32 %v14135_v41, 0.0  ;;  %v14167_v41 = vld [vmem:[%s16522_s1 + $0x30] sm:$0xff] }
0x1056   :  { %v2728_v58 = vmul.f32 %v12304_v44, %v2727_v4 }
0x105d   :  { %v12306_v29 = vpop.eup %12305 }
0x105e   :  { %v12308_v22 = vpop.eup %12307  ;;  %v2716_v54 = vmul.f32 0.6931472, %v12306_v29 }
0x105f   :  { %v12310_v55 = vpop.eup %12309  ;;  %v2707_v2 = vmul.f32 0.6931472, %v12308_v22 }
0x1060   :  { %v2698_v32 = vmul.f32 0.6931472, %v12310_v55  ;;  %v2722_v17 = vsel %vm2721_vm11, %v2719_v59, %v2716_v54  ;;  %v14201_v55 = vld [vmem:[%s16522_s1 + $0x78] sm:$0xff] }
0x1061   :  { %v12312_v63 = vpop.eup %12311  ;;  %v2713_v23 = vsel %vm2712_vm13, %v2710_v28, %v2707_v2  ;;  %v2735_v44 = vadd.f32 %v2722_v17, %v2665_v52 }
0x1062   :  { %v2725_v13 = vmul.f32 0.6931472, %v12312_v63  ;;  %v12314_v6 = vpop.eup %12313  ;;  %v2704_v4 = vsel %vm2703_vm14, %v2701_v62, %v2698_v32  ;;  %v2734_v22 = vadd.f32 %v2713_v23, %v2664_v50 }
0x1063   :  { %v2689_v43 = vmul.f32 0.6931472, %v12314_v6  ;;  %v2733_v27 = vadd.f32 %v2704_v4, %v2663_v45 }
0x1064   :  { %v2731_v14 = vsel %vm2730_vm12, %v2728_v58, %v2725_v13 }
0x1065   :  { %v2736_v29 = vadd.f32 %v2731_v14, %v2666_v12  ;;  %v2695_v57 = vsel %vm2694_vm15, %v2692_v30, %v2689_v43 }
0x1066   :  { %v2732_v49 = vadd.f32 %v2695_v57, %v2662_v5 }
0x1067   :  { %11047 = vmatpush3.msra.mxu1 %v2736_v29 }
0x1068   :  { %11048 = vmatprep.subr.mxu1 %v16629_v34 }
0x1069   :  { %11049 = vmatpush3.msra.mxu1 %v2735_v44 }
0x106a   :  { %11050 = vmatprep.subr.mxu1 %v16629_v34 }
0x106b   :  { %11051 = vmatpush3.msra.mxu1 %v2734_v22 }
0x106c   :  { %11052 = vmatprep.subr.mxu1 %v16629_v34 }
0x106d   :  { %11053 = vmatpush3.msra.mxu1 %v2733_v27 }
0x106e   :  { %11054 = vmatprep.subr.mxu1 %v16629_v34 }
0x106f   :  { %11055 = vmatpush3.msra.mxu1 %v2732_v49 }
0x1070   :  { %11057 = vmatmul.mubr.msk.f32.vlgmr.msra.gmra.mxu1 %vm312_vm7, %v14158_v60 }
0x1071   :  { %11059 = vmatprep.mubr.msk.f32.mxu1 %vm13134_vm1, %v16629_v34 }
0x1074   :  { %11060 = vmatmul.mubr.msk.f32.gmra.mxu1 %vm312_vm7, %v14167_v41 }
0x1075   :  { %11062 = vmatprep.mubr.msk.f32.mxu1 %vm13134_vm1, %v16629_v34 }
0x1078   :  { %11063 = vmatmul.mubr.msk.f32.gmra.mxu1 %vm312_vm7, %v14176_v9 }
0x1079   :  { %11065 = vmatprep.mubr.msk.f32.mxu1 %vm13134_vm1, %v16629_v34 }
0x107c   :  { %11066 = vmatmul.mubr.msk.f32.gmra.mxu1 %vm312_vm7, %v14185_v56 }
0x107d   :  { %11068 = vmatprep.mubr.msk.f32.mxu1 %vm13134_vm1, %v16629_v34 }
0x1080   :  { %11069 = vmatmul.mubr.msk.f32.gmra.mxu1 %vm312_vm7, %v14194_v26 }
0x1081   :  { %11106 = vmatprep.mubr.msk.f32.mxu1 %vm312_vm7, %v14201_v55 }
0x1130   :  { %v2803_v61 = vpop.f32.mrf.mxu1 }
0x1131   :  { %v14210_v12 = vadd.f32 %v2803_v61, %v16639_v1 }
0x1132   :  { %v11058_v54 = vpop.f32.mrf.mxu1 }
0x1133   :  { %v2832_v38 = vand.u32 2147483647, %v14210_v12 }
0x1134   :  { %v2808_v63 = vpop.f32.mrf.mxu1 }
0x1135   :  { %v14206_v33 = vadd.f32 %v2808_v63, %v16638_v46  ;;  %v2837_v43 = vsub.f32 0.0, %v2832_v38 }
0x1136   :  { %v11061_v21 = vpop.f32.mrf.mxu1 }
0x1137   :  { %v2833_v31 = vand.u32 2147483647, %v14206_v33  ;;  %v2842_v22 = vmul.f32 1.442695, %v2837_v43 }
0x1138   :  { %v2813_v2 = vpop.f32.mrf.mxu1 }
0x1139   :  { %v14213_v59 = vadd.f32 %v2813_v2, %v16640_v37  ;;  %v2838_v58 = vsub.f32 0.0, %v2833_v31 }
0x113a   :  { %v11064_v13 = vpop.f32.mrf.mxu1 }
0x113b   :  { %v2834_v6 = vand.u32 2147483647, %v14213_v59  ;;  %v2844_v52 = vmul.f32 1.442695, %v2838_v58 }
0x113c   :  { %v2818_v32 = vpop.f32.mrf.mxu1 }
0x113d   :  { %v2839_v28 = vsub.f32 0.0, %v2834_v6  ;;  %v14218_v17 = vadd.f32 %v2818_v32, %v16641_v18  ;;  %12315 = vpow2.f32 %v2844_v52 }
0x113e   :  { %v11067_v14 = vpop.f32.mrf.mxu1 }
0x113f   :  { %v2835_v29 = vand.u32 2147483647, %v14218_v17  ;;  %v2846_v62 = vmul.f32 1.442695, %v2839_v28 }
0x1140   :  { %v2823_v23 = vpop.f32.mrf.mxu1 }
0x1141   :  { %v2840_v50 = vsub.f32 0.0, %v2835_v29  ;;  %v2824_v44 = vadd.f32 %v2823_v23, %v16642_v16  ;;  %12317 = vpow2.f32 %v2846_v62 }
0x1142   :  { %v11070_v30 = vpop.f32.mrf.mxu1 }
0x1143   :  { %v2848_v4 = vmul.f32 1.442695, %v2840_v50  ;;  %v2836_v45 = vand.u32 2147483647, %v2824_v44 }
0x1145   :  { %12319 = vpow2.f32 %v2848_v4  ;;  %v2841_v57 = vsub.f32 0.0, %v2836_v45 }
0x1146   :  { %12321 = vpow2.f32 %v2842_v22 }
0x1147   :  { %v2850_v5 = vmul.f32 1.442695, %v2841_v57 }
0x1149   :  { %12323 = vpow2.f32 %v2850_v5 }
0x114a   :  { %v12316_v27 = vpop.eup %12315 }
0x114b   :  { %v2861_v31 = vadd.f32 1.0, %v12316_v27  ;;  %v2864_v52 = vmul.f32 -0.5, %v12316_v27  ;;  %v2867_v18 = vand.u32 2147483647, %v12316_v27 }
0x114d   :  { %v2865_v5 = vadd.f32 1.0, %v2864_v52  ;;  %vm2868_vm5 = vcmp.lt.f32.partialorder %v2867_v18, 0.0004427343  ;;  %v14243_v18 = vld [vmem:[%s16522_s1 + $0x58] sm:$0xff] }
0x114e   :  { %v12318_v49 = vpop.eup %12317 }
0x114f   :  { %v2870_v63 = vadd.f32 1.0, %v12318_v49  ;;  %v2873_v32 = vmul.f32 -0.5, %v12318_v49  ;;  %v2866_v52 = vmul.f32 %v12316_v27, %v2865_v5 }
0x1151   :  { %v2874_v4 = vadd.f32 1.0, %v2873_v32  ;;  %v2830_v32 = vmax.f32 %v14218_v17, 0.0 }
0x1152   :  { %v12320_v61 = vpop.eup %12319 }
0x1153   :  { %v2879_v54 = vadd.f32 1.0, %v12320_v61  ;;  %v12322_v21 = vpop.eup %12321  ;;  %v2882_v6 = vmul.f32 -0.5, %v12320_v61  ;;  %v2885_v23 = vand.u32 2147483647, %v12320_v61 }
0x1154   :  { %v2852_v13 = vadd.f32 1.0, %v12322_v21  ;;  %v2855_v14 = vmul.f32 -0.5, %v12322_v21  ;;  %v2858_v46 = vand.u32 2147483647, %v12322_v21 }
0x1155   :  { %12325 = vlog2.f32 %v2879_v54  ;;  %v2883_v29 = vadd.f32 1.0, %v2882_v6  ;;  %v2876_v54 = vand.u32 2147483647, %v12318_v49  ;;  %vm2886_vm2 = vcmp.lt.f32.partialorder %v2885_v23, 0.0004427343 }
0x1156   :  { %v12324_v2 = vpop.eup %12323  ;;  %12327 = vlog2.f32 %v2870_v63  ;;  %v2856_v57 = vadd.f32 1.0, %v2855_v14  ;;  %v2831_v63 = vmax.f32 %v2824_v44, 0.0  ;;  %vm2859_vm6 = vcmp.lt.f32.partialorder %v2858_v46, 0.0004427343  ;;  %v14233_v46 = vld [vmem:[%s16522_s1 + $0x50] sm:$0xff] }
0x1157   :  { %v2888_v58 = vadd.f32 1.0, %v12324_v2  ;;  %12329 = vlog2.f32 %v2861_v31  ;;  %v2891_v38 = vmul.f32 -0.5, %v12324_v2  ;;  %v2894_v50 = vand.u32 2147483647, %v12324_v2 }
0x1158   :  { %vm2877_vm4 = vcmp.lt.f32.partialorder %v2876_v54, 0.0004427343 }
0x1159   :  { %12331 = vlog2.f32 %v2888_v58  ;;  %v2892_v43 = vadd.f32 1.0, %v2891_v38  ;;  %vm2895_vm3 = vcmp.lt.f32.partialorder %v2894_v50, 0.0004427343  ;;  %v2875_v38 = vmul.f32 %v12318_v49, %v2874_v4 }
0x115a   :  { %12333 = vlog2.f32 %v2852_v13  ;;  %v2884_v13 = vmul.f32 %v12320_v61, %v2883_v29  ;;  %v2829_v61 = vmax.f32 %v14213_v59, 0.0  ;;  %v2857_v29 = vmul.f32 %v12322_v21, %v2856_v57  ;;  %v14270_v59 = vld [vmem:[%s16522_s1 + $0x70] sm:$0xff] }
0x115b   :  { %v2893_v8 = vmul.f32 %v12324_v2, %v2892_v43 }
0x1162   :  { %v12326_v28 = vpop.eup %12325 }
0x1163   :  { %v12328_v62 = vpop.eup %12327  ;;  %v2881_v45 = vmul.f32 0.6931472, %v12326_v28 }
0x1164   :  { %v12330_v30 = vpop.eup %12329  ;;  %v2872_v31 = vmul.f32 0.6931472, %v12328_v62 }
0x1165   :  { %v2863_v6 = vmul.f32 0.6931472, %v12330_v30  ;;  %v2887_v37 = vsel %vm2886_vm2, %v2884_v13, %v2881_v45 }
0x1166   :  { %v12332_v22 = vpop.eup %12331  ;;  %v2878_v44 = vsel %vm2877_vm4, %v2875_v38, %v2872_v31  ;;  %v2900_v2 = vadd.f32 %v2887_v37, %v2830_v32 }
0x1167   :  { %v2890_v58 = vmul.f32 0.6931472, %v12332_v22  ;;  %v12334_v16 = vpop.eup %12333  ;;  %v2869_v43 = vsel %vm2868_vm5, %v2866_v52, %v2863_v6  ;;  %v2899_v49 = vadd.f32 %v2878_v44, %v2829_v61 }
0x1168   :  { %v2854_v14 = vmul.f32 0.6931472, %v12334_v16 }
0x1169   :  { %v2896_v1 = vsel %vm2895_vm3, %v2893_v8, %v2890_v58  ;;  %v2828_v8 = vmax.f32 %v14206_v33, 0.0  ;;  %v14252_v33 = vld [vmem:[%s16522_s1 + $0x60] sm:$0xff] }
0x116a   :  { %v2901_v28 = vadd.f32 %v2896_v1, %v2831_v63  ;;  %v2860_v62 = vsel %vm2859_vm6, %v2857_v29, %v2854_v14  ;;  %v2827_v1 = vmax.f32 %v14210_v12, 0.0  ;;  %v14261_v12 = vld [vmem:[%s16522_s1 + $0x68] sm:$0xff] }
0x116b   :  { %v2898_v16 = vadd.f32 %v2869_v43, %v2828_v8 }
0x116c   :  { %11072 = vmatpush3.msra.mxu0 %v2901_v28  ;;  %v2897_v37 = vadd.f32 %v2860_v62, %v2827_v1 }
0x116d   :  { %11073 = vmatprep.subr.mxu0 %v16629_v34 }
0x116e   :  { %11074 = vmatpush3.msra.mxu0 %v2900_v2 }
0x116f   :  { %11075 = vmatprep.subr.mxu0 %v16629_v34 }
0x1170   :  { %11076 = vmatpush3.msra.mxu0 %v2899_v49 }
0x1171   :  { %11077 = vmatprep.subr.mxu0 %v16629_v34 }
0x1172   :  { %11078 = vmatpush3.msra.mxu0 %v2898_v16 }
0x1173   :  { %11079 = vmatprep.subr.mxu0 %v16629_v34 }
0x1174   :  { %11080 = vmatpush3.msra.mxu0 %v2897_v37 }
0x1175   :  { %11082 = vmatmul.mubr.msk.f32.vlgmr.msra.gmra.mxu0 %vm312_vm7, %v14233_v46  ;;  %11128 = vmatprep.subr.mxu0 %v16629_v34 }
0x1176   :  { %11084 = vmatprep.mubr.msk.f32.mxu0 %vm13134_vm1, %v16629_v34 }
0x1179   :  { %11085 = vmatmul.mubr.msk.f32.gmra.mxu0 %vm312_vm7, %v14243_v18 }
0x117a   :  { %11087 = vmatprep.mubr.msk.f32.mxu0 %vm13134_vm1, %v16629_v34 }
0x117d   :  { %11088 = vmatmul.mubr.msk.f32.gmra.mxu0 %vm312_vm7, %v14252_v33 }
0x117e   :  { %11090 = vmatprep.mubr.msk.f32.mxu0 %vm13134_vm1, %v16629_v34 }
0x1181   :  { %11091 = vmatmul.mubr.msk.f32.gmra.mxu0 %vm312_vm7, %v14261_v12 }
0x1182   :  { %11093 = vmatprep.mubr.msk.f32.mxu0 %vm13134_vm1, %v16629_v34 }
0x1185   :  { %11094 = vmatmul.mubr.msk.f32.gmra.mxu0 %vm312_vm7, %v14270_v59 }
0x1186   :  { %11138 = vmatprep.mubr.msk.f32.mxu0 %vm13134_vm1, %v16629_v34 }
0x1235   :  { %v2968_v17 = vpop.f32.mrf.mxu0 }
0x1236   :  { %v14280_v30 = vadd.f32 %v2968_v17, %v16644_v39 }
0x1237   :  { %v11083_v27 = vpop.f32.mrf.mxu0 }
0x1238   :  { %v2997_v5 = vand.u32 2147483647, %v14280_v30 }
0x1239   :  { %v2973_v21 = vpop.f32.mrf.mxu0 }
0x123a   :  { %v14277_v23 = vadd.f32 %v2973_v21, %v16643_v51  ;;  %v3002_v38 = vsub.f32 0.0, %v2997_v5 }
0x123b   :  { %v11086_v50 = vpop.f32.mrf.mxu0 }
0x123c   :  { %v2998_v4 = vand.u32 2147483647, %v14277_v23  ;;  %v3007_v29 = vmul.f32 1.442695, %v3002_v38 }
0x123d   :  { %v2978_v45 = vpop.f32.mrf.mxu0 }
0x123e   :  { %v14284_v22 = vadd.f32 %v2978_v45, %v16645_v42  ;;  %v3003_v63 = vsub.f32 0.0, %v2998_v4 }
0x123f   :  { %v11089_v57 = vpop.f32.mrf.mxu0 }
0x1240   :  { %v2999_v54 = vand.u32 2147483647, %v14284_v22  ;;  %v3009_v14 = vmul.f32 1.442695, %v3003_v63 }
0x1241   :  { %v2983_v31 = vpop.f32.mrf.mxu0 }
0x1242   :  { %v3004_v13 = vsub.f32 0.0, %v2999_v54  ;;  %v14289_v58 = vadd.f32 %v2983_v31, %v16646_v48 }
0x1243   :  { %v11092_v6 = vpop.f32.mrf.mxu0 }
0x1244   :  { %v3011_v32 = vmul.f32 1.442695, %v3004_v13  ;;  %v3000_v28 = vand.u32 2147483647, %v14289_v58 }
0x1245   :  { %v2988_v52 = vpop.f32.mrf.mxu0 }
0x1246   :  { %v3005_v44 = vsub.f32 0.0, %v3000_v28  ;;  %v2989_v61 = vadd.f32 %v2988_v52, %v16647_v20  ;;  %12335 = vpow2.f32 %v3011_v32 }
0x1247   :  { %v11095_v2 = vpop.f32.mrf.mxu0  ;;  %12337 = vpow2.f32 %v3009_v14 }
0x1248   :  { %v3013_v43 = vmul.f32 1.442695, %v3005_v44  ;;  %v3001_v8 = vand.u32 2147483647, %v2989_v61 }
0x124a   :  { %12339 = vpow2.f32 %v3013_v43  ;;  %v3006_v49 = vsub.f32 0.0, %v3001_v8  ;;  %v2996_v8 = vmax.f32 %v2989_v61, 0.0 }
0x124b   :  { %12341 = vpow2.f32 %v3007_v29 }
0x124c   :  { %v3015_v62 = vmul.f32 1.442695, %v3006_v49 }
0x124e   :  { %12343 = vpow2.f32 %v3015_v62 }
0x1253   :  { %v12336_v1 = vpop.eup %12335 }
0x1254   :  { %v12338_v16 = vpop.eup %12337  ;;  %v3035_v27 = vadd.f32 1.0, %v12336_v1  ;;  %v3038_v63 = vmul.f32 -0.5, %v12336_v1  ;;  %v3041_v49 = vand.u32 2147483647, %v12336_v1 }
0x1255   :  { %v3026_v50 = vadd.f32 1.0, %v12338_v16  ;;  %v3029_v13 = vmul.f32 -0.5, %v12338_v16 }
0x1256   :  { %v3039_v29 = vadd.f32 1.0, %v3038_v63  ;;  %vm3042_vm10 = vcmp.lt.f32.partialorder %v3041_v49, 0.0004427343 }
0x1257   :  { %v12340_v37 = vpop.eup %12339  ;;  %v3030_v62 = vadd.f32 1.0, %v3029_v13 }
0x1258   :  { %v3044_v17 = vadd.f32 1.0, %v12340_v37  ;;  %v12342_v21 = vpop.eup %12341  ;;  %v3047_v54 = vmul.f32 -0.5, %v12340_v37  ;;  %v3050_v52 = vand.u32 2147483647, %v12340_v37  ;;  %v3040_v42 = vmul.f32 %v12336_v1, %v3039_v29 }
0x1259   :  { %v3017_v57 = vadd.f32 1.0, %v12342_v21  ;;  %v3020_v6 = vmul.f32 -0.5, %v12342_v21  ;;  %v3023_v61 = vand.u32 2147483647, %v12342_v21  ;;  %v3031_v13 = vmul.f32 %v12338_v16, %v3030_v62 }
0x125a   :  { %12345 = vlog2.f32 %v3044_v17  ;;  %v3048_v32 = vadd.f32 1.0, %v3047_v54  ;;  %vm3051_vm9 = vcmp.lt.f32.partialorder %v3050_v52, 0.0004427343 }
0x125b   :  { %v12344_v4 = vpop.eup %12343  ;;  %12347 = vlog2.f32 %v3035_v27  ;;  %v3021_v17 = vadd.f32 1.0, %v3020_v6  ;;  %vm3024_vm12 = vcmp.lt.f32.partialorder %v3023_v61, 0.0004427343 }
0x125c   :  { %v3053_v45 = vadd.f32 1.0, %v12344_v4  ;;  %12349 = vlog2.f32 %v3026_v50  ;;  %v3056_v5 = vmul.f32 -0.5, %v12344_v4  ;;  %v3059_v14 = vand.u32 2147483647, %v12344_v4 }
0x125e   :  { %12351 = vlog2.f32 %v3053_v45  ;;  %v3057_v38 = vadd.f32 1.0, %v3056_v5  ;;  %v3049_v45 = vmul.f32 %v12340_v37, %v3048_v32  ;;  %vm3060_vm8 = vcmp.lt.f32.partialorder %v3059_v14, 0.0004427343 }
0x125f   :  { %12353 = vlog2.f32 %v3017_v57  ;;  %v3032_v5 = vand.u32 2147483647, %v12338_v16  ;;  %v3022_v32 = vmul.f32 %v12342_v21, %v3021_v17  ;;  %v2992_v14 = vmax.f32 %v14280_v30, 0.0 }
0x1260   :  { %v3058_v50 = vmul.f32 %v12344_v4, %v3057_v38  ;;  %v2994_v4 = vmax.f32 %v14284_v22, 0.0 }
0x1261   :  { %vm3033_vm11 = vcmp.lt.f32.partialorder %v3032_v5, 0.0004427343 }
0x1267   :  { %v12346_v31 = vpop.eup %12345 }
0x1268   :  { %v12348_v28 = vpop.eup %12347  ;;  %v3046_v2 = vmul.f32 0.6931472, %v12346_v31  ;;  %v2995_v31 = vmax.f32 %v14289_v58, 0.0 }
0x1269   :  { %v12350_v44 = vpop.eup %12349  ;;  %v3037_v57 = vmul.f32 0.6931472, %v12348_v28  ;;  %v2993_v28 = vmax.f32 %v14277_v23, 0.0 }
0x126a   :  { %v3052_v48 = vsel %vm3051_vm9, %v3049_v45, %v3046_v2  ;;  %v3028_v39 = vmul.f32 0.6931472, %v12350_v44 }
0x126b   :  { %v12352_v43 = vpop.eup %12351  ;;  %v3043_v51 = vsel %vm3042_vm10, %v3040_v42, %v3037_v57  ;;  %v3065_v37 = vadd.f32 %v3052_v48, %v2995_v31 }
0x126c   :  { %v3055_v27 = vmul.f32 0.6931472, %v12352_v43  ;;  %v12354_v20 = vpop.eup %12353  ;;  %v3034_v38 = vsel %vm3033_vm11, %v3031_v13, %v3028_v39  ;;  %v3064_v1 = vadd.f32 %v3043_v51, %v2994_v4  ;;  %v14300_v39 = vld [vmem:[%s16522_s1 + $0x80] sm:$0xff]  ;;  %v16575_v51 = vmov 5  }
0x126d   :  { %v3019_v6 = vmul.f32 0.6931472, %v12354_v20  ;;  %v3063_v42 = vadd.f32 %v3034_v38, %v2993_v28  ;;  %12031 = vset.pattern.permute.xlu1 %v16575_v51  ;;  %12032 = vset.pattern.permute.xlu0 %v16575_v51 }
0x126e   :  { %v3061_v54 = vsel %vm3060_vm8, %v3058_v50, %v3055_v27  ;;  %3167 = vperm.xlu1 %12031, %v14051_v36   ;;  %3163 = vperm.xlu0 %12032, %v14057_v24  }
0x126f   :  { %v3066_v63 = vadd.f32 %v3061_v54, %v2996_v8  ;;  %v3025_v58 = vsel %vm3024_vm12, %v3022_v32, %v3019_v6 }
0x1270   :  { %v3062_v20 = vadd.f32 %v3025_v58, %v2992_v14 }
0x1271   :  { %11096 = vmatprep.subr.mxu1 %v3066_v63 }
0x1272   :  { %11097 = vmatpush3.msra.mxu1 %v3066_v63  ;;  %3159 = vperm.xlu1 %12031, %v14063_v25  }
0x1273   :  { %11098 = vmatprep.subr.mxu1 %v3065_v37  ;;  %3151 = vperm.xlu0 %12032, %v14069_v19  }
0x1274   :  { %11099 = vmatpush3.msra.mxu1 %v3065_v37 }
0x1275   :  { %11100 = vmatprep.subr.mxu1 %v3064_v1 }
0x1276   :  { %11101 = vmatpush3.msra.mxu1 %v3064_v1  ;;  %3155 = vperm.xlu1 %12031, %v14075_v35  }
0x1277   :  { %11102 = vmatprep.subr.mxu1 %v3063_v42 }
0x1278   :  { %11103 = vmatpush3.msra.mxu1 %v3063_v42 }
0x1279   :  { %11104 = vmatprep.subr.mxu1 %v3062_v20 }
0x127a   :  { %11105 = vmatpush3.msra.mxu1 %v3062_v20 }
0x127b   :  { %11107 = vmatmul.mubr.msk.f32.vlgmr.msra.gmra.mxu1 %vm312_vm7, %v14300_v39  ;;  %11109 = vmatprep.subr.mxu1 %v16629_v34 }
0x127c   :  { %11113 = vmatprep.mubr.msk.f32.mxu1 %vm13134_vm1, %v16629_v34 }
0x12e9   :  { %v3168_v19 = vpop.permute.xlu1 %3167 }
0x12ed   :  { %v3160_v35 = vpop.permute.xlu1 %3159 }
0x12f1   :  { %v3156_v21 = vpop.permute.xlu1 %3155 }
0x133b   :  { %v11108_v48 = vpop.f32.mrf.mxu1 }
0x133c   :  { %v14315_v23 = vadd.f32 %v11108_v48, %v13483_v47 }
0x133d   :  { %v3133_v30 = vpop.f32.mrf.mxu1 }
0x133e   :  { %v3147_v22 = vmul.f32 0.25, %v14315_v23  ;;  %v14319_v16 = vadd.f32 %v3133_v30, %v13488_v53 }
0x1340   :  { %v3149_v36 = vadd.f32 %v3147_v22, %v14081_v11  ;;  %v3146_v24 = vmul.f32 0.25, %v14319_v16 }
0x1342   :  { %v3148_v25 = vadd.f32 %v3146_v24, %v14084_v0  ;;  %11110 = vmatpush3.msra.mxu1 %v3149_v36 }
0x1343   :  { %11111 = vmatprep.subr.mxu1 %v16629_v34 }
0x1344   :  { %11112 = vmatpush3.msra.mxu1 %v3148_v25 }
0x1345   :  { %11114 = vmatmul.mubr.msk.f32.vlgmr.msra.gmra.mxu1 %vm131_vm0, %v14092_v10  ;;  %11153 = vmatprep.subr.mxu1 %v16629_v34  ;;  %v3164_v10 = vpop.permute.xlu0 %3163 }
0x1346   :  { %11116 = vmatprep.mubr.msk.f32.mxu1 %vm13134_vm1, %v16629_v34 }
0x1349   :  { %11117 = vmatmul.mubr.msk.f32.gmra.mxu1 %vm131_vm0, %v14102_v7  ;;  %v3152_v44 = vpop.permute.xlu0 %3151 }
0x134a   :  { %11119 = vmatprep.mubr.msk.f32.mxu1 %vm13134_vm1, %v16629_v34 }
0x134d   :  { %11120 = vmatmul.mubr.msk.f32.gmra.mxu1 %vm131_vm0, %v14111_v40 }
0x134e   :  { %11122 = vmatprep.mubr.msk.f32.mxu1 %vm13134_vm1, %v16629_v34 }
0x1351   :  { %11123 = vmatmul.mubr.msk.f32.gmra.mxu1 %vm131_vm0, %v14120_v3 }
0x1352   :  { %11125 = vmatprep.mubr.msk.f32.mxu1 %vm13134_vm1, %v16629_v34 }
0x1355   :  { %11126 = vmatmul.mubr.msk.f32.gmra.mxu1 %vm131_vm0, %v14129_v15 }
0x1356   :  { %11163 = vmatprep.mubr.msk.f32.mxu1 %vm13134_vm1, %v16629_v34 }
0x1405   :  { %v3236_v7 = vpop.f32.mrf.mxu1 }
0x1406   :  { %v14349_v43 = vadd.f32 %v3236_v7, %v3152_v44 }
0x1407   :  { %v11115_v40 = vpop.f32.mrf.mxu1 }
0x1408   :  { %v3265_v27 = vand.u32 2147483647, %v14349_v43 }
0x1409   :  { %v3241_v52 = vpop.f32.mrf.mxu1 }
0x140a   :  { %v14346_v2 = vadd.f32 %v3241_v52, %v3156_v21  ;;  %v3270_v63 = vsub.f32 0.0, %v3265_v27 }
0x140b   :  { %v11118_v3 = vpop.f32.mrf.mxu1 }
0x140c   :  { %v3266_v29 = vand.u32 2147483647, %v14346_v2  ;;  %v3275_v28 = vmul.f32 1.442695, %v3270_v63 }
0x140d   :  { %v3246_v8 = vpop.f32.mrf.mxu1 }
0x140e   :  { %v14351_v15 = vadd.f32 %v3246_v8, %v3160_v35  ;;  %v3271_v62 = vsub.f32 0.0, %v3266_v29 }
0x140f   :  { %v11121_v49 = vpop.f32.mrf.mxu1 }
0x1410   :  { %v3267_v17 = vand.u32 2147483647, %v14351_v15  ;;  %v3277_v54 = vmul.f32 1.442695, %v3271_v62 }
0x1411   :  { %v3251_v50 = vpop.f32.mrf.mxu1 }
0x1412   :  { %v3272_v45 = vsub.f32 0.0, %v3267_v17  ;;  %v14355_v57 = vadd.f32 %v3251_v50, %v3164_v10  ;;  %12355 = vpow2.f32 %v3277_v54 }
0x1413   :  { %v11124_v5 = vpop.f32.mrf.mxu1 }
0x1414   :  { %v3268_v31 = vand.u32 2147483647, %v14355_v57  ;;  %v3279_v61 = vmul.f32 1.442695, %v3272_v45 }
0x1415   :  { %v3256_v13 = vpop.f32.mrf.mxu1 }
0x1416   :  { %v3273_v6 = vsub.f32 0.0, %v3268_v31  ;;  %v3257_v4 = vadd.f32 %v3256_v13, %v3168_v19  ;;  %12357 = vpow2.f32 %v3279_v61 }
0x1417   :  { %v11127_v37 = vpop.f32.mrf.mxu1 }
0x1418   :  { %v3281_v38 = vmul.f32 1.442695, %v3273_v6  ;;  %v3269_v32 = vand.u32 2147483647, %v3257_v4  ;;  %v3264_v31 = vmax.f32 %v3257_v4, 0.0 }
0x141a   :  { %12359 = vpow2.f32 %v3281_v38  ;;  %v3274_v1 = vsub.f32 0.0, %v3269_v32 }
0x141b   :  { %12361 = vpow2.f32 %v3275_v28 }
0x141c   :  { %v3283_v58 = vmul.f32 1.442695, %v3274_v1 }
0x141e   :  { %12363 = vpow2.f32 %v3283_v58 }
0x141f   :  { %v12356_v14 = vpop.eup %12355 }
0x1420   :  { %v3294_v36 = vadd.f32 1.0, %v12356_v14  ;;  %v3297_v52 = vmul.f32 -0.5, %v12356_v14  ;;  %v3300_v38 = vand.u32 2147483647, %v12356_v14 }
0x1422   :  { %v3298_v5 = vadd.f32 1.0, %v3297_v52  ;;  %vm3301_vm2 = vcmp.lt.f32.partialorder %v3300_v38, 0.0004427343  ;;  %v16649_v52 = vld [vmem:[#allocation6_spill] sm:$0xff] }
0x1423   :  { %v12358_v42 = vpop.eup %12357 }
0x1424   :  { %v3303_v30 = vadd.f32 1.0, %v12358_v42  ;;  %v3306_v7 = vmul.f32 -0.5, %v12358_v42  ;;  %v3309_v54 = vand.u32 2147483647, %v12358_v42 }
0x1426   :  { %v3307_v17 = vadd.f32 1.0, %v3306_v7  ;;  %vm3310_vm15 = vcmp.lt.f32.partialorder %v3309_v54, 0.0004427343 }
0x1427   :  { %v12360_v20 = vpop.eup %12359 }
0x1428   :  { %v3312_v48 = vadd.f32 1.0, %v12360_v20  ;;  %v12362_v22 = vpop.eup %12361  ;;  %v3315_v35 = vmul.f32 -0.5, %v12360_v20  ;;  %v3318_v8 = vand.u32 2147483647, %v12360_v20  ;;  %v3308_v28 = vmul.f32 %v12358_v42, %v3307_v17 }
0x1429   :  { %v3285_v25 = vadd.f32 1.0, %v12362_v22  ;;  %v3288_v21 = vmul.f32 -0.5, %v12362_v22  ;;  %v3261_v42 = vmax.f32 %v14346_v2, 0.0 }
0x142a   :  { %12365 = vlog2.f32 %v3312_v48  ;;  %v3316_v44 = vadd.f32 1.0, %v3315_v35  ;;  %vm3319_vm13 = vcmp.lt.f32.partialorder %v3318_v8, 0.0004427343  ;;  %v3291_v48 = vand.u32 2147483647, %v12362_v22 }
0x142b   :  { %v12364_v24 = vpop.eup %12363  ;;  %12367 = vlog2.f32 %v3303_v30  ;;  %v3289_v45 = vadd.f32 1.0, %v3288_v21  ;;  %v3263_v30 = vmax.f32 %v14355_v57, 0.0  ;;  %v3260_v57 = vmax.f32 %v14349_v43, 0.0  ;;  %v16648_v43 = vld [vmem:[#allocation5_spill] sm:$0xff] }
0x142c   :  { %v3321_v19 = vadd.f32 1.0, %v12364_v24  ;;  %12369 = vlog2.f32 %v3294_v36  ;;  %v3324_v10 = vmul.f32 -0.5, %v12364_v24  ;;  %v3327_v49 = vand.u32 2147483647, %v12364_v24 }
0x142d   :  { %v3317_v61 = vmul.f32 %v12360_v20, %v3316_v44  ;;  %v3262_v20 = vmax.f32 %v14351_v15, 0.0  ;;  %v3290_v35 = vmul.f32 %v12362_v22, %v3289_v45  ;;  %vm3292_vm3 = vcmp.lt.f32.partialorder %v3291_v48, 0.0004427343 }
0x142e   :  { %12371 = vlog2.f32 %v3321_v19  ;;  %v3325_v3 = vadd.f32 1.0, %v3324_v10  ;;  %vm3328_vm14 = vcmp.lt.f32.partialorder %v3327_v49, 0.0004427343  ;;  %v3299_v19 = vmul.f32 %v12356_v14, %v3298_v5 }
0x142f   :  { %12373 = vlog2.f32 %v3285_v25 }
0x1430   :  { %v3326_v6 = vmul.f32 %v12364_v24, %v3325_v3  ;;  %v16650_v3 = vld [vmem:[#allocation4_spill] sm:$0xff] }
0x1437   :  { %v12366_v40 = vpop.eup %12365 }
0x1438   :  { %v12368_v29 = vpop.eup %12367  ;;  %v3314_v27 = vmul.f32 0.6931472, %v12366_v40 }
0x1439   :  { %v12370_v62 = vpop.eup %12369  ;;  %v3305_v63 = vmul.f32 0.6931472, %v12368_v29 }
0x143a   :  { %v3296_v32 = vmul.f32 0.6931472, %v12370_v62  ;;  %v3320_v1 = vsel %vm3319_vm13, %v3317_v61, %v3314_v27  ;;  %v16651_v27 = vld [vmem:[#allocation3_spill] sm:$0xff] }
0x143b   :  { %v12372_v50 = vpop.eup %12371  ;;  %v3311_v4 = vsel %vm3310_vm15, %v3308_v28, %v3305_v63  ;;  %v3333_v24 = vadd.f32 %v3320_v1, %v3263_v30 }
0x143c   :  { %v3323_v13 = vmul.f32 0.6931472, %v12372_v50  ;;  %v12374_v37 = vpop.eup %12373  ;;  %v3302_v10 = vsel %vm3301_vm2, %v3299_v19, %v3296_v32  ;;  %v3332_v7 = vadd.f32 %v3311_v4, %v3262_v20 }
0x143d   :  { %v3287_v25 = vmul.f32 0.6931472, %v12374_v37  ;;  %v3331_v14 = vadd.f32 %v3302_v10, %v3261_v42 }
0x143e   :  { %v3329_v58 = vsel %vm3328_vm14, %v3326_v6, %v3323_v13  ;;  %v16652_v6 = vld [vmem:[#allocation2_spill] sm:$0xff] }
0x143f   :  { %v3334_v36 = vadd.f32 %v3329_v58, %v3264_v31  ;;  %v3293_v40 = vsel %vm3292_vm3, %v3290_v35, %v3287_v25 }
0x1440   :  { %v3330_v15 = vadd.f32 %v3293_v40, %v3260_v57 }
0x1441   :  { %11129 = vmatpush3.msra.mxu0 %v3334_v36 }
0x1442   :  { %11130 = vmatprep.subr.mxu0 %v16629_v34 }
0x1443   :  { %11131 = vmatpush3.msra.mxu0 %v3333_v24 }
0x1444   :  { %11132 = vmatprep.subr.mxu0 %v16629_v34 }
0x1445   :  { %11133 = vmatpush3.msra.mxu0 %v3332_v7 }
0x1446   :  { %11134 = vmatprep.subr.mxu0 %v16629_v34 }
0x1447   :  { %11135 = vmatpush3.msra.mxu0 %v3331_v14 }
0x1448   :  { %11136 = vmatprep.subr.mxu0 %v16629_v34 }
0x1449   :  { %11137 = vmatpush3.msra.mxu0 %v3330_v15 }
0x144a   :  { %11139 = vmatmul.mubr.msk.f32.vlgmr.msra.gmra.mxu0 %vm312_vm7, %v14158_v60 }
0x144b   :  { %11141 = vmatprep.mubr.msk.f32.mxu0 %vm13134_vm1, %v16629_v34 }
0x144e   :  { %11142 = vmatmul.mubr.msk.f32.gmra.mxu0 %vm312_vm7, %v14167_v41 }
0x144f   :  { %11144 = vmatprep.mubr.msk.f32.mxu0 %vm13134_vm1, %v16629_v34 }
0x1452   :  { %11145 = vmatmul.mubr.msk.f32.gmra.mxu0 %vm312_vm7, %v14176_v9 }
0x1453   :  { %11147 = vmatprep.mubr.msk.f32.mxu0 %vm13134_vm1, %v16629_v34 }
0x1456   :  { %11148 = vmatmul.mubr.msk.f32.gmra.mxu0 %vm312_vm7, %v14185_v56 }
0x1457   :  { %11150 = vmatprep.mubr.msk.f32.mxu0 %vm13134_vm1, %v16629_v34 }
0x145a   :  { %11151 = vmatmul.mubr.msk.f32.gmra.mxu0 %vm312_vm7, %v14194_v26 }
0x145b   :  { %11188 = vmatprep.mubr.msk.f32.mxu0 %vm312_vm7, %v14201_v55 }
0x150a   :  { %v3401_v60 = vpop.f32.mrf.mxu0 }
0x150b   :  { %v14391_v56 = vadd.f32 %v3401_v60, %v16649_v52 }
0x150c   :  { %v11140_v41 = vpop.f32.mrf.mxu0 }
0x150d   :  { %v3430_v49 = vand.u32 2147483647, %v14391_v56 }
0x150e   :  { %v3406_v2 = vpop.f32.mrf.mxu0 }
0x150f   :  { %v14387_v9 = vadd.f32 %v3406_v2, %v16648_v43  ;;  %v3435_v31 = vsub.f32 0.0, %v3430_v49 }
0x1510   :  { %v11143_v22 = vpop.f32.mrf.mxu0 }
0x1511   :  { %v3431_v21 = vand.u32 2147483647, %v14387_v9  ;;  %v3440_v1 = vmul.f32 1.442695, %v3435_v31 }
0x1512   :  { %v3411_v44 = vpop.f32.mrf.mxu0 }
0x1513   :  { %v14394_v29 = vadd.f32 %v3411_v44, %v16650_v3  ;;  %v3436_v8 = vsub.f32 0.0, %v3431_v21 }
0x1514   :  { %v11146_v26 = vpop.f32.mrf.mxu0 }
0x1515   :  { %v3432_v55 = vand.u32 2147483647, %v14394_v29  ;;  %v3442_v5 = vmul.f32 1.442695, %v3436_v8 }
0x1516   :  { %v3416_v62 = vpop.f32.mrf.mxu0 }
0x1517   :  { %v3437_v17 = vsub.f32 0.0, %v3432_v55  ;;  %v14399_v50 = vadd.f32 %v3416_v62, %v16651_v27  ;;  %12375 = vpow2.f32 %v3442_v5 }
0x1518   :  { %v11149_v45 = vpop.f32.mrf.mxu0 }
0x1519   :  { %v3433_v54 = vand.u32 2147483647, %v14399_v50  ;;  %v3444_v63 = vmul.f32 1.442695, %v3437_v17 }
0x151a   :  { %v3421_v61 = vpop.f32.mrf.mxu0 }
0x151b   :  { %v3438_v13 = vsub.f32 0.0, %v3433_v54  ;;  %v3422_v37 = vadd.f32 %v3421_v61, %v16652_v6  ;;  %12377 = vpow2.f32 %v3444_v63 }
0x151c   :  { %v11152_v38 = vpop.f32.mrf.mxu0 }
0x151d   :  { %v3446_v32 = vmul.f32 1.442695, %v3438_v13  ;;  %v3434_v28 = vand.u32 2147483647, %v3422_v37  ;;  %v3429_v5 = vmax.f32 %v3422_v37, 0.0 }
0x151f   :  { %12379 = vpow2.f32 %v3446_v32  ;;  %v3439_v58 = vsub.f32 0.0, %v3434_v28 }
0x1520   :  { %12381 = vpow2.f32 %v3440_v1 }
0x1521   :  { %v3448_v48 = vmul.f32 1.442695, %v3439_v58 }
0x1523   :  { %12383 = vpow2.f32 %v3448_v48 }
0x1524   :  { %v12376_v30 = vpop.eup %12375 }
0x1525   :  { %v3459_v24 = vadd.f32 1.0, %v12376_v30  ;;  %v3462_v60 = vmul.f32 -0.5, %v12376_v30  ;;  %v3465_v38 = vand.u32 2147483647, %v12376_v30 }
0x1527   :  { %v3463_v17 = vadd.f32 1.0, %v3462_v60  ;;  %vm3466_vm8 = vcmp.lt.f32.partialorder %v3465_v38, 0.0004427343 }
0x1528   :  { %v12378_v36 = vpop.eup %12377 }
0x1529   :  { %v3468_v4 = vadd.f32 1.0, %v12378_v36  ;;  %v3471_v57 = vmul.f32 -0.5, %v12378_v36  ;;  %v3474_v45 = vand.u32 2147483647, %v12378_v36 }
0x152b   :  { %v3472_v8 = vadd.f32 1.0, %v3471_v57  ;;  %vm3475_vm6 = vcmp.lt.f32.partialorder %v3474_v45, 0.0004427343 }
0x152c   :  { %v12380_v25 = vpop.eup %12379 }
0x152d   :  { %v3477_v19 = vadd.f32 1.0, %v12380_v25  ;;  %v12382_v20 = vpop.eup %12381  ;;  %v3480_v7 = vmul.f32 -0.5, %v12380_v25  ;;  %v3483_v21 = vand.u32 2147483647, %v12380_v25  ;;  %v3473_v28 = vmul.f32 %v12378_v36, %v3472_v8 }
0x152e   :  { %v3450_v10 = vadd.f32 1.0, %v12382_v20  ;;  %v3453_v15 = vmul.f32 -0.5, %v12382_v20  ;;  %v3456_v48 = vand.u32 2147483647, %v12382_v20  ;;  %v3426_v36 = vmax.f32 %v14387_v9, 0.0 }
0x152f   :  { %12385 = vlog2.f32 %v3477_v19  ;;  %v3481_v41 = vadd.f32 1.0, %v3480_v7  ;;  %vm3484_vm4 = vcmp.lt.f32.partialorder %v3483_v21, 0.0004427343  ;;  %v3428_v19 = vmax.f32 %v14399_v50, 0.0 }
0x1530   :  { %v12384_v35 = vpop.eup %12383  ;;  %12387 = vlog2.f32 %v3468_v4  ;;  %v3454_v62 = vadd.f32 1.0, %v3453_v15  ;;  %vm3457_vm9 = vcmp.lt.f32.partialorder %v3456_v48, 0.0004427343  ;;  %v3425_v50 = vmax.f32 %v14391_v56, 0.0  ;;  %v16653_v56 = vld [vmem:[#allocation11_spill] sm:$0xff] }
0x1531   :  { %v3486_v42 = vadd.f32 1.0, %v12384_v35  ;;  %12389 = vlog2.f32 %v3459_v24  ;;  %v3489_v40 = vmul.f32 -0.5, %v12384_v35  ;;  %v3492_v44 = vand.u32 2147483647, %v12384_v35 }
0x1532   :  { %v3482_v31 = vmul.f32 %v12380_v25, %v3481_v41  ;;  %v3427_v25 = vmax.f32 %v14394_v29, 0.0  ;;  %v16655_v41 = vld [vmem:[#allocation10_spill] sm:$0xff] }
0x1533   :  { %12391 = vlog2.f32 %v3486_v42  ;;  %v3490_v2 = vadd.f32 1.0, %v3489_v40  ;;  %vm3493_vm5 = vcmp.lt.f32.partialorder %v3492_v44, 0.0004427343  ;;  %v3455_v42 = vmul.f32 %v12382_v20, %v3454_v62 }
0x1534   :  { %12393 = vlog2.f32 %v3450_v10  ;;  %v3464_v10 = vmul.f32 %v12376_v30, %v3463_v17 }
0x1535   :  { %v3491_v61 = vmul.f32 %v12384_v35, %v3490_v2 }
0x153c   :  { %v12386_v14 = vpop.eup %12385 }
0x153d   :  { %v12388_v22 = vpop.eup %12387  ;;  %v3479_v55 = vmul.f32 0.6931472, %v12386_v14  ;;  %v16654_v14 = vld [vmem:[#allocation12_spill] sm:$0xff] }
0x153e   :  { %v12390_v26 = vpop.eup %12389  ;;  %v3470_v54 = vmul.f32 0.6931472, %v12388_v22 }
0x153f   :  { %v3461_v32 = vmul.f32 0.6931472, %v12390_v26  ;;  %v3485_v1 = vsel %vm3484_vm4, %v3482_v31, %v3479_v55  ;;  %v16656_v55 = vld [vmem:[#allocation9_spill] sm:$0xff] }
0x1540   :  { %v12392_v49 = vpop.eup %12391  ;;  %v3476_v37 = vsel %vm3475_vm6, %v3473_v28, %v3470_v54  ;;  %v3498_v35 = vadd.f32 %v3485_v1, %v3428_v19 }
0x1541   :  { %v3488_v63 = vmul.f32 0.6931472, %v12392_v49  ;;  %v12394_v13 = vpop.eup %12393  ;;  %v3467_v7 = vsel %vm3466_vm8, %v3464_v10, %v3461_v32  ;;  %v3497_v40 = vadd.f32 %v3476_v37, %v3427_v25 }
0x1542   :  { %v3452_v24 = vmul.f32 0.6931472, %v12394_v13  ;;  %v3496_v30 = vadd.f32 %v3467_v7, %v3426_v36 }
0x1543   :  { %v3494_v58 = vsel %vm3493_vm5, %v3491_v61, %v3488_v63  ;;  %v16657_v61 = vld [vmem:[#allocation8_spill] sm:$0xff] }
0x1544   :  { %v3499_v4 = vadd.f32 %v3494_v58, %v3429_v5  ;;  %v3458_v57 = vsel %vm3457_vm9, %v3455_v42, %v3452_v24 }
0x1545   :  { %v3495_v29 = vadd.f32 %v3458_v57, %v3425_v50 }
0x1546   :  { %11154 = vmatpush3.msra.mxu1 %v3499_v4 }
0x1547   :  { %11155 = vmatprep.subr.mxu1 %v16629_v34 }
0x1548   :  { %11156 = vmatpush3.msra.mxu1 %v3498_v35 }
0x1549   :  { %11157 = vmatprep.subr.mxu1 %v16629_v34 }
0x154a   :  { %11158 = vmatpush3.msra.mxu1 %v3497_v40 }
0x154b   :  { %11159 = vmatprep.subr.mxu1 %v16629_v34 }
0x154c   :  { %11160 = vmatpush3.msra.mxu1 %v3496_v30 }
0x154d   :  { %11161 = vmatprep.subr.mxu1 %v16629_v34 }
0x154e   :  { %11162 = vmatpush3.msra.mxu1 %v3495_v29 }
0x154f   :  { %11164 = vmatmul.mubr.msk.f32.vlgmr.msra.gmra.mxu1 %vm312_vm7, %v14233_v46  ;;  %11210 = vmatprep.subr.mxu1 %v16629_v34 }
0x1550   :  { %11166 = vmatprep.mubr.msk.f32.mxu1 %vm13134_vm1, %v16629_v34 }
0x1553   :  { %11167 = vmatmul.mubr.msk.f32.gmra.mxu1 %vm312_vm7, %v14243_v18 }
0x1554   :  { %11169 = vmatprep.mubr.msk.f32.mxu1 %vm13134_vm1, %v16629_v34 }
0x1557   :  { %11170 = vmatmul.mubr.msk.f32.gmra.mxu1 %vm312_vm7, %v14252_v33 }
0x1558   :  { %11172 = vmatprep.mubr.msk.f32.mxu1 %vm13134_vm1, %v16629_v34 }
0x155b   :  { %11173 = vmatmul.mubr.msk.f32.gmra.mxu1 %vm312_vm7, %v14261_v12 }
0x155c   :  { %11175 = vmatprep.mubr.msk.f32.mxu1 %vm13134_vm1, %v16629_v34 }
0x155f   :  { %11176 = vmatmul.mubr.msk.f32.gmra.mxu1 %vm312_vm7, %v14270_v59 }
0x1560   :  { %11220 = vmatprep.mubr.msk.f32.mxu1 %vm13134_vm1, %v16629_v34 }
0x160f   :  { %v3566_v46 = vpop.f32.mrf.mxu1 }
0x1610   :  { %v14436_v15 = vadd.f32 %v3566_v46, %v16654_v14 }
0x1611   :  { %v11165_v18 = vpop.f32.mrf.mxu1 }
0x1612   :  { %v3595_v22 = vand.u32 2147483647, %v14436_v15 }
0x1613   :  { %v3571_v9 = vpop.f32.mrf.mxu1 }
0x1614   :  { %v14433_v33 = vadd.f32 %v3571_v9, %v16653_v56  ;;  %v3600_v17 = vsub.f32 0.0, %v3595_v22 }
0x1615   :  { %v11168_v20 = vpop.f32.mrf.mxu1 }
0x1616   :  { %v3596_v12 = vand.u32 2147483647, %v14433_v33  ;;  %v3605_v32 = vmul.f32 1.442695, %v3600_v17 }
0x1617   :  { %v3576_v60 = vpop.f32.mrf.mxu1 }
0x1618   :  { %v14440_v2 = vadd.f32 %v3576_v60, %v16655_v41  ;;  %v3601_v44 = vsub.f32 0.0, %v3596_v12 }
0x1619   :  { %v11171_v59 = vpop.f32.mrf.mxu1 }
0x161a   :  { %v3597_v21 = vand.u32 2147483647, %v14440_v2  ;;  %v3607_v54 = vmul.f32 1.442695, %v3601_v44 }
0x161b   :  { %v3581_v26 = vpop.f32.mrf.mxu1 }
0x161c   :  { %v3602_v8 = vsub.f32 0.0, %v3597_v21  ;;  %v14445_v49 = vadd.f32 %v3581_v26, %v16656_v55 }
0x161d   :  { %v11174_v62 = vpop.f32.mrf.mxu1 }
0x161e   :  { %v3609_v45 = vmul.f32 1.442695, %v3602_v8  ;;  %v3598_v5 = vand.u32 2147483647, %v14445_v49 }
0x161f   :  { %v3586_v31 = vpop.f32.mrf.mxu1 }
0x1620   :  { %v3603_v63 = vsub.f32 0.0, %v3598_v5  ;;  %v3587_v13 = vadd.f32 %v3586_v31, %v16657_v61  ;;  %12395 = vpow2.f32 %v3609_v45 }
0x1621   :  { %v11177_v38 = vpop.f32.mrf.mxu1  ;;  %12397 = vpow2.f32 %v3607_v54 }
0x1622   :  { %v3611_v28 = vmul.f32 1.442695, %v3603_v63  ;;  %v3599_v1 = vand.u32 2147483647, %v3587_v13  ;;  %v3594_v26 = vmax.f32 %v3587_v13, 0.0 }
0x1624   :  { %12399 = vpow2.f32 %v3611_v28  ;;  %v3604_v58 = vsub.f32 0.0, %v3599_v1 }
0x1625   :  { %12401 = vpow2.f32 %v3605_v32 }
0x1626   :  { %v3613_v48 = vmul.f32 1.442695, %v3604_v58 }
0x1628   :  { %12403 = vpow2.f32 %v3613_v48  ;;  %v3593_v48 = vmax.f32 %v14445_v49, 0.0 }
0x162d   :  { %v12396_v19 = vpop.eup %12395 }
0x162e   :  { %v12398_v4 = vpop.eup %12397  ;;  %v3633_v37 = vadd.f32 1.0, %v12396_v19  ;;  %v3636_v50 = vmul.f32 -0.5, %v12396_v19  ;;  %v3639_v8 = vand.u32 2147483647, %v12396_v19 }
0x162f   :  { %v3624_v35 = vadd.f32 1.0, %v12398_v4  ;;  %v3627_v29 = vmul.f32 -0.5, %v12398_v4  ;;  %v3630_v38 = vand.u32 2147483647, %v12398_v4 }
0x1630   :  { %v3637_v21 = vadd.f32 1.0, %v3636_v50  ;;  %vm3640_vm12 = vcmp.lt.f32.partialorder %v3639_v8, 0.0004427343  ;;  %v3590_v50 = vmax.f32 %v14436_v15, 0.0  ;;  %v14463_v15 = vld [vmem:[%s16522_s1 + $0xa8] sm:$0xff] }
0x1631   :  { %v12400_v24 = vpop.eup %12399  ;;  %v3628_v62 = vadd.f32 1.0, %v3627_v29  ;;  %vm3631_vm13 = vcmp.lt.f32.partialorder %v3630_v38, 0.0004427343  ;;  %v14487_v29 = vld [vmem:[%s16522_s1 + $0x90] sm:$0xff] }
0x1632   :  { %v3642_v10 = vadd.f32 1.0, %v12400_v24  ;;  %v12402_v25 = vpop.eup %12401  ;;  %v3645_v57 = vmul.f32 -0.5, %v12400_v24  ;;  %v3648_v60 = vand.u32 2147483647, %v12400_v24  ;;  %v3638_v1 = vmul.f32 %v12396_v19, %v3637_v21 }
0x1633   :  { %v3615_v36 = vadd.f32 1.0, %v12402_v25  ;;  %v3618_v46 = vmul.f32 -0.5, %v12402_v25  ;;  %v3621_v13 = vand.u32 2147483647, %v12402_v25 }
0x1634   :  { %12405 = vlog2.f32 %v3642_v10  ;;  %v3646_v9 = vadd.f32 1.0, %v3645_v57  ;;  %vm3649_vm11 = vcmp.lt.f32.partialorder %v3648_v60, 0.0004427343  ;;  %v3591_v57 = vmax.f32 %v14433_v33, 0.0 }
0x1635   :  { %v12404_v42 = vpop.eup %12403  ;;  %12407 = vlog2.f32 %v3633_v37  ;;  %v3619_v17 = vadd.f32 1.0, %v3618_v46  ;;  %vm3622_vm14 = vcmp.lt.f32.partialorder %v3621_v13, 0.0004427343  ;;  %v16573_v33 = vmov 6  }
0x1636   :  { %v3651_v7 = vadd.f32 1.0, %v12404_v42  ;;  %12409 = vlog2.f32 %v3624_v35  ;;  %v3654_v40 = vmul.f32 -0.5, %v12404_v42  ;;  %v3657_v12 = vand.u32 2147483647, %v12404_v42  ;;  %12033 = vset.pattern.permute.xlu1 %v16573_v33  ;;  %12034 = vset.pattern.permute.xlu0 %v16573_v33 }
0x1637   :  { %v3647_v54 = vmul.f32 %v12400_v24, %v3646_v9  ;;  %v3629_v35 = vmul.f32 %v12398_v4, %v3628_v62  ;;  %3765 = vperm.xlu1 %12033, %v14463_v15   ;;  %v3143_v46 = vmul.f32 0.083333336, %v14315_v23 }
0x1638   :  { %12411 = vlog2.f32 %v3651_v7  ;;  %v3655_v18 = vadd.f32 1.0, %v3654_v40  ;;  %vm3658_vm10 = vcmp.lt.f32.partialorder %v3657_v12, 0.0004427343  ;;  %v3620_v40 = vmul.f32 %v12402_v25, %v3619_v17  ;;  %v14475_v25 = vld [vmem:[%s16522_s1 + $0x98] sm:$0xff] }
0x1639   :  { %12413 = vlog2.f32 %v3615_v36  ;;  %v3145_v60 = vadd.f32 %v3143_v46, %v14081_v11 }
0x163a   :  { %v3656_v5 = vmul.f32 %v12404_v42, %v3655_v18  ;;  %v3592_v42 = vmax.f32 %v14440_v2, 0.0  ;;  %v3142_v18 = vmul.f32 0.083333336, %v14319_v16 }
0x163b   :  { %3757 = vperm.xlu1 %12033, %v14475_v25  }
0x163f   :  { %3753 = vperm.xlu1 %12033, %v14487_v29  }
0x1641   :  { %v12406_v30 = vpop.eup %12405 }
0x1642   :  { %v12408_v20 = vpop.eup %12407  ;;  %v3644_v22 = vmul.f32 0.6931472, %v12406_v30  ;;  %v14481_v30 = vld [vmem:[%s16522_s1 + $0x88] sm:$0xff] }
0x1643   :  { %v12410_v59 = vpop.eup %12409  ;;  %v3635_v31 = vmul.f32 0.6931472, %v12408_v20 }
0x1644   :  { %v3650_v28 = vsel %vm3649_vm11, %v3647_v54, %v3644_v22  ;;  %v3626_v58 = vmul.f32 0.6931472, %v12410_v59  ;;  %v14525_v54 = vld [vmem:[%s16522_s1 + $0x10] sm:$0xff] }
0x1645   :  { %v12412_v44 = vpop.eup %12411  ;;  %v3641_v37 = vsel %vm3640_vm12, %v3638_v1, %v3635_v31  ;;  %v3663_v24 = vadd.f32 %v3650_v28, %v3593_v48  ;;  %v14534_v31 = vld [vmem:[%s16522_s1 + $0x18] sm:$0xff] }
0x1646   :  { %v3653_v45 = vmul.f32 0.6931472, %v12412_v44  ;;  %v12414_v63 = vpop.eup %12413  ;;  %v3632_v36 = vsel %vm3631_vm13, %v3629_v35, %v3626_v58  ;;  %v3662_v19 = vadd.f32 %v3641_v37, %v3592_v42  ;;  %v3144_v44 = vadd.f32 %v3142_v18, %v14084_v0 }
0x1647   :  { %v3617_v7 = vmul.f32 0.6931472, %v12414_v63  ;;  %v3661_v4 = vadd.f32 %v3632_v36, %v3591_v57  ;;  %v14543_v63 = vld [vmem:[%s16522_s1 + $0x20] sm:$0xff] }
0x1648   :  { %v3659_v32 = vsel %vm3658_vm10, %v3656_v5, %v3653_v45  ;;  %v14506_v45 = vld [vmem:[%s16522_s1] sm:$0xff]  ;;  %v14516_v5 = vld [vmem:[%s16522_s1 + $0x8] sm:$0xff]  ;;  %16658 = vst [vmem:[#allocation7_spill] sm:$0xff] %v14543_v63 }
0x1649   :  { %v3664_v10 = vadd.f32 %v3659_v32, %v3594_v26  ;;  %v3623_v49 = vsel %vm3622_vm14, %v3620_v40, %v3617_v7 }
0x164a   :  { %v3660_v2 = vadd.f32 %v3623_v49, %v3590_v50 }
0x164b   :  { %11178 = vmatprep.subr.mxu0 %v3664_v10 }
0x164c   :  { %11179 = vmatpush3.msra.mxu0 %v3664_v10 }
0x164d   :  { %11180 = vmatprep.subr.mxu0 %v3663_v24 }
0x164e   :  { %11181 = vmatpush3.msra.mxu0 %v3663_v24 }
0x164f   :  { %11182 = vmatprep.subr.mxu0 %v3662_v19 }
0x1650   :  { %11183 = vmatpush3.msra.mxu0 %v3662_v19 }
0x1651   :  { %11184 = vmatprep.subr.mxu0 %v3661_v4 }
0x1652   :  { %11185 = vmatpush3.msra.mxu0 %v3661_v4 }
0x1653   :  { %11186 = vmatprep.subr.mxu0 %v3660_v2 }
0x1654   :  { %11187 = vmatpush3.msra.mxu0 %v3660_v2 }
0x1655   :  { %11189 = vmatmul.mubr.msk.f32.vlgmr.msra.gmra.mxu0 %vm312_vm7, %v14300_v39  ;;  %11191 = vmatprep.subr.mxu0 %v16629_v34  ;;  %v14469_v39 = vld [vmem:[%s16522_s1 + $0xa0] sm:$0xff] }
0x1656   :  { %11195 = vmatprep.mubr.msk.f32.mxu0 %vm13134_vm1, %v16629_v34  ;;  %3761 = vperm.xlu0 %12034, %v14469_v39  }
0x165a   :  { %3749 = vperm.xlu0 %12034, %v14481_v30  }
0x16b2   :  { %v3766_v38 = vpop.permute.xlu1 %3765 }
0x16b6   :  { %v3758_v32 = vpop.permute.xlu1 %3757 }
0x16ba   :  { %v3754_v48 = vpop.permute.xlu1 %3753 }
0x16d1   :  { %v3762_v28 = vpop.permute.xlu0 %3761 }
0x16d5   :  { %v3750_v13 = vpop.permute.xlu0 %3749 }
0x1715   :  { %v11190_v9 = vpop.f32.mrf.mxu0 }
0x1716   :  { %v3737_v20 = vadd.f32 %v11190_v9, %v13483_v47 }
0x1717   :  { %v3731_v12 = vpop.f32.mrf.mxu0 }
0x1718   :  { %v3741_v59 = vmul.f32 0.16666667, %v3737_v20  ;;  %v3745_v22 = vmul.f32 0.25, %v3737_v20  ;;  %v3732_v21 = vadd.f32 %v3731_v12, %v13488_v53 }
0x171a   :  { %v14496_v26 = vadd.f32 %v3741_v59, %v3145_v60  ;;  %v3747_v8 = vadd.f32 %v3745_v22, %v14081_v11  ;;  %v3740_v62 = vmul.f32 0.16666667, %v3732_v21  ;;  %v3744_v23 = vmul.f32 0.25, %v3732_v21 }
0x171c   :  { %v14499_v17 = vadd.f32 %v3740_v62, %v3144_v44  ;;  %v3746_v16 = vadd.f32 %v3744_v23, %v14084_v0  ;;  %11192 = vmatpush3.msra.mxu0 %v3747_v8 }
0x171d   :  { %11193 = vmatprep.subr.mxu0 %v16629_v34 }
0x171e   :  { %11194 = vmatpush3.msra.mxu0 %v3746_v16 }
0x171f   :  { %11196 = vmatmul.mubr.msk.f32.vlgmr.msra.gmra.mxu0 %vm131_vm0, %v14506_v45  ;;  %11235 = vmatprep.subr.mxu0 %v16629_v34 }
0x1720   :  { %11198 = vmatprep.mubr.msk.f32.mxu0 %vm13134_vm1, %v16629_v34 }
0x1723   :  { %11199 = vmatmul.mubr.msk.f32.gmra.mxu0 %vm131_vm0, %v14516_v5 }
0x1724   :  { %11201 = vmatprep.mubr.msk.f32.mxu0 %vm13134_vm1, %v16629_v34 }
0x1727   :  { %11202 = vmatmul.mubr.msk.f32.gmra.mxu0 %vm131_vm0, %v14525_v54 }
0x1728   :  { %11204 = vmatprep.mubr.msk.f32.mxu0 %vm13134_vm1, %v16629_v34 }
0x172b   :  { %11205 = vmatmul.mubr.msk.f32.gmra.mxu0 %vm131_vm0, %v14534_v31 }
0x172c   :  { %11207 = vmatprep.mubr.msk.f32.mxu0 %vm13134_vm1, %v16629_v34 }
0x172f   :  { %11208 = vmatmul.mubr.msk.f32.gmra.mxu0 %vm131_vm0, %v14543_v63 }
0x1730   :  { %11245 = vmatprep.mubr.msk.f32.mxu0 %vm13134_vm1, %v16629_v34 }
0x17df   :  { %v3834_v1 = vpop.f32.mrf.mxu0 }
0x17e0   :  { %v14552_v42 = vadd.f32 %v3834_v1, %v3750_v13 }
0x17e1   :  { %v11197_v58 = vpop.f32.mrf.mxu0 }
0x17e2   :  { %v3863_v49 = vand.u32 2147483647, %v14552_v42 }
0x17e3   :  { %v3839_v10 = vpop.f32.mrf.mxu0 }
0x17e4   :  { %v14549_v37 = vadd.f32 %v3839_v10, %v3754_v48  ;;  %v3868_v20 = vsub.f32 0.0, %v3863_v49 }
0x17e5   :  { %v11200_v35 = vpop.f32.mrf.mxu0 }
0x17e6   :  { %v3864_v7 = vand.u32 2147483647, %v14549_v37  ;;  %v3873_v62 = vmul.f32 1.442695, %v3868_v20 }
0x17e7   :  { %v3844_v24 = vpop.f32.mrf.mxu0 }
0x17e8   :  { %v14554_v36 = vadd.f32 %v3844_v24, %v3758_v32  ;;  %v3869_v57 = vsub.f32 0.0, %v3864_v7 }
0x17e9   :  { %v11203_v40 = vpop.f32.mrf.mxu0 }
0x17ea   :  { %v3865_v19 = vand.u32 2147483647, %v14554_v36  ;;  %v3875_v18 = vmul.f32 1.442695, %v3869_v57 }
0x17eb   :  { %v3849_v50 = vpop.f32.mrf.mxu0 }
0x17ec   :  { %v3870_v4 = vsub.f32 0.0, %v3865_v19  ;;  %v14558_v2 = vadd.f32 %v3849_v50, %v3762_v28  ;;  %12415 = vpow2.f32 %v3875_v18 }
0x17ed   :  { %v11206_v46 = vpop.f32.mrf.mxu0 }
0x17ee   :  { %v3866_v9 = vand.u32 2147483647, %v14558_v2  ;;  %v3877_v12 = vmul.f32 1.442695, %v3870_v4 }
0x17ef   :  { %v3854_v60 = vpop.f32.mrf.mxu0 }
0x17f0   :  { %v3871_v59 = vsub.f32 0.0, %v3866_v9  ;;  %v3855_v22 = vadd.f32 %v3854_v60, %v3766_v38  ;;  %12417 = vpow2.f32 %v3877_v12 }
0x17f1   :  { %v11209_v21 = vpop.f32.mrf.mxu0 }
0x17f2   :  { %v3879_v44 = vmul.f32 1.442695, %v3871_v59  ;;  %v3867_v8 = vand.u32 2147483647, %v3855_v22 }
0x17f4   :  { %12419 = vpow2.f32 %v3879_v44  ;;  %v3872_v23 = vsub.f32 0.0, %v3867_v8 }
0x17f5   :  { %12421 = vpow2.f32 %v3873_v62 }
0x17f6   :  { %v3881_v16 = vmul.f32 1.442695, %v3872_v23  ;;  %v3862_v23 = vmax.f32 %v3855_v22, 0.0 }
0x17f8   :  { %12423 = vpow2.f32 %v3881_v16 }
0x17f9   :  { %v12416_v32 = vpop.eup %12415 }
0x17fa   :  { %v3892_v13 = vadd.f32 1.0, %v12416_v32  ;;  %v3895_v50 = vmul.f32 -0.5, %v12416_v32 }
0x17fc   :  { %v3896_v8 = vadd.f32 1.0, %v3895_v50 }
0x17fd   :  { %v12418_v28 = vpop.eup %12417 }
0x17fe   :  { %v3901_v48 = vadd.f32 1.0, %v12418_v28  ;;  %v3904_v57 = vmul.f32 -0.5, %v12418_v28  ;;  %v3907_v62 = vand.u32 2147483647, %v12418_v28  ;;  %v3897_v50 = vmul.f32 %v12416_v32, %v3896_v8 }
0x1800   :  { %v3905_v60 = vadd.f32 1.0, %v3904_v57  ;;  %vm3908_vm3 = vcmp.lt.f32.partialorder %v3907_v62, 0.0004427343  ;;  %v3861_v57 = vmax.f32 %v14558_v2, 0.0 }
0x1801   :  { %v12420_v1 = vpop.eup %12419 }
0x1802   :  { %v3910_v58 = vadd.f32 1.0, %v12420_v1  ;;  %v12422_v10 = vpop.eup %12421  ;;  %v3913_v24 = vmul.f32 -0.5, %v12420_v1  ;;  %v3916_v9 = vand.u32 2147483647, %v12420_v1 }
0x1803   :  { %v3883_v35 = vadd.f32 1.0, %v12422_v10  ;;  %v3886_v49 = vmul.f32 -0.5, %v12422_v10  ;;  %v3889_v63 = vand.u32 2147483647, %v12422_v10 }
0x1804   :  { %12425 = vlog2.f32 %v3910_v58  ;;  %v3914_v4 = vadd.f32 1.0, %v3913_v24  ;;  %vm3917_vm15 = vcmp.lt.f32.partialorder %v3916_v9, 0.0004427343 }
0x1805   :  { %v12424_v38 = vpop.eup %12423  ;;  %12427 = vlog2.f32 %v3901_v48  ;;  %v3887_v44 = vadd.f32 1.0, %v3886_v49  ;;  %vm3890_vm5 = vcmp.lt.f32.partialorder %v3889_v63, 0.0004427343  ;;  %v14572_v63 = vld [vmem:[%s16522_s1 + $0x28] sm:$0xff] }
0x1806   :  { %v3919_v7 = vadd.f32 1.0, %v12424_v38  ;;  %12429 = vlog2.f32 %v3892_v13  ;;  %v3922_v40 = vmul.f32 -0.5, %v12424_v38  ;;  %v3925_v20 = vand.u32 2147483647, %v12424_v38 }
0x1807   :  { %v3915_v58 = vmul.f32 %v12420_v1, %v3914_v4  ;;  %v3860_v1 = vmax.f32 %v14554_v36, 0.0  ;;  %v3888_v4 = vmul.f32 %v12422_v10, %v3887_v44  ;;  %v14599_v36 = vld [vmem:[%s16522_s1 + $0x40] sm:$0xff]  ;;  %v14615_v10 = vld [vmem:[%s16522_s1 + $0x78] sm:$0xff] }
0x1808   :  { %12431 = vlog2.f32 %v3919_v7  ;;  %v3923_v46 = vadd.f32 1.0, %v3922_v40  ;;  %v3898_v7 = vand.u32 2147483647, %v12416_v32  ;;  %vm3926_vm2 = vcmp.lt.f32.partialorder %v3925_v20, 0.0004427343  ;;  %v14608_v32 = vld [vmem:[%s16522_s1 + $0x48] sm:$0xff] }
0x1809   :  { %12433 = vlog2.f32 %v3883_v35  ;;  %v3906_v40 = vmul.f32 %v12418_v28, %v3905_v60  ;;  %v3859_v28 = vmax.f32 %v14549_v37, 0.0  ;;  %v14581_v37 = vld [vmem:[%s16522_s1 + $0x30] sm:$0xff]  ;;  %16659 = vst [vmem:[#allocation13_spill] sm:$0xff] %v14615_v10 }
0x180a   :  { %v3924_v13 = vmul.f32 %v12424_v38, %v3923_v46  ;;  %vm3899_vm4 = vcmp.lt.f32.partialorder %v3898_v7, 0.0004427343 }
0x1811   :  { %v12426_v19 = vpop.eup %12425 }
0x1812   :  { %v12428_v18 = vpop.eup %12427  ;;  %v3912_v59 = vmul.f32 0.6931472, %v12426_v19 }
0x1813   :  { %v12430_v12 = vpop.eup %12429  ;;  %v3903_v16 = vmul.f32 0.6931472, %v12428_v18 }
0x1814   :  { %v3894_v24 = vmul.f32 0.6931472, %v12430_v12  ;;  %v3918_v33 = vsel %vm3917_vm15, %v3915_v58, %v3912_v59 }
0x1815   :  { %v12432_v21 = vpop.eup %12431  ;;  %v3909_v22 = vsel %vm3908_vm3, %v3906_v40, %v3903_v16  ;;  %v3931_v38 = vadd.f32 %v3918_v33, %v3861_v57 }
0x1816   :  { %v3921_v48 = vmul.f32 0.6931472, %v12432_v21  ;;  %v12434_v35 = vpop.eup %12433  ;;  %v3900_v46 = vsel %vm3899_vm4, %v3897_v50, %v3894_v24  ;;  %v3930_v18 = vadd.f32 %v3909_v22, %v3860_v1 }
0x1817   :  { %v3885_v49 = vmul.f32 0.6931472, %v12434_v35  ;;  %v3929_v2 = vadd.f32 %v3900_v46, %v3859_v28 }
0x1818   :  { %v3927_v51 = vsel %vm3926_vm2, %v3924_v13, %v3921_v48 }
0x1819   :  { %v3932_v19 = vadd.f32 %v3927_v51, %v3862_v23  ;;  %v3891_v9 = vsel %vm3890_vm5, %v3888_v4, %v3885_v49  ;;  %v3858_v51 = vmax.f32 %v14552_v42, 0.0  ;;  %v14590_v42 = vld [vmem:[%s16522_s1 + $0x38] sm:$0xff] }
0x181b   :  { %11211 = vmatpush3.msra.mxu1 %v3932_v19  ;;  %v3928_v33 = vadd.f32 %v3891_v9, %v3858_v51 }
0x181c   :  { %11212 = vmatprep.subr.mxu1 %v16629_v34 }
0x181d   :  { %11213 = vmatpush3.msra.mxu1 %v3931_v38 }
0x181e   :  { %11214 = vmatprep.subr.mxu1 %v16629_v34 }
0x181f   :  { %11215 = vmatpush3.msra.mxu1 %v3930_v18 }
0x1820   :  { %11216 = vmatprep.subr.mxu1 %v16629_v34 }
0x1821   :  { %11217 = vmatpush3.msra.mxu1 %v3929_v2 }
0x1822   :  { %11218 = vmatprep.subr.mxu1 %v16629_v34 }
0x1823   :  { %11219 = vmatpush3.msra.mxu1 %v3928_v33 }
0x1824   :  { %11221 = vmatmul.mubr.msk.f32.vlgmr.msra.gmra.mxu1 %vm312_vm7, %v14572_v63 }
0x1825   :  { %11223 = vmatprep.mubr.msk.f32.mxu1 %vm13134_vm1, %v16629_v34 }
0x1828   :  { %11224 = vmatmul.mubr.msk.f32.gmra.mxu1 %vm312_vm7, %v14581_v37 }
0x1829   :  { %11226 = vmatprep.mubr.msk.f32.mxu1 %vm13134_vm1, %v16629_v34 }
0x182c   :  { %11227 = vmatmul.mubr.msk.f32.gmra.mxu1 %vm312_vm7, %v14590_v42 }
0x182d   :  { %11229 = vmatprep.mubr.msk.f32.mxu1 %vm13134_vm1, %v16629_v34 }
0x1830   :  { %11230 = vmatmul.mubr.msk.f32.gmra.mxu1 %vm312_vm7, %v14599_v36 }
0x1831   :  { %11232 = vmatprep.mubr.msk.f32.mxu1 %vm13134_vm1, %v16629_v34 }
0x1834   :  { %11233 = vmatmul.mubr.msk.f32.gmra.mxu1 %vm312_vm7, %v14608_v32 }
0x1835   :  { %11270 = vmatprep.mubr.msk.f32.mxu1 %vm312_vm7, %v14615_v10 }
0x18e4   :  { %v3999_v20 = vpop.f32.mrf.mxu1 }
0x18e5   :  { %v14624_v8 = vadd.f32 %v3999_v20, %v16649_v52 }
0x18e6   :  { %v11222_v12 = vpop.f32.mrf.mxu1 }
0x18e7   :  { %v4028_v13 = vand.u32 2147483647, %v14624_v8 }
0x18e8   :  { %v4004_v60 = vpop.f32.mrf.mxu1 }
0x18e9   :  { %v14620_v59 = vadd.f32 %v4004_v60, %v16648_v43  ;;  %v4033_v49 = vsub.f32 0.0, %v4028_v13 }
0x18ea   :  { %v11225_v21 = vpop.f32.mrf.mxu1 }
0x18eb   :  { %v4029_v44 = vand.u32 2147483647, %v14620_v59  ;;  %v4038_v18 = vmul.f32 1.442695, %v4033_v49 }
0x18ec   :  { %v4009_v62 = vpop.f32.mrf.mxu1 }
0x18ed   :  { %v14627_v23 = vadd.f32 %v4009_v62, %v16650_v3  ;;  %v4034_v58 = vsub.f32 0.0, %v4029_v44 }
0x18ee   :  { %v11228_v16 = vpop.f32.mrf.mxu1 }
0x18ef   :  { %v4030_v48 = vand.u32 2147483647, %v14627_v23  ;;  %v4040_v57 = vmul.f32 1.442695, %v4034_v58 }
0x18f0   :  { %v4014_v35 = vpop.f32.mrf.mxu1 }
0x18f1   :  { %v4035_v7 = vsub.f32 0.0, %v4030_v48  ;;  %v14632_v24 = vadd.f32 %v4014_v35, %v16651_v27  ;;  %12435 = vpow2.f32 %v4040_v57 }
0x18f2   :  { %v11231_v40 = vpop.f32.mrf.mxu1 }
0x18f3   :  { %v4031_v19 = vand.u32 2147483647, %v14632_v24  ;;  %v4042_v50 = vmul.f32 1.442695, %v4035_v7 }
0x18f4   :  { %v4019_v22 = vpop.f32.mrf.mxu1 }
0x18f5   :  { %v4036_v1 = vsub.f32 0.0, %v4031_v19  ;;  %v4020_v38 = vadd.f32 %v4019_v22, %v16652_v6  ;;  %12437 = vpow2.f32 %v4042_v50 }
0x18f6   :  { %v11234_v4 = vpop.f32.mrf.mxu1 }
0x18f7   :  { %v4044_v46 = vmul.f32 1.442695, %v4036_v1  ;;  %v4032_v28 = vand.u32 2147483647, %v4020_v38 }
0x18f9   :  { %12439 = vpow2.f32 %v4044_v46  ;;  %v4037_v9 = vsub.f32 0.0, %v4032_v28 }
0x18fa   :  { %12441 = vpow2.f32 %v4038_v18 }
0x18fb   :  { %v4046_v51 = vmul.f32 1.442695, %v4037_v9 }
0x18fd   :  { %12443 = vpow2.f32 %v4046_v51 }
0x18fe   :  { %v12436_v2 = vpop.eup %12435 }
0x18ff   :  { %v4057_v44 = vadd.f32 1.0, %v12436_v2  ;;  %v4060_v57 = vmul.f32 -0.5, %v12436_v2  ;;  %v4063_v3 = vand.u32 2147483647, %v12436_v2 }
0x1901   :  { %v4061_v51 = vadd.f32 1.0, %v4060_v57  ;;  %vm4064_vm10 = vcmp.lt.f32.partialorder %v4063_v3, 0.0004427343  ;;  %v14647_v3 = vld [vmem:[%s16522_s1 + $0x50] sm:$0xff] }
0x1902   :  { %v12438_v33 = vpop.eup %12437 }
0x1903   :  { %v4066_v60 = vadd.f32 1.0, %v12438_v33  ;;  %v4069_v35 = vmul.f32 -0.5, %v12438_v33  ;;  %v4062_v57 = vmul.f32 %v12436_v2, %v4061_v51 }
0x1905   :  { %v4070_v46 = vadd.f32 1.0, %v4069_v35  ;;  %v4026_v35 = vmax.f32 %v14632_v24, 0.0 }
0x1906   :  { %v12440_v20 = vpop.eup %12439 }
0x1907   :  { %v4075_v12 = vadd.f32 1.0, %v12440_v20  ;;  %v12442_v21 = vpop.eup %12441  ;;  %v4078_v48 = vmul.f32 -0.5, %v12440_v20  ;;  %v4081_v22 = vand.u32 2147483647, %v12440_v20 }
0x1908   :  { %v4048_v16 = vadd.f32 1.0, %v12442_v21  ;;  %v4051_v40 = vmul.f32 -0.5, %v12442_v21  ;;  %v4054_v10 = vand.u32 2147483647, %v12442_v21 }
0x1909   :  { %12445 = vlog2.f32 %v4075_v12  ;;  %v4079_v19 = vadd.f32 1.0, %v4078_v48  ;;  %v4072_v12 = vand.u32 2147483647, %v12438_v33  ;;  %vm4082_vm6 = vcmp.lt.f32.partialorder %v4081_v22, 0.0004427343 }
0x190a   :  { %v12444_v62 = vpop.eup %12443  ;;  %12447 = vlog2.f32 %v4066_v60  ;;  %v4052_v9 = vadd.f32 1.0, %v4051_v40  ;;  %v4027_v60 = vmax.f32 %v4020_v38, 0.0  ;;  %vm4055_vm11 = vcmp.lt.f32.partialorder %v4054_v10, 0.0004427343  ;;  %v14657_v10 = vld [vmem:[%s16522_s1 + $0x58] sm:$0xff] }
0x190b   :  { %v4084_v58 = vadd.f32 1.0, %v12444_v62  ;;  %12449 = vlog2.f32 %v4057_v44  ;;  %v4087_v13 = vmul.f32 -0.5, %v12444_v62  ;;  %v4090_v1 = vand.u32 2147483647, %v12444_v62 }
0x190c   :  { %vm4073_vm9 = vcmp.lt.f32.partialorder %v4072_v12, 0.0004427343 }
0x190d   :  { %12451 = vlog2.f32 %v4084_v58  ;;  %v4088_v49 = vadd.f32 1.0, %v4087_v13  ;;  %vm4091_vm8 = vcmp.lt.f32.partialorder %v4090_v1, 0.0004427343  ;;  %v4071_v13 = vmul.f32 %v12438_v33, %v4070_v46 }
0x190e   :  { %12453 = vlog2.f32 %v4048_v16  ;;  %v4080_v16 = vmul.f32 %v12440_v20, %v4079_v19  ;;  %v4025_v20 = vmax.f32 %v14627_v23, 0.0  ;;  %v4053_v19 = vmul.f32 %v12442_v21, %v4052_v9  ;;  %v14684_v23 = vld [vmem:[%s16522_s1 + $0x70] sm:$0xff] }
0x190f   :  { %v4089_v6 = vmul.f32 %v12444_v62, %v4088_v49 }
0x1916   :  { %v12446_v7 = vpop.eup %12445 }
0x1917   :  { %v12448_v50 = vpop.eup %12447  ;;  %v4077_v28 = vmul.f32 0.6931472, %v12446_v7 }
0x1918   :  { %v12450_v4 = vpop.eup %12449  ;;  %v4068_v44 = vmul.f32 0.6931472, %v12448_v50 }
0x1919   :  { %v4059_v48 = vmul.f32 0.6931472, %v12450_v4  ;;  %v4083_v52 = vsel %vm4082_vm6, %v4080_v16, %v4077_v28 }
0x191a   :  { %v12452_v18 = vpop.eup %12451  ;;  %v4074_v38 = vsel %vm4073_vm9, %v4071_v13, %v4068_v44  ;;  %v4096_v62 = vadd.f32 %v4083_v52, %v4026_v35 }
0x191b   :  { %v4086_v58 = vmul.f32 0.6931472, %v12452_v18  ;;  %v12454_v27 = vpop.eup %12453  ;;  %v4065_v49 = vsel %vm4064_vm10, %v4062_v57, %v4059_v48  ;;  %v4095_v33 = vadd.f32 %v4074_v38, %v4025_v20 }
0x191c   :  { %v4050_v40 = vmul.f32 0.6931472, %v12454_v27 }
0x191d   :  { %v4092_v43 = vsel %vm4091_vm8, %v4089_v6, %v4086_v58  ;;  %v4024_v6 = vmax.f32 %v14620_v59, 0.0  ;;  %v14666_v59 = vld [vmem:[%s16522_s1 + $0x60] sm:$0xff] }
0x191e   :  { %v4097_v7 = vadd.f32 %v4092_v43, %v4027_v60  ;;  %v4056_v50 = vsel %vm4055_vm11, %v4053_v19, %v4050_v40  ;;  %v4023_v43 = vmax.f32 %v14624_v8, 0.0  ;;  %v14675_v8 = vld [vmem:[%s16522_s1 + $0x68] sm:$0xff] }
0x191f   :  { %v4094_v27 = vadd.f32 %v4065_v49, %v4024_v6 }
0x1920   :  { %11236 = vmatpush3.msra.mxu0 %v4097_v7  ;;  %v4093_v52 = vadd.f32 %v4056_v50, %v4023_v43 }
0x1921   :  { %11237 = vmatprep.subr.mxu0 %v16629_v34 }
0x1922   :  { %11238 = vmatpush3.msra.mxu0 %v4096_v62 }
0x1923   :  { %11239 = vmatprep.subr.mxu0 %v16629_v34 }
0x1924   :  { %11240 = vmatpush3.msra.mxu0 %v4095_v33 }
0x1925   :  { %11241 = vmatprep.subr.mxu0 %v16629_v34 }
0x1926   :  { %11242 = vmatpush3.msra.mxu0 %v4094_v27 }
0x1927   :  { %11243 = vmatprep.subr.mxu0 %v16629_v34 }
0x1928   :  { %11244 = vmatpush3.msra.mxu0 %v4093_v52 }
0x1929   :  { %11246 = vmatmul.mubr.msk.f32.vlgmr.msra.gmra.mxu0 %vm312_vm7, %v14647_v3  ;;  %11292 = vmatprep.subr.mxu0 %v16629_v34 }
0x192a   :  { %11248 = vmatprep.mubr.msk.f32.mxu0 %vm13134_vm1, %v16629_v34 }
0x192d   :  { %11249 = vmatmul.mubr.msk.f32.gmra.mxu0 %vm312_vm7, %v14657_v10 }
0x192e   :  { %11251 = vmatprep.mubr.msk.f32.mxu0 %vm13134_vm1, %v16629_v34 }
0x1931   :  { %11252 = vmatmul.mubr.msk.f32.gmra.mxu0 %vm312_vm7, %v14666_v59 }
0x1932   :  { %11254 = vmatprep.mubr.msk.f32.mxu0 %vm13134_vm1, %v16629_v34 }
0x1935   :  { %11255 = vmatmul.mubr.msk.f32.gmra.mxu0 %vm312_vm7, %v14675_v8 }
0x1936   :  { %11257 = vmatprep.mubr.msk.f32.mxu0 %vm13134_vm1, %v16629_v34 }
0x1939   :  { %11258 = vmatmul.mubr.msk.f32.gmra.mxu0 %vm312_vm7, %v14684_v23 }
0x193a   :  { %11302 = vmatprep.mubr.msk.f32.mxu0 %vm13134_vm1, %v16629_v34 }
0x19e9   :  { %v4164_v24 = vpop.f32.mrf.mxu0 }
0x19ea   :  { %v14694_v4 = vadd.f32 %v4164_v24, %v16654_v14 }
0x19eb   :  { %v11247_v2 = vpop.f32.mrf.mxu0 }
0x19ec   :  { %v4193_v51 = vand.u32 2147483647, %v14694_v4 }
0x19ed   :  { %v4169_v21 = vpop.f32.mrf.mxu0 }
0x19ee   :  { %v14691_v22 = vadd.f32 %v4169_v21, %v16653_v56  ;;  %v4198_v13 = vsub.f32 0.0, %v4193_v51 }
0x19ef   :  { %v11250_v1 = vpop.f32.mrf.mxu0 }
0x19f0   :  { %v4194_v46 = vand.u32 2147483647, %v14691_v22  ;;  %v4203_v19 = vmul.f32 1.442695, %v4198_v13 }
0x19f1   :  { %v4174_v28 = vpop.f32.mrf.mxu0 }
0x19f2   :  { %v14698_v18 = vadd.f32 %v4174_v28, %v16655_v41  ;;  %v4199_v60 = vsub.f32 0.0, %v4194_v46 }
0x19f3   :  { %v11253_v9 = vpop.f32.mrf.mxu0 }
0x19f4   :  { %v4195_v12 = vand.u32 2147483647, %v14698_v18  ;;  %v4205_v40 = vmul.f32 1.442695, %v4199_v60 }
0x19f5   :  { %v4179_v44 = vpop.f32.mrf.mxu0 }
0x19f6   :  { %v4200_v16 = vsub.f32 0.0, %v4195_v12  ;;  %v14703_v58 = vadd.f32 %v4179_v44, %v16656_v55 }
0x19f7   :  { %v11256_v48 = vpop.f32.mrf.mxu0 }
0x19f8   :  { %v4207_v35 = vmul.f32 1.442695, %v4200_v16  ;;  %v4196_v7 = vand.u32 2147483647, %v14703_v58 }
0x19f9   :  { %v4184_v57 = vpop.f32.mrf.mxu0 }
0x19fa   :  { %v4201_v38 = vsub.f32 0.0, %v4196_v7  ;;  %v4185_v20 = vadd.f32 %v4184_v57, %v16657_v61  ;;  %12455 = vpow2.f32 %v4207_v35 }
0x19fb   :  { %v11259_v62 = vpop.f32.mrf.mxu0  ;;  %12457 = vpow2.f32 %v4205_v40 }
0x19fc   :  { %v4209_v49 = vmul.f32 1.442695, %v4201_v38  ;;  %v4197_v6 = vand.u32 2147483647, %v4185_v20 }
0x19fe   :  { %12459 = vpow2.f32 %v4209_v49  ;;  %v4202_v33 = vsub.f32 0.0, %v4197_v6  ;;  %v4192_v6 = vmax.f32 %v4185_v20, 0.0 }
0x19ff   :  { %12461 = vpow2.f32 %v4203_v19 }
0x1a00   :  { %v4211_v50 = vmul.f32 1.442695, %v4202_v33 }
0x1a02   :  { %12463 = vpow2.f32 %v4211_v50 }
0x1a07   :  { %v12456_v43 = vpop.eup %12455 }
0x1a08   :  { %v12458_v27 = vpop.eup %12457  ;;  %v4231_v2 = vadd.f32 1.0, %v12456_v43  ;;  %v4234_v60 = vmul.f32 -0.5, %v12456_v43  ;;  %v4237_v33 = vand.u32 2147483647, %v12456_v43 }
0x1a09   :  { %v4222_v1 = vadd.f32 1.0, %v12458_v27  ;;  %v4225_v16 = vmul.f32 -0.5, %v12458_v27 }
0x1a0a   :  { %v4235_v19 = vadd.f32 1.0, %v4234_v60  ;;  %vm4238_vm14 = vcmp.lt.f32.partialorder %v4237_v33, 0.0004427343 }
0x1a0b   :  { %v12460_v52 = vpop.eup %12459  ;;  %v4226_v50 = vadd.f32 1.0, %v4225_v16 }
0x1a0c   :  { %v4240_v24 = vadd.f32 1.0, %v12460_v52  ;;  %v12462_v21 = vpop.eup %12461  ;;  %v4243_v12 = vmul.f32 -0.5, %v12460_v52  ;;  %v4246_v57 = vand.u32 2147483647, %v12460_v52  ;;  %v4236_v41 = vmul.f32 %v12456_v43, %v4235_v19 }
0x1a0d   :  { %v4213_v9 = vadd.f32 1.0, %v12462_v21  ;;  %v4216_v48 = vmul.f32 -0.5, %v12462_v21  ;;  %v4219_v20 = vand.u32 2147483647, %v12462_v21  ;;  %v4227_v16 = vmul.f32 %v12458_v27, %v4226_v50 }
0x1a0e   :  { %12465 = vlog2.f32 %v4240_v24  ;;  %v4244_v35 = vadd.f32 1.0, %v4243_v12  ;;  %vm4247_vm13 = vcmp.lt.f32.partialorder %v4246_v57, 0.0004427343 }
0x1a0f   :  { %v12464_v46 = vpop.eup %12463  ;;  %12467 = vlog2.f32 %v4231_v2  ;;  %v4217_v24 = vadd.f32 1.0, %v4216_v48  ;;  %vm4220_vm2 = vcmp.lt.f32.partialorder %v4219_v20, 0.0004427343 }
0x1a10   :  { %v4249_v28 = vadd.f32 1.0, %v12464_v46  ;;  %12469 = vlog2.f32 %v4222_v1  ;;  %v4252_v51 = vmul.f32 -0.5, %v12464_v46  ;;  %v4255_v40 = vand.u32 2147483647, %v12464_v46 }
0x1a12   :  { %12471 = vlog2.f32 %v4249_v28  ;;  %v4253_v13 = vadd.f32 1.0, %v4252_v51  ;;  %v4245_v28 = vmul.f32 %v12460_v52, %v4244_v35  ;;  %vm4256_vm12 = vcmp.lt.f32.partialorder %v4255_v40, 0.0004427343 }
0x1a13   :  { %12473 = vlog2.f32 %v4213_v9  ;;  %v4228_v51 = vand.u32 2147483647, %v12458_v27  ;;  %v4218_v35 = vmul.f32 %v12462_v21, %v4217_v24  ;;  %v4188_v40 = vmax.f32 %v14694_v4, 0.0 }
0x1a14   :  { %v4254_v1 = vmul.f32 %v12464_v46, %v4253_v13  ;;  %v4190_v46 = vmax.f32 %v14698_v18, 0.0 }
0x1a15   :  { %vm4229_vm15 = vcmp.lt.f32.partialorder %v4228_v51, 0.0004427343 }
0x1a1b   :  { %v12466_v44 = vpop.eup %12465 }
0x1a1c   :  { %v12468_v7 = vpop.eup %12467  ;;  %v4242_v62 = vmul.f32 0.6931472, %v12466_v44  ;;  %v4191_v44 = vmax.f32 %v14703_v58, 0.0 }
0x1a1d   :  { %v12470_v38 = vpop.eup %12469  ;;  %v4233_v9 = vmul.f32 0.6931472, %v12468_v7  ;;  %v4189_v7 = vmax.f32 %v14691_v22, 0.0 }
0x1a1e   :  { %v4248_v55 = vsel %vm4247_vm13, %v4245_v28, %v4242_v62  ;;  %v4224_v14 = vmul.f32 0.6931472, %v12470_v38 }
0x1a1f   :  { %v12472_v49 = vpop.eup %12471  ;;  %v4239_v56 = vsel %vm4238_vm14, %v4236_v41, %v4233_v9  ;;  %v4261_v52 = vadd.f32 %v4248_v55, %v4191_v44  ;;  %v16660_v55 = vmov 0  }
0x1a20   :  { %v4251_v2 = vmul.f32 0.6931472, %v12472_v49  ;;  %v12474_v61 = vpop.eup %12473  ;;  %v4230_v13 = vsel %vm4229_vm15, %v4227_v16, %v4224_v14  ;;  %v4260_v43 = vadd.f32 %v4239_v56, %v4190_v46  ;;  %v14714_v14 = vld [vmem:[%s16522_s1 + $0x80] sm:$0xff]  ;;  %v13142_v56 = vmov 7  }
0x1a21   :  { %v4215_v48 = vmul.f32 0.6931472, %v12474_v61  ;;  %v4259_v41 = vadd.f32 %v4230_v13, %v4189_v7  ;;  %12035 = vset.pattern.permute.xlu1 %v13142_v56  ;;  %12036 = vset.pattern.permute.xlu0 %v13142_v56 }
0x1a22   :  { %v4257_v12 = vsel %vm4256_vm12, %v4254_v1, %v4251_v2  ;;  %4363 = vperm.xlu1 %12035, %v14463_v15   ;;  %4359 = vperm.xlu0 %12036, %v14469_v39  }
0x1a23   :  { %v4262_v60 = vadd.f32 %v4257_v12, %v4192_v6  ;;  %v4221_v58 = vsel %vm4220_vm2, %v4218_v35, %v4215_v48 }
0x1a24   :  { %v4258_v61 = vadd.f32 %v4221_v58, %v4188_v40 }
0x1a25   :  { %11260 = vmatprep.subr.mxu1 %v4262_v60 }
0x1a26   :  { %11261 = vmatpush3.msra.mxu1 %v4262_v60  ;;  %4355 = vperm.xlu1 %12035, %v14475_v25  }
0x1a27   :  { %11262 = vmatprep.subr.mxu1 %v4261_v52  ;;  %4347 = vperm.xlu0 %12036, %v14481_v30  }
0x1a28   :  { %11263 = vmatpush3.msra.mxu1 %v4261_v52 }
0x1a29   :  { %11264 = vmatprep.subr.mxu1 %v4260_v43 }
0x1a2a   :  { %11265 = vmatpush3.msra.mxu1 %v4260_v43  ;;  %4351 = vperm.xlu1 %12035, %v14487_v29  }
0x1a2b   :  { %11266 = vmatprep.subr.mxu1 %v4259_v41  ;;  %12038 = vset.pattern.permute.xlu0 %v16660_v55 }
0x1a2c   :  { %11267 = vmatpush3.msra.mxu1 %v4259_v41 }
0x1a2d   :  { %11268 = vmatprep.subr.mxu1 %v4258_v61 }
0x1a2e   :  { %11269 = vmatpush3.msra.mxu1 %v4258_v61  ;;  %12037 = vset.pattern.permute.xlu1 %v16660_v55 }
0x1a2f   :  { %11271 = vmatmul.mubr.msk.f32.vlgmr.msra.gmra.mxu1 %vm312_vm7, %v14714_v14  ;;  %11273 = vmatprep.subr.mxu1 %v16629_v34 }
0x1a30   :  { %11277 = vmatprep.mubr.msk.f32.mxu1 %vm13134_vm1, %v16629_v34 }
0x1aef   :  { %v11272_v22 = vpop.f32.mrf.mxu1 }
0x1af0   :  { %v4335_v4 = vadd.f32 %v11272_v22, %v13483_v47 }
0x1af1   :  { %v4329_v18 = vpop.f32.mrf.mxu1 }
0x1af2   :  { %v4339_v27 = vmul.f32 0.16666667, %v4335_v4  ;;  %v4343_v21 = vmul.f32 0.5, %v4335_v4  ;;  %v4330_v15 = vadd.f32 %v4329_v18, %v13488_v53 }
0x1af4   :  { %v14733_v39 = vadd.f32 %v4339_v27, %v14496_v26  ;;  %v4345_v25 = vadd.f32 %v4343_v21, %v14081_v11  ;;  %v4338_v30 = vmul.f32 0.16666667, %v4330_v15  ;;  %v4342_v57 = vmul.f32 0.5, %v4330_v15  ;;  %v16661_v11 = vld [vmem:[#allocation7_spill] sm:$0xff] }
0x1af6   :  { %v14737_v29 = vadd.f32 %v4338_v30, %v14499_v17  ;;  %v4344_v38 = vadd.f32 %v4342_v57, %v14084_v0  ;;  %11274 = vmatpush3.msra.mxu1 %v4345_v25  ;;  %v4364_v0 = vpop.permute.xlu1 %4363  ;;  %v4360_v17 = vpop.permute.xlu0 %4359 }
0x1af7   :  { %11275 = vmatprep.subr.mxu1 %v16629_v34 }
0x1af8   :  { %11276 = vmatpush3.msra.mxu1 %v4344_v38 }
0x1af9   :  { %11278 = vmatmul.mubr.msk.f32.vlgmr.msra.gmra.mxu1 %vm131_vm0, %v14506_v45  ;;  %11317 = vmatprep.subr.mxu1 %v16629_v34 }
0x1afa   :  { %11280 = vmatprep.mubr.msk.f32.mxu1 %vm13134_vm1, %v16629_v34  ;;  %v4356_v26 = vpop.permute.xlu1 %4355  ;;  %v4348_v19 = vpop.permute.xlu0 %4347 }
0x1afd   :  { %11281 = vmatmul.mubr.msk.f32.gmra.mxu1 %vm131_vm0, %v14516_v5 }
0x1afe   :  { %11283 = vmatprep.mubr.msk.f32.mxu1 %vm13134_vm1, %v16629_v34 }
0x1b01   :  { %11284 = vmatmul.mubr.msk.f32.gmra.mxu1 %vm131_vm0, %v14525_v54  ;;  %v4352_v54 = vpop.permute.xlu1 %4351 }
0x1b02   :  { %11286 = vmatprep.mubr.msk.f32.mxu1 %vm13134_vm1, %v16629_v34 }
0x1b05   :  { %11287 = vmatmul.mubr.msk.f32.gmra.mxu1 %vm131_vm0, %v14534_v31 }
0x1b06   :  { %11289 = vmatprep.mubr.msk.f32.mxu1 %vm13134_vm1, %v16629_v34 }
0x1b09   :  { %11290 = vmatmul.mubr.msk.f32.gmra.mxu1 %vm131_vm0, %v16661_v11 }
0x1b0a   :  { %11327 = vmatprep.mubr.msk.f32.mxu1 %vm13134_vm1, %v16629_v34 }
0x1bb9   :  { %v4432_v45 = vpop.f32.mrf.mxu1 }
0x1bba   :  { %v14765_v33 = vadd.f32 %v4432_v45, %v4348_v19 }
0x1bbb   :  { %v11279_v5 = vpop.f32.mrf.mxu1 }
0x1bbc   :  { %v4461_v9 = vand.u32 2147483647, %v14765_v33 }
0x1bbd   :  { %v4437_v62 = vpop.f32.mrf.mxu1 }
0x1bbe   :  { %v14762_v49 = vadd.f32 %v4437_v62, %v4352_v54  ;;  %v4466_v48 = vsub.f32 0.0, %v4461_v9 }
0x1bbf   :  { %v11282_v31 = vpop.f32.mrf.mxu1 }
0x1bc0   :  { %v4462_v6 = vand.u32 2147483647, %v14762_v49  ;;  %v4471_v40 = vmul.f32 1.442695, %v4466_v48 }
0x1bc1   :  { %v4442_v50 = vpop.f32.mrf.mxu1 }
0x1bc2   :  { %v14767_v24 = vadd.f32 %v4442_v50, %v4356_v26  ;;  %v4467_v1 = vsub.f32 0.0, %v4462_v6 }
0x1bc3   :  { %v11285_v2 = vpop.f32.mrf.mxu1 }
0x1bc4   :  { %v4463_v28 = vand.u32 2147483647, %v14767_v24  ;;  %v4473_v20 = vmul.f32 1.442695, %v4467_v1 }
0x1bc5   :  { %v4447_v51 = vpop.f32.mrf.mxu1 }
0x1bc6   :  { %v4468_v12 = vsub.f32 0.0, %v4463_v28  ;;  %v14771_v44 = vadd.f32 %v4447_v51, %v4360_v17  ;;  %12475 = vpow2.f32 %v4473_v20 }
0x1bc7   :  { %v11288_v60 = vpop.f32.mrf.mxu1 }
0x1bc8   :  { %v4464_v16 = vand.u32 2147483647, %v14771_v44  ;;  %v4475_v46 = vmul.f32 1.442695, %v4468_v12 }
0x1bc9   :  { %v4452_v52 = vpop.f32.mrf.mxu1 }
0x1bca   :  { %v4469_v13 = vsub.f32 0.0, %v4464_v16  ;;  %v4453_v35 = vadd.f32 %v4452_v52, %v4364_v0  ;;  %12477 = vpow2.f32 %v4475_v46 }
0x1bcb   :  { %v11291_v7 = vpop.f32.mrf.mxu1 }
0x1bcc   :  { %v4477_v43 = vmul.f32 1.442695, %v4469_v13  ;;  %v4465_v58 = vand.u32 2147483647, %v4453_v35  ;;  %v4460_v60 = vmax.f32 %v4453_v35, 0.0 }
0x1bce   :  { %12479 = vpow2.f32 %v4477_v43  ;;  %v4470_v41 = vsub.f32 0.0, %v4465_v58 }
0x1bcf   :  { %12481 = vpow2.f32 %v4471_v40 }
0x1bd0   :  { %v4479_v61 = vmul.f32 1.442695, %v4470_v41 }
0x1bd2   :  { %12483 = vpow2.f32 %v4479_v61  ;;  %v4459_v61 = vmax.f32 %v14771_v44, 0.0  ;;  %v4456_v44 = vmax.f32 %v14765_v33, 0.0 }
0x1bd3   :  { %v12476_v22 = vpop.eup %12475 }
0x1bd4   :  { %v4490_v25 = vadd.f32 1.0, %v12476_v22  ;;  %v4493_v5 = vmul.f32 -0.5, %v12476_v22  ;;  %v4496_v13 = vand.u32 2147483647, %v12476_v22 }
0x1bd6   :  { %v4494_v51 = vadd.f32 1.0, %v4493_v5  ;;  %vm4497_vm6 = vcmp.lt.f32.partialorder %v4496_v13, 0.0004427343 }
0x1bd7   :  { %v12478_v4 = vpop.eup %12477 }
0x1bd8   :  { %v4499_v21 = vadd.f32 1.0, %v12478_v4  ;;  %v4502_v26 = vmul.f32 -0.5, %v12478_v4  ;;  %v4505_v12 = vand.u32 2147483647, %v12478_v4 }
0x1bda   :  { %v4503_v2 = vadd.f32 1.0, %v4502_v26  ;;  %vm4506_vm5 = vcmp.lt.f32.partialorder %v4505_v12, 0.0004427343 }
0x1bdb   :  { %v12480_v18 = vpop.eup %12479 }
0x1bdc   :  { %v4508_v27 = vadd.f32 1.0, %v12480_v18  ;;  %v12482_v15 = vpop.eup %12481  ;;  %v4511_v11 = vmul.f32 -0.5, %v12480_v18  ;;  %v4514_v31 = vand.u32 2147483647, %v12480_v18  ;;  %v4504_v43 = vmul.f32 %v12478_v4, %v4503_v2 }
0x1bdd   :  { %v4481_v57 = vadd.f32 1.0, %v12482_v15  ;;  %v4484_v45 = vmul.f32 -0.5, %v12482_v15  ;;  %v4487_v41 = vand.u32 2147483647, %v12482_v15  ;;  %v4457_v4 = vmax.f32 %v14762_v49, 0.0 }
0x1bde   :  { %12485 = vlog2.f32 %v4508_v27  ;;  %v4512_v54 = vadd.f32 1.0, %v4511_v11  ;;  %vm4515_vm3 = vcmp.lt.f32.partialorder %v4514_v31, 0.0004427343 }
0x1bdf   :  { %v12484_v30 = vpop.eup %12483  ;;  %12487 = vlog2.f32 %v4499_v21  ;;  %v4485_v9 = vadd.f32 1.0, %v4484_v45  ;;  %vm4488_vm8 = vcmp.lt.f32.partialorder %v4487_v41, 0.0004427343  ;;  %v16664_v45 = vld [vmem:[#allocation6_spill] sm:$0xff] }
0x1be0   :  { %v4517_v38 = vadd.f32 1.0, %v12484_v30  ;;  %12489 = vlog2.f32 %v4490_v25  ;;  %v4520_v0 = vmul.f32 -0.5, %v12484_v30  ;;  %v4523_v6 = vand.u32 2147483647, %v12484_v30 }
0x1be1   :  { %v4513_v16 = vmul.f32 %v12480_v18, %v4512_v54  ;;  %v4495_v25 = vmul.f32 %v12476_v22, %v4494_v51  ;;  %v4458_v18 = vmax.f32 %v14767_v24, 0.0  ;;  %v16665_v54 = vld [vmem:[#allocation4_spill] sm:$0xff] }
0x1be2   :  { %12491 = vlog2.f32 %v4517_v38  ;;  %v4521_v62 = vadd.f32 1.0, %v4520_v0  ;;  %vm4524_vm4 = vcmp.lt.f32.partialorder %v4523_v6, 0.0004427343 }
0x1be3   :  { %12493 = vlog2.f32 %v4481_v57  ;;  %v4486_v57 = vmul.f32 %v12482_v15, %v4485_v9  ;;  %v16663_v15 = vld [vmem:[#allocation5_spill] sm:$0xff] }
0x1be4   :  { %v4522_v46 = vmul.f32 %v12484_v30, %v4521_v62 }
0x1beb   :  { %v12486_v17 = vpop.eup %12485 }
0x1bec   :  { %v12488_v19 = vpop.eup %12487  ;;  %v4510_v1 = vmul.f32 0.6931472, %v12486_v17 }
0x1bed   :  { %v12490_v50 = vpop.eup %12489  ;;  %v4501_v20 = vmul.f32 0.6931472, %v12488_v19 }
0x1bee   :  { %v4492_v7 = vmul.f32 0.6931472, %v12490_v50  ;;  %v4516_v58 = vsel %vm4515_vm3, %v4513_v16, %v4510_v1  ;;  %v16666_v1 = vld [vmem:[#allocation3_spill] sm:$0xff] }
0x1bef   :  { %v12492_v28 = vpop.eup %12491  ;;  %v4507_v35 = vsel %vm4506_vm5, %v4504_v43, %v4501_v20  ;;  %v4529_v30 = vadd.f32 %v4516_v58, %v4459_v61 }
0x1bf0   :  { %v4519_v48 = vmul.f32 0.6931472, %v12492_v28  ;;  %v12494_v52 = vpop.eup %12493  ;;  %v4498_v38 = vsel %vm4497_vm6, %v4495_v25, %v4492_v7  ;;  %v4528_v11 = vadd.f32 %v4507_v35, %v4458_v18 }
0x1bf1   :  { %v4483_v21 = vmul.f32 0.6931472, %v12494_v52  ;;  %v4527_v22 = vadd.f32 %v4498_v38, %v4457_v4 }
0x1bf2   :  { %v4525_v40 = vsel %vm4524_vm4, %v4522_v46, %v4519_v48  ;;  %v16667_v46 = vld [vmem:[#allocation2_spill] sm:$0xff] }
0x1bf3   :  { %v4530_v27 = vadd.f32 %v4525_v40, %v4460_v60  ;;  %v4489_v0 = vsel %vm4488_vm8, %v4486_v57, %v4483_v21 }
0x1bf4   :  { %v4526_v24 = vadd.f32 %v4489_v0, %v4456_v44 }
0x1bf5   :  { %11293 = vmatpush3.msra.mxu0 %v4530_v27 }
0x1bf6   :  { %11294 = vmatprep.subr.mxu0 %v16629_v34 }
0x1bf7   :  { %11295 = vmatpush3.msra.mxu0 %v4529_v30 }
0x1bf8   :  { %11296 = vmatprep.subr.mxu0 %v16629_v34 }
0x1bf9   :  { %11297 = vmatpush3.msra.mxu0 %v4528_v11 }
0x1bfa   :  { %11298 = vmatprep.subr.mxu0 %v16629_v34 }
0x1bfb   :  { %11299 = vmatpush3.msra.mxu0 %v4527_v22 }
0x1bfc   :  { %11300 = vmatprep.subr.mxu0 %v16629_v34 }
0x1bfd   :  { %11301 = vmatpush3.msra.mxu0 %v4526_v24 }
0x1bfe   :  { %11303 = vmatmul.mubr.msk.f32.vlgmr.msra.gmra.mxu0 %vm312_vm7, %v14572_v63  ;;  %v16662_v63 = vld [vmem:[#allocation13_spill] sm:$0xff] }
0x1bff   :  { %11305 = vmatprep.mubr.msk.f32.mxu0 %vm13134_vm1, %v16629_v34 }
0x1c02   :  { %11306 = vmatmul.mubr.msk.f32.gmra.mxu0 %vm312_vm7, %v14581_v37 }
0x1c03   :  { %11308 = vmatprep.mubr.msk.f32.mxu0 %vm13134_vm1, %v16629_v34 }
0x1c06   :  { %11309 = vmatmul.mubr.msk.f32.gmra.mxu0 %vm312_vm7, %v14590_v42 }
0x1c07   :  { %11311 = vmatprep.mubr.msk.f32.mxu0 %vm13134_vm1, %v16629_v34 }
0x1c0a   :  { %11312 = vmatmul.mubr.msk.f32.gmra.mxu0 %vm312_vm7, %v14599_v36 }
0x1c0b   :  { %11314 = vmatprep.mubr.msk.f32.mxu0 %vm13134_vm1, %v16629_v34 }
0x1c0e   :  { %11315 = vmatmul.mubr.msk.f32.gmra.mxu0 %vm312_vm7, %v14608_v32 }
0x1c0f   :  { %11352 = vmatprep.mubr.msk.f32.mxu0 %vm312_vm7, %v16662_v63 }
0x1cbe   :  { %v4597_v37 = vpop.f32.mrf.mxu0 }
0x1cbf   :  { %v14807_v36 = vadd.f32 %v4597_v37, %v16664_v45 }
0x1cc0   :  { %v11304_v49 = vpop.f32.mrf.mxu0 }
0x1cc1   :  { %v4626_v6 = vand.u32 2147483647, %v14807_v36 }
0x1cc2   :  { %v4602_v33 = vpop.f32.mrf.mxu0 }
0x1cc3   :  { %v14803_v42 = vadd.f32 %v4602_v33, %v16663_v15  ;;  %v4631_v60 = vsub.f32 0.0, %v4626_v6 }
0x1cc4   :  { %v11307_v26 = vpop.f32.mrf.mxu0 }
0x1cc5   :  { %v4627_v17 = vand.u32 2147483647, %v14803_v42  ;;  %v4636_v58 = vmul.f32 1.442695, %v4631_v60 }
0x1cc6   :  { %v4607_v5 = vpop.f32.mrf.mxu0 }
0x1cc7   :  { %v14810_v62 = vadd.f32 %v4607_v5, %v16665_v54  ;;  %v4632_v19 = vsub.f32 0.0, %v4627_v17 }
0x1cc8   :  { %v11310_v32 = vpop.f32.mrf.mxu0 }
0x1cc9   :  { %v4628_v31 = vand.u32 2147483647, %v14810_v62  ;;  %v4638_v51 = vmul.f32 1.442695, %v4632_v19 }
0x1cca   :  { %v4612_v50 = vpop.f32.mrf.mxu0 }
0x1ccb   :  { %v4633_v2 = vsub.f32 0.0, %v4628_v31  ;;  %v14815_v28 = vadd.f32 %v4612_v50, %v16666_v1  ;;  %12495 = vpow2.f32 %v4638_v51 }
0x1ccc   :  { %v11313_v9 = vpop.f32.mrf.mxu0 }
0x1ccd   :  { %v4629_v12 = vand.u32 2147483647, %v14815_v28  ;;  %v4640_v20 = vmul.f32 1.442695, %v4633_v2 }
0x1cce   :  { %v4617_v16 = vpop.f32.mrf.mxu0 }
0x1ccf   :  { %v4634_v48 = vsub.f32 0.0, %v4629_v12  ;;  %v4618_v52 = vadd.f32 %v4617_v16, %v16667_v46  ;;  %12497 = vpow2.f32 %v4640_v20 }
0x1cd0   :  { %v11316_v13 = vpop.f32.mrf.mxu0 }
0x1cd1   :  { %v4642_v7 = vmul.f32 1.442695, %v4634_v48  ;;  %v4630_v43 = vand.u32 2147483647, %v4618_v52  ;;  %v4625_v6 = vmax.f32 %v4618_v52, 0.0  ;;  %v4624_v13 = vmax.f32 %v14815_v28, 0.0 }
0x1cd2   :  { %v4621_v28 = vmax.f32 %v14807_v36, 0.0  ;;  %v16668_v36 = vld [vmem:[#allocation11_spill] sm:$0xff] }
0x1cd3   :  { %12499 = vpow2.f32 %v4642_v7  ;;  %v4635_v40 = vsub.f32 0.0, %v4630_v43 }
0x1cd4   :  { %12501 = vpow2.f32 %v4636_v58 }
0x1cd5   :  { %v4644_v41 = vmul.f32 1.442695, %v4635_v40  ;;  %v4623_v40 = vmax.f32 %v14810_v62, 0.0 }
0x1cd7   :  { %12503 = vpow2.f32 %v4644_v41 }
0x1cd8   :  { %v12496_v61 = vpop.eup %12495 }
0x1cd9   :  { %v4655_v30 = vadd.f32 1.0, %v12496_v61  ;;  %v4658_v63 = vmul.f32 -0.5, %v12496_v61  ;;  %v4661_v12 = vand.u32 2147483647, %v12496_v61 }
0x1cdb   :  { %v4659_v19 = vadd.f32 1.0, %v4658_v63  ;;  %vm4662_vm12 = vcmp.lt.f32.partialorder %v4661_v12, 0.0004427343 }
0x1cdc   :  { %v12498_v27 = vpop.eup %12497 }
0x1cdd   :  { %v4664_v35 = vadd.f32 1.0, %v12498_v27  ;;  %v4667_v44 = vmul.f32 -0.5, %v12498_v27  ;;  %v4670_v31 = vand.u32 2147483647, %v12498_v27  ;;  %v4660_v58 = vmul.f32 %v12496_v61, %v4659_v19  ;;  %v16672_v19 = vld [vmem:[#allocation8_spill] sm:$0xff] }
0x1cdf   :  { %v4668_v45 = vadd.f32 1.0, %v4667_v44  ;;  %vm4671_vm11 = vcmp.lt.f32.partialorder %v4670_v31, 0.0004427343 }
0x1ce0   :  { %v12500_v21 = vpop.eup %12499 }
0x1ce1   :  { %v4673_v25 = vadd.f32 1.0, %v12500_v21  ;;  %v12502_v18 = vpop.eup %12501  ;;  %v4676_v11 = vmul.f32 -0.5, %v12500_v21  ;;  %v4679_v15 = vand.u32 2147483647, %v12500_v21  ;;  %v4669_v20 = vmul.f32 %v12498_v27, %v4668_v45 }
0x1ce2   :  { %v4646_v38 = vadd.f32 1.0, %v12502_v18  ;;  %v4649_v24 = vmul.f32 -0.5, %v12502_v18  ;;  %v4652_v46 = vand.u32 2147483647, %v12502_v18  ;;  %v4622_v27 = vmax.f32 %v14803_v42, 0.0 }
0x1ce3   :  { %12505 = vlog2.f32 %v4673_v25  ;;  %v4677_v37 = vadd.f32 1.0, %v4676_v11  ;;  %vm4680_vm9 = vcmp.lt.f32.partialorder %v4679_v15, 0.0004427343  ;;  %v16670_v11 = vld [vmem:[#allocation10_spill] sm:$0xff] }
0x1ce4   :  { %v12504_v57 = vpop.eup %12503  ;;  %12507 = vlog2.f32 %v4664_v35  ;;  %v4650_v32 = vadd.f32 1.0, %v4649_v24  ;;  %vm4653_vm13 = vcmp.lt.f32.partialorder %v4652_v46, 0.0004427343 }
0x1ce5   :  { %v4682_v4 = vadd.f32 1.0, %v12504_v57  ;;  %12509 = vlog2.f32 %v4655_v30  ;;  %v4685_v0 = vmul.f32 -0.5, %v12504_v57  ;;  %v4688_v26 = vand.u32 2147483647, %v12504_v57 }
0x1ce6   :  { %v4678_v2 = vmul.f32 %v12500_v21, %v4677_v37  ;;  %v4651_v21 = vmul.f32 %v12502_v18, %v4650_v32 }
0x1ce7   :  { %12511 = vlog2.f32 %v4682_v4  ;;  %v4686_v49 = vadd.f32 1.0, %v4685_v0  ;;  %vm4689_vm10 = vcmp.lt.f32.partialorder %v4688_v26, 0.0004427343 }
0x1ce8   :  { %12513 = vlog2.f32 %v4646_v38 }
0x1ce9   :  { %v4687_v9 = vmul.f32 %v12504_v57, %v4686_v49  ;;  %v16669_v57 = vld [vmem:[#allocation12_spill] sm:$0xff]  ;;  %v16671_v49 = vld [vmem:[#allocation9_spill] sm:$0xff] }
0x1cf0   :  { %v12506_v22 = vpop.eup %12505 }
0x1cf1   :  { %v12508_v33 = vpop.eup %12507  ;;  %v4675_v5 = vmul.f32 0.6931472, %v12506_v22 }
0x1cf2   :  { %v12510_v17 = vpop.eup %12509  ;;  %v4666_v50 = vmul.f32 0.6931472, %v12508_v33 }
0x1cf3   :  { %v4657_v60 = vmul.f32 0.6931472, %v12510_v17  ;;  %v4681_v16 = vsel %vm4680_vm9, %v4678_v2, %v4675_v5 }
0x1cf4   :  { %v12512_v54 = vpop.eup %12511  ;;  %v4672_v52 = vsel %vm4671_vm11, %v4669_v20, %v4666_v50  ;;  %v4694_v41 = vadd.f32 %v4681_v16, %v4624_v13 }
0x1cf5   :  { %v4684_v1 = vmul.f32 0.6931472, %v12512_v54  ;;  %v12514_v51 = vpop.eup %12513  ;;  %v4663_v25 = vsel %vm4662_vm12, %v4660_v58, %v4657_v60  ;;  %v4693_v35 = vadd.f32 %v4672_v52, %v4623_v40 }
0x1cf6   :  { %v4648_v43 = vmul.f32 0.6931472, %v12514_v51  ;;  %v4692_v61 = vadd.f32 %v4663_v25, %v4622_v27 }
0x1cf7   :  { %v4690_v48 = vsel %vm4689_vm10, %v4687_v9, %v4684_v1 }
0x1cf8   :  { %v4695_v7 = vadd.f32 %v4690_v48, %v4625_v6  ;;  %v4654_v30 = vsel %vm4653_vm13, %v4651_v21, %v4648_v43 }
0x1cf9   :  { %v4691_v62 = vadd.f32 %v4654_v30, %v4621_v28 }
0x1cfa   :  { %11318 = vmatpush3.msra.mxu1 %v4695_v7 }
0x1cfb   :  { %11319 = vmatprep.subr.mxu1 %v16629_v34 }
0x1cfc   :  { %11320 = vmatpush3.msra.mxu1 %v4694_v41 }
0x1cfd   :  { %11321 = vmatprep.subr.mxu1 %v16629_v34 }
0x1cfe   :  { %11322 = vmatpush3.msra.mxu1 %v4693_v35 }
0x1cff   :  { %11323 = vmatprep.subr.mxu1 %v16629_v34 }
0x1d00   :  { %11324 = vmatpush3.msra.mxu1 %v4692_v61 }
0x1d01   :  { %11325 = vmatprep.subr.mxu1 %v16629_v34 }
0x1d02   :  { %11326 = vmatpush3.msra.mxu1 %v4691_v62 }
0x1d03   :  { %11328 = vmatmul.mubr.msk.f32.vlgmr.msra.gmra.mxu1 %vm312_vm7, %v14647_v3  ;;  %11374 = vmatprep.subr.mxu1 %v16629_v34 }
0x1d04   :  { %11330 = vmatprep.mubr.msk.f32.mxu1 %vm13134_vm1, %v16629_v34 }
0x1d07   :  { %11331 = vmatmul.mubr.msk.f32.gmra.mxu1 %vm312_vm7, %v14657_v10 }
0x1d08   :  { %11333 = vmatprep.mubr.msk.f32.mxu1 %vm13134_vm1, %v16629_v34 }
0x1d0b   :  { %11334 = vmatmul.mubr.msk.f32.gmra.mxu1 %vm312_vm7, %v14666_v59 }
0x1d0c   :  { %11336 = vmatprep.mubr.msk.f32.mxu1 %vm13134_vm1, %v16629_v34 }
0x1d0f   :  { %11337 = vmatmul.mubr.msk.f32.gmra.mxu1 %vm312_vm7, %v14675_v8 }
0x1d10   :  { %11339 = vmatprep.mubr.msk.f32.mxu1 %vm13134_vm1, %v16629_v34 }
0x1d13   :  { %11340 = vmatmul.mubr.msk.f32.gmra.mxu1 %vm312_vm7, %v14684_v23 }
0x1d14   :  { %11384 = vmatprep.mubr.msk.f32.mxu1 %vm13134_vm1, %v16629_v34 }
0x1dc3   :  { %v4762_v3 = vpop.f32.mrf.mxu1 }
0x1dc4   :  { %v14852_v38 = vadd.f32 %v4762_v3, %v16669_v57 }
0x1dc5   :  { %v11329_v10 = vpop.f32.mrf.mxu1 }
0x1dc6   :  { %v4791_v44 = vand.u32 2147483647, %v14852_v38 }
0x1dc7   :  { %v4767_v42 = vpop.f32.mrf.mxu1 }
0x1dc8   :  { %v14849_v59 = vadd.f32 %v4767_v42, %v16668_v36  ;;  %v4796_v26 = vsub.f32 0.0, %v4791_v44 }
0x1dc9   :  { %v11332_v18 = vpop.f32.mrf.mxu1 }
0x1dca   :  { %v4792_v8 = vand.u32 2147483647, %v14849_v59  ;;  %v4801_v50 = vmul.f32 1.442695, %v4796_v26 }
0x1dcb   :  { %v4772_v4 = vpop.f32.mrf.mxu1 }
0x1dcc   :  { %v14856_v0 = vadd.f32 %v4772_v4, %v16670_v11  ;;  %v4797_v24 = vsub.f32 0.0, %v4792_v8 }
0x1dcd   :  { %v11335_v23 = vpop.f32.mrf.mxu1 }
0x1dce   :  { %v4793_v22 = vand.u32 2147483647, %v14856_v0  ;;  %v4803_v5 = vmul.f32 1.442695, %v4797_v24 }
0x1dcf   :  { %v4777_v63 = vpop.f32.mrf.mxu1 }
0x1dd0   :  { %v4798_v37 = vsub.f32 0.0, %v4793_v22  ;;  %v14861_v33 = vadd.f32 %v4777_v63, %v16671_v49 }
0x1dd1   :  { %v11338_v15 = vpop.f32.mrf.mxu1 }
0x1dd2   :  { %v4805_v17 = vmul.f32 1.442695, %v4798_v37  ;;  %v4794_v45 = vand.u32 2147483647, %v14861_v33 }
0x1dd3   :  { %v4782_v54 = vpop.f32.mrf.mxu1 }
0x1dd4   :  { %v4799_v32 = vsub.f32 0.0, %v4794_v45  ;;  %v4783_v31 = vadd.f32 %v4782_v54, %v16672_v19  ;;  %12515 = vpow2.f32 %v4805_v17  ;;  %v4789_v17 = vmax.f32 %v14861_v33, 0.0 }
0x1dd5   :  { %v11341_v6 = vpop.f32.mrf.mxu1  ;;  %12517 = vpow2.f32 %v4803_v5 }
0x1dd6   :  { %v4807_v2 = vmul.f32 1.442695, %v4799_v32  ;;  %v4795_v1 = vand.u32 2147483647, %v4783_v31  ;;  %v4790_v18 = vmax.f32 %v4783_v31, 0.0  ;;  %v4788_v31 = vmax.f32 %v14856_v0, 0.0 }
0x1dd8   :  { %12519 = vpow2.f32 %v4807_v2  ;;  %v4800_v9 = vsub.f32 0.0, %v4795_v1  ;;  %v4787_v1 = vmax.f32 %v14849_v59, 0.0  ;;  %v14877_v59 = vld [vmem:[%s16522_s1 + $0x1b8] sm:$0xff] }
0x1dd9   :  { %12521 = vpow2.f32 %v4801_v50  ;;  %5056 = vperm.xlu1 %12037, %v14877_v59  }
0x1dda   :  { %v4809_v51 = vmul.f32 1.442695, %v4800_v9 }
0x1ddc   :  { %12523 = vpow2.f32 %v4809_v51  ;;  %v4786_v51 = vmax.f32 %v14852_v38, 0.0  ;;  %v14883_v38 = vld [vmem:[%s16522_s1 + $0x1b0] sm:$0xff] }
0x1ddd   :  { %5051 = vperm.xlu0 %12038, %v14883_v38  }
0x1de1   :  { %v12516_v12 = vpop.eup %12515 }
0x1de2   :  { %v12518_v60 = vpop.eup %12517  ;;  %v4829_v48 = vadd.f32 1.0, %v12516_v12  ;;  %v4832_v41 = vmul.f32 -0.5, %v12516_v12  ;;  %v4835_v57 = vand.u32 2147483647, %v12516_v12 }
0x1de3   :  { %v4820_v13 = vadd.f32 1.0, %v12518_v60  ;;  %v4823_v25 = vmul.f32 -0.5, %v12518_v60  ;;  %v4826_v63 = vand.u32 2147483647, %v12518_v60 }
0x1de4   :  { %v4833_v42 = vadd.f32 1.0, %v4832_v41  ;;  %vm4836_vm2 = vcmp.lt.f32.partialorder %v4835_v57, 0.0004427343  ;;  %v4993_v41 = vld [vmem:[%s16522_s1 + $0x1f0] sm:$0xff] }
0x1de5   :  { %v12520_v20 = vpop.eup %12519  ;;  %v4824_v8 = vadd.f32 1.0, %v4823_v25  ;;  %vm4827_vm3 = vcmp.lt.f32.partialorder %v4826_v63, 0.0004427343  ;;  %v5023_v25 = vld [vmem:[%s16522_s1 + $0x218] sm:$0xff] }
0x1de6   :  { %v4838_v16 = vadd.f32 1.0, %v12520_v20  ;;  %v12522_v46 = vpop.eup %12521  ;;  %v4841_v40 = vmul.f32 -0.5, %v12520_v20  ;;  %v4844_v62 = vand.u32 2147483647, %v12520_v20  ;;  %v4834_v15 = vmul.f32 %v12516_v12, %v4833_v42 }
0x1de7   :  { %v4811_v58 = vadd.f32 1.0, %v12522_v46  ;;  %v4814_v27 = vmul.f32 -0.5, %v12522_v46  ;;  %v4817_v5 = vand.u32 2147483647, %v12522_v46  ;;  %v4825_v32 = vmul.f32 %v12518_v60, %v4824_v8  ;;  %v14894_v60 = vld [vmem:[%s16522_s1 + $0x198] sm:$0xff] }
0x1de8   :  { %12525 = vlog2.f32 %v4838_v16  ;;  %v4842_v30 = vadd.f32 1.0, %v4841_v40  ;;  %vm4845_vm15 = vcmp.lt.f32.partialorder %v4844_v62, 0.0004427343  ;;  %5036 = vperm.xlu0 %12038, %v14894_v60   ;;  %v4965_v16 = vld [vmem:[%s16522_s1 + $0x1d8] sm:$0xff]  ;;  %v4992_v40 = vld [vmem:[%s16522_s1 + $0x1e8] sm:$0xff]  ;;  %v16678_v62 = vmov 6  }
0x1de9   :  { %v12524_v7 = vpop.eup %12523  ;;  %12527 = vlog2.f32 %v4829_v48  ;;  %v4815_v4 = vadd.f32 1.0, %v4814_v27  ;;  %vm4818_vm4 = vcmp.lt.f32.partialorder %v4817_v5, 0.0004427343  ;;  %v4966_v48 = vld [vmem:[%s16522_s1 + $0x1e0] sm:$0xff]  ;;  %v16673_v27 = vmov 1  }
0x1dea   :  { %v4847_v43 = vadd.f32 1.0, %v12524_v7  ;;  %12529 = vlog2.f32 %v4820_v13  ;;  %v4850_v52 = vmul.f32 -0.5, %v12524_v7  ;;  %v4853_v61 = vand.u32 2147483647, %v12524_v7  ;;  %v4964_v13 = vld [vmem:[%s16522_s1 + $0x1d0] sm:$0xff] }
0x1deb   :  { %v4843_v44 = vmul.f32 %v12520_v20, %v4842_v30  ;;  %v4816_v2 = vmul.f32 %v12522_v46, %v4815_v4  ;;  %v14900_v20 = vld [vmem:[%s16522_s1 + $0x1a0] sm:$0xff]  ;;  %v4963_v46 = vld [vmem:[%s16522_s1 + $0x1c8] sm:$0xff]  ;;  %v16675_v30 = vmov 3  }
0x1dec   :  { %12531 = vlog2.f32 %v4847_v43  ;;  %v4851_v35 = vadd.f32 1.0, %v4850_v52  ;;  %vm4854_vm14 = vcmp.lt.f32.partialorder %v4853_v61, 0.0004427343  ;;  %4984 = vperm.xlu0 %12038, %v4965_v16   ;;  %v4962_v43 = vld [vmem:[%s16522_s1 + $0x1c0] sm:$0xff]  ;;  %v16677_v61 = vmov 5  }
0x1ded   :  { %12533 = vlog2.f32 %v4811_v58  ;;  %v4994_v58 = vld [vmem:[%s16522_s1 + $0x1f8] sm:$0xff]  ;;  %v4995_v52 = vld [vmem:[%s16522_s1 + $0x200] sm:$0xff] }
0x1dee   :  { %v4852_v23 = vmul.f32 %v12524_v7, %v4851_v35  ;;  %v4996_v7 = vld [vmem:[%s16522_s1 + $0x208] sm:$0xff]  ;;  %v16674_v35 = vmov 2  }
0x1df0   :  { %4974 = vperm.xlu0 %12038, %v4963_v46  }
0x1df4   :  { %5019 = vperm.xlu0 %12038, %v4996_v7  }
0x1df5   :  { %v12526_v21 = vpop.eup %12525 }
0x1df6   :  { %v12528_v28 = vpop.eup %12527  ;;  %v4840_v10 = vmul.f32 0.6931472, %v12526_v21  ;;  %v5022_v21 = vld [vmem:[%s16522_s1 + $0x210] sm:$0xff] }
0x1df7   :  { %v12530_v3 = vpop.eup %12529  ;;  %v4831_v22 = vmul.f32 0.6931472, %v12528_v28  ;;  %v16676_v28 = vmov 4  }
0x1df8   :  { %v4846_v49 = vsel %vm4845_vm15, %v4843_v44, %v4840_v10  ;;  %v4822_v26 = vmul.f32 0.6931472, %v12530_v3  ;;  %5009 = vperm.xlu0 %12038, %v4994_v58  }
0x1df9   :  { %v12532_v36 = vpop.eup %12531  ;;  %v4837_v54 = vsel %vm4836_vm2, %v4834_v15, %v4831_v22  ;;  %v4859_v6 = vadd.f32 %v4846_v49, %v4789_v17 }
0x1dfa   :  { %v4849_v11 = vmul.f32 0.6931472, %v12532_v36  ;;  %v12534_v24 = vpop.eup %12533  ;;  %v4828_v50 = vsel %vm4827_vm3, %v4825_v32, %v4822_v26  ;;  %v4858_v9 = vadd.f32 %v4837_v54, %v4788_v31 }
0x1dfb   :  { %v4813_v19 = vmul.f32 0.6931472, %v12534_v24  ;;  %v4857_v12 = vadd.f32 %v4828_v50, %v4787_v1 }
0x1dfc   :  { %v4855_v37 = vsel %vm4854_vm14, %v4852_v23, %v4849_v11  ;;  %4999 = vperm.xlu0 %12038, %v4992_v40  }
0x1dfd   :  { %v4860_v45 = vadd.f32 %v4855_v37, %v4790_v18  ;;  %v4819_v33 = vsel %vm4818_vm4, %v4816_v2, %v4813_v19 }
0x1dfe   :  { %v4856_v0 = vadd.f32 %v4819_v33, %v4786_v51 }
0x1dff   :  { %11342 = vmatprep.subr.mxu0 %v4860_v45 }
0x1e00   :  { %11343 = vmatpush3.msra.mxu0 %v4860_v45  ;;  %5026 = vperm.xlu0 %12038, %v5022_v21  }
0x1e01   :  { %11344 = vmatprep.subr.mxu0 %v4859_v6 }
0x1e02   :  { %11345 = vmatpush3.msra.mxu0 %v4859_v6 }
0x1e03   :  { %11346 = vmatprep.subr.mxu0 %v4858_v9 }
0x1e04   :  { %11347 = vmatpush3.msra.mxu0 %v4858_v9  ;;  %12040 = vset.pattern.permute.xlu0 %v16673_v27 }
0x1e05   :  { %11348 = vmatprep.subr.mxu0 %v4857_v12  ;;  %5701 = vperm.xlu0 %12040, %v14883_v38  }
0x1e06   :  { %11349 = vmatpush3.msra.mxu0 %v4857_v12 }
0x1e07   :  { %11350 = vmatprep.subr.mxu0 %v4856_v0 }
0x1e08   :  { %11351 = vmatpush3.msra.mxu0 %v4856_v0 }
0x1e09   :  { %11353 = vmatmul.mubr.msk.f32.vlgmr.msra.gmra.mxu0 %vm312_vm7, %v14714_v14  ;;  %11355 = vmatprep.subr.mxu0 %v16629_v34  ;;  %v14888_v14 = vld [vmem:[%s16522_s1 + $0x1a8] sm:$0xff] }
0x1e0a   :  { %11359 = vmatprep.mubr.msk.f32.mxu0 %vm13134_vm1, %v16629_v34  ;;  %5046 = vperm.xlu1 %12037, %v14888_v14  }
0x1e0b   :  { %5689 = vperm.xlu0 %12040, %v14894_v60  }
0x1e0e   :  { %5041 = vperm.xlu1 %12037, %v14900_v20  }
0x1e0f   :  { %12042 = vset.pattern.permute.xlu0 %v16674_v35 }
0x1e10   :  { %6299 = vperm.xlu0 %12042, %v14883_v38  }
0x1e12   :  { %4989 = vperm.xlu1 %12037, %v4966_v48  }
0x1e14   :  { %6287 = vperm.xlu0 %12042, %v14894_v60  }
0x1e16   :  { %4979 = vperm.xlu1 %12037, %v4964_v13  }
0x1e18   :  { %12044 = vset.pattern.permute.xlu0 %v16675_v30 }
0x1e19   :  { %6897 = vperm.xlu0 %12044, %v14883_v38  }
0x1e1a   :  { %4969 = vperm.xlu1 %12037, %v4962_v43  }
0x1e1d   :  { %6885 = vperm.xlu0 %12044, %v14894_v60  }
0x1e1e   :  { %5014 = vperm.xlu1 %12037, %v4995_v52  }
0x1e21   :  { %12046 = vset.pattern.permute.xlu0 %v16676_v28 }
0x1e22   :  { %5004 = vperm.xlu1 %12037, %v4993_v41   ;;  %7491 = vperm.xlu0 %12046, %v14883_v38  }
0x1e26   :  { %5031 = vperm.xlu1 %12037, %v5023_v25   ;;  %7479 = vperm.xlu0 %12046, %v14894_v60  }
0x1e2a   :  { %12039 = vset.pattern.permute.xlu1 %v16673_v27  ;;  %12048 = vset.pattern.permute.xlu0 %v16677_v61 }
0x1e2b   :  { %5705 = vperm.xlu1 %12039, %v14877_v59   ;;  %8089 = vperm.xlu0 %12048, %v14883_v38  }
0x1e2f   :  { %5697 = vperm.xlu1 %12039, %v14888_v14   ;;  %8077 = vperm.xlu0 %12048, %v14894_v60  }
0x1e33   :  { %5693 = vperm.xlu1 %12039, %v14900_v20   ;;  %12050 = vset.pattern.permute.xlu0 %v16678_v62 }
0x1e34   :  { %8687 = vperm.xlu0 %12050, %v14883_v38  }
0x1e37   :  { %12041 = vset.pattern.permute.xlu1 %v16674_v35 }
0x1e38   :  { %6303 = vperm.xlu1 %12041, %v14877_v59   ;;  %8675 = vperm.xlu0 %12050, %v14894_v60  }
0x1e3c   :  { %6295 = vperm.xlu1 %12041, %v14888_v14   ;;  %12052 = vset.pattern.permute.xlu0 %v13142_v56 }
0x1e3d   :  { %9285 = vperm.xlu0 %12052, %v14883_v38  }
0x1e40   :  { %6291 = vperm.xlu1 %12041, %v14900_v20  }
0x1e41   :  { %9273 = vperm.xlu0 %12052, %v14894_v60  }
0x1e44   :  { %12043 = vset.pattern.permute.xlu1 %v16675_v30 }
0x1e45   :  { %6901 = vperm.xlu1 %12043, %v14877_v59   ;;  %12054 = vset.pattern.permute.xlu0 %v16660_v55 }
0x1e49   :  { %6893 = vperm.xlu1 %12043, %v14888_v14  }
0x1e4d   :  { %6889 = vperm.xlu1 %12043, %v14900_v20  }
0x1e51   :  { %12045 = vset.pattern.permute.xlu1 %v16676_v28 }
0x1e52   :  { %7495 = vperm.xlu1 %12045, %v14877_v59  }
0x1e54   :  { %v5057_v11 = vpop.permute.xlu1 %5056 }
0x1e56   :  { %7487 = vperm.xlu1 %12045, %v14888_v14  }
0x1e58   :  { %v5052_v22 = vpop.permute.xlu0 %5051 }
0x1e5a   :  { %7483 = vperm.xlu1 %12045, %v14900_v20  }
0x1e5e   :  { %12047 = vset.pattern.permute.xlu1 %v16677_v61 }
0x1e5f   :  { %8093 = vperm.xlu1 %12047, %v14877_v59  }
0x1e63   :  { %8085 = vperm.xlu1 %12047, %v14888_v14   ;;  %v5037_v26 = vpop.permute.xlu0 %5036 }
0x1e67   :  { %8081 = vperm.xlu1 %12047, %v14900_v20  }
0x1e6b   :  { %12049 = vset.pattern.permute.xlu1 %v16678_v62 }
0x1e6c   :  { %8691 = vperm.xlu1 %12049, %v14877_v59  }
0x1e70   :  { %8683 = vperm.xlu1 %12049, %v14888_v14  }
0x1e74   :  { %8679 = vperm.xlu1 %12049, %v14900_v20  }
0x1e78   :  { %12051 = vset.pattern.permute.xlu1 %v13142_v56  ;;  %v15031_v56 = vld [vmem:[%s16522_s1 + $0x128] sm:$0xff] }
0x1e79   :  { %9289 = vperm.xlu1 %12051, %v14877_v59  }
0x1e7d   :  { %9281 = vperm.xlu1 %12051, %v14888_v14  }
0x1e81   :  { %9277 = vperm.xlu1 %12051, %v14900_v20  }
0x1e85   :  { %12053 = vset.pattern.permute.xlu1 %v16660_v55  ;;  %v5047_v23 = vpop.permute.xlu1 %5046 }
0x1e89   :  { %v5042_v63 = vpop.permute.xlu1 %5041 }
0x1ec9   :  { %v11354_v3 = vpop.f32.mrf.mxu0 }
0x1eca   :  { %v4933_v10 = vadd.f32 %v11354_v3, %v13483_v47  ;;  %v14997_v47 = vld [vmem:[%s16522_s1 + $0x110] sm:$0xff] }
0x1ecb   :  { %v4927_v42 = vpop.f32.mrf.mxu0 }
0x1ecc   :  { %v4937_v36 = vmul.f32 0.083333336, %v4933_v10  ;;  %v4928_v18 = vadd.f32 %v4927_v42, %v13488_v53  ;;  %v15010_v53 = vld [vmem:[%s16522_s1 + $0x118] sm:$0xff] }
0x1ece   :  { %v14987_v57 = vadd.f32 %v4937_v36, %v14733_v39  ;;  %v4936_v8 = vmul.f32 0.083333336, %v4928_v18  ;;  %v15021_v39 = vld [vmem:[%s16522_s1 + $0x120] sm:$0xff] }
0x1ed0   :  { %v14991_v4 = vadd.f32 %v4936_v8, %v14737_v29  ;;  %11356 = vmatpush3.msra.mxu0 %v14987_v57  ;;  %v15041_v29 = vld [vmem:[%s16522_s1 + $0x130] sm:$0xff] }
0x1ed1   :  { %11357 = vmatprep.subr.mxu0 %v16629_v34 }
0x1ed2   :  { %11358 = vmatpush3.msra.mxu0 %v14991_v4 }
0x1ed3   :  { %11360 = vmatmul.mubr.msk.f32.vlgmr.msra.gmra.mxu0 %vm131_vm0, %v14997_v47  ;;  %11399 = vmatprep.subr.mxu0 %v16629_v34 }
0x1ed4   :  { %11362 = vmatprep.mubr.msk.f32.mxu0 %vm13134_vm1, %v16629_v34 }
0x1ed7   :  { %11363 = vmatmul.mubr.msk.f32.gmra.mxu0 %vm131_vm0, %v15010_v53 }
0x1ed8   :  { %11365 = vmatprep.mubr.msk.f32.mxu0 %vm13134_vm1, %v16629_v34 }
0x1edb   :  { %11366 = vmatmul.mubr.msk.f32.gmra.mxu0 %vm131_vm0, %v15021_v39 }
0x1edc   :  { %11368 = vmatprep.mubr.msk.f32.mxu0 %vm13134_vm1, %v16629_v34 }
0x1edf   :  { %11369 = vmatmul.mubr.msk.f32.gmra.mxu0 %vm131_vm0, %v15031_v56 }
0x1ee0   :  { %11371 = vmatprep.mubr.msk.f32.mxu0 %vm13134_vm1, %v16629_v34 }
0x1ee3   :  { %11372 = vmatmul.mubr.msk.f32.gmra.mxu0 %vm131_vm0, %v15041_v29 }
0x1ee4   :  { %11409 = vmatprep.mubr.msk.f32.mxu0 %vm13134_vm1, %v16629_v34 }
0x1f93   :  { %v5140_v44 = vpop.f32.mrf.mxu0 }
0x1f94   :  { %v15051_v45 = vadd.f32 %v5140_v44, %v5037_v26 }
0x1f95   :  { %v11361_v24 = vpop.f32.mrf.mxu0 }
0x1f96   :  { %v5169_v31 = vand.u32 2147483647, %v15051_v45 }
0x1f97   :  { %v5145_v37 = vpop.f32.mrf.mxu0 }
0x1f98   :  { %v15048_v49 = vadd.f32 %v5145_v37, %v5042_v63  ;;  %v5174_v51 = vsub.f32 0.0, %v5169_v31 }
0x1f99   :  { %v11364_v15 = vpop.f32.mrf.mxu0 }
0x1f9a   :  { %v5170_v17 = vand.u32 2147483647, %v15048_v49  ;;  %v5179_v16 = vmul.f32 1.442695, %v5174_v51 }
0x1f9b   :  { %v5150_v5 = vpop.f32.mrf.mxu0 }
0x1f9c   :  { %v15053_v55 = vadd.f32 %v5150_v5, %v5047_v23  ;;  %v5175_v32 = vsub.f32 0.0, %v5170_v17 }
0x1f9d   :  { %v11367_v54 = vpop.f32.mrf.mxu0 }
0x1f9e   :  { %v5171_v19 = vand.u32 2147483647, %v15053_v55  ;;  %v5181_v9 = vmul.f32 1.442695, %v5175_v32 }
0x1f9f   :  { %v5155_v6 = vpop.f32.mrf.mxu0 }
0x1fa0   :  { %v5176_v50 = vsub.f32 0.0, %v5171_v19  ;;  %v15057_v2 = vadd.f32 %v5155_v6, %v5052_v22  ;;  %12535 = vpow2.f32 %v5181_v9 }
0x1fa1   :  { %v11370_v1 = vpop.f32.mrf.mxu0 }
0x1fa2   :  { %v5172_v33 = vand.u32 2147483647, %v15057_v2  ;;  %v5183_v12 = vmul.f32 1.442695, %v5176_v50 }
0x1fa3   :  { %v5160_v0 = vpop.f32.mrf.mxu0 }
0x1fa4   :  { %v5177_v59 = vsub.f32 0.0, %v5172_v33  ;;  %v5161_v38 = vadd.f32 %v5160_v0, %v5057_v11  ;;  %12537 = vpow2.f32 %v5183_v12  ;;  %v5167_v33 = vmax.f32 %v15057_v2, 0.0 }
0x1fa5   :  { %v11373_v14 = vpop.f32.mrf.mxu0  ;;  %v5164_v2 = vmax.f32 %v15051_v45, 0.0  ;;  %v15089_v45 = vld [vmem:[%s16522_s1 + $0x148] sm:$0xff] }
0x1fa6   :  { %v5185_v60 = vmul.f32 1.442695, %v5177_v59  ;;  %v5173_v20 = vand.u32 2147483647, %v5161_v38  ;;  %v5168_v15 = vmax.f32 %v5161_v38, 0.0  ;;  %v5166_v38 = vmax.f32 %v15053_v55, 0.0 }
0x1fa8   :  { %12539 = vpow2.f32 %v5185_v60  ;;  %v5178_v48 = vsub.f32 0.0, %v5173_v20 }
0x1fa9   :  { %12541 = vpow2.f32 %v5179_v16  ;;  %v5165_v16 = vmax.f32 %v15048_v49, 0.0  ;;  %v15080_v49 = vld [vmem:[%s16522_s1 + $0x140] sm:$0xff] }
0x1faa   :  { %v5187_v46 = vmul.f32 1.442695, %v5178_v48 }
0x1fac   :  { %12543 = vpow2.f32 %v5187_v46 }
0x1fad   :  { %v12536_v13 = vpop.eup %12535 }
0x1fae   :  { %v5198_v41 = vadd.f32 1.0, %v12536_v13  ;;  %v5201_v3 = vmul.f32 -0.5, %v12536_v13  ;;  %v5204_v19 = vand.u32 2147483647, %v12536_v13 }
0x1fb0   :  { %v5202_v63 = vadd.f32 1.0, %v5201_v3  ;;  %vm5205_vm9 = vcmp.lt.f32.partialorder %v5204_v19, 0.0004427343 }
0x1fb1   :  { %v12538_v7 = vpop.eup %12537 }
0x1fb2   :  { %v5207_v52 = vadd.f32 1.0, %v12538_v7  ;;  %v5210_v28 = vmul.f32 -0.5, %v12538_v7  ;;  %v5213_v37 = vand.u32 2147483647, %v12538_v7  ;;  %v5203_v0 = vmul.f32 %v12536_v13, %v5202_v63 }
0x1fb4   :  { %v5211_v23 = vadd.f32 1.0, %v5210_v28  ;;  %vm5214_vm8 = vcmp.lt.f32.partialorder %v5213_v37, 0.0004427343 }
0x1fb5   :  { %v12540_v43 = vpop.eup %12539 }
0x1fb6   :  { %v5216_v58 = vadd.f32 1.0, %v12540_v43  ;;  %v12542_v40 = vpop.eup %12541  ;;  %v5219_v35 = vmul.f32 -0.5, %v12540_v43  ;;  %v5222_v18 = vand.u32 2147483647, %v12540_v43  ;;  %v5212_v6 = vmul.f32 %v12538_v7, %v5211_v23  ;;  %v15070_v7 = vld [vmem:[%s16522_s1 + $0x138] sm:$0xff] }
0x1fb7   :  { %v5189_v25 = vadd.f32 1.0, %v12542_v40  ;;  %v5192_v62 = vmul.f32 -0.5, %v12542_v40  ;;  %v5195_v9 = vand.u32 2147483647, %v12542_v40 }
0x1fb8   :  { %12545 = vlog2.f32 %v5216_v58  ;;  %v5220_v10 = vadd.f32 1.0, %v5219_v35  ;;  %vm5223_vm5 = vcmp.lt.f32.partialorder %v5222_v18, 0.0004427343  ;;  %v15107_v58 = vld [vmem:[%s16522_s1 + $0x158] sm:$0xff] }
0x1fb9   :  { %v12544_v21 = vpop.eup %12543  ;;  %12547 = vlog2.f32 %v5207_v52  ;;  %v5193_v24 = vadd.f32 1.0, %v5192_v62  ;;  %vm5196_vm10 = vcmp.lt.f32.partialorder %v5195_v9, 0.0004427343  ;;  %v15111_v52 = vpop.permute.xlu1 %4989 }
0x1fba   :  { %v5225_v27 = vadd.f32 1.0, %v12544_v21  ;;  %12549 = vlog2.f32 %v5198_v41  ;;  %v5228_v30 = vmul.f32 -0.5, %v12544_v21  ;;  %v5231_v8 = vand.u32 2147483647, %v12544_v21  ;;  %16679 = vst [vmem:[#allocation7_spill] sm:$0xff] %v15111_v52 }
0x1fbb   :  { %v5221_v17 = vmul.f32 %v12540_v43, %v5220_v10  ;;  %v5194_v60 = vmul.f32 %v12542_v40, %v5193_v24  ;;  %v15098_v43 = vld [vmem:[%s16522_s1 + $0x150] sm:$0xff]  ;;  %v15113_v40 = vpop.permute.xlu0 %4984 }
0x1fbc   :  { %12551 = vlog2.f32 %v5225_v27  ;;  %v5229_v42 = vadd.f32 1.0, %v5228_v30  ;;  %vm5232_vm6 = vcmp.lt.f32.partialorder %v5231_v8, 0.0004427343  ;;  %16680 = vst [vmem:[#allocation13_spill] sm:$0xff] %v15113_v40 }
0x1fbd   :  { %12553 = vlog2.f32 %v5189_v25 }
0x1fbe   :  { %v5230_v54 = vmul.f32 %v12544_v21, %v5229_v42  ;;  %v15115_v21 = vpop.permute.xlu1 %4979 }
0x1fbf   :  { %v15117_v27 = vpop.permute.xlu0 %4974 }
0x1fc5   :  { %v12546_v61 = vpop.eup %12545 }
0x1fc6   :  { %v12548_v36 = vpop.eup %12547  ;;  %v5218_v44 = vmul.f32 0.6931472, %v12546_v61  ;;  %v15122_v61 = vpop.permute.xlu1 %4969 }
0x1fc7   :  { %v12550_v11 = vpop.eup %12549  ;;  %v5209_v26 = vmul.f32 0.6931472, %v12548_v36 }
0x1fc8   :  { %v5200_v31 = vmul.f32 0.6931472, %v12550_v11  ;;  %v5224_v50 = vsel %vm5223_vm5, %v5221_v17, %v5218_v44 }
0x1fc9   :  { %v12552_v22 = vpop.eup %12551  ;;  %v5215_v59 = vsel %vm5214_vm8, %v5212_v6, %v5209_v26  ;;  %v5237_v14 = vadd.f32 %v5224_v50, %v5167_v33 }
0x1fca   :  { %v5227_v5 = vmul.f32 0.6931472, %v12552_v22  ;;  %v12554_v32 = vpop.eup %12553  ;;  %v5206_v20 = vsel %vm5205_vm9, %v5203_v0, %v5200_v31  ;;  %v5236_v48 = vadd.f32 %v5215_v59, %v5166_v38 }
0x1fcb   :  { %v5191_v12 = vmul.f32 0.6931472, %v12554_v32  ;;  %v5235_v13 = vadd.f32 %v5206_v20, %v5165_v16 }
0x1fcc   :  { %v5233_v1 = vsel %vm5232_vm6, %v5230_v54, %v5227_v5 }
0x1fcd   :  { %v5238_v51 = vadd.f32 %v5233_v1, %v5168_v15  ;;  %v5197_v46 = vsel %vm5196_vm10, %v5194_v60, %v5191_v12 }
0x1fce   :  { %v5234_v55 = vadd.f32 %v5197_v46, %v5164_v2 }
0x1fcf   :  { %11375 = vmatpush3.msra.mxu1 %v5238_v51 }
0x1fd0   :  { %11376 = vmatprep.subr.mxu1 %v16629_v34 }
0x1fd1   :  { %11377 = vmatpush3.msra.mxu1 %v5237_v14 }
0x1fd2   :  { %11378 = vmatprep.subr.mxu1 %v16629_v34 }
0x1fd3   :  { %11379 = vmatpush3.msra.mxu1 %v5236_v48 }
0x1fd4   :  { %11380 = vmatprep.subr.mxu1 %v16629_v34 }
0x1fd5   :  { %11381 = vmatpush3.msra.mxu1 %v5235_v13 }
0x1fd6   :  { %11382 = vmatprep.subr.mxu1 %v16629_v34 }
0x1fd7   :  { %11383 = vmatpush3.msra.mxu1 %v5234_v55 }
0x1fd8   :  { %11385 = vmatmul.mubr.msk.f32.vlgmr.msra.gmra.mxu1 %vm312_vm7, %v15070_v7 }
0x1fd9   :  { %11387 = vmatprep.mubr.msk.f32.mxu1 %vm13134_vm1, %v16629_v34 }
0x1fdc   :  { %11388 = vmatmul.mubr.msk.f32.gmra.mxu1 %vm312_vm7, %v15080_v49 }
0x1fdd   :  { %11390 = vmatprep.mubr.msk.f32.mxu1 %vm13134_vm1, %v16629_v34 }
0x1fe0   :  { %11391 = vmatmul.mubr.msk.f32.gmra.mxu1 %vm312_vm7, %v15089_v45 }
0x1fe1   :  { %11393 = vmatprep.mubr.msk.f32.mxu1 %vm13134_vm1, %v16629_v34 }
0x1fe4   :  { %11394 = vmatmul.mubr.msk.f32.gmra.mxu1 %vm312_vm7, %v15098_v43 }
0x1fe5   :  { %11396 = vmatprep.mubr.msk.f32.mxu1 %vm13134_vm1, %v16629_v34 }
0x1fe8   :  { %11397 = vmatmul.mubr.msk.f32.gmra.mxu1 %vm312_vm7, %v15107_v58 }
0x2098   :  { %v5320_v41 = vpop.f32.mrf.mxu1 }
0x2099   :  { %v15126_v3 = vadd.f32 %v5320_v41, %v15122_v61 }
0x209a   :  { %v11386_v25 = vpop.f32.mrf.mxu1 }
0x209b   :  { %v5349_v11 = vand.u32 2147483647, %v15126_v3 }
0x209c   :  { %v5325_v35 = vpop.f32.mrf.mxu1 }
0x209d   :  { %v15120_v30 = vadd.f32 %v5325_v35, %v15117_v27  ;;  %v5354_v15 = vsub.f32 0.0, %v5349_v11 }
0x209e   :  { %v11389_v28 = vpop.f32.mrf.mxu1 }
0x209f   :  { %v5350_v62 = vand.u32 2147483647, %v15120_v30  ;;  %v5359_v6 = vmul.f32 1.442695, %v5354_v15 }
0x20a0   :  { %v5330_v10 = vpop.f32.mrf.mxu1 }
0x20a1   :  { %v15129_v42 = vadd.f32 %v5330_v10, %v15115_v21  ;;  %v5355_v18 = vsub.f32 0.0, %v5350_v62 }
0x20a2   :  { %v11392_v36 = vpop.f32.mrf.mxu1 }
0x20a3   :  { %v5351_v8 = vand.u32 2147483647, %v15129_v42  ;;  %v5361_v63 = vmul.f32 1.442695, %v5355_v18 }
0x20a4   :  { %v5335_v23 = vpop.f32.mrf.mxu1 }
0x20a5   :  { %v5356_v44 = vsub.f32 0.0, %v5351_v8  ;;  %v15134_v22 = vadd.f32 %v5335_v23, %v15113_v40  ;;  %12555 = vpow2.f32 %v5361_v63 }
0x20a6   :  { %v11395_v24 = vpop.f32.mrf.mxu1 }
0x20a7   :  { %v5352_v37 = vand.u32 2147483647, %v15134_v22  ;;  %v5363_v26 = vmul.f32 1.442695, %v5356_v44 }
0x20a8   :  { %v5340_v17 = vpop.f32.mrf.mxu1 }
0x20a9   :  { %v5357_v5 = vsub.f32 0.0, %v5352_v37  ;;  %v5341_v54 = vadd.f32 %v5340_v17, %v15111_v52  ;;  %12557 = vpow2.f32 %v5363_v26 }
0x20aa   :  { %v11398_v32 = vpop.f32.mrf.mxu1 }
0x20ab   :  { %v5365_v19 = vmul.f32 1.442695, %v5357_v5  ;;  %v5353_v31 = vand.u32 2147483647, %v5341_v54  ;;  %v5348_v24 = vmax.f32 %v5341_v54, 0.0 }
0x20ad   :  { %12559 = vpow2.f32 %v5365_v19  ;;  %v5358_v50 = vsub.f32 0.0, %v5353_v31 }
0x20ae   :  { %12561 = vpow2.f32 %v5359_v6 }
0x20af   :  { %v5367_v1 = vmul.f32 1.442695, %v5358_v50 }
0x20b1   :  { %12563 = vpow2.f32 %v5367_v1  ;;  %v5347_v1 = vmax.f32 %v15134_v22, 0.0  ;;  %v5344_v22 = vmax.f32 %v15126_v3, 0.0  ;;  %v15168_v3 = vld [vmem:[%s16522_s1 + $0x170] sm:$0xff] }
0x20b2   :  { %v12556_v9 = vpop.eup %12555 }
0x20b3   :  { %v5378_v38 = vadd.f32 1.0, %v12556_v9  ;;  %v5381_v55 = vmul.f32 -0.5, %v12556_v9  ;;  %v5384_v5 = vand.u32 2147483647, %v12556_v9 }
0x20b5   :  { %v5382_v23 = vadd.f32 1.0, %v5381_v55  ;;  %vm5385_vm14 = vcmp.lt.f32.partialorder %v5384_v5, 0.0004427343  ;;  %v15199_v55 = vpop.permute.xlu0 %5019 }
0x20b6   :  { %v12558_v33 = vpop.eup %12557  ;;  %16681 = vst [vmem:[#allocation5_spill] sm:$0xff] %v15199_v55 }
0x20b7   :  { %v5387_v0 = vadd.f32 1.0, %v12558_v33  ;;  %v5390_v46 = vmul.f32 -0.5, %v12558_v33  ;;  %v5393_v44 = vand.u32 2147483647, %v12558_v33 }
0x20b9   :  { %v5391_v36 = vadd.f32 1.0, %v5390_v46  ;;  %vm5394_vm13 = vcmp.lt.f32.partialorder %v5393_v44, 0.0004427343  ;;  %v15177_v46 = vld [vmem:[%s16522_s1 + $0x178] sm:$0xff] }
0x20ba   :  { %v12560_v51 = vpop.eup %12559 }
0x20bb   :  { %v5396_v12 = vadd.f32 1.0, %v12560_v51  ;;  %v12562_v59 = vpop.eup %12561  ;;  %v5399_v16 = vmul.f32 -0.5, %v12560_v51  ;;  %v5402_v28 = vand.u32 2147483647, %v12560_v51  ;;  %v5392_v19 = vmul.f32 %v12558_v33, %v5391_v36 }
0x20bc   :  { %v5369_v60 = vadd.f32 1.0, %v12562_v59  ;;  %v5372_v13 = vmul.f32 -0.5, %v12562_v59  ;;  %v5375_v50 = vand.u32 2147483647, %v12562_v59  ;;  %v5345_v33 = vmax.f32 %v15120_v30, 0.0  ;;  %v15159_v30 = vld [vmem:[%s16522_s1 + $0x168] sm:$0xff] }
0x20bd   :  { %12565 = vlog2.f32 %v5396_v12  ;;  %v5400_v41 = vadd.f32 1.0, %v5399_v16  ;;  %vm5403_vm11 = vcmp.lt.f32.partialorder %v5402_v28, 0.0004427343 }
0x20be   :  { %v12564_v14 = vpop.eup %12563  ;;  %12567 = vlog2.f32 %v5387_v0  ;;  %v5373_v11 = vadd.f32 1.0, %v5372_v13  ;;  %vm5376_vm15 = vcmp.lt.f32.partialorder %v5375_v50, 0.0004427343  ;;  %v15195_v13 = vld [vmem:[%s16522_s1 + $0x188] sm:$0xff] }
0x20bf   :  { %v5405_v20 = vadd.f32 1.0, %v12564_v14  ;;  %12569 = vlog2.f32 %v5378_v38  ;;  %v5408_v48 = vmul.f32 -0.5, %v12564_v14  ;;  %v5411_v62 = vand.u32 2147483647, %v12564_v14  ;;  %11434 = vmatprep.mubr.msk.f32.mxu1 %vm312_vm7, %v15195_v13 }
0x20c0   :  { %v5401_v37 = vmul.f32 %v12560_v51, %v5400_v41  ;;  %v5383_v38 = vmul.f32 %v12556_v9, %v5382_v23  ;;  %v5346_v51 = vmax.f32 %v15129_v42, 0.0  ;;  %v15201_v41 = vpop.permute.xlu1 %5014 }
0x20c1   :  { %12571 = vlog2.f32 %v5405_v20  ;;  %v5409_v25 = vadd.f32 1.0, %v5408_v48  ;;  %vm5412_vm12 = vcmp.lt.f32.partialorder %v5411_v62, 0.0004427343  ;;  %16682 = vst [vmem:[#allocation6_spill] sm:$0xff] %v15201_v41 }
0x20c2   :  { %12573 = vlog2.f32 %v5369_v60  ;;  %v5374_v60 = vmul.f32 %v12562_v59, %v5373_v11  ;;  %v15148_v59 = vld [vmem:[%s16522_s1 + $0x160] sm:$0xff] }
0x20c3   :  { %v5410_v26 = vmul.f32 %v12564_v14, %v5409_v25  ;;  %v15203_v25 = vpop.permute.xlu0 %5009 }
0x20c4   :  { %16683 = vst [vmem:[#allocation4_spill] sm:$0xff] %v15203_v25  ;;  %v15205_v62 = vpop.permute.xlu1 %5004 }
0x20c5   :  { %16684 = vst [vmem:[#allocation3_spill] sm:$0xff] %v15205_v62 }
0x20ca   :  { %v12566_v2 = vpop.eup %12565 }
0x20cb   :  { %v12568_v35 = vpop.eup %12567  ;;  %v5398_v18 = vmul.f32 0.6931472, %v12566_v2  ;;  %v15186_v2 = vld [vmem:[%s16522_s1 + $0x180] sm:$0xff] }
0x20cc   :  { %v12570_v10 = vpop.eup %12569  ;;  %v5389_v63 = vmul.f32 0.6931472, %v12568_v35 }
0x20cd   :  { %v5380_v32 = vmul.f32 0.6931472, %v12570_v10  ;;  %v5404_v31 = vsel %vm5403_vm11, %v5401_v37, %v5398_v18  ;;  %v15210_v18 = vpop.permute.xlu0 %4999 }
0x20ce   :  { %v12572_v8 = vpop.eup %12571  ;;  %v5395_v54 = vsel %vm5394_vm13, %v5392_v19, %v5389_v63  ;;  %v5417_v14 = vadd.f32 %v5404_v31, %v5347_v1  ;;  %16685 = vst [vmem:[#allocation2_spill] sm:$0xff] %v15210_v18 }
0x20cf   :  { %v5407_v15 = vmul.f32 0.6931472, %v12572_v8  ;;  %v12574_v17 = vpop.eup %12573  ;;  %v5386_v20 = vsel %vm5385_vm14, %v5383_v38, %v5380_v32  ;;  %v5416_v16 = vadd.f32 %v5395_v54, %v5346_v51 }
0x20d0   :  { %v5371_v0 = vmul.f32 0.6931472, %v12574_v17  ;;  %v5415_v9 = vadd.f32 %v5386_v20, %v5345_v33 }
0x20d1   :  { %v5413_v6 = vsel %vm5412_vm12, %v5410_v26, %v5407_v15 }
0x20d2   :  { %v5418_v12 = vadd.f32 %v5413_v6, %v5348_v24  ;;  %v5377_v48 = vsel %vm5376_vm15, %v5374_v60, %v5371_v0 }
0x20d3   :  { %v5414_v42 = vadd.f32 %v5377_v48, %v5344_v22 }
0x20d4   :  { %11400 = vmatpush3.msra.mxu0 %v5418_v12 }
0x20d5   :  { %11401 = vmatprep.subr.mxu0 %v16629_v34 }
0x20d6   :  { %11402 = vmatpush3.msra.mxu0 %v5417_v14 }
0x20d7   :  { %11403 = vmatprep.subr.mxu0 %v16629_v34 }
0x20d8   :  { %11404 = vmatpush3.msra.mxu0 %v5416_v16 }
0x20d9   :  { %11405 = vmatprep.subr.mxu0 %v16629_v34 }
0x20da   :  { %11406 = vmatpush3.msra.mxu0 %v5415_v9 }
0x20db   :  { %11407 = vmatprep.subr.mxu0 %v16629_v34 }
0x20dc   :  { %11408 = vmatpush3.msra.mxu0 %v5414_v42 }
0x20dd   :  { %11410 = vmatmul.mubr.msk.f32.vlgmr.msra.gmra.mxu0 %vm312_vm7, %v15148_v59  ;;  %11456 = vmatprep.subr.mxu0 %v16629_v34 }
0x20de   :  { %11412 = vmatprep.mubr.msk.f32.mxu0 %vm13134_vm1, %v16629_v34 }
0x20e1   :  { %11413 = vmatmul.mubr.msk.f32.gmra.mxu0 %vm312_vm7, %v15159_v30 }
0x20e2   :  { %11415 = vmatprep.mubr.msk.f32.mxu0 %vm13134_vm1, %v16629_v34 }
0x20e5   :  { %11416 = vmatmul.mubr.msk.f32.gmra.mxu0 %vm312_vm7, %v15168_v3 }
0x20e6   :  { %11418 = vmatprep.mubr.msk.f32.mxu0 %vm13134_vm1, %v16629_v34 }
0x20e9   :  { %11419 = vmatmul.mubr.msk.f32.gmra.mxu0 %vm312_vm7, %v15177_v46 }
0x20ea   :  { %11421 = vmatprep.mubr.msk.f32.mxu0 %vm13134_vm1, %v16629_v34 }
0x20ed   :  { %11422 = vmatmul.mubr.msk.f32.gmra.mxu0 %vm312_vm7, %v15186_v2 }
0x20ee   :  { %11466 = vmatprep.mubr.msk.f32.mxu0 %vm13134_vm1, %v16629_v34 }
0x219d   :  { %v5500_v35 = vpop.f32.mrf.mxu0 }
0x219e   :  { %v15213_v11 = vadd.f32 %v5500_v35, %v15210_v18 }
0x219f   :  { %v11411_v28 = vpop.f32.mrf.mxu0 }
0x21a0   :  { %v5529_v37 = vand.u32 2147483647, %v15213_v11 }
0x21a1   :  { %v5505_v10 = vpop.f32.mrf.mxu0 }
0x21a2   :  { %v15208_v36 = vadd.f32 %v5505_v10, %v15205_v62  ;;  %v5534_v31 = vsub.f32 0.0, %v5529_v37 }
0x21a3   :  { %v11414_v8 = vpop.f32.mrf.mxu0 }
0x21a4   :  { %v5530_v23 = vand.u32 2147483647, %v15208_v36  ;;  %v5539_v51 = vmul.f32 1.442695, %v5534_v31 }
0x21a5   :  { %v5510_v44 = vpop.f32.mrf.mxu0 }
0x21a6   :  { %v15217_v24 = vadd.f32 %v5510_v44, %v15203_v25  ;;  %v5535_v26 = vsub.f32 0.0, %v5530_v23 }
0x21a7   :  { %v11417_v63 = vpop.f32.mrf.mxu0 }
0x21a8   :  { %v5531_v15 = vand.u32 2147483647, %v15217_v24  ;;  %v5541_v1 = vmul.f32 1.442695, %v5535_v26 }
0x21a9   :  { %v5515_v17 = vpop.f32.mrf.mxu0 }
0x21aa   :  { %v5536_v5 = vsub.f32 0.0, %v5531_v15  ;;  %v15222_v32 = vadd.f32 %v5515_v17, %v15201_v41 }
0x21ab   :  { %v11420_v19 = vpop.f32.mrf.mxu0 }
0x21ac   :  { %v5543_v6 = vmul.f32 1.442695, %v5536_v5  ;;  %v5532_v50 = vand.u32 2147483647, %v15222_v32 }
0x21ad   :  { %v5520_v12 = vpop.f32.mrf.mxu0 }
0x21ae   :  { %v5537_v0 = vsub.f32 0.0, %v5532_v50  ;;  %v5521_v38 = vadd.f32 %v5520_v12, %v15199_v55  ;;  %12575 = vpow2.f32 %v5543_v6 }
0x21af   :  { %v11423_v54 = vpop.f32.mrf.mxu0  ;;  %12577 = vpow2.f32 %v5541_v1 }
0x21b0   :  { %v5545_v14 = vmul.f32 1.442695, %v5537_v0  ;;  %v5533_v60 = vand.u32 2147483647, %v5521_v38 }
0x21b2   :  { %12579 = vpow2.f32 %v5545_v14  ;;  %v5538_v20 = vsub.f32 0.0, %v5533_v60 }
0x21b3   :  { %12581 = vpow2.f32 %v5539_v51  ;;  %v5528_v51 = vmax.f32 %v5521_v38, 0.0 }
0x21b4   :  { %v5547_v33 = vmul.f32 1.442695, %v5538_v20 }
0x21b6   :  { %12583 = vpow2.f32 %v5547_v33 }
0x21bb   :  { %v12576_v16 = vpop.eup %12575 }
0x21bc   :  { %v12578_v48 = vpop.eup %12577  ;;  %v5567_v42 = vadd.f32 1.0, %v12576_v16  ;;  %v5570_v37 = vmul.f32 -0.5, %v12576_v16  ;;  %v5573_v14 = vand.u32 2147483647, %v12576_v16 }
0x21bd   :  { %v5558_v28 = vadd.f32 1.0, %v12578_v48  ;;  %v5561_v26 = vmul.f32 -0.5, %v12578_v48 }
0x21be   :  { %v5571_v0 = vadd.f32 1.0, %v5570_v37  ;;  %vm5574_vm4 = vcmp.lt.f32.partialorder %v5573_v14, 0.0004427343 }
0x21bf   :  { %v12580_v22 = vpop.eup %12579  ;;  %v5562_v60 = vadd.f32 1.0, %v5561_v26 }
0x21c0   :  { %v5576_v9 = vadd.f32 1.0, %v12580_v22  ;;  %v12582_v35 = vpop.eup %12581  ;;  %v5579_v63 = vmul.f32 -0.5, %v12580_v22  ;;  %v5582_v50 = vand.u32 2147483647, %v12580_v22  ;;  %v5572_v55 = vmul.f32 %v12576_v16, %v5571_v0 }
0x21c1   :  { %v5549_v23 = vadd.f32 1.0, %v12582_v35  ;;  %v5552_v17 = vmul.f32 -0.5, %v12582_v35  ;;  %v5555_v38 = vand.u32 2147483647, %v12582_v35  ;;  %v5563_v26 = vmul.f32 %v12578_v48, %v5562_v60 }
0x21c2   :  { %12585 = vlog2.f32 %v5576_v9  ;;  %v5580_v19 = vadd.f32 1.0, %v5579_v63  ;;  %vm5583_vm3 = vcmp.lt.f32.partialorder %v5582_v50, 0.0004427343 }
0x21c3   :  { %v12584_v10 = vpop.eup %12583  ;;  %12587 = vlog2.f32 %v5567_v42  ;;  %v5553_v20 = vadd.f32 1.0, %v5552_v17  ;;  %vm5556_vm6 = vcmp.lt.f32.partialorder %v5555_v38, 0.0004427343 }
0x21c4   :  { %v5585_v8 = vadd.f32 1.0, %v12584_v10  ;;  %12589 = vlog2.f32 %v5558_v28  ;;  %v5588_v44 = vmul.f32 -0.5, %v12584_v10  ;;  %v5591_v6 = vand.u32 2147483647, %v12584_v10 }
0x21c5   :  { %v5581_v42 = vmul.f32 %v12580_v22, %v5580_v19  ;;  %v5554_v19 = vmul.f32 %v12582_v35, %v5553_v20 }
0x21c6   :  { %12591 = vlog2.f32 %v5585_v8  ;;  %v5589_v5 = vadd.f32 1.0, %v5588_v44  ;;  %vm5592_vm2 = vcmp.lt.f32.partialorder %v5591_v6, 0.0004427343  ;;  %v5524_v6 = vmax.f32 %v15213_v11, 0.0 }
0x21c7   :  { %12593 = vlog2.f32 %v5549_v23  ;;  %v5564_v23 = vand.u32 2147483647, %v12578_v48  ;;  %v15245_v48 = vpop.permute.xlu0 %5026 }
0x21c8   :  { %v5590_v9 = vmul.f32 %v12584_v10, %v5589_v5  ;;  %v5526_v10 = vmax.f32 %v15217_v24, 0.0 }
0x21c9   :  { %vm5565_vm5 = vcmp.lt.f32.partialorder %v5564_v23, 0.0004427343 }
0x21cf   :  { %v12586_v15 = vpop.eup %12585 }
0x21d0   :  { %v12588_v31 = vpop.eup %12587  ;;  %v5578_v12 = vmul.f32 0.6931472, %v12586_v15  ;;  %v5527_v15 = vmax.f32 %v15222_v32, 0.0 }
0x21d1   :  { %v12590_v1 = vpop.eup %12589  ;;  %v5569_v28 = vmul.f32 0.6931472, %v12588_v31  ;;  %v5525_v31 = vmax.f32 %v15208_v36, 0.0 }
0x21d2   :  { %v5584_v63 = vsel %vm5583_vm3, %v5581_v42, %v5578_v12  ;;  %v5560_v41 = vmul.f32 0.6931472, %v12590_v1 }
0x21d3   :  { %v12592_v54 = vpop.eup %12591  ;;  %v5575_v25 = vsel %vm5574_vm4, %v5572_v55, %v5569_v28  ;;  %v5597_v22 = vadd.f32 %v5584_v63, %v5527_v15 }
0x21d4   :  { %v5587_v33 = vmul.f32 0.6931472, %v12592_v54  ;;  %v12594_v8 = vpop.eup %12593  ;;  %v5566_v5 = vsel %vm5565_vm5, %v5563_v26, %v5560_v41  ;;  %v5596_v16 = vadd.f32 %v5575_v25, %v5526_v10  ;;  %v15233_v41 = vld [vmem:[%s16522_s1 + $0x190] sm:$0xff]  ;;  %v15240_v25 = vpop.permute.xlu1 %5031 }
0x21d5   :  { %v5551_v17 = vmul.f32 0.6931472, %v12594_v8  ;;  %v5595_v55 = vadd.f32 %v5566_v5, %v5525_v31 }
0x21d6   :  { %v5593_v44 = vsel %vm5592_vm2, %v5590_v9, %v5587_v33 }
0x21d7   :  { %v5598_v37 = vadd.f32 %v5593_v44, %v5528_v51  ;;  %v5557_v32 = vsel %vm5556_vm6, %v5554_v19, %v5551_v17  ;;  %v5702_v51 = vpop.permute.xlu0 %5701 }
0x21d8   :  { %v5594_v24 = vadd.f32 %v5557_v32, %v5524_v6 }
0x21d9   :  { %11424 = vmatprep.subr.mxu1 %v5598_v37 }
0x21da   :  { %11425 = vmatpush3.msra.mxu1 %v5598_v37 }
0x21db   :  { %11426 = vmatprep.subr.mxu1 %v5597_v22  ;;  %v5690_v33 = vpop.permute.xlu0 %5689 }
0x21dc   :  { %11427 = vmatpush3.msra.mxu1 %v5597_v22 }
0x21dd   :  { %11428 = vmatprep.subr.mxu1 %v5596_v16 }
0x21de   :  { %11429 = vmatpush3.msra.mxu1 %v5596_v16 }
0x21df   :  { %11430 = vmatprep.subr.mxu1 %v5595_v55 }
0x21e0   :  { %11431 = vmatpush3.msra.mxu1 %v5595_v55 }
0x21e1   :  { %11432 = vmatprep.subr.mxu1 %v5594_v24 }
0x21e2   :  { %11433 = vmatpush3.msra.mxu1 %v5594_v24 }
0x21e3   :  { %11435 = vmatmul.mubr.msk.f32.vlgmr.msra.gmra.mxu1 %vm312_vm7, %v15233_v41  ;;  %11437 = vmatprep.subr.mxu1 %v16629_v34 }
0x21e4   :  { %11441 = vmatprep.mubr.msk.f32.mxu1 %vm13134_vm1, %v16629_v34 }
0x22a3   :  { %v11436_v36 = vpop.f32.mrf.mxu1 }
0x22a4   :  { %v15243_v11 = vadd.f32 %v11436_v36, %v15240_v25 }
0x22a5   :  { %v5671_v35 = vpop.f32.mrf.mxu1 }
0x22a6   :  { %v5685_v50 = vmul.f32 0.25, %v15243_v11  ;;  %v15249_v1 = vadd.f32 %v5671_v35, %v15245_v48 }
0x22a8   :  { %v5687_v12 = vadd.f32 %v5685_v50, %v14987_v57  ;;  %v5684_v0 = vmul.f32 0.25, %v15249_v1 }
0x22aa   :  { %v5686_v54 = vadd.f32 %v5684_v0, %v14991_v4  ;;  %11438 = vmatpush3.msra.mxu1 %v5687_v12 }
0x22ab   :  { %11439 = vmatprep.subr.mxu1 %v16629_v34 }
0x22ac   :  { %11440 = vmatpush3.msra.mxu1 %v5686_v54 }
0x22ad   :  { %11442 = vmatmul.mubr.msk.f32.vlgmr.msra.gmra.mxu1 %vm131_vm0, %v14997_v47  ;;  %11481 = vmatprep.subr.mxu1 %v16629_v34  ;;  %v5706_v47 = vpop.permute.xlu1 %5705 }
0x22ae   :  { %11444 = vmatprep.mubr.msk.f32.mxu1 %vm13134_vm1, %v16629_v34 }
0x22b1   :  { %11445 = vmatmul.mubr.msk.f32.gmra.mxu1 %vm131_vm0, %v15010_v53  ;;  %v5698_v53 = vpop.permute.xlu1 %5697 }
0x22b2   :  { %11447 = vmatprep.mubr.msk.f32.mxu1 %vm13134_vm1, %v16629_v34 }
0x22b5   :  { %11448 = vmatmul.mubr.msk.f32.gmra.mxu1 %vm131_vm0, %v15021_v39  ;;  %v5694_v60 = vpop.permute.xlu1 %5693 }
0x22b6   :  { %11450 = vmatprep.mubr.msk.f32.mxu1 %vm13134_vm1, %v16629_v34 }
0x22b9   :  { %11451 = vmatmul.mubr.msk.f32.gmra.mxu1 %vm131_vm0, %v15031_v56 }
0x22ba   :  { %11453 = vmatprep.mubr.msk.f32.mxu1 %vm13134_vm1, %v16629_v34 }
0x22bd   :  { %11454 = vmatmul.mubr.msk.f32.gmra.mxu1 %vm131_vm0, %v15041_v29 }
0x22be   :  { %11491 = vmatprep.mubr.msk.f32.mxu1 %vm13134_vm1, %v16629_v34 }
0x236d   :  { %v5774_v14 = vpop.f32.mrf.mxu1 }
0x236e   :  { %v15279_v28 = vadd.f32 %v5774_v14, %v5690_v33 }
0x236f   :  { %v11443_v39 = vpop.f32.mrf.mxu1 }
0x2370   :  { %v5803_v15 = vand.u32 2147483647, %v15279_v28 }
0x2371   :  { %v5779_v20 = vpop.f32.mrf.mxu1 }
0x2372   :  { %v15276_v9 = vadd.f32 %v5779_v20, %v5694_v60  ;;  %v5808_v5 = vsub.f32 0.0, %v5803_v15 }
0x2373   :  { %v11446_v56 = vpop.f32.mrf.mxu1 }
0x2374   :  { %v5804_v42 = vand.u32 2147483647, %v15276_v9  ;;  %v5813_v36 = vmul.f32 1.442695, %v5808_v5 }
0x2375   :  { %v5784_v8 = vpop.f32.mrf.mxu1 }
0x2376   :  { %v15281_v29 = vadd.f32 %v5784_v8, %v5698_v53  ;;  %v5809_v44 = vsub.f32 0.0, %v5804_v42 }
0x2377   :  { %v11449_v23 = vpop.f32.mrf.mxu1 }
0x2378   :  { %v5805_v63 = vand.u32 2147483647, %v15281_v29  ;;  %v5815_v10 = vmul.f32 1.442695, %v5809_v44 }
0x2379   :  { %v5789_v37 = vpop.f32.mrf.mxu1 }
0x237a   :  { %v5810_v38 = vsub.f32 0.0, %v5805_v63  ;;  %v15285_v26 = vadd.f32 %v5789_v37, %v5702_v51  ;;  %12595 = vpow2.f32 %v5815_v10 }
0x237b   :  { %v11452_v17 = vpop.f32.mrf.mxu1 }
0x237c   :  { %v5806_v22 = vand.u32 2147483647, %v15285_v26  ;;  %v5817_v19 = vmul.f32 1.442695, %v5810_v38 }
0x237d   :  { %v5794_v31 = vpop.f32.mrf.mxu1 }
0x237e   :  { %v5811_v16 = vsub.f32 0.0, %v5806_v22  ;;  %v5795_v32 = vadd.f32 %v5794_v31, %v5706_v47  ;;  %12597 = vpow2.f32 %v5817_v19 }
0x237f   :  { %v11455_v6 = vpop.f32.mrf.mxu1 }
0x2380   :  { %v5819_v55 = vmul.f32 1.442695, %v5811_v16  ;;  %v5807_v24 = vand.u32 2147483647, %v5795_v32 }
0x2382   :  { %12599 = vpow2.f32 %v5819_v55  ;;  %v5812_v35 = vsub.f32 0.0, %v5807_v24  ;;  %v5802_v55 = vmax.f32 %v5795_v32, 0.0 }
0x2383   :  { %12601 = vpow2.f32 %v5813_v36 }
0x2384   :  { %v5821_v50 = vmul.f32 1.442695, %v5812_v35 }
0x2386   :  { %12603 = vpow2.f32 %v5821_v50 }
0x2387   :  { %v12596_v12 = vpop.eup %12595 }
0x2388   :  { %v5832_v39 = vadd.f32 1.0, %v12596_v12  ;;  %v5835_v44 = vmul.f32 -0.5, %v12596_v12 }
0x238a   :  { %v5836_v16 = vadd.f32 1.0, %v5835_v44 }
0x238b   :  { %v12598_v0 = vpop.eup %12597 }
0x238c   :  { %v5841_v51 = vadd.f32 1.0, %v12598_v0  ;;  %v5844_v42 = vmul.f32 -0.5, %v12598_v0  ;;  %v5847_v6 = vand.u32 2147483647, %v12598_v0  ;;  %v5837_v44 = vmul.f32 %v12596_v12, %v5836_v16 }
0x238e   :  { %v5845_v22 = vadd.f32 1.0, %v5844_v42  ;;  %vm5848_vm10 = vcmp.lt.f32.partialorder %v5847_v6, 0.0004427343  ;;  %v5801_v42 = vmax.f32 %v15285_v26, 0.0  ;;  %v5798_v26 = vmax.f32 %v15279_v28, 0.0 }
0x238f   :  { %v12600_v54 = vpop.eup %12599 }
0x2390   :  { %v5850_v53 = vadd.f32 1.0, %v12600_v54  ;;  %v12602_v14 = vpop.eup %12601  ;;  %v5853_v33 = vmul.f32 -0.5, %v12600_v54  ;;  %v5856_v38 = vand.u32 2147483647, %v12600_v54 }
0x2391   :  { %v5823_v60 = vadd.f32 1.0, %v12602_v14  ;;  %v5826_v23 = vmul.f32 -0.5, %v12602_v14 }
0x2392   :  { %12605 = vlog2.f32 %v5850_v53  ;;  %v5854_v63 = vadd.f32 1.0, %v5853_v33  ;;  %vm5857_vm8 = vcmp.lt.f32.partialorder %v5856_v38, 0.0004427343 }
0x2393   :  { %v12604_v47 = vpop.eup %12603  ;;  %12607 = vlog2.f32 %v5841_v51  ;;  %v5827_v31 = vadd.f32 1.0, %v5826_v23  ;;  %v5838_v51 = vand.u32 2147483647, %v12596_v12 }
0x2394   :  { %v5859_v20 = vadd.f32 1.0, %v12604_v47  ;;  %12609 = vlog2.f32 %v5832_v39  ;;  %v5862_v56 = vmul.f32 -0.5, %v12604_v47  ;;  %v5865_v17 = vand.u32 2147483647, %v12604_v47 }
0x2395   :  { %v5855_v36 = vmul.f32 %v12600_v54, %v5854_v63  ;;  %vm5839_vm11 = vcmp.lt.f32.partialorder %v5838_v51, 0.0004427343  ;;  %v5800_v54 = vmax.f32 %v15281_v29, 0.0  ;;  %v5828_v63 = vmul.f32 %v12602_v14, %v5827_v31 }
0x2396   :  { %12611 = vlog2.f32 %v5859_v20  ;;  %v5863_v15 = vadd.f32 1.0, %v5862_v56  ;;  %vm5866_vm9 = vcmp.lt.f32.partialorder %v5865_v17, 0.0004427343  ;;  %v5829_v56 = vand.u32 2147483647, %v12602_v14 }
0x2397   :  { %12613 = vlog2.f32 %v5823_v60  ;;  %v5846_v60 = vmul.f32 %v12598_v0, %v5845_v22  ;;  %v5799_v0 = vmax.f32 %v15276_v9, 0.0 }
0x2398   :  { %v5864_v50 = vmul.f32 %v12604_v47, %v5863_v15  ;;  %vm5830_vm12 = vcmp.lt.f32.partialorder %v5829_v56, 0.0004427343 }
0x239f   :  { %v12606_v8 = vpop.eup %12605 }
0x23a0   :  { %v12608_v37 = vpop.eup %12607  ;;  %v5852_v5 = vmul.f32 0.6931472, %v12606_v8 }
0x23a1   :  { %v12610_v10 = vpop.eup %12609  ;;  %v5843_v24 = vmul.f32 0.6931472, %v12608_v37 }
0x23a2   :  { %v5834_v39 = vmul.f32 0.6931472, %v12610_v10  ;;  %v5858_v20 = vsel %vm5857_vm8, %v5855_v36, %v5852_v5 }
0x23a3   :  { %v12612_v19 = vpop.eup %12611  ;;  %v5849_v32 = vsel %vm5848_vm10, %v5846_v60, %v5843_v24  ;;  %v5871_v47 = vadd.f32 %v5858_v20, %v5801_v42 }
0x23a4   :  { %v5861_v35 = vmul.f32 0.6931472, %v12612_v19  ;;  %v12614_v53 = vpop.eup %12613  ;;  %v5840_v15 = vsel %vm5839_vm11, %v5837_v44, %v5834_v39  ;;  %v5870_v37 = vadd.f32 %v5849_v32, %v5800_v54 }
0x23a5   :  { %v5825_v23 = vmul.f32 0.6931472, %v12614_v53  ;;  %v5869_v12 = vadd.f32 %v5840_v15, %v5799_v0 }
0x23a6   :  { %v5867_v33 = vsel %vm5866_vm9, %v5864_v50, %v5861_v35 }
0x23a7   :  { %v5872_v8 = vadd.f32 %v5867_v33, %v5802_v55  ;;  %v5831_v38 = vsel %vm5830_vm12, %v5828_v63, %v5825_v23 }
0x23a8   :  { %v5868_v29 = vadd.f32 %v5831_v38, %v5798_v26 }
0x23a9   :  { %11457 = vmatpush3.msra.mxu0 %v5872_v8 }
0x23aa   :  { %11458 = vmatprep.subr.mxu0 %v16629_v34 }
0x23ab   :  { %11459 = vmatpush3.msra.mxu0 %v5871_v47 }
0x23ac   :  { %11460 = vmatprep.subr.mxu0 %v16629_v34 }
0x23ad   :  { %11461 = vmatpush3.msra.mxu0 %v5870_v37 }
0x23ae   :  { %11462 = vmatprep.subr.mxu0 %v16629_v34 }
0x23af   :  { %11463 = vmatpush3.msra.mxu0 %v5869_v12 }
0x23b0   :  { %11464 = vmatprep.subr.mxu0 %v16629_v34 }
0x23b1   :  { %11465 = vmatpush3.msra.mxu0 %v5868_v29 }
0x23b2   :  { %11467 = vmatmul.mubr.msk.f32.vlgmr.msra.gmra.mxu0 %vm312_vm7, %v15070_v7 }
0x23b3   :  { %11469 = vmatprep.mubr.msk.f32.mxu0 %vm13134_vm1, %v16629_v34 }
0x23b6   :  { %11470 = vmatmul.mubr.msk.f32.gmra.mxu0 %vm312_vm7, %v15080_v49 }
0x23b7   :  { %11472 = vmatprep.mubr.msk.f32.mxu0 %vm13134_vm1, %v16629_v34 }
0x23ba   :  { %11473 = vmatmul.mubr.msk.f32.gmra.mxu0 %vm312_vm7, %v15089_v45 }
0x23bb   :  { %11475 = vmatprep.mubr.msk.f32.mxu0 %vm13134_vm1, %v16629_v34 }
0x23be   :  { %11476 = vmatmul.mubr.msk.f32.gmra.mxu0 %vm312_vm7, %v15098_v43 }
0x23bf   :  { %11478 = vmatprep.mubr.msk.f32.mxu0 %vm13134_vm1, %v16629_v34 }
0x23c2   :  { %11479 = vmatmul.mubr.msk.f32.gmra.mxu0 %vm312_vm7, %v15107_v58 }
0x23c3   :  { %11516 = vmatprep.mubr.msk.f32.mxu0 %vm312_vm7, %v15195_v13 }
0x2472   :  { %v5939_v7 = vpop.f32.mrf.mxu0 }
0x2473   :  { %v15321_v43 = vadd.f32 %v5939_v7, %v15122_v61 }
0x2474   :  { %v11468_v49 = vpop.f32.mrf.mxu0 }
0x2475   :  { %v5968_v5 = vand.u32 2147483647, %v15321_v43 }
0x2476   :  { %v5944_v9 = vpop.f32.mrf.mxu0 }
0x2477   :  { %v15317_v45 = vadd.f32 %v5944_v9, %v15117_v27  ;;  %v5973_v36 = vsub.f32 0.0, %v5968_v5 }
0x2478   :  { %v11471_v28 = vpop.f32.mrf.mxu0 }
0x2479   :  { %v5969_v14 = vand.u32 2147483647, %v15317_v45  ;;  %v5978_v33 = vmul.f32 1.442695, %v5973_v36 }
0x247a   :  { %v5949_v17 = vpop.f32.mrf.mxu0 }
0x247b   :  { %v15324_v10 = vadd.f32 %v5949_v17, %v15115_v21  ;;  %v5974_v22 = vsub.f32 0.0, %v5969_v14 }
0x247c   :  { %v11474_v58 = vpop.f32.mrf.mxu0 }
0x247d   :  { %v5970_v13 = vand.u32 2147483647, %v15324_v10  ;;  %v5980_v55 = vmul.f32 1.442695, %v5974_v22 }
0x247e   :  { %v5954_v19 = vpop.f32.mrf.mxu0 }
0x247f   :  { %v5975_v31 = vsub.f32 0.0, %v5970_v13  ;;  %v15329_v16 = vadd.f32 %v5954_v19, %v15113_v40  ;;  %12615 = vpow2.f32 %v5980_v55 }
0x2480   :  { %v11477_v6 = vpop.f32.mrf.mxu0 }
0x2481   :  { %v5971_v24 = vand.u32 2147483647, %v15329_v16  ;;  %v5982_v35 = vmul.f32 1.442695, %v5975_v31 }
0x2482   :  { %v5959_v50 = vpop.f32.mrf.mxu0 }
0x2483   :  { %v5976_v53 = vsub.f32 0.0, %v5971_v24  ;;  %v5960_v51 = vadd.f32 %v5959_v50, %v15111_v52  ;;  %12617 = vpow2.f32 %v5982_v35 }
0x2484   :  { %v11480_v39 = vpop.f32.mrf.mxu0 }
0x2485   :  { %v5984_v60 = vmul.f32 1.442695, %v5976_v53  ;;  %v5972_v20 = vand.u32 2147483647, %v5960_v51  ;;  %v5967_v24 = vmax.f32 %v5960_v51, 0.0 }
0x2487   :  { %12619 = vpow2.f32 %v5984_v60  ;;  %v5977_v56 = vsub.f32 0.0, %v5972_v20 }
0x2488   :  { %12621 = vpow2.f32 %v5978_v33 }
0x2489   :  { %v5986_v42 = vmul.f32 1.442695, %v5977_v56 }
0x248b   :  { %12623 = vpow2.f32 %v5986_v42 }
0x248c   :  { %v12616_v8 = vpop.eup %12615 }
0x248d   :  { %v5997_v63 = vadd.f32 1.0, %v12616_v8  ;;  %v6000_v49 = vmul.f32 -0.5, %v12616_v8  ;;  %v6003_v60 = vand.u32 2147483647, %v12616_v8 }
0x248f   :  { %v6001_v6 = vadd.f32 1.0, %v6000_v49  ;;  %vm6004_vm2 = vcmp.lt.f32.partialorder %v6003_v60, 0.0004427343  ;;  %v16686_v49 = vld [vmem:[#allocation4_spill] sm:$0xff] }
0x2490   :  { %v12618_v23 = vpop.eup %12617 }
0x2491   :  { %v6006_v54 = vadd.f32 1.0, %v12618_v23  ;;  %v6009_v12 = vmul.f32 -0.5, %v12618_v23  ;;  %v6012_v55 = vand.u32 2147483647, %v12618_v23 }
0x2493   :  { %v6010_v13 = vadd.f32 1.0, %v6009_v12  ;;  %vm6013_vm15 = vcmp.lt.f32.partialorder %v6012_v55, 0.0004427343 }
0x2494   :  { %v12620_v44 = vpop.eup %12619 }
0x2495   :  { %v6015_v32 = vadd.f32 1.0, %v12620_v44  ;;  %v12622_v47 = vpop.eup %12621  ;;  %v6018_v38 = vmul.f32 -0.5, %v12620_v44  ;;  %v6021_v17 = vand.u32 2147483647, %v12620_v44  ;;  %v6011_v33 = vmul.f32 %v12618_v23, %v6010_v13  ;;  %v16687_v13 = vld [vmem:[#allocation6_spill] sm:$0xff] }
0x2496   :  { %v5988_v0 = vadd.f32 1.0, %v12622_v47  ;;  %v5991_v7 = vmul.f32 -0.5, %v12622_v47  ;;  %v5964_v23 = vmax.f32 %v15317_v45, 0.0 }
0x2497   :  { %12625 = vlog2.f32 %v6015_v32  ;;  %v6019_v9 = vadd.f32 1.0, %v6018_v38  ;;  %vm6022_vm13 = vcmp.lt.f32.partialorder %v6021_v17, 0.0004427343  ;;  %v5994_v32 = vand.u32 2147483647, %v12622_v47 }
0x2498   :  { %v12624_v15 = vpop.eup %12623  ;;  %12627 = vlog2.f32 %v6006_v54  ;;  %v5992_v31 = vadd.f32 1.0, %v5991_v7  ;;  %v5966_v54 = vmax.f32 %v15329_v16, 0.0  ;;  %v5963_v16 = vmax.f32 %v15321_v43, 0.0 }
0x2499   :  { %v6024_v37 = vadd.f32 1.0, %v12624_v15  ;;  %12629 = vlog2.f32 %v5997_v63  ;;  %v6027_v26 = vmul.f32 -0.5, %v12624_v15  ;;  %v6030_v58 = vand.u32 2147483647, %v12624_v15 }
0x249a   :  { %v6020_v35 = vmul.f32 %v12620_v44, %v6019_v9  ;;  %v5965_v44 = vmax.f32 %v15324_v10, 0.0  ;;  %v5993_v38 = vmul.f32 %v12622_v47, %v5992_v31  ;;  %vm5995_vm3 = vcmp.lt.f32.partialorder %v5994_v32, 0.0004427343 }
0x249b   :  { %12631 = vlog2.f32 %v6024_v37  ;;  %v6028_v28 = vadd.f32 1.0, %v6027_v26  ;;  %vm6031_vm14 = vcmp.lt.f32.partialorder %v6030_v58, 0.0004427343  ;;  %v6002_v37 = vmul.f32 %v12616_v8, %v6001_v6 }
0x249c   :  { %12633 = vlog2.f32 %v5988_v0 }
0x249d   :  { %v6029_v53 = vmul.f32 %v12624_v15, %v6028_v28 }
0x24a4   :  { %v12626_v29 = vpop.eup %12625 }
0x24a5   :  { %v12628_v14 = vpop.eup %12627  ;;  %v6017_v5 = vmul.f32 0.6931472, %v12626_v29 }
0x24a6   :  { %v12630_v22 = vpop.eup %12629  ;;  %v6008_v36 = vmul.f32 0.6931472, %v12628_v14 }
0x24a7   :  { %v5999_v20 = vmul.f32 0.6931472, %v12630_v22  ;;  %v6023_v56 = vsel %vm6022_vm13, %v6020_v35, %v6017_v5 }
0x24a8   :  { %v12632_v19 = vpop.eup %12631  ;;  %v6014_v51 = vsel %vm6013_vm15, %v6011_v33, %v6008_v36  ;;  %v6036_v15 = vadd.f32 %v6023_v56, %v5966_v54 }
0x24a9   :  { %v6026_v50 = vmul.f32 0.6931472, %v12632_v19  ;;  %v12634_v39 = vpop.eup %12633  ;;  %v6005_v26 = vsel %vm6004_vm2, %v6002_v37, %v5999_v20  ;;  %v6035_v12 = vadd.f32 %v6014_v51, %v5965_v44 }
0x24aa   :  { %v5990_v0 = vmul.f32 0.6931472, %v12634_v39  ;;  %v6034_v8 = vadd.f32 %v6005_v26, %v5964_v23 }
0x24ab   :  { %v6032_v42 = vsel %vm6031_vm14, %v6029_v53, %v6026_v50  ;;  %v16688_v50 = vld [vmem:[#allocation5_spill] sm:$0xff] }
0x24ac   :  { %v6037_v63 = vadd.f32 %v6032_v42, %v5967_v24  ;;  %v5996_v29 = vsel %vm5995_vm3, %v5993_v38, %v5990_v0 }
0x24ad   :  { %v6033_v10 = vadd.f32 %v5996_v29, %v5963_v16 }
0x24ae   :  { %11482 = vmatpush3.msra.mxu1 %v6037_v63 }
0x24af   :  { %11483 = vmatprep.subr.mxu1 %v16629_v34 }
0x24b0   :  { %11484 = vmatpush3.msra.mxu1 %v6036_v15 }
0x24b1   :  { %11485 = vmatprep.subr.mxu1 %v16629_v34 }
0x24b2   :  { %11486 = vmatpush3.msra.mxu1 %v6035_v12 }
0x24b3   :  { %11487 = vmatprep.subr.mxu1 %v16629_v34 }
0x24b4   :  { %11488 = vmatpush3.msra.mxu1 %v6034_v8 }
0x24b5   :  { %11489 = vmatprep.subr.mxu1 %v16629_v34 }
0x24b6   :  { %11490 = vmatpush3.msra.mxu1 %v6033_v10 }
0x24b7   :  { %11492 = vmatmul.mubr.msk.f32.vlgmr.msra.gmra.mxu1 %vm312_vm7, %v15148_v59  ;;  %11538 = vmatprep.subr.mxu1 %v16629_v34 }
0x24b8   :  { %11494 = vmatprep.mubr.msk.f32.mxu1 %vm13134_vm1, %v16629_v34 }
0x24bb   :  { %11495 = vmatmul.mubr.msk.f32.gmra.mxu1 %vm312_vm7, %v15159_v30 }
0x24bc   :  { %11497 = vmatprep.mubr.msk.f32.mxu1 %vm13134_vm1, %v16629_v34 }
0x24bf   :  { %11498 = vmatmul.mubr.msk.f32.gmra.mxu1 %vm312_vm7, %v15168_v3 }
0x24c0   :  { %11500 = vmatprep.mubr.msk.f32.mxu1 %vm13134_vm1, %v16629_v34 }
0x24c3   :  { %11501 = vmatmul.mubr.msk.f32.gmra.mxu1 %vm312_vm7, %v15177_v46 }
0x24c4   :  { %11503 = vmatprep.mubr.msk.f32.mxu1 %vm13134_vm1, %v16629_v34 }
0x24c7   :  { %11504 = vmatmul.mubr.msk.f32.gmra.mxu1 %vm312_vm7, %v15186_v2 }
0x24c8   :  { %11548 = vmatprep.mubr.msk.f32.mxu1 %vm13134_vm1, %v16629_v34 }
0x2577   :  { %v6104_v59 = vpop.f32.mrf.mxu1 }
0x2578   :  { %v15366_v47 = vadd.f32 %v6104_v59, %v15210_v18 }
0x2579   :  { %v11493_v30 = vpop.f32.mrf.mxu1 }
0x257a   :  { %v6133_v28 = vand.u32 2147483647, %v15366_v47 }
0x257b   :  { %v6109_v45 = vpop.f32.mrf.mxu1 }
0x257c   :  { %v15363_v3 = vadd.f32 %v6109_v45, %v15205_v62  ;;  %v6138_v31 = vsub.f32 0.0, %v6133_v28 }
0x257d   :  { %v11496_v43 = vpop.f32.mrf.mxu1 }
0x257e   :  { %v6134_v46 = vand.u32 2147483647, %v15363_v3  ;;  %v6143_v60 = vmul.f32 1.442695, %v6138_v31 }
0x257f   :  { %v6114_v7 = vpop.f32.mrf.mxu1 }
0x2580   :  { %v15370_v9 = vadd.f32 %v6114_v7, %v16686_v49  ;;  %v6139_v17 = vsub.f32 0.0, %v6134_v46 }
0x2581   :  { %v11499_v2 = vpop.f32.mrf.mxu1 }
0x2582   :  { %v6135_v14 = vand.u32 2147483647, %v15370_v9  ;;  %v6145_v24 = vmul.f32 1.442695, %v6139_v17 }
0x2583   :  { %v6119_v58 = vpop.f32.mrf.mxu1 }
0x2584   :  { %v6140_v22 = vsub.f32 0.0, %v6135_v14  ;;  %v15375_v5 = vadd.f32 %v6119_v58, %v16687_v13 }
0x2585   :  { %v11502_v19 = vpop.f32.mrf.mxu1 }
0x2586   :  { %v6147_v6 = vmul.f32 1.442695, %v6140_v22  ;;  %v6136_v55 = vand.u32 2147483647, %v15375_v5 }
0x2587   :  { %v6124_v36 = vpop.f32.mrf.mxu1 }
0x2588   :  { %v6141_v35 = vsub.f32 0.0, %v6136_v55  ;;  %v6125_v53 = vadd.f32 %v6124_v36, %v16688_v50  ;;  %12635 = vpow2.f32 %v6147_v6 }
0x2589   :  { %v11505_v39 = vpop.f32.mrf.mxu1  ;;  %12637 = vpow2.f32 %v6145_v24 }
0x258a   :  { %v6149_v20 = vmul.f32 1.442695, %v6141_v35  ;;  %v6137_v33 = vand.u32 2147483647, %v6125_v53  ;;  %v6132_v17 = vmax.f32 %v6125_v53, 0.0 }
0x258c   :  { %12639 = vpow2.f32 %v6149_v20  ;;  %v6142_v56 = vsub.f32 0.0, %v6137_v33 }
0x258d   :  { %12641 = vpow2.f32 %v6143_v60 }
0x258e   :  { %v6151_v42 = vmul.f32 1.442695, %v6142_v56  ;;  %v6131_v56 = vmax.f32 %v15375_v5, 0.0 }
0x2590   :  { %12643 = vpow2.f32 %v6151_v42 }
0x2595   :  { %v12636_v32 = vpop.eup %12635 }
0x2596   :  { %v12638_v54 = vpop.eup %12637  ;;  %v6171_v37 = vadd.f32 1.0, %v12636_v32  ;;  %v6174_v29 = vmul.f32 -0.5, %v12636_v32  ;;  %v6177_v58 = vand.u32 2147483647, %v12636_v32 }
0x2597   :  { %v6162_v44 = vadd.f32 1.0, %v12638_v54  ;;  %v6165_v8 = vmul.f32 -0.5, %v12638_v54  ;;  %v6168_v35 = vand.u32 2147483647, %v12638_v54 }
0x2598   :  { %v6175_v28 = vadd.f32 1.0, %v6174_v29  ;;  %vm6178_vm6 = vcmp.lt.f32.partialorder %v6177_v58, 0.0004427343  ;;  %v15441_v58 = vld [vmem:[%s16522_s1 + $0x130] sm:$0xff] }
0x2599   :  { %v12640_v63 = vpop.eup %12639  ;;  %v6166_v22 = vadd.f32 1.0, %v6165_v8  ;;  %vm6169_vm8 = vcmp.lt.f32.partialorder %v6168_v35, 0.0004427343 }
0x259a   :  { %v6180_v0 = vadd.f32 1.0, %v12640_v63  ;;  %v12642_v51 = vpop.eup %12641  ;;  %v6183_v12 = vmul.f32 -0.5, %v12640_v63  ;;  %v6186_v46 = vand.u32 2147483647, %v12640_v63  ;;  %v6176_v20 = vmul.f32 %v12636_v32, %v6175_v28  ;;  %v15414_v28 = vld [vmem:[%s16522_s1 + $0x118] sm:$0xff] }
0x259b   :  { %v6153_v26 = vadd.f32 1.0, %v12642_v51  ;;  %v6156_v10 = vmul.f32 -0.5, %v12642_v51  ;;  %v6159_v53 = vand.u32 2147483647, %v12642_v51 }
0x259c   :  { %12645 = vlog2.f32 %v6180_v0  ;;  %v6184_v30 = vadd.f32 1.0, %v6183_v12  ;;  %vm6187_vm5 = vcmp.lt.f32.partialorder %v6186_v46, 0.0004427343  ;;  %v6128_v12 = vmax.f32 %v15366_v47, 0.0 }
0x259d   :  { %v12644_v15 = vpop.eup %12643  ;;  %12647 = vlog2.f32 %v6171_v37  ;;  %v6157_v19 = vadd.f32 1.0, %v6156_v10  ;;  %v6167_v37 = vmul.f32 %v12638_v54, %v6166_v22  ;;  %vm6160_vm9 = vcmp.lt.f32.partialorder %v6159_v53, 0.0004427343  ;;  %v6304_v22 = vpop.permute.xlu1 %6303 }
0x259e   :  { %v6189_v38 = vadd.f32 1.0, %v12644_v15  ;;  %12649 = vlog2.f32 %v6162_v44  ;;  %v6192_v23 = vmul.f32 -0.5, %v12644_v15  ;;  %v6195_v43 = vand.u32 2147483647, %v12644_v15 }
0x259f   :  { %v6185_v55 = vmul.f32 %v12640_v63, %v6184_v30  ;;  %v5680_v47 = vmul.f32 0.083333336, %v15249_v1 }
0x25a0   :  { %12651 = vlog2.f32 %v6189_v38  ;;  %v6193_v59 = vadd.f32 1.0, %v6192_v23  ;;  %vm6196_vm4 = vcmp.lt.f32.partialorder %v6195_v43, 0.0004427343  ;;  %v6129_v23 = vmax.f32 %v15363_v3, 0.0 }
0x25a1   :  { %12653 = vlog2.f32 %v6153_v26  ;;  %v6158_v26 = vmul.f32 %v12642_v51, %v6157_v19  ;;  %v5681_v3 = vmul.f32 0.083333336, %v15243_v11  ;;  %v6296_v19 = vpop.permute.xlu1 %6295 }
0x25a2   :  { %v6194_v6 = vmul.f32 %v12644_v15, %v6193_v59  ;;  %v6130_v15 = vmax.f32 %v15370_v9, 0.0 }
0x25a3   :  { %v5683_v8 = vadd.f32 %v5681_v3, %v14987_v57 }
0x25a9   :  { %v12646_v16 = vpop.eup %12645 }
0x25aa   :  { %v12648_v45 = vpop.eup %12647  ;;  %v6182_v2 = vmul.f32 0.6931472, %v12646_v16 }
0x25ab   :  { %v12650_v7 = vpop.eup %12649  ;;  %v6173_v24 = vmul.f32 0.6931472, %v12648_v45 }
0x25ac   :  { %v6188_v60 = vsel %vm6187_vm5, %v6185_v55, %v6182_v2  ;;  %v6164_v33 = vmul.f32 0.6931472, %v12650_v7  ;;  %v15404_v2 = vld [vmem:[%s16522_s1 + $0x110] sm:$0xff] }
0x25ad   :  { %v12652_v14 = vpop.eup %12651  ;;  %v6179_v0 = vsel %vm6178_vm6, %v6176_v20, %v6173_v24  ;;  %v6201_v63 = vadd.f32 %v6188_v60, %v6131_v56  ;;  %v6292_v24 = vpop.permute.xlu1 %6291 }
0x25ae   :  { %v6191_v31 = vmul.f32 0.6931472, %v12652_v14  ;;  %v12654_v36 = vpop.eup %12653  ;;  %v6170_v38 = vsel %vm6169_vm8, %v6167_v37, %v6164_v33  ;;  %v6200_v32 = vadd.f32 %v6179_v0, %v6130_v15  ;;  %v15423_v14 = vld [vmem:[%s16522_s1 + $0x120] sm:$0xff] }
0x25af   :  { %v6155_v44 = vmul.f32 0.6931472, %v12654_v36  ;;  %v6199_v54 = vadd.f32 %v6170_v38, %v6129_v23 }
0x25b0   :  { %v6197_v39 = vsel %vm6196_vm4, %v6194_v6, %v6191_v31  ;;  %v6300_v31 = vpop.permute.xlu0 %6299 }
0x25b1   :  { %v6202_v42 = vadd.f32 %v6197_v39, %v6132_v17  ;;  %v6161_v5 = vsel %vm6160_vm9, %v6158_v26, %v6155_v44  ;;  %v15432_v17 = vld [vmem:[%s16522_s1 + $0x128] sm:$0xff] }
0x25b2   :  { %v6198_v9 = vadd.f32 %v6161_v5, %v6128_v12 }
0x25b3   :  { %11506 = vmatprep.subr.mxu0 %v6202_v42 }
0x25b4   :  { %11507 = vmatpush3.msra.mxu0 %v6202_v42  ;;  %v6288_v35 = vpop.permute.xlu0 %6287 }
0x25b5   :  { %11508 = vmatprep.subr.mxu0 %v6201_v63 }
0x25b6   :  { %11509 = vmatpush3.msra.mxu0 %v6201_v63 }
0x25b7   :  { %11510 = vmatprep.subr.mxu0 %v6200_v32 }
0x25b8   :  { %11511 = vmatpush3.msra.mxu0 %v6200_v32 }
0x25b9   :  { %11512 = vmatprep.subr.mxu0 %v6199_v54 }
0x25ba   :  { %11513 = vmatpush3.msra.mxu0 %v6199_v54 }
0x25bb   :  { %11514 = vmatprep.subr.mxu0 %v6198_v9 }
0x25bc   :  { %11515 = vmatpush3.msra.mxu0 %v6198_v9 }
0x25bd   :  { %11517 = vmatmul.mubr.msk.f32.vlgmr.msra.gmra.mxu0 %vm312_vm7, %v15233_v41  ;;  %11519 = vmatprep.subr.mxu0 %v16629_v34  ;;  %v5682_v41 = vadd.f32 %v5680_v47, %v14991_v4 }
0x25be   :  { %11523 = vmatprep.mubr.msk.f32.mxu0 %vm13134_vm1, %v16629_v34 }
0x267d   :  { %v11518_v51 = vpop.f32.mrf.mxu0 }
0x267e   :  { %v6275_v29 = vadd.f32 %v11518_v51, %v15240_v25 }
0x267f   :  { %v6269_v16 = vpop.f32.mrf.mxu0 }
0x2680   :  { %v6279_v10 = vmul.f32 0.16666667, %v6275_v29  ;;  %v6283_v59 = vmul.f32 0.25, %v6275_v29  ;;  %v6270_v30 = vadd.f32 %v6269_v16, %v15245_v48 }
0x2682   :  { %v15394_v45 = vadd.f32 %v6279_v10, %v5683_v8  ;;  %v6285_v43 = vadd.f32 %v6283_v59, %v14987_v57  ;;  %v6278_v46 = vmul.f32 0.16666667, %v6270_v30  ;;  %v6282_v11 = vmul.f32 0.25, %v6270_v30 }
0x2684   :  { %v15397_v7 = vadd.f32 %v6278_v46, %v5682_v41  ;;  %v6284_v1 = vadd.f32 %v6282_v11, %v14991_v4  ;;  %11520 = vmatpush3.msra.mxu0 %v6285_v43 }
0x2685   :  { %11521 = vmatprep.subr.mxu0 %v16629_v34 }
0x2686   :  { %11522 = vmatpush3.msra.mxu0 %v6284_v1 }
0x2687   :  { %11524 = vmatmul.mubr.msk.f32.vlgmr.msra.gmra.mxu0 %vm131_vm0, %v15404_v2  ;;  %11563 = vmatprep.subr.mxu0 %v16629_v34 }
0x2688   :  { %11526 = vmatprep.mubr.msk.f32.mxu0 %vm13134_vm1, %v16629_v34 }
0x268b   :  { %11527 = vmatmul.mubr.msk.f32.gmra.mxu0 %vm131_vm0, %v15414_v28 }
0x268c   :  { %11529 = vmatprep.mubr.msk.f32.mxu0 %vm13134_vm1, %v16629_v34 }
0x268f   :  { %11530 = vmatmul.mubr.msk.f32.gmra.mxu0 %vm131_vm0, %v15423_v14 }
0x2690   :  { %11532 = vmatprep.mubr.msk.f32.mxu0 %vm13134_vm1, %v16629_v34 }
0x2693   :  { %11533 = vmatmul.mubr.msk.f32.gmra.mxu0 %vm131_vm0, %v15432_v17 }
0x2694   :  { %11535 = vmatprep.mubr.msk.f32.mxu0 %vm13134_vm1, %v16629_v34 }
0x2697   :  { %11536 = vmatmul.mubr.msk.f32.gmra.mxu0 %vm131_vm0, %v15441_v58 }
0x2698   :  { %11573 = vmatprep.mubr.msk.f32.mxu0 %vm13134_vm1, %v16629_v34 }
0x2747   :  { %v6372_v6 = vpop.f32.mrf.mxu0 }
0x2748   :  { %v15450_v33 = vadd.f32 %v6372_v6, %v6288_v35 }
0x2749   :  { %v11525_v55 = vpop.f32.mrf.mxu0 }
0x274a   :  { %v6401_v44 = vand.u32 2147483647, %v15450_v33 }
0x274b   :  { %v6377_v36 = vpop.f32.mrf.mxu0 }
0x274c   :  { %v15447_v39 = vadd.f32 %v6377_v36, %v6292_v24  ;;  %v6406_v5 = vsub.f32 0.0, %v6401_v44 }
0x274d   :  { %v11528_v60 = vpop.f32.mrf.mxu0 }
0x274e   :  { %v6402_v20 = vand.u32 2147483647, %v15447_v39  ;;  %v6411_v16 = vmul.f32 1.442695, %v6406_v5 }
0x274f   :  { %v6382_v56 = vpop.f32.mrf.mxu0 }
0x2750   :  { %v15452_v42 = vadd.f32 %v6382_v56, %v6296_v19  ;;  %v6407_v0 = vsub.f32 0.0, %v6402_v20 }
0x2751   :  { %v11531_v53 = vpop.f32.mrf.mxu0 }
0x2752   :  { %v6403_v37 = vand.u32 2147483647, %v15452_v42  ;;  %v6413_v23 = vmul.f32 1.442695, %v6407_v0 }
0x2753   :  { %v6387_v15 = vpop.f32.mrf.mxu0 }
0x2754   :  { %v6408_v63 = vsub.f32 0.0, %v6403_v37  ;;  %v15456_v38 = vadd.f32 %v6387_v15, %v6300_v31  ;;  %12655 = vpow2.f32 %v6413_v23 }
0x2755   :  { %v11534_v26 = vpop.f32.mrf.mxu0 }
0x2756   :  { %v6404_v32 = vand.u32 2147483647, %v15456_v38  ;;  %v6415_v12 = vmul.f32 1.442695, %v6408_v63 }
0x2757   :  { %v6392_v54 = vpop.f32.mrf.mxu0 }
0x2758   :  { %v6409_v9 = vsub.f32 0.0, %v6404_v32  ;;  %v6393_v3 = vadd.f32 %v6392_v54, %v6304_v22  ;;  %12657 = vpow2.f32 %v6415_v12 }
0x2759   :  { %v11537_v47 = vpop.f32.mrf.mxu0 }
0x275a   :  { %v6417_v51 = vmul.f32 1.442695, %v6409_v9  ;;  %v6405_v29 = vand.u32 2147483647, %v6393_v3  ;;  %v6400_v12 = vmax.f32 %v6393_v3, 0.0 }
0x275c   :  { %12659 = vpow2.f32 %v6417_v51  ;;  %v6410_v8 = vsub.f32 0.0, %v6405_v29 }
0x275d   :  { %12661 = vpow2.f32 %v6411_v16 }
0x275e   :  { %v6419_v10 = vmul.f32 1.442695, %v6410_v8 }
0x2760   :  { %12663 = vpow2.f32 %v6419_v10 }
0x2761   :  { %v12656_v59 = vpop.eup %12655 }
0x2762   :  { %v6430_v1 = vadd.f32 1.0, %v12656_v59  ;;  %v6433_v60 = vmul.f32 -0.5, %v12656_v59  ;;  %v6436_v16 = vand.u32 2147483647, %v12656_v59 }
0x2764   :  { %v6434_v32 = vadd.f32 1.0, %v6433_v60  ;;  %vm6437_vm13 = vcmp.lt.f32.partialorder %v6436_v16, 0.0004427343 }
0x2765   :  { %v12658_v30 = vpop.eup %12657 }
0x2766   :  { %v6439_v46 = vadd.f32 1.0, %v12658_v30  ;;  %v6442_v24 = vmul.f32 -0.5, %v12658_v30  ;;  %v6445_v5 = vand.u32 2147483647, %v12658_v30 }
0x2768   :  { %v6443_v15 = vadd.f32 1.0, %v6442_v24  ;;  %vm6446_vm12 = vcmp.lt.f32.partialorder %v6445_v5, 0.0004427343 }
0x2769   :  { %v12660_v41 = vpop.eup %12659 }
0x276a   :  { %v6448_v43 = vadd.f32 1.0, %v12660_v41  ;;  %v12662_v11 = vpop.eup %12661  ;;  %v6451_v6 = vmul.f32 -0.5, %v12660_v41  ;;  %v6454_v0 = vand.u32 2147483647, %v12660_v41  ;;  %v6444_v10 = vmul.f32 %v12658_v30, %v6443_v15 }
0x276b   :  { %v6421_v19 = vadd.f32 1.0, %v12662_v11  ;;  %v6424_v35 = vmul.f32 -0.5, %v12662_v11  ;;  %v6397_v30 = vmax.f32 %v15447_v39, 0.0  ;;  %v15470_v39 = vld [vmem:[%s16522_s1 + $0x138] sm:$0xff] }
0x276c   :  { %12665 = vlog2.f32 %v6448_v43  ;;  %v6452_v20 = vadd.f32 1.0, %v6451_v6  ;;  %vm6455_vm10 = vcmp.lt.f32.partialorder %v6454_v0, 0.0004427343 }
0x276d   :  { %v12664_v22 = vpop.eup %12663  ;;  %12667 = vlog2.f32 %v6439_v46  ;;  %v6425_v23 = vadd.f32 1.0, %v6424_v35 }
0x276e   :  { %v6457_v31 = vadd.f32 1.0, %v12664_v22  ;;  %12669 = vlog2.f32 %v6430_v1  ;;  %v6460_v55 = vmul.f32 -0.5, %v12664_v22  ;;  %v6463_v37 = vand.u32 2147483647, %v12664_v22 }
0x276f   :  { %v6453_v9 = vmul.f32 %v12660_v41, %v6452_v20  ;;  %v6427_v1 = vand.u32 2147483647, %v12662_v11  ;;  %v6398_v41 = vmax.f32 %v15452_v42, 0.0  ;;  %v6426_v24 = vmul.f32 %v12662_v11, %v6425_v23  ;;  %v15488_v11 = vld [vmem:[%s16522_s1 + $0x148] sm:$0xff]  ;;  %v15497_v20 = vld [vmem:[%s16522_s1 + $0x150] sm:$0xff] }
0x2770   :  { %12671 = vlog2.f32 %v6457_v31  ;;  %v6461_v56 = vadd.f32 1.0, %v6460_v55  ;;  %vm6464_vm11 = vcmp.lt.f32.partialorder %v6463_v37, 0.0004427343  ;;  %v6435_v55 = vmul.f32 %v12656_v59, %v6434_v32 }
0x2771   :  { %12673 = vlog2.f32 %v6421_v19  ;;  %v6399_v19 = vmax.f32 %v15456_v38, 0.0  ;;  %vm6428_vm14 = vcmp.lt.f32.partialorder %v6427_v1, 0.0004427343  ;;  %v6396_v38 = vmax.f32 %v15450_v33, 0.0  ;;  %v15479_v33 = vld [vmem:[%s16522_s1 + $0x140] sm:$0xff] }
0x2772   :  { %v6462_v51 = vmul.f32 %v12664_v22, %v6461_v56  ;;  %v15506_v56 = vld [vmem:[%s16522_s1 + $0x158] sm:$0xff] }
0x2779   :  { %v12666_v36 = vpop.eup %12665 }
0x277a   :  { %v12668_v53 = vpop.eup %12667  ;;  %v6450_v63 = vmul.f32 0.6931472, %v12666_v36 }
0x277b   :  { %v12670_v44 = vpop.eup %12669  ;;  %v6441_v54 = vmul.f32 0.6931472, %v12668_v53  ;;  %v15513_v53 = vld [vmem:[%s16522_s1 + $0x188] sm:$0xff] }
0x277c   :  { %v6432_v8 = vmul.f32 0.6931472, %v12670_v44  ;;  %v6456_v43 = vsel %vm6455_vm10, %v6453_v9, %v6450_v63 }
0x277d   :  { %v12672_v26 = vpop.eup %12671  ;;  %v6447_v3 = vsel %vm6446_vm12, %v6444_v10, %v6441_v54  ;;  %v6469_v22 = vadd.f32 %v6456_v43, %v6399_v19 }
0x277e   :  { %v6459_v47 = vmul.f32 0.6931472, %v12672_v26  ;;  %v12674_v29 = vpop.eup %12673  ;;  %v6438_v36 = vsel %vm6437_vm13, %v6435_v55, %v6432_v8  ;;  %v6468_v35 = vadd.f32 %v6447_v3, %v6398_v41 }
0x277f   :  { %v6423_v6 = vmul.f32 0.6931472, %v12674_v29  ;;  %v6467_v59 = vadd.f32 %v6438_v36, %v6397_v30 }
0x2780   :  { %v6465_v46 = vsel %vm6464_vm11, %v6462_v51, %v6459_v47 }
0x2781   :  { %v6470_v31 = vadd.f32 %v6465_v46, %v6400_v12  ;;  %v6429_v60 = vsel %vm6428_vm14, %v6426_v24, %v6423_v6 }
0x2782   :  { %v6466_v42 = vadd.f32 %v6429_v60, %v6396_v38 }
0x2783   :  { %11539 = vmatpush3.msra.mxu1 %v6470_v31 }
0x2784   :  { %11540 = vmatprep.subr.mxu1 %v16629_v34 }
0x2785   :  { %11541 = vmatpush3.msra.mxu1 %v6469_v22 }
0x2786   :  { %11542 = vmatprep.subr.mxu1 %v16629_v34 }
0x2787   :  { %11543 = vmatpush3.msra.mxu1 %v6468_v35 }
0x2788   :  { %11544 = vmatprep.subr.mxu1 %v16629_v34 }
0x2789   :  { %11545 = vmatpush3.msra.mxu1 %v6467_v59 }
0x278a   :  { %11546 = vmatprep.subr.mxu1 %v16629_v34 }
0x278b   :  { %11547 = vmatpush3.msra.mxu1 %v6466_v42 }
0x278c   :  { %11549 = vmatmul.mubr.msk.f32.vlgmr.msra.gmra.mxu1 %vm312_vm7, %v15470_v39 }
0x278d   :  { %11551 = vmatprep.mubr.msk.f32.mxu1 %vm13134_vm1, %v16629_v34 }
0x2790   :  { %11552 = vmatmul.mubr.msk.f32.gmra.mxu1 %vm312_vm7, %v15479_v33 }
0x2791   :  { %11554 = vmatprep.mubr.msk.f32.mxu1 %vm13134_vm1, %v16629_v34 }
0x2794   :  { %11555 = vmatmul.mubr.msk.f32.gmra.mxu1 %vm312_vm7, %v15488_v11 }
0x2795   :  { %11557 = vmatprep.mubr.msk.f32.mxu1 %vm13134_vm1, %v16629_v34 }
0x2798   :  { %11558 = vmatmul.mubr.msk.f32.gmra.mxu1 %vm312_vm7, %v15497_v20 }
0x2799   :  { %11560 = vmatprep.mubr.msk.f32.mxu1 %vm13134_vm1, %v16629_v34 }
0x279c   :  { %11561 = vmatmul.mubr.msk.f32.gmra.mxu1 %vm312_vm7, %v15506_v56 }
0x279d   :  { %11598 = vmatprep.mubr.msk.f32.mxu1 %vm312_vm7, %v15513_v53 }
0x284c   :  { %v6537_v0 = vpop.f32.mrf.mxu1 }
0x284d   :  { %v15522_v23 = vadd.f32 %v6537_v0, %v15122_v61 }
0x284e   :  { %v11550_v37 = vpop.f32.mrf.mxu1 }
0x284f   :  { %v6566_v47 = vand.u32 2147483647, %v15522_v23 }
0x2850   :  { %v6542_v44 = vpop.f32.mrf.mxu1 }
0x2851   :  { %v15518_v15 = vadd.f32 %v6542_v44, %v15117_v27  ;;  %v6571_v46 = vsub.f32 0.0, %v6566_v47 }
0x2852   :  { %v11553_v63 = vpop.f32.mrf.mxu1 }
0x2853   :  { %v6567_v26 = vand.u32 2147483647, %v15518_v15  ;;  %v6576_v22 = vmul.f32 1.442695, %v6571_v46 }
0x2854   :  { %v6547_v32 = vpop.f32.mrf.mxu1 }
0x2855   :  { %v15525_v5 = vadd.f32 %v6547_v32, %v15115_v21  ;;  %v6572_v54 = vsub.f32 0.0, %v6567_v26 }
0x2856   :  { %v11556_v12 = vpop.f32.mrf.mxu1 }
0x2857   :  { %v6568_v9 = vand.u32 2147483647, %v15525_v5  ;;  %v6578_v10 = vmul.f32 1.442695, %v6572_v54 }
0x2858   :  { %v6552_v51 = vpop.f32.mrf.mxu1 }
0x2859   :  { %v6573_v29 = vsub.f32 0.0, %v6568_v9  ;;  %v15530_v16 = vadd.f32 %v6552_v51, %v15113_v40  ;;  %12675 = vpow2.f32 %v6578_v10 }
0x285a   :  { %v11559_v8 = vpop.f32.mrf.mxu1 }
0x285b   :  { %v6569_v43 = vand.u32 2147483647, %v15530_v16  ;;  %v6580_v1 = vmul.f32 1.442695, %v6573_v29 }
0x285c   :  { %v6557_v19 = vpop.f32.mrf.mxu1 }
0x285d   :  { %v6574_v31 = vsub.f32 0.0, %v6569_v43  ;;  %v6558_v6 = vadd.f32 %v6557_v19, %v15111_v52  ;;  %12677 = vpow2.f32 %v6580_v1 }
0x285e   :  { %v11562_v55 = vpop.f32.mrf.mxu1 }
0x285f   :  { %v6582_v3 = vmul.f32 1.442695, %v6574_v31  ;;  %v6570_v41 = vand.u32 2147483647, %v6558_v6 }
0x2861   :  { %12679 = vpow2.f32 %v6582_v3  ;;  %v6575_v24 = vsub.f32 0.0, %v6570_v41 }
0x2862   :  { %12681 = vpow2.f32 %v6576_v22  ;;  %v6565_v22 = vmax.f32 %v6558_v6, 0.0 }
0x2863   :  { %v6584_v36 = vmul.f32 1.442695, %v6575_v24 }
0x2865   :  { %12683 = vpow2.f32 %v6584_v36 }
0x2866   :  { %v12676_v30 = vpop.eup %12675 }
0x2867   :  { %v6595_v0 = vadd.f32 1.0, %v12676_v30  ;;  %v6598_v47 = vmul.f32 -0.5, %v12676_v30 }
0x2869   :  { %v6599_v3 = vadd.f32 1.0, %v6598_v47 }
0x286a   :  { %v12678_v35 = vpop.eup %12677 }
0x286b   :  { %v6604_v59 = vadd.f32 1.0, %v12678_v35  ;;  %v6607_v12 = vmul.f32 -0.5, %v12678_v35  ;;  %v6610_v41 = vand.u32 2147483647, %v12678_v35  ;;  %v6600_v47 = vmul.f32 %v12676_v30, %v6599_v3 }
0x286d   :  { %v6608_v1 = vadd.f32 1.0, %v6607_v12  ;;  %vm6611_vm3 = vcmp.lt.f32.partialorder %v6610_v41, 0.0004427343  ;;  %v6564_v12 = vmax.f32 %v15530_v16, 0.0 }
0x286e   :  { %v12680_v60 = vpop.eup %12679 }
0x286f   :  { %v6613_v38 = vadd.f32 1.0, %v12680_v60  ;;  %v12682_v42 = vpop.eup %12681  ;;  %v6616_v26 = vmul.f32 -0.5, %v12680_v60  ;;  %v6619_v10 = vand.u32 2147483647, %v12680_v60 }
0x2870   :  { %v6586_v44 = vadd.f32 1.0, %v12682_v42  ;;  %v6589_v9 = vmul.f32 -0.5, %v12682_v42  ;;  %v6592_v40 = vand.u32 2147483647, %v12682_v42 }
0x2871   :  { %12685 = vlog2.f32 %v6613_v38  ;;  %v6617_v51 = vadd.f32 1.0, %v6616_v26  ;;  %vm6620_vm15 = vcmp.lt.f32.partialorder %v6619_v10, 0.0004427343  ;;  %v6609_v26 = vmul.f32 %v12678_v35, %v6608_v1 }
0x2872   :  { %v12684_v37 = vpop.eup %12683  ;;  %12687 = vlog2.f32 %v6604_v59  ;;  %v6590_v55 = vadd.f32 1.0, %v6589_v9  ;;  %vm6593_vm5 = vcmp.lt.f32.partialorder %v6592_v40, 0.0004427343  ;;  %v6562_v35 = vmax.f32 %v15518_v15, 0.0  ;;  %v15545_v40 = vld [vmem:[%s16522_s1 + $0x160] sm:$0xff]  ;;  %v15555_v15 = vld [vmem:[%s16522_s1 + $0x168] sm:$0xff] }
0x2873   :  { %v6622_v63 = vadd.f32 1.0, %v12684_v37  ;;  %12689 = vlog2.f32 %v6595_v0  ;;  %v6625_v32 = vmul.f32 -0.5, %v12684_v37  ;;  %v6628_v43 = vand.u32 2147483647, %v12684_v37 }
0x2874   :  { %v6618_v36 = vmul.f32 %v12680_v60, %v6617_v51  ;;  %v6563_v60 = vmax.f32 %v15525_v5, 0.0  ;;  %v6591_v51 = vmul.f32 %v12682_v42, %v6590_v55  ;;  %v15582_v42 = vld [vmem:[%s16522_s1 + $0x180] sm:$0xff] }
0x2875   :  { %12691 = vlog2.f32 %v6622_v63  ;;  %v6626_v29 = vadd.f32 1.0, %v6625_v32  ;;  %vm6629_vm2 = vcmp.lt.f32.partialorder %v6628_v43, 0.0004427343 }
0x2876   :  { %12693 = vlog2.f32 %v6586_v44  ;;  %v6601_v44 = vand.u32 2147483647, %v12676_v30  ;;  %v15573_v30 = vld [vmem:[%s16522_s1 + $0x178] sm:$0xff] }
0x2877   :  { %v6627_v59 = vmul.f32 %v12684_v37, %v6626_v29 }
0x2878   :  { %vm6602_vm4 = vcmp.lt.f32.partialorder %v6601_v44, 0.0004427343 }
0x287e   :  { %v12686_v54 = vpop.eup %12685 }
0x287f   :  { %v12688_v8 = vpop.eup %12687  ;;  %v6615_v19 = vmul.f32 0.6931472, %v12686_v54 }
0x2880   :  { %v12690_v46 = vpop.eup %12689  ;;  %v6606_v24 = vmul.f32 0.6931472, %v12688_v8 }
0x2881   :  { %v6597_v63 = vmul.f32 0.6931472, %v12690_v46  ;;  %v6621_v32 = vsel %vm6620_vm15, %v6618_v36, %v6615_v19 }
0x2882   :  { %v12692_v31 = vpop.eup %12691  ;;  %v6612_v6 = vsel %vm6611_vm3, %v6609_v26, %v6606_v24  ;;  %v6634_v37 = vadd.f32 %v6621_v32, %v6564_v12 }
0x2883   :  { %v6624_v38 = vmul.f32 0.6931472, %v12692_v31  ;;  %v12694_v0 = vpop.eup %12693  ;;  %v6603_v29 = vsel %vm6602_vm4, %v6600_v47, %v6597_v63  ;;  %v6633_v8 = vadd.f32 %v6612_v6, %v6563_v60 }
0x2884   :  { %v6588_v9 = vmul.f32 0.6931472, %v12694_v0  ;;  %v6632_v16 = vadd.f32 %v6603_v29, %v6562_v35 }
0x2885   :  { %v6630_v52 = vsel %vm6629_vm2, %v6627_v59, %v6624_v38 }
0x2886   :  { %v6635_v54 = vadd.f32 %v6630_v52, %v6565_v22  ;;  %v6594_v10 = vsel %vm6593_vm5, %v6591_v51, %v6588_v9  ;;  %v6561_v52 = vmax.f32 %v15522_v23, 0.0  ;;  %v15564_v23 = vld [vmem:[%s16522_s1 + $0x170] sm:$0xff] }
0x2888   :  { %11564 = vmatpush3.msra.mxu0 %v6635_v54  ;;  %v6631_v5 = vadd.f32 %v6594_v10, %v6561_v52 }
0x2889   :  { %11565 = vmatprep.subr.mxu0 %v16629_v34 }
0x288a   :  { %11566 = vmatpush3.msra.mxu0 %v6634_v37 }
0x288b   :  { %11567 = vmatprep.subr.mxu0 %v16629_v34 }
0x288c   :  { %11568 = vmatpush3.msra.mxu0 %v6633_v8 }
0x288d   :  { %11569 = vmatprep.subr.mxu0 %v16629_v34 }
0x288e   :  { %11570 = vmatpush3.msra.mxu0 %v6632_v16 }
0x288f   :  { %11571 = vmatprep.subr.mxu0 %v16629_v34 }
0x2890   :  { %11572 = vmatpush3.msra.mxu0 %v6631_v5 }
0x2891   :  { %11574 = vmatmul.mubr.msk.f32.vlgmr.msra.gmra.mxu0 %vm312_vm7, %v15545_v40  ;;  %11620 = vmatprep.subr.mxu0 %v16629_v34 }
0x2892   :  { %11576 = vmatprep.mubr.msk.f32.mxu0 %vm13134_vm1, %v16629_v34 }
0x2895   :  { %11577 = vmatmul.mubr.msk.f32.gmra.mxu0 %vm312_vm7, %v15555_v15 }
0x2896   :  { %11579 = vmatprep.mubr.msk.f32.mxu0 %vm13134_vm1, %v16629_v34 }
0x2899   :  { %11580 = vmatmul.mubr.msk.f32.gmra.mxu0 %vm312_vm7, %v15564_v23 }
0x289a   :  { %11582 = vmatprep.mubr.msk.f32.mxu0 %vm13134_vm1, %v16629_v34 }
0x289d   :  { %11583 = vmatmul.mubr.msk.f32.gmra.mxu0 %vm312_vm7, %v15573_v30 }
0x289e   :  { %11585 = vmatprep.mubr.msk.f32.mxu0 %vm13134_vm1, %v16629_v34 }
0x28a1   :  { %11586 = vmatmul.mubr.msk.f32.gmra.mxu0 %vm312_vm7, %v15582_v42 }
0x28a2   :  { %11630 = vmatprep.mubr.msk.f32.mxu0 %vm13134_vm1, %v16629_v34 }
0x2951   :  { %v6702_v43 = vpop.f32.mrf.mxu0 }
0x2952   :  { %v15592_v55 = vadd.f32 %v6702_v43, %v15210_v18 }
0x2953   :  { %v11575_v46 = vpop.f32.mrf.mxu0 }
0x2954   :  { %v6731_v36 = vand.u32 2147483647, %v15592_v55 }
0x2955   :  { %v6707_v1 = vpop.f32.mrf.mxu0 }
0x2956   :  { %v15589_v19 = vadd.f32 %v6707_v1, %v15205_v62  ;;  %v6736_v32 = vsub.f32 0.0, %v6731_v36 }
0x2957   :  { %v11578_v31 = vpop.f32.mrf.mxu0 }
0x2958   :  { %v6732_v3 = vand.u32 2147483647, %v15589_v19  ;;  %v6741_v51 = vmul.f32 1.442695, %v6736_v32 }
0x2959   :  { %v6712_v41 = vpop.f32.mrf.mxu0 }
0x295a   :  { %v15596_v22 = vadd.f32 %v6712_v41, %v16686_v49  ;;  %v6737_v59 = vsub.f32 0.0, %v6732_v3 }
0x295b   :  { %v11581_v24 = vpop.f32.mrf.mxu0 }
0x295c   :  { %v6733_v38 = vand.u32 2147483647, %v15596_v22  ;;  %v6743_v9 = vmul.f32 1.442695, %v6737_v59 }
0x295d   :  { %v6717_v0 = vpop.f32.mrf.mxu0 }
0x295e   :  { %v6738_v44 = vsub.f32 0.0, %v6733_v38  ;;  %v15601_v63 = vadd.f32 %v6717_v0, %v16687_v13 }
0x295f   :  { %v11584_v26 = vpop.f32.mrf.mxu0 }
0x2960   :  { %v6745_v12 = vmul.f32 1.442695, %v6738_v44  ;;  %v6734_v54 = vand.u32 2147483647, %v15601_v63 }
0x2961   :  { %v6722_v47 = vpop.f32.mrf.mxu0 }
0x2962   :  { %v6739_v6 = vsub.f32 0.0, %v6734_v54  ;;  %v6723_v60 = vadd.f32 %v6722_v47, %v16688_v50  ;;  %12695 = vpow2.f32 %v6745_v12 }
0x2963   :  { %v11587_v37 = vpop.f32.mrf.mxu0  ;;  %12697 = vpow2.f32 %v6743_v9 }
0x2964   :  { %v6747_v29 = vmul.f32 1.442695, %v6739_v6  ;;  %v6735_v35 = vand.u32 2147483647, %v6723_v60 }
0x2966   :  { %12699 = vpow2.f32 %v6747_v29  ;;  %v6740_v8 = vsub.f32 0.0, %v6735_v35  ;;  %v6730_v35 = vmax.f32 %v6723_v60, 0.0 }
0x2967   :  { %12701 = vpow2.f32 %v6741_v51 }
0x2968   :  { %v6749_v10 = vmul.f32 1.442695, %v6740_v8 }
0x296a   :  { %12703 = vpow2.f32 %v6749_v10 }
0x296f   :  { %v12696_v52 = vpop.eup %12695 }
0x2970   :  { %v12698_v16 = vpop.eup %12697  ;;  %v6769_v46 = vadd.f32 1.0, %v12696_v52  ;;  %v6772_v59 = vmul.f32 -0.5, %v12696_v52  ;;  %v6775_v8 = vand.u32 2147483647, %v12696_v52 }
0x2971   :  { %v6760_v31 = vadd.f32 1.0, %v12698_v16  ;;  %v6763_v44 = vmul.f32 -0.5, %v12698_v16 }
0x2972   :  { %v6773_v51 = vadd.f32 1.0, %v6772_v59  ;;  %vm6776_vm9 = vcmp.lt.f32.partialorder %v6775_v8, 0.0004427343 }
0x2973   :  { %v12700_v5 = vpop.eup %12699  ;;  %v6764_v10 = vadd.f32 1.0, %v6763_v44 }
0x2974   :  { %v6778_v43 = vadd.f32 1.0, %v12700_v5  ;;  %v12702_v1 = vpop.eup %12701  ;;  %v6781_v38 = vmul.f32 -0.5, %v12700_v5  ;;  %v6784_v47 = vand.u32 2147483647, %v12700_v5  ;;  %v6774_v49 = vmul.f32 %v12696_v52, %v6773_v51 }
0x2975   :  { %v6751_v24 = vadd.f32 1.0, %v12702_v1  ;;  %v6754_v26 = vmul.f32 -0.5, %v12702_v1  ;;  %v6757_v60 = vand.u32 2147483647, %v12702_v1  ;;  %v6765_v44 = vmul.f32 %v12698_v16, %v6764_v10 }
0x2976   :  { %12705 = vlog2.f32 %v6778_v43  ;;  %v6782_v12 = vadd.f32 1.0, %v6781_v38  ;;  %vm6785_vm8 = vcmp.lt.f32.partialorder %v6784_v47, 0.0004427343 }
0x2977   :  { %v12704_v3 = vpop.eup %12703  ;;  %12707 = vlog2.f32 %v6769_v46  ;;  %v6755_v43 = vadd.f32 1.0, %v6754_v26  ;;  %vm6758_vm11 = vcmp.lt.f32.partialorder %v6757_v60, 0.0004427343 }
0x2978   :  { %v6787_v41 = vadd.f32 1.0, %v12704_v3  ;;  %12709 = vlog2.f32 %v6760_v31  ;;  %v6790_v36 = vmul.f32 -0.5, %v12704_v3  ;;  %v6793_v9 = vand.u32 2147483647, %v12704_v3 }
0x297a   :  { %12711 = vlog2.f32 %v6787_v41  ;;  %v6791_v32 = vadd.f32 1.0, %v6790_v36  ;;  %v6783_v41 = vmul.f32 %v12700_v5, %v6782_v12  ;;  %vm6794_vm6 = vcmp.lt.f32.partialorder %v6793_v9, 0.0004427343 }
0x297b   :  { %12713 = vlog2.f32 %v6751_v24  ;;  %v6766_v36 = vand.u32 2147483647, %v12698_v16  ;;  %v6756_v12 = vmul.f32 %v12702_v1, %v6755_v43  ;;  %v6726_v9 = vmax.f32 %v15592_v55, 0.0 }
0x297c   :  { %v6792_v31 = vmul.f32 %v12704_v3, %v6791_v32  ;;  %v6728_v3 = vmax.f32 %v15596_v22, 0.0 }
0x297d   :  { %vm6767_vm10 = vcmp.lt.f32.partialorder %v6766_v36, 0.0004427343 }
0x2983   :  { %v12706_v0 = vpop.eup %12705 }
0x2984   :  { %v12708_v54 = vpop.eup %12707  ;;  %v6780_v37 = vmul.f32 0.6931472, %v12706_v0  ;;  %v6729_v0 = vmax.f32 %v15601_v63, 0.0 }
0x2985   :  { %v12710_v6 = vpop.eup %12709  ;;  %v6771_v24 = vmul.f32 0.6931472, %v12708_v54  ;;  %v6727_v54 = vmax.f32 %v15589_v19, 0.0 }
0x2986   :  { %v6786_v13 = vsel %vm6785_vm8, %v6783_v41, %v6780_v37  ;;  %v6762_v18 = vmul.f32 0.6931472, %v12710_v6 }
0x2987   :  { %v12712_v29 = vpop.eup %12711  ;;  %v6777_v62 = vsel %vm6776_vm9, %v6774_v49, %v6771_v24  ;;  %v6799_v5 = vadd.f32 %v6786_v13, %v6729_v0 }
0x2988   :  { %v6789_v46 = vmul.f32 0.6931472, %v12712_v29  ;;  %v12714_v50 = vpop.eup %12713  ;;  %v6768_v32 = vsel %vm6767_vm10, %v6765_v44, %v6762_v18  ;;  %v6798_v52 = vadd.f32 %v6777_v62, %v6728_v3  ;;  %v15612_v18 = vld [vmem:[%s16522_s1 + $0x190] sm:$0xff] }
0x2989   :  { %v6753_v26 = vmul.f32 0.6931472, %v12714_v50  ;;  %v6797_v49 = vadd.f32 %v6768_v32, %v6727_v54 }
0x298a   :  { %v6795_v38 = vsel %vm6794_vm6, %v6792_v31, %v6789_v46 }
0x298b   :  { %v6800_v59 = vadd.f32 %v6795_v38, %v6730_v35  ;;  %v6759_v63 = vsel %vm6758_vm11, %v6756_v12, %v6753_v26 }
0x298c   :  { %v6796_v50 = vadd.f32 %v6759_v63, %v6726_v9 }
0x298d   :  { %11588 = vmatprep.subr.mxu1 %v6800_v59 }
0x298e   :  { %11589 = vmatpush3.msra.mxu1 %v6800_v59 }
0x298f   :  { %11590 = vmatprep.subr.mxu1 %v6799_v5 }
0x2990   :  { %11591 = vmatpush3.msra.mxu1 %v6799_v5 }
0x2991   :  { %11592 = vmatprep.subr.mxu1 %v6798_v52 }
0x2992   :  { %11593 = vmatpush3.msra.mxu1 %v6798_v52 }
0x2993   :  { %11594 = vmatprep.subr.mxu1 %v6797_v49 }
0x2994   :  { %11595 = vmatpush3.msra.mxu1 %v6797_v49 }
0x2995   :  { %11596 = vmatprep.subr.mxu1 %v6796_v50 }
0x2996   :  { %11597 = vmatpush3.msra.mxu1 %v6796_v50 }
0x2997   :  { %11599 = vmatmul.mubr.msk.f32.vlgmr.msra.gmra.mxu1 %vm312_vm7, %v15612_v18  ;;  %11601 = vmatprep.subr.mxu1 %v16629_v34 }
0x2998   :  { %11605 = vmatprep.mubr.msk.f32.mxu1 %vm13134_vm1, %v16629_v34 }
0x2a57   :  { %v11600_v62 = vpop.f32.mrf.mxu1 }
0x2a58   :  { %v6873_v13 = vadd.f32 %v11600_v62, %v15240_v25 }
0x2a59   :  { %v6867_v19 = vpop.f32.mrf.mxu1 }
0x2a5a   :  { %v6877_v55 = vmul.f32 0.16666667, %v6873_v13  ;;  %v6881_v22 = vmul.f32 0.5, %v6873_v13  ;;  %v6868_v16 = vadd.f32 %v6867_v19, %v15245_v48 }
0x2a5c   :  { %v15622_v1 = vadd.f32 %v6877_v55, %v15394_v45  ;;  %v6883_v47 = vadd.f32 %v6881_v22, %v14987_v57  ;;  %v6876_v6 = vmul.f32 0.16666667, %v6868_v16  ;;  %v6880_v37 = vmul.f32 0.5, %v6868_v16  ;;  %v6902_v57 = vpop.permute.xlu1 %6901  ;;  %v6898_v45 = vpop.permute.xlu0 %6897 }
0x2a5e   :  { %v15626_v51 = vadd.f32 %v6876_v6, %v15397_v7  ;;  %v6882_v29 = vadd.f32 %v6880_v37, %v14991_v4  ;;  %11602 = vmatpush3.msra.mxu1 %v6883_v47 }
0x2a5f   :  { %11603 = vmatprep.subr.mxu1 %v16629_v34 }
0x2a60   :  { %11604 = vmatpush3.msra.mxu1 %v6882_v29  ;;  %v6894_v4 = vpop.permute.xlu1 %6893  ;;  %v6886_v35 = vpop.permute.xlu0 %6885 }
0x2a61   :  { %11606 = vmatmul.mubr.msk.f32.vlgmr.msra.gmra.mxu1 %vm131_vm0, %v15404_v2  ;;  %11645 = vmatprep.subr.mxu1 %v16629_v34 }
0x2a62   :  { %11608 = vmatprep.mubr.msk.f32.mxu1 %vm13134_vm1, %v16629_v34 }
0x2a65   :  { %11609 = vmatmul.mubr.msk.f32.gmra.mxu1 %vm131_vm0, %v15414_v28  ;;  %v6890_v28 = vpop.permute.xlu1 %6889 }
0x2a66   :  { %11611 = vmatprep.mubr.msk.f32.mxu1 %vm13134_vm1, %v16629_v34 }
0x2a69   :  { %11612 = vmatmul.mubr.msk.f32.gmra.mxu1 %vm131_vm0, %v15423_v14 }
0x2a6a   :  { %11614 = vmatprep.mubr.msk.f32.mxu1 %vm13134_vm1, %v16629_v34 }
0x2a6d   :  { %11615 = vmatmul.mubr.msk.f32.gmra.mxu1 %vm131_vm0, %v15432_v17 }
0x2a6e   :  { %11617 = vmatprep.mubr.msk.f32.mxu1 %vm13134_vm1, %v16629_v34 }
0x2a71   :  { %11618 = vmatmul.mubr.msk.f32.gmra.mxu1 %vm131_vm0, %v15441_v58 }
0x2a72   :  { %11655 = vmatprep.mubr.msk.f32.mxu1 %vm13134_vm1, %v16629_v34 }
0x2b21   :  { %v6970_v7 = vpop.f32.mrf.mxu1 }
0x2b22   :  { %v15654_v43 = vadd.f32 %v6970_v7, %v6886_v35 }
0x2b23   :  { %v11607_v2 = vpop.f32.mrf.mxu1 }
0x2b24   :  { %v6999_v36 = vand.u32 2147483647, %v15654_v43 }
0x2b25   :  { %v6975_v14 = vpop.f32.mrf.mxu1 }
0x2b26   :  { %v15651_v8 = vadd.f32 %v6975_v14, %v6890_v28  ;;  %v7004_v3 = vsub.f32 0.0, %v6999_v36 }
0x2b27   :  { %v11610_v17 = vpop.f32.mrf.mxu1 }
0x2b28   :  { %v7000_v10 = vand.u32 2147483647, %v15651_v8  ;;  %v7009_v49 = vmul.f32 1.442695, %v7004_v3 }
0x2b29   :  { %v6980_v46 = vpop.f32.mrf.mxu1 }
0x2b2a   :  { %v15656_v58 = vadd.f32 %v6980_v46, %v6894_v4  ;;  %v7005_v41 = vsub.f32 0.0, %v7000_v10 }
0x2b2b   :  { %v11613_v31 = vpop.f32.mrf.mxu1 }
0x2b2c   :  { %v7001_v24 = vand.u32 2147483647, %v15656_v58  ;;  %v7011_v44 = vmul.f32 1.442695, %v7005_v41 }
0x2b2d   :  { %v6985_v38 = vpop.f32.mrf.mxu1 }
0x2b2e   :  { %v7006_v0 = vsub.f32 0.0, %v7001_v24  ;;  %v15660_v59 = vadd.f32 %v6985_v38, %v6898_v45  ;;  %12715 = vpow2.f32 %v7011_v44 }
0x2b2f   :  { %v11616_v60 = vpop.f32.mrf.mxu1 }
0x2b30   :  { %v7002_v26 = vand.u32 2147483647, %v15660_v59  ;;  %v7013_v5 = vmul.f32 1.442695, %v7006_v0 }
0x2b31   :  { %v6990_v32 = vpop.f32.mrf.mxu1 }
0x2b32   :  { %v7007_v12 = vsub.f32 0.0, %v7002_v26  ;;  %v6991_v54 = vadd.f32 %v6990_v32, %v6902_v57  ;;  %12717 = vpow2.f32 %v7013_v5 }
0x2b33   :  { %v11619_v52 = vpop.f32.mrf.mxu1 }
0x2b34   :  { %v7015_v63 = vmul.f32 1.442695, %v7007_v12  ;;  %v7003_v9 = vand.u32 2147483647, %v6991_v54  ;;  %v6998_v26 = vmax.f32 %v6991_v54, 0.0 }
0x2b36   :  { %12719 = vpow2.f32 %v7015_v63  ;;  %v7008_v50 = vsub.f32 0.0, %v7003_v9 }
0x2b37   :  { %12721 = vpow2.f32 %v7009_v49 }
0x2b38   :  { %v7017_v62 = vmul.f32 1.442695, %v7008_v50 }
0x2b3a   :  { %12723 = vpow2.f32 %v7017_v62 }
0x2b3b   :  { %v12716_v13 = vpop.eup %12715 }
0x2b3c   :  { %v7028_v6 = vadd.f32 1.0, %v12716_v13  ;;  %v7031_v14 = vmul.f32 -0.5, %v12716_v13  ;;  %v7034_v63 = vand.u32 2147483647, %v12716_v13 }
0x2b3e   :  { %v7032_v60 = vadd.f32 1.0, %v7031_v14  ;;  %vm7035_vm15 = vcmp.lt.f32.partialorder %v7034_v63, 0.0004427343 }
0x2b3f   :  { %v12718_v19 = vpop.eup %12717 }
0x2b40   :  { %v7037_v16 = vadd.f32 1.0, %v12718_v19  ;;  %v7040_v7 = vmul.f32 -0.5, %v12718_v19  ;;  %v7043_v44 = vand.u32 2147483647, %v12718_v19 }
0x2b42   :  { %v7041_v24 = vadd.f32 1.0, %v7040_v7  ;;  %vm7044_vm14 = vcmp.lt.f32.partialorder %v7043_v44, 0.0004427343 }
0x2b43   :  { %v12720_v55 = vpop.eup %12719 }
0x2b44   :  { %v7046_v22 = vadd.f32 1.0, %v12720_v55  ;;  %v12722_v47 = vpop.eup %12721  ;;  %v7049_v4 = vmul.f32 -0.5, %v12720_v55  ;;  %v7052_v46 = vand.u32 2147483647, %v12720_v55  ;;  %v7042_v49 = vmul.f32 %v12718_v19, %v7041_v24 }
0x2b45   :  { %v7019_v29 = vadd.f32 1.0, %v12722_v47  ;;  %v7022_v28 = vmul.f32 -0.5, %v12722_v47  ;;  %v6995_v19 = vmax.f32 %v15651_v8, 0.0 }
0x2b46   :  { %12725 = vlog2.f32 %v7046_v22  ;;  %v7050_v35 = vadd.f32 1.0, %v7049_v4  ;;  %vm7053_vm12 = vcmp.lt.f32.partialorder %v7052_v46, 0.0004427343  ;;  %v7025_v22 = vand.u32 2147483647, %v12722_v47 }
0x2b47   :  { %v12724_v37 = vpop.eup %12723  ;;  %12727 = vlog2.f32 %v7037_v16  ;;  %v7023_v0 = vadd.f32 1.0, %v7022_v28  ;;  %v6997_v16 = vmax.f32 %v15660_v59, 0.0  ;;  %v6994_v59 = vmax.f32 %v15654_v43, 0.0 }
0x2b48   :  { %v7055_v57 = vadd.f32 1.0, %v12724_v37  ;;  %12729 = vlog2.f32 %v7028_v6  ;;  %v7058_v45 = vmul.f32 -0.5, %v12724_v37  ;;  %v7061_v31 = vand.u32 2147483647, %v12724_v37 }
0x2b49   :  { %v7051_v5 = vmul.f32 %v12720_v55, %v7050_v35  ;;  %v6996_v55 = vmax.f32 %v15656_v58, 0.0  ;;  %v7024_v4 = vmul.f32 %v12722_v47, %v7023_v0  ;;  %vm7026_vm2 = vcmp.lt.f32.partialorder %v7025_v22, 0.0004427343 }
0x2b4a   :  { %12731 = vlog2.f32 %v7055_v57  ;;  %v7059_v17 = vadd.f32 1.0, %v7058_v45  ;;  %vm7062_vm13 = vcmp.lt.f32.partialorder %v7061_v31, 0.0004427343  ;;  %v7033_v57 = vmul.f32 %v12716_v13, %v7032_v60  ;;  %v16689_v31 = vld [vmem:[#allocation13_spill] sm:$0xff] }
0x2b4b   :  { %12733 = vlog2.f32 %v7019_v29 }
0x2b4c   :  { %v7060_v12 = vmul.f32 %v12724_v37, %v7059_v17 }
0x2b53   :  { %v12726_v2 = vpop.eup %12725 }
0x2b54   :  { %v12728_v10 = vpop.eup %12727  ;;  %v7048_v36 = vmul.f32 0.6931472, %v12726_v2 }
0x2b55   :  { %v12730_v41 = vpop.eup %12729  ;;  %v7039_v3 = vmul.f32 0.6931472, %v12728_v10 }
0x2b56   :  { %v7030_v9 = vmul.f32 0.6931472, %v12730_v41  ;;  %v7054_v50 = vsel %vm7053_vm12, %v7051_v5, %v7048_v36 }
0x2b57   :  { %v12732_v38 = vpop.eup %12731  ;;  %v7045_v54 = vsel %vm7044_vm14, %v7042_v49, %v7039_v3  ;;  %v7067_v37 = vadd.f32 %v7054_v50, %v6997_v16  ;;  %v16690_v3 = vld [vmem:[#allocation7_spill] sm:$0xff] }
0x2b58   :  { %v7057_v32 = vmul.f32 0.6931472, %v12732_v38  ;;  %v12734_v52 = vpop.eup %12733  ;;  %v7036_v45 = vsel %vm7035_vm15, %v7033_v57, %v7030_v9  ;;  %v7066_v7 = vadd.f32 %v7045_v54, %v6996_v55 }
0x2b59   :  { %v7021_v29 = vmul.f32 0.6931472, %v12734_v52  ;;  %v7065_v13 = vadd.f32 %v7036_v45, %v6995_v19 }
0x2b5a   :  { %v7063_v62 = vsel %vm7062_vm13, %v7060_v12, %v7057_v32 }
0x2b5b   :  { %v7068_v6 = vadd.f32 %v7063_v62, %v6998_v26  ;;  %v7027_v2 = vsel %vm7026_vm2, %v7024_v4, %v7021_v29 }
0x2b5c   :  { %v7064_v58 = vadd.f32 %v7027_v2, %v6994_v59 }
0x2b5d   :  { %11621 = vmatpush3.msra.mxu0 %v7068_v6 }
0x2b5e   :  { %11622 = vmatprep.subr.mxu0 %v16629_v34 }
0x2b5f   :  { %11623 = vmatpush3.msra.mxu0 %v7067_v37 }
0x2b60   :  { %11624 = vmatprep.subr.mxu0 %v16629_v34 }
0x2b61   :  { %11625 = vmatpush3.msra.mxu0 %v7066_v7 }
0x2b62   :  { %11626 = vmatprep.subr.mxu0 %v16629_v34 }
0x2b63   :  { %11627 = vmatpush3.msra.mxu0 %v7065_v13 }
0x2b64   :  { %11628 = vmatprep.subr.mxu0 %v16629_v34 }
0x2b65   :  { %11629 = vmatpush3.msra.mxu0 %v7064_v58 }
0x2b66   :  { %11631 = vmatmul.mubr.msk.f32.vlgmr.msra.gmra.mxu0 %vm312_vm7, %v15470_v39 }
0x2b67   :  { %11633 = vmatprep.mubr.msk.f32.mxu0 %vm13134_vm1, %v16629_v34 }
0x2b6a   :  { %11634 = vmatmul.mubr.msk.f32.gmra.mxu0 %vm312_vm7, %v15479_v33 }
0x2b6b   :  { %11636 = vmatprep.mubr.msk.f32.mxu0 %vm13134_vm1, %v16629_v34 }
0x2b6e   :  { %11637 = vmatmul.mubr.msk.f32.gmra.mxu0 %vm312_vm7, %v15488_v11 }
0x2b6f   :  { %11639 = vmatprep.mubr.msk.f32.mxu0 %vm13134_vm1, %v16629_v34 }
0x2b72   :  { %11640 = vmatmul.mubr.msk.f32.gmra.mxu0 %vm312_vm7, %v15497_v20 }
0x2b73   :  { %11642 = vmatprep.mubr.msk.f32.mxu0 %vm13134_vm1, %v16629_v34 }
0x2b76   :  { %11643 = vmatmul.mubr.msk.f32.gmra.mxu0 %vm312_vm7, %v15506_v56 }
0x2b77   :  { %11680 = vmatprep.mubr.msk.f32.mxu0 %vm312_vm7, %v15513_v53 }
0x2c26   :  { %v7135_v39 = vpop.f32.mrf.mxu0 }
0x2c27   :  { %v15696_v20 = vadd.f32 %v7135_v39, %v15122_v61 }
0x2c28   :  { %v11632_v33 = vpop.f32.mrf.mxu0 }
0x2c29   :  { %v7164_v17 = vand.u32 2147483647, %v15696_v20 }
0x2c2a   :  { %v7140_v8 = vpop.f32.mrf.mxu0 }
0x2c2b   :  { %v15692_v11 = vadd.f32 %v7140_v8, %v15117_v27  ;;  %v7169_v0 = vsub.f32 0.0, %v7164_v17 }
0x2c2c   :  { %v11635_v43 = vpop.f32.mrf.mxu0 }
0x2c2d   :  { %v7165_v47 = vand.u32 2147483647, %v15692_v11  ;;  %v7174_v63 = vmul.f32 1.442695, %v7169_v0 }
0x2c2e   :  { %v7145_v28 = vpop.f32.mrf.mxu0 }
0x2c2f   :  { %v15699_v14 = vadd.f32 %v7145_v28, %v15115_v21  ;;  %v7170_v35 = vsub.f32 0.0, %v7165_v47 }
0x2c30   :  { %v11638_v56 = vpop.f32.mrf.mxu0 }
0x2c31   :  { %v7166_v53 = vand.u32 2147483647, %v15699_v14  ;;  %v7176_v36 = vmul.f32 1.442695, %v7170_v35 }
0x2c32   :  { %v7150_v10 = vpop.f32.mrf.mxu0 }
0x2c33   :  { %v7171_v46 = vsub.f32 0.0, %v7166_v53  ;;  %v15704_v41 = vadd.f32 %v7150_v10, %v16689_v31  ;;  %12735 = vpow2.f32 %v7176_v36 }
0x2c34   :  { %v11641_v24 = vpop.f32.mrf.mxu0 }
0x2c35   :  { %v7167_v38 = vand.u32 2147483647, %v15704_v41  ;;  %v7178_v60 = vmul.f32 1.442695, %v7171_v46 }
0x2c36   :  { %v7155_v44 = vpop.f32.mrf.mxu0 }
0x2c37   :  { %v7172_v26 = vsub.f32 0.0, %v7167_v38  ;;  %v7156_v5 = vadd.f32 %v7155_v44, %v16690_v3  ;;  %12737 = vpow2.f32 %v7178_v60 }
0x2c38   :  { %v11644_v32 = vpop.f32.mrf.mxu0 }
0x2c39   :  { %v7180_v12 = vmul.f32 1.442695, %v7172_v26  ;;  %v7168_v52 = vand.u32 2147483647, %v7156_v5  ;;  %v7163_v10 = vmax.f32 %v7156_v5, 0.0 }
0x2c3b   :  { %12739 = vpow2.f32 %v7180_v12  ;;  %v7173_v9 = vsub.f32 0.0, %v7168_v52 }
0x2c3c   :  { %12741 = vpow2.f32 %v7174_v63  ;;  %v7162_v63 = vmax.f32 %v15704_v41, 0.0  ;;  %v7159_v41 = vmax.f32 %v15696_v20, 0.0  ;;  %v16691_v20 = vld [vmem:[#allocation3_spill] sm:$0xff] }
0x2c3d   :  { %v7182_v49 = vmul.f32 1.442695, %v7173_v9 }
0x2c3f   :  { %12743 = vpow2.f32 %v7182_v49 }
0x2c40   :  { %v12736_v50 = vpop.eup %12735 }
0x2c41   :  { %v7193_v57 = vadd.f32 1.0, %v12736_v50  ;;  %v7196_v59 = vmul.f32 -0.5, %v12736_v50  ;;  %v7199_v60 = vand.u32 2147483647, %v12736_v50 }
0x2c43   :  { %v7197_v53 = vadd.f32 1.0, %v7196_v59  ;;  %vm7200_vm6 = vcmp.lt.f32.partialorder %v7199_v60, 0.0004427343 }
0x2c44   :  { %v12738_v62 = vpop.eup %12737 }
0x2c45   :  { %v7202_v6 = vadd.f32 1.0, %v12738_v62  ;;  %v7205_v19 = vmul.f32 -0.5, %v12738_v62  ;;  %v7208_v17 = vand.u32 2147483647, %v12738_v62 }
0x2c47   :  { %v7206_v47 = vadd.f32 1.0, %v7205_v19  ;;  %vm7209_vm5 = vcmp.lt.f32.partialorder %v7208_v17, 0.0004427343 }
0x2c48   :  { %v12740_v22 = vpop.eup %12739 }
0x2c49   :  { %v7211_v16 = vadd.f32 1.0, %v12740_v22  ;;  %v12742_v29 = vpop.eup %12741  ;;  %v7214_v4 = vmul.f32 -0.5, %v12740_v22  ;;  %v7217_v33 = vand.u32 2147483647, %v12740_v22  ;;  %v7207_v26 = vmul.f32 %v12738_v62, %v7206_v47 }
0x2c4a   :  { %v7184_v55 = vadd.f32 1.0, %v12742_v29  ;;  %v7187_v2 = vmul.f32 -0.5, %v12742_v29  ;;  %v7190_v52 = vand.u32 2147483647, %v12742_v29  ;;  %v7160_v62 = vmax.f32 %v15692_v11, 0.0 }
0x2c4b   :  { %12745 = vlog2.f32 %v7211_v16  ;;  %v7215_v13 = vadd.f32 1.0, %v7214_v4  ;;  %vm7218_vm3 = vcmp.lt.f32.partialorder %v7217_v33, 0.0004427343  ;;  %v7198_v16 = vmul.f32 %v12736_v50, %v7197_v53  ;;  %v16692_v4 = vld [vmem:[#allocation2_spill] sm:$0xff] }
0x2c4c   :  { %v12744_v54 = vpop.eup %12743  ;;  %12747 = vlog2.f32 %v7202_v6  ;;  %v7188_v35 = vadd.f32 1.0, %v7187_v2  ;;  %vm7191_vm8 = vcmp.lt.f32.partialorder %v7190_v52, 0.0004427343 }
0x2c4d   :  { %v7220_v37 = vadd.f32 1.0, %v12744_v54  ;;  %12749 = vlog2.f32 %v7193_v57  ;;  %v7223_v45 = vmul.f32 -0.5, %v12744_v54  ;;  %v7226_v8 = vand.u32 2147483647, %v12744_v54 }
0x2c4e   :  { %v7216_v24 = vmul.f32 %v12740_v22, %v7215_v13  ;;  %v7161_v22 = vmax.f32 %v15699_v14, 0.0  ;;  %v7189_v57 = vmul.f32 %v12742_v29, %v7188_v35 }
0x2c4f   :  { %12751 = vlog2.f32 %v7220_v37  ;;  %v7224_v58 = vadd.f32 1.0, %v7223_v45  ;;  %vm7227_vm4 = vcmp.lt.f32.partialorder %v7226_v8, 0.0004427343  ;;  %v16694_v8 = vld [vmem:[#allocation6_spill] sm:$0xff] }
0x2c50   :  { %12753 = vlog2.f32 %v7184_v55 }
0x2c51   :  { %v7225_v38 = vmul.f32 %v12744_v54, %v7224_v58 }
0x2c58   :  { %v12746_v7 = vpop.eup %12745 }
0x2c59   :  { %v12748_v39 = vpop.eup %12747  ;;  %v7213_v28 = vmul.f32 0.6931472, %v12746_v7  ;;  %v16693_v7 = vld [vmem:[#allocation4_spill] sm:$0xff] }
0x2c5a   :  { %v12750_v43 = vpop.eup %12749  ;;  %v7204_v46 = vmul.f32 0.6931472, %v12748_v39 }
0x2c5b   :  { %v7195_v44 = vmul.f32 0.6931472, %v12750_v43  ;;  %v7219_v32 = vsel %vm7218_vm3, %v7216_v24, %v7213_v28 }
0x2c5c   :  { %v12752_v56 = vpop.eup %12751  ;;  %v7210_v5 = vsel %vm7209_vm5, %v7207_v26, %v7204_v46  ;;  %v7232_v6 = vadd.f32 %v7219_v32, %v7162_v63  ;;  %v16695_v46 = vld [vmem:[#allocation5_spill] sm:$0xff] }
0x2c5d   :  { %v7222_v36 = vmul.f32 0.6931472, %v12752_v56  ;;  %v12754_v0 = vpop.eup %12753  ;;  %v7201_v54 = vsel %vm7200_vm6, %v7198_v16, %v7195_v44  ;;  %v7231_v55 = vadd.f32 %v7210_v5, %v7161_v22 }
0x2c5e   :  { %v7186_v49 = vmul.f32 0.6931472, %v12754_v0  ;;  %v7230_v50 = vadd.f32 %v7201_v54, %v7160_v62 }
0x2c5f   :  { %v7228_v12 = vsel %vm7227_vm4, %v7225_v38, %v7222_v36 }
0x2c60   :  { %v7233_v9 = vadd.f32 %v7228_v12, %v7163_v10  ;;  %v7192_v37 = vsel %vm7191_vm8, %v7189_v57, %v7186_v49 }
0x2c61   :  { %v7229_v14 = vadd.f32 %v7192_v37, %v7159_v41 }
0x2c62   :  { %11646 = vmatpush3.msra.mxu1 %v7233_v9 }
0x2c63   :  { %11647 = vmatprep.subr.mxu1 %v16629_v34 }
0x2c64   :  { %11648 = vmatpush3.msra.mxu1 %v7232_v6 }
0x2c65   :  { %11649 = vmatprep.subr.mxu1 %v16629_v34 }
0x2c66   :  { %11650 = vmatpush3.msra.mxu1 %v7231_v55 }
0x2c67   :  { %11651 = vmatprep.subr.mxu1 %v16629_v34 }
0x2c68   :  { %11652 = vmatpush3.msra.mxu1 %v7230_v50 }
0x2c69   :  { %11653 = vmatprep.subr.mxu1 %v16629_v34 }
0x2c6a   :  { %11654 = vmatpush3.msra.mxu1 %v7229_v14 }
0x2c6b   :  { %11656 = vmatmul.mubr.msk.f32.vlgmr.msra.gmra.mxu1 %vm312_vm7, %v15545_v40  ;;  %11702 = vmatprep.subr.mxu1 %v16629_v34 }
0x2c6c   :  { %11658 = vmatprep.mubr.msk.f32.mxu1 %vm13134_vm1, %v16629_v34 }
0x2c6f   :  { %11659 = vmatmul.mubr.msk.f32.gmra.mxu1 %vm312_vm7, %v15555_v15 }
0x2c70   :  { %11661 = vmatprep.mubr.msk.f32.mxu1 %vm13134_vm1, %v16629_v34 }
0x2c73   :  { %11662 = vmatmul.mubr.msk.f32.gmra.mxu1 %vm312_vm7, %v15564_v23 }
0x2c74   :  { %11664 = vmatprep.mubr.msk.f32.mxu1 %vm13134_vm1, %v16629_v34 }
0x2c77   :  { %11665 = vmatmul.mubr.msk.f32.gmra.mxu1 %vm312_vm7, %v15573_v30 }
0x2c78   :  { %11667 = vmatprep.mubr.msk.f32.mxu1 %vm13134_vm1, %v16629_v34 }
0x2c7b   :  { %11668 = vmatmul.mubr.msk.f32.gmra.mxu1 %vm312_vm7, %v15582_v42 }
0x2c7c   :  { %11712 = vmatprep.mubr.msk.f32.mxu1 %vm13134_vm1, %v16629_v34 }
0x2d2b   :  { %v7300_v40 = vpop.f32.mrf.mxu1 }
0x2d2c   :  { %v15741_v45 = vadd.f32 %v7300_v40, %v16692_v4 }
0x2d2d   :  { %v11657_v15 = vpop.f32.mrf.mxu1 }
0x2d2e   :  { %v7329_v59 = vand.u32 2147483647, %v15741_v45 }
0x2d2f   :  { %v7305_v11 = vpop.f32.mrf.mxu1 }
0x2d30   :  { %v15738_v23 = vadd.f32 %v7305_v11, %v16691_v20  ;;  %v7334_v28 = vsub.f32 0.0, %v7329_v59 }
0x2d31   :  { %v11660_v29 = vpop.f32.mrf.mxu1 }
0x2d32   :  { %v7330_v30 = vand.u32 2147483647, %v15738_v23  ;;  %v7339_v38 = vmul.f32 1.442695, %v7334_v28 }
0x2d33   :  { %v7310_v19 = vpop.f32.mrf.mxu1 }
0x2d34   :  { %v15745_v2 = vadd.f32 %v7310_v19, %v16693_v7  ;;  %v7335_v58 = vsub.f32 0.0, %v7330_v30 }
0x2d35   :  { %v11663_v42 = vpop.f32.mrf.mxu1 }
0x2d36   :  { %v7331_v13 = vand.u32 2147483647, %v15745_v2  ;;  %v7341_v53 = vmul.f32 1.442695, %v7335_v58 }
0x2d37   :  { %v7315_v39 = vpop.f32.mrf.mxu1 }
0x2d38   :  { %v7336_v33 = vsub.f32 0.0, %v7331_v13  ;;  %v15750_v43 = vadd.f32 %v7315_v39, %v16694_v8 }
0x2d39   :  { %v11666_v47 = vpop.f32.mrf.mxu1 }
0x2d3a   :  { %v7343_v56 = vmul.f32 1.442695, %v7336_v33  ;;  %v7332_v35 = vand.u32 2147483647, %v15750_v43 }
0x2d3b   :  { %v7320_v17 = vpop.f32.mrf.mxu1 }
0x2d3c   :  { %v7337_v10 = vsub.f32 0.0, %v7332_v35  ;;  %v7321_v24 = vadd.f32 %v7320_v17, %v16695_v46  ;;  %12755 = vpow2.f32 %v7343_v56 }
0x2d3d   :  { %v11669_v36 = vpop.f32.mrf.mxu1  ;;  %12757 = vpow2.f32 %v7341_v53 }
0x2d3e   :  { %v7345_v0 = vmul.f32 1.442695, %v7337_v10  ;;  %v7333_v60 = vand.u32 2147483647, %v7321_v24  ;;  %v7328_v59 = vmax.f32 %v7321_v24, 0.0 }
0x2d40   :  { %12759 = vpow2.f32 %v7345_v0  ;;  %v7338_v44 = vsub.f32 0.0, %v7333_v60  ;;  %v7327_v0 = vmax.f32 %v15750_v43, 0.0 }
0x2d41   :  { %12761 = vpow2.f32 %v7339_v38 }
0x2d42   :  { %v7347_v26 = vmul.f32 1.442695, %v7338_v44 }
0x2d44   :  { %12763 = vpow2.f32 %v7347_v26 }
0x2d49   :  { %v12756_v32 = vpop.eup %12755 }
0x2d4a   :  { %v12758_v12 = vpop.eup %12757  ;;  %v7367_v9 = vadd.f32 1.0, %v12756_v32  ;;  %v7370_v62 = vmul.f32 -0.5, %v12756_v32  ;;  %v7373_v13 = vand.u32 2147483647, %v12756_v32 }
0x2d4b   :  { %v7358_v16 = vadd.f32 1.0, %v12758_v12  ;;  %v7361_v37 = vmul.f32 -0.5, %v12758_v12  ;;  %v7364_v53 = vand.u32 2147483647, %v12758_v12 }
0x2d4c   :  { %v7371_v19 = vadd.f32 1.0, %v7370_v62  ;;  %vm7374_vm11 = vcmp.lt.f32.partialorder %v7373_v13, 0.0004427343 }
0x2d4d   :  { %v12760_v52 = vpop.eup %12759  ;;  %v7362_v58 = vadd.f32 1.0, %v7361_v37  ;;  %vm7365_vm12 = vcmp.lt.f32.partialorder %v7364_v53, 0.0004427343 }
0x2d4e   :  { %v7376_v63 = vadd.f32 1.0, %v12760_v52  ;;  %v12762_v49 = vpop.eup %12761  ;;  %v7379_v54 = vmul.f32 -0.5, %v12760_v52  ;;  %v7382_v11 = vand.u32 2147483647, %v12760_v52  ;;  %v7372_v36 = vmul.f32 %v12756_v32, %v7371_v19 }
0x2d4f   :  { %v7349_v6 = vadd.f32 1.0, %v12762_v49  ;;  %v7352_v41 = vmul.f32 -0.5, %v12762_v49  ;;  %v7355_v24 = vand.u32 2147483647, %v12762_v49  ;;  %v7363_v26 = vmul.f32 %v12758_v12, %v7362_v58 }
0x2d50   :  { %12765 = vlog2.f32 %v7376_v63  ;;  %v7380_v14 = vadd.f32 1.0, %v7379_v54  ;;  %vm7383_vm10 = vcmp.lt.f32.partialorder %v7382_v11, 0.0004427343 }
0x2d51   :  { %v12764_v5 = vpop.eup %12763  ;;  %12767 = vlog2.f32 %v7367_v9  ;;  %v7353_v39 = vadd.f32 1.0, %v7352_v41  ;;  %v7326_v9 = vmax.f32 %v15745_v2, 0.0  ;;  %vm7356_vm13 = vcmp.lt.f32.partialorder %v7355_v24, 0.0004427343  ;;  %v15805_v41 = vld [vmem:[%s16522_s1 + $0x128] sm:$0xff] }
0x2d52   :  { %v7385_v22 = vadd.f32 1.0, %v12764_v5  ;;  %12769 = vlog2.f32 %v7358_v16  ;;  %v7388_v57 = vmul.f32 -0.5, %v12764_v5  ;;  %v7391_v15 = vand.u32 2147483647, %v12764_v5 }
0x2d53   :  { %v7381_v28 = vmul.f32 %v12760_v52, %v7380_v14  ;;  %v7496_v14 = vpop.permute.xlu1 %7495 }
0x2d54   :  { %12771 = vlog2.f32 %v7385_v22  ;;  %v7389_v50 = vadd.f32 1.0, %v7388_v57  ;;  %vm7392_vm9 = vcmp.lt.f32.partialorder %v7391_v15, 0.0004427343  ;;  %v7325_v22 = vmax.f32 %v15738_v23, 0.0  ;;  %v7492_v15 = vpop.permute.xlu0 %7491 }
0x2d55   :  { %12773 = vlog2.f32 %v7349_v6  ;;  %v7324_v6 = vmax.f32 %v15741_v45, 0.0 }
0x2d56   :  { %v7390_v47 = vmul.f32 %v12764_v5, %v7389_v50  ;;  %v7354_v5 = vmul.f32 %v12762_v49, %v7353_v39  ;;  %v15814_v50 = vld [vmem:[%s16522_s1 + $0x130] sm:$0xff] }
0x2d5d   :  { %v12766_v55 = vpop.eup %12765 }
0x2d5e   :  { %v12768_v40 = vpop.eup %12767  ;;  %v7378_v30 = vmul.f32 0.6931472, %v12766_v55 }
0x2d5f   :  { %v12770_v29 = vpop.eup %12769  ;;  %v7369_v56 = vmul.f32 0.6931472, %v12768_v40  ;;  %v7488_v40 = vpop.permute.xlu1 %7487 }
0x2d60   :  { %v7384_v10 = vsel %vm7383_vm10, %v7381_v28, %v7378_v30  ;;  %v7360_v38 = vmul.f32 0.6931472, %v12770_v29 }
0x2d61   :  { %v12772_v42 = vpop.eup %12771  ;;  %v7375_v44 = vsel %vm7374_vm11, %v7372_v36, %v7369_v56  ;;  %v7397_v52 = vadd.f32 %v7384_v10, %v7327_v0 }
0x2d62   :  { %v7387_v33 = vmul.f32 0.6931472, %v12772_v42  ;;  %v12774_v35 = vpop.eup %12773  ;;  %v7366_v16 = vsel %vm7365_vm12, %v7363_v26, %v7360_v38  ;;  %v7396_v32 = vadd.f32 %v7375_v44, %v7326_v9  ;;  %v7480_v42 = vpop.permute.xlu0 %7479 }
0x2d63   :  { %v7351_v63 = vmul.f32 0.6931472, %v12774_v35  ;;  %v7395_v12 = vadd.f32 %v7366_v16, %v7325_v22  ;;  %v7484_v30 = vpop.permute.xlu1 %7483 }
0x2d64   :  { %v7393_v17 = vsel %vm7392_vm9, %v7390_v47, %v7387_v33 }
0x2d65   :  { %v7398_v60 = vadd.f32 %v7393_v17, %v7328_v59  ;;  %v7357_v43 = vsel %vm7356_vm13, %v7354_v5, %v7351_v63 }
0x2d66   :  { %v7394_v2 = vadd.f32 %v7357_v43, %v7324_v6 }
0x2d67   :  { %11670 = vmatprep.subr.mxu0 %v7398_v60 }
0x2d68   :  { %11671 = vmatpush3.msra.mxu0 %v7398_v60 }
0x2d69   :  { %11672 = vmatprep.subr.mxu0 %v7397_v52 }
0x2d6a   :  { %11673 = vmatpush3.msra.mxu0 %v7397_v52 }
0x2d6b   :  { %11674 = vmatprep.subr.mxu0 %v7396_v32 }
0x2d6c   :  { %11675 = vmatpush3.msra.mxu0 %v7396_v32 }
0x2d6d   :  { %11676 = vmatprep.subr.mxu0 %v7395_v12 }
0x2d6e   :  { %11677 = vmatpush3.msra.mxu0 %v7395_v12 }
0x2d6f   :  { %11678 = vmatprep.subr.mxu0 %v7394_v2 }
0x2d70   :  { %11679 = vmatpush3.msra.mxu0 %v7394_v2 }
0x2d71   :  { %11681 = vmatmul.mubr.msk.f32.vlgmr.msra.gmra.mxu0 %vm312_vm7, %v15612_v18  ;;  %11683 = vmatprep.subr.mxu0 %v16629_v34  ;;  %v15777_v18 = vld [vmem:[%s16522_s1 + $0x110] sm:$0xff] }
0x2d72   :  { %11687 = vmatprep.mubr.msk.f32.mxu0 %vm13134_vm1, %v16629_v34 }
0x2e31   :  { %v11682_v23 = vpop.f32.mrf.mxu0 }
0x2e32   :  { %v7471_v49 = vadd.f32 %v11682_v23, %v15240_v25 }
0x2e33   :  { %v7465_v45 = vpop.f32.mrf.mxu0 }
0x2e34   :  { %v7475_v57 = vmul.f32 0.083333336, %v7471_v49  ;;  %v7466_v54 = vadd.f32 %v7465_v45, %v15245_v48 }
0x2e36   :  { %v15766_v62 = vadd.f32 %v7475_v57, %v15622_v1  ;;  %v7474_v55 = vmul.f32 0.083333336, %v7466_v54  ;;  %v15787_v1 = vld [vmem:[%s16522_s1 + $0x118] sm:$0xff] }
0x2e38   :  { %v15769_v37 = vadd.f32 %v7474_v55, %v15626_v51  ;;  %11684 = vmatpush3.msra.mxu0 %v15766_v62  ;;  %v15796_v51 = vld [vmem:[%s16522_s1 + $0x120] sm:$0xff] }
0x2e39   :  { %11685 = vmatprep.subr.mxu0 %v16629_v34 }
0x2e3a   :  { %11686 = vmatpush3.msra.mxu0 %v15769_v37 }
0x2e3b   :  { %11688 = vmatmul.mubr.msk.f32.vlgmr.msra.gmra.mxu0 %vm131_vm0, %v15777_v18  ;;  %11727 = vmatprep.subr.mxu0 %v16629_v34 }
0x2e3c   :  { %11690 = vmatprep.mubr.msk.f32.mxu0 %vm13134_vm1, %v16629_v34 }
0x2e3f   :  { %11691 = vmatmul.mubr.msk.f32.gmra.mxu0 %vm131_vm0, %v15787_v1 }
0x2e40   :  { %11693 = vmatprep.mubr.msk.f32.mxu0 %vm13134_vm1, %v16629_v34 }
0x2e43   :  { %11694 = vmatmul.mubr.msk.f32.gmra.mxu0 %vm131_vm0, %v15796_v51 }
0x2e44   :  { %11696 = vmatprep.mubr.msk.f32.mxu0 %vm13134_vm1, %v16629_v34 }
0x2e47   :  { %11697 = vmatmul.mubr.msk.f32.gmra.mxu0 %vm131_vm0, %v15805_v41 }
0x2e48   :  { %11699 = vmatprep.mubr.msk.f32.mxu0 %vm13134_vm1, %v16629_v34 }
0x2e4b   :  { %11700 = vmatmul.mubr.msk.f32.gmra.mxu0 %vm131_vm0, %v15814_v50 }
0x2e4c   :  { %11737 = vmatprep.mubr.msk.f32.mxu0 %vm13134_vm1, %v16629_v34 }
0x2efb   :  { %v7564_v11 = vpop.f32.mrf.mxu0 }
0x2efc   :  { %v15823_v39 = vadd.f32 %v7564_v11, %v7480_v42 }
0x2efd   :  { %v11689_v29 = vpop.f32.mrf.mxu0 }
0x2efe   :  { %v7593_v53 = vand.u32 2147483647, %v15823_v39 }
0x2eff   :  { %v7569_v19 = vpop.f32.mrf.mxu0 }
0x2f00   :  { %v15820_v59 = vadd.f32 %v7569_v19, %v7484_v30  ;;  %v7598_v24 = vsub.f32 0.0, %v7593_v53 }
0x2f01   :  { %v11692_v13 = vpop.f32.mrf.mxu0 }
0x2f02   :  { %v7594_v58 = vand.u32 2147483647, %v15820_v59  ;;  %v7603_v22 = vmul.f32 1.442695, %v7598_v24 }
0x2f03   :  { %v7574_v33 = vpop.f32.mrf.mxu0 }
0x2f04   :  { %v15825_v47 = vadd.f32 %v7574_v33, %v7488_v40  ;;  %v7599_v56 = vsub.f32 0.0, %v7594_v58 }
0x2f05   :  { %v11695_v28 = vpop.f32.mrf.mxu0 }
0x2f06   :  { %v7595_v35 = vand.u32 2147483647, %v15825_v47  ;;  %v7605_v0 = vmul.f32 1.442695, %v7599_v56 }
0x2f07   :  { %v7579_v17 = vpop.f32.mrf.mxu0 }
0x2f08   :  { %v7600_v10 = vsub.f32 0.0, %v7595_v35  ;;  %v15829_v36 = vadd.f32 %v7579_v17, %v7492_v15  ;;  %12775 = vpow2.f32 %v7605_v0 }
0x2f09   :  { %v11698_v38 = vpop.f32.mrf.mxu0 }
0x2f0a   :  { %v7596_v60 = vand.u32 2147483647, %v15829_v36  ;;  %v7607_v44 = vmul.f32 1.442695, %v7600_v10 }
0x2f0b   :  { %v7584_v26 = vpop.f32.mrf.mxu0 }
0x2f0c   :  { %v7601_v63 = vsub.f32 0.0, %v7596_v60  ;;  %v7585_v9 = vadd.f32 %v7584_v26, %v7496_v14  ;;  %12777 = vpow2.f32 %v7607_v44 }
0x2f0d   :  { %v11701_v52 = vpop.f32.mrf.mxu0 }
0x2f0e   :  { %v7609_v16 = vmul.f32 1.442695, %v7601_v63  ;;  %v7597_v5 = vand.u32 2147483647, %v7585_v9  ;;  %v7592_v60 = vmax.f32 %v7585_v9, 0.0 }
0x2f10   :  { %12779 = vpow2.f32 %v7609_v16  ;;  %v7602_v32 = vsub.f32 0.0, %v7597_v5 }
0x2f11   :  { %12781 = vpow2.f32 %v7603_v22 }
0x2f12   :  { %v7611_v43 = vmul.f32 1.442695, %v7602_v32 }
0x2f14   :  { %12783 = vpow2.f32 %v7611_v43 }
0x2f15   :  { %v12776_v6 = vpop.eup %12775 }
0x2f16   :  { %v7622_v57 = vadd.f32 1.0, %v12776_v6  ;;  %v7625_v19 = vmul.f32 -0.5, %v12776_v6  ;;  %v7628_v16 = vand.u32 2147483647, %v12776_v6 }
0x2f18   :  { %v7626_v38 = vadd.f32 1.0, %v7625_v19  ;;  %vm7629_vm3 = vcmp.lt.f32.partialorder %v7628_v16, 0.0004427343  ;;  %v15879_v19 = vld [vmem:[%s16522_s1 + $0x158] sm:$0xff] }
0x2f19   :  { %v12778_v12 = vpop.eup %12777 }
0x2f1a   :  { %v7631_v49 = vadd.f32 1.0, %v12778_v12  ;;  %v7634_v11 = vmul.f32 -0.5, %v12778_v12  ;;  %v7637_v0 = vand.u32 2147483647, %v12778_v12 }
0x2f1c   :  { %v7635_v35 = vadd.f32 1.0, %v7634_v11  ;;  %vm7638_vm2 = vcmp.lt.f32.partialorder %v7637_v0, 0.0004427343 }
0x2f1d   :  { %v12780_v2 = vpop.eup %12779 }
0x2f1e   :  { %v7640_v23 = vadd.f32 1.0, %v12780_v2  ;;  %v12782_v45 = vpop.eup %12781  ;;  %v7643_v40 = vmul.f32 -0.5, %v12780_v2  ;;  %v7646_v33 = vand.u32 2147483647, %v12780_v2  ;;  %v7636_v22 = vmul.f32 %v12778_v12, %v7635_v35 }
0x2f1f   :  { %v7613_v55 = vadd.f32 1.0, %v12782_v45  ;;  %v7616_v30 = vmul.f32 -0.5, %v12782_v45  ;;  %v7589_v12 = vmax.f32 %v15820_v59, 0.0  ;;  %v15843_v59 = vld [vmem:[%s16522_s1 + $0x138] sm:$0xff] }
0x2f20   :  { %12785 = vlog2.f32 %v7640_v23  ;;  %v7644_v42 = vadd.f32 1.0, %v7643_v40  ;;  %vm7647_vm14 = vcmp.lt.f32.partialorder %v7646_v33, 0.0004427343  ;;  %v7619_v23 = vand.u32 2147483647, %v12782_v45 }
0x2f21   :  { %v12784_v54 = vpop.eup %12783  ;;  %12787 = vlog2.f32 %v7631_v49  ;;  %v7617_v10 = vadd.f32 1.0, %v7616_v30  ;;  %v7591_v49 = vmax.f32 %v15829_v36, 0.0  ;;  %v7588_v36 = vmax.f32 %v15823_v39, 0.0  ;;  %v15852_v39 = vld [vmem:[%s16522_s1 + $0x140] sm:$0xff]  ;;  %v15870_v30 = vld [vmem:[%s16522_s1 + $0x150] sm:$0xff] }
0x2f22   :  { %v7649_v14 = vadd.f32 1.0, %v12784_v54  ;;  %12789 = vlog2.f32 %v7622_v57  ;;  %v7652_v15 = vmul.f32 -0.5, %v12784_v54  ;;  %v7655_v28 = vand.u32 2147483647, %v12784_v54 }
0x2f23   :  { %v7645_v44 = vmul.f32 %v12780_v2, %v7644_v42  ;;  %v7590_v2 = vmax.f32 %v15825_v47, 0.0  ;;  %v7618_v40 = vmul.f32 %v12782_v45, %v7617_v10  ;;  %vm7620_vm4 = vcmp.lt.f32.partialorder %v7619_v23, 0.0004427343  ;;  %v15861_v45 = vld [vmem:[%s16522_s1 + $0x148] sm:$0xff] }
0x2f24   :  { %12791 = vlog2.f32 %v7649_v14  ;;  %v7653_v13 = vadd.f32 1.0, %v7652_v15  ;;  %vm7656_vm15 = vcmp.lt.f32.partialorder %v7655_v28, 0.0004427343  ;;  %v7627_v14 = vmul.f32 %v12776_v6, %v7626_v38  ;;  %v15886_v42 = vld [vmem:[%s16522_s1 + $0x188] sm:$0xff] }
0x2f25   :  { %12793 = vlog2.f32 %v7613_v55 }
0x2f26   :  { %v7654_v63 = vmul.f32 %v12784_v54, %v7653_v13 }
0x2f2d   :  { %v12786_v29 = vpop.eup %12785 }
0x2f2e   :  { %v12788_v58 = vpop.eup %12787  ;;  %v7642_v53 = vmul.f32 0.6931472, %v12786_v29 }
0x2f2f   :  { %v12790_v56 = vpop.eup %12789  ;;  %v7633_v24 = vmul.f32 0.6931472, %v12788_v58 }
0x2f30   :  { %v7624_v5 = vmul.f32 0.6931472, %v12790_v56  ;;  %v7648_v32 = vsel %vm7647_vm14, %v7645_v44, %v7642_v53 }
0x2f31   :  { %v12792_v17 = vpop.eup %12791  ;;  %v7639_v9 = vsel %vm7638_vm2, %v7636_v22, %v7633_v24  ;;  %v7661_v54 = vadd.f32 %v7648_v32, %v7591_v49 }
0x2f32   :  { %v7651_v26 = vmul.f32 0.6931472, %v12792_v17  ;;  %v12794_v52 = vpop.eup %12793  ;;  %v7630_v15 = vsel %vm7629_vm3, %v7627_v14, %v7624_v5  ;;  %v7660_v11 = vadd.f32 %v7639_v9, %v7590_v2 }
0x2f33   :  { %v7615_v55 = vmul.f32 0.6931472, %v12794_v52  ;;  %v7659_v6 = vadd.f32 %v7630_v15, %v7589_v12 }
0x2f34   :  { %v7657_v43 = vsel %vm7656_vm15, %v7654_v63, %v7651_v26 }
0x2f35   :  { %v7662_v57 = vadd.f32 %v7657_v43, %v7592_v60  ;;  %v7621_v29 = vsel %vm7620_vm4, %v7618_v40, %v7615_v55 }
0x2f36   :  { %v7658_v47 = vadd.f32 %v7621_v29, %v7588_v36 }
0x2f37   :  { %11703 = vmatpush3.msra.mxu1 %v7662_v57 }
0x2f38   :  { %11704 = vmatprep.subr.mxu1 %v16629_v34 }
0x2f39   :  { %11705 = vmatpush3.msra.mxu1 %v7661_v54 }
0x2f3a   :  { %11706 = vmatprep.subr.mxu1 %v16629_v34 }
0x2f3b   :  { %11707 = vmatpush3.msra.mxu1 %v7660_v11 }
0x2f3c   :  { %11708 = vmatprep.subr.mxu1 %v16629_v34 }
0x2f3d   :  { %11709 = vmatpush3.msra.mxu1 %v7659_v6 }
0x2f3e   :  { %11710 = vmatprep.subr.mxu1 %v16629_v34 }
0x2f3f   :  { %11711 = vmatpush3.msra.mxu1 %v7658_v47 }
0x2f40   :  { %11713 = vmatmul.mubr.msk.f32.vlgmr.msra.gmra.mxu1 %vm312_vm7, %v15843_v59 }
0x2f41   :  { %11715 = vmatprep.mubr.msk.f32.mxu1 %vm13134_vm1, %v16629_v34 }
0x2f44   :  { %11716 = vmatmul.mubr.msk.f32.gmra.mxu1 %vm312_vm7, %v15852_v39 }
0x2f45   :  { %11718 = vmatprep.mubr.msk.f32.mxu1 %vm13134_vm1, %v16629_v34 }
0x2f48   :  { %11719 = vmatmul.mubr.msk.f32.gmra.mxu1 %vm312_vm7, %v15861_v45 }
0x2f49   :  { %11721 = vmatprep.mubr.msk.f32.mxu1 %vm13134_vm1, %v16629_v34 }
0x2f4c   :  { %11722 = vmatmul.mubr.msk.f32.gmra.mxu1 %vm312_vm7, %v15870_v30 }
0x2f4d   :  { %11724 = vmatprep.mubr.msk.f32.mxu1 %vm13134_vm1, %v16629_v34 }
0x2f50   :  { %11725 = vmatmul.mubr.msk.f32.gmra.mxu1 %vm312_vm7, %v15879_v19 }
0x2f51   :  { %11762 = vmatprep.mubr.msk.f32.mxu1 %vm312_vm7, %v15886_v42 }
0x3000   :  { %v7729_v13 = vpop.f32.mrf.mxu1 }
0x3001   :  { %v15895_v53 = vadd.f32 %v7729_v13, %v15122_v61 }
0x3002   :  { %v11714_v58 = vpop.f32.mrf.mxu1 }
0x3003   :  { %v7758_v24 = vand.u32 2147483647, %v15895_v53 }
0x3004   :  { %v7734_v33 = vpop.f32.mrf.mxu1 }
0x3005   :  { %v15891_v28 = vadd.f32 %v7734_v33, %v15117_v27  ;;  %v7763_v22 = vsub.f32 0.0, %v7758_v24 }
0x3006   :  { %v11717_v56 = vpop.f32.mrf.mxu1 }
0x3007   :  { %v7759_v35 = vand.u32 2147483647, %v15891_v28  ;;  %v7768_v9 = vmul.f32 1.442695, %v7763_v22 }
0x3008   :  { %v7739_v17 = vpop.f32.mrf.mxu1 }
0x3009   :  { %v15898_v10 = vadd.f32 %v7739_v17, %v15115_v21  ;;  %v7764_v0 = vsub.f32 0.0, %v7759_v35 }
0x300a   :  { %v11720_v38 = vpop.f32.mrf.mxu1 }
0x300b   :  { %v7760_v60 = vand.u32 2147483647, %v15898_v10  ;;  %v7770_v16 = vmul.f32 1.442695, %v7764_v0 }
0x300c   :  { %v7744_v44 = vpop.f32.mrf.mxu1 }
0x300d   :  { %v7765_v26 = vsub.f32 0.0, %v7760_v60  ;;  %v15903_v63 = vadd.f32 %v7744_v44, %v16689_v31  ;;  %12795 = vpow2.f32 %v7770_v16 }
0x300e   :  { %v11723_v52 = vpop.f32.mrf.mxu1 }
0x300f   :  { %v7761_v5 = vand.u32 2147483647, %v15903_v63  ;;  %v7772_v32 = vmul.f32 1.442695, %v7765_v26 }
0x3010   :  { %v7749_v43 = vpop.f32.mrf.mxu1 }
0x3011   :  { %v7766_v23 = vsub.f32 0.0, %v7761_v5  ;;  %v7750_v49 = vadd.f32 %v7749_v43, %v16690_v3  ;;  %12797 = vpow2.f32 %v7772_v32 }
0x3012   :  { %v11726_v57 = vpop.f32.mrf.mxu1 }
0x3013   :  { %v7774_v55 = vmul.f32 1.442695, %v7766_v23  ;;  %v7762_v14 = vand.u32 2147483647, %v7750_v49 }
0x3015   :  { %12799 = vpow2.f32 %v7774_v55  ;;  %v7767_v2 = vsub.f32 0.0, %v7762_v14  ;;  %v7757_v55 = vmax.f32 %v7750_v49, 0.0 }
0x3016   :  { %12801 = vpow2.f32 %v7768_v9 }
0x3017   :  { %v7776_v54 = vmul.f32 1.442695, %v7767_v2 }
0x3019   :  { %12803 = vpow2.f32 %v7776_v54 }
0x301a   :  { %v12796_v40 = vpop.eup %12795 }
0x301b   :  { %v7787_v6 = vadd.f32 1.0, %v12796_v40  ;;  %v7790_v0 = vmul.f32 -0.5, %v12796_v40 }
0x301d   :  { %v7791_v23 = vadd.f32 1.0, %v7790_v0 }
0x301e   :  { %v12798_v15 = vpop.eup %12797 }
0x301f   :  { %v7796_v29 = vadd.f32 1.0, %v12798_v15  ;;  %v7799_v35 = vmul.f32 -0.5, %v12798_v15  ;;  %v7802_v57 = vand.u32 2147483647, %v12798_v15  ;;  %v7792_v0 = vmul.f32 %v12796_v40, %v7791_v23 }
0x3021   :  { %v7800_v5 = vadd.f32 1.0, %v7799_v35  ;;  %vm7803_vm8 = vcmp.lt.f32.partialorder %v7802_v57, 0.0004427343  ;;  %v7756_v35 = vmax.f32 %v15903_v63, 0.0  ;;  %v7753_v63 = vmax.f32 %v15895_v53, 0.0  ;;  %v15928_v53 = vld [vmem:[%s16522_s1 + $0x168] sm:$0xff] }
0x3022   :  { %v12800_v12 = vpop.eup %12799 }
0x3023   :  { %v7805_v11 = vadd.f32 1.0, %v12800_v12  ;;  %v12802_v36 = vpop.eup %12801  ;;  %v7808_v33 = vmul.f32 -0.5, %v12800_v12  ;;  %v7811_v26 = vand.u32 2147483647, %v12800_v12 }
0x3024   :  { %v7778_v13 = vadd.f32 1.0, %v12802_v36  ;;  %v7781_v38 = vmul.f32 -0.5, %v12802_v36 }
0x3025   :  { %12805 = vlog2.f32 %v7805_v11  ;;  %v7809_v60 = vadd.f32 1.0, %v7808_v33  ;;  %vm7812_vm5 = vcmp.lt.f32.partialorder %v7811_v26, 0.0004427343 }
0x3026   :  { %v12804_v47 = vpop.eup %12803  ;;  %12807 = vlog2.f32 %v7796_v29  ;;  %v7782_v43 = vadd.f32 1.0, %v7781_v38  ;;  %v7793_v29 = vand.u32 2147483647, %v12796_v40 }
0x3027   :  { %v7814_v58 = vadd.f32 1.0, %v12804_v47  ;;  %12809 = vlog2.f32 %v7787_v6  ;;  %v7817_v56 = vmul.f32 -0.5, %v12804_v47  ;;  %v7820_v52 = vand.u32 2147483647, %v12804_v47 }
0x3028   :  { %v7810_v9 = vmul.f32 %v12800_v12, %v7809_v60  ;;  %vm7794_vm9 = vcmp.lt.f32.partialorder %v7793_v29, 0.0004427343  ;;  %v7755_v12 = vmax.f32 %v15898_v10, 0.0  ;;  %v7783_v60 = vmul.f32 %v12802_v36, %v7782_v43 }
0x3029   :  { %12811 = vlog2.f32 %v7814_v58  ;;  %v7818_v24 = vadd.f32 1.0, %v7817_v56  ;;  %vm7821_vm6 = vcmp.lt.f32.partialorder %v7820_v52, 0.0004427343  ;;  %v7784_v56 = vand.u32 2147483647, %v12802_v36  ;;  %v15937_v36 = vld [vmem:[%s16522_s1 + $0x170] sm:$0xff] }
0x302a   :  { %12813 = vlog2.f32 %v7778_v13  ;;  %v7801_v13 = vmul.f32 %v12798_v15, %v7800_v5  ;;  %v7754_v15 = vmax.f32 %v15891_v28, 0.0  ;;  %v15918_v28 = vld [vmem:[%s16522_s1 + $0x160] sm:$0xff]  ;;  %v15946_v52 = vld [vmem:[%s16522_s1 + $0x178] sm:$0xff] }
0x302b   :  { %v7819_v54 = vmul.f32 %v12804_v47, %v7818_v24  ;;  %vm7785_vm10 = vcmp.lt.f32.partialorder %v7784_v56, 0.0004427343 }
0x3032   :  { %v12806_v17 = vpop.eup %12805 }
0x3033   :  { %v12808_v44 = vpop.eup %12807  ;;  %v7807_v22 = vmul.f32 0.6931472, %v12806_v17 }
0x3034   :  { %v12810_v16 = vpop.eup %12809  ;;  %v7798_v14 = vmul.f32 0.6931472, %v12808_v44 }
0x3035   :  { %v7789_v6 = vmul.f32 0.6931472, %v12810_v16  ;;  %v7813_v58 = vsel %vm7812_vm5, %v7810_v9, %v7807_v22  ;;  %v15955_v16 = vld [vmem:[%s16522_s1 + $0x180] sm:$0xff] }
0x3036   :  { %v12812_v32 = vpop.eup %12811  ;;  %v7804_v49 = vsel %vm7803_vm8, %v7801_v13, %v7798_v14  ;;  %v7826_v47 = vadd.f32 %v7813_v58, %v7756_v35 }
0x3037   :  { %v7816_v2 = vmul.f32 0.6931472, %v12812_v32  ;;  %v12814_v11 = vpop.eup %12813  ;;  %v7795_v24 = vsel %vm7794_vm9, %v7792_v0, %v7789_v6  ;;  %v7825_v44 = vadd.f32 %v7804_v49, %v7755_v12 }
0x3038   :  { %v7780_v38 = vmul.f32 0.6931472, %v12814_v11  ;;  %v7824_v40 = vadd.f32 %v7795_v24, %v7754_v15 }
0x3039   :  { %v7822_v33 = vsel %vm7821_vm6, %v7819_v54, %v7816_v2 }
0x303a   :  { %v7827_v17 = vadd.f32 %v7822_v33, %v7757_v55  ;;  %v7786_v26 = vsel %vm7785_vm10, %v7783_v60, %v7780_v38 }
0x303b   :  { %v7823_v10 = vadd.f32 %v7786_v26, %v7753_v63 }
0x303c   :  { %11728 = vmatpush3.msra.mxu0 %v7827_v17 }
0x303d   :  { %11729 = vmatprep.subr.mxu0 %v16629_v34 }
0x303e   :  { %11730 = vmatpush3.msra.mxu0 %v7826_v47 }
0x303f   :  { %11731 = vmatprep.subr.mxu0 %v16629_v34 }
0x3040   :  { %11732 = vmatpush3.msra.mxu0 %v7825_v44 }
0x3041   :  { %11733 = vmatprep.subr.mxu0 %v16629_v34 }
0x3042   :  { %11734 = vmatpush3.msra.mxu0 %v7824_v40 }
0x3043   :  { %11735 = vmatprep.subr.mxu0 %v16629_v34 }
0x3044   :  { %11736 = vmatpush3.msra.mxu0 %v7823_v10 }
0x3045   :  { %11738 = vmatmul.mubr.msk.f32.vlgmr.msra.gmra.mxu0 %vm312_vm7, %v15918_v28  ;;  %11784 = vmatprep.subr.mxu0 %v16629_v34 }
0x3046   :  { %11740 = vmatprep.mubr.msk.f32.mxu0 %vm13134_vm1, %v16629_v34 }
0x3049   :  { %11741 = vmatmul.mubr.msk.f32.gmra.mxu0 %vm312_vm7, %v15928_v53 }
0x304a   :  { %11743 = vmatprep.mubr.msk.f32.mxu0 %vm13134_vm1, %v16629_v34 }
0x304d   :  { %11744 = vmatmul.mubr.msk.f32.gmra.mxu0 %vm312_vm7, %v15937_v36 }
0x304e   :  { %11746 = vmatprep.mubr.msk.f32.mxu0 %vm13134_vm1, %v16629_v34 }
0x3051   :  { %11747 = vmatmul.mubr.msk.f32.gmra.mxu0 %vm312_vm7, %v15946_v52 }
0x3052   :  { %11749 = vmatprep.mubr.msk.f32.mxu0 %vm13134_vm1, %v16629_v34 }
0x3055   :  { %11750 = vmatmul.mubr.msk.f32.gmra.mxu0 %vm312_vm7, %v15955_v16 }
0x3056   :  { %11794 = vmatprep.mubr.msk.f32.mxu0 %vm13134_vm1, %v16629_v34 }
0x3105   :  { %v7894_v5 = vpop.f32.mrf.mxu0 }
0x3106   :  { %v15965_v57 = vadd.f32 %v7894_v5, %v16692_v4 }
0x3107   :  { %v11739_v22 = vpop.f32.mrf.mxu0 }
0x3108   :  { %v7923_v54 = vand.u32 2147483647, %v15965_v57 }
0x3109   :  { %v7899_v32 = vpop.f32.mrf.mxu0 }
0x310a   :  { %v15962_v43 = vadd.f32 %v7899_v32, %v16691_v20  ;;  %v7928_v56 = vsub.f32 0.0, %v7923_v54 }
0x310b   :  { %v11742_v23 = vpop.f32.mrf.mxu0 }
0x310c   :  { %v7924_v55 = vand.u32 2147483647, %v15962_v43  ;;  %v7933_v60 = vmul.f32 1.442695, %v7928_v56 }
0x310d   :  { %v7904_v14 = vpop.f32.mrf.mxu0 }
0x310e   :  { %v15969_v9 = vadd.f32 %v7904_v14, %v16693_v7  ;;  %v7929_v29 = vsub.f32 0.0, %v7924_v55 }
0x310f   :  { %v11745_v2 = vpop.f32.mrf.mxu0 }
0x3110   :  { %v7925_v11 = vand.u32 2147483647, %v15969_v9  ;;  %v7935_v38 = vmul.f32 1.442695, %v7929_v29 }
0x3111   :  { %v7909_v6 = vpop.f32.mrf.mxu0 }
0x3112   :  { %v7930_v13 = vsub.f32 0.0, %v7925_v11  ;;  %v15974_v58 = vadd.f32 %v7909_v6, %v16694_v8 }
0x3113   :  { %v11748_v33 = vpop.f32.mrf.mxu0 }
0x3114   :  { %v7937_v35 = vmul.f32 1.442695, %v7930_v13  ;;  %v7926_v17 = vand.u32 2147483647, %v15974_v58 }
0x3115   :  { %v7914_v0 = vpop.f32.mrf.mxu0 }
0x3116   :  { %v7931_v49 = vsub.f32 0.0, %v7926_v17  ;;  %v7915_v12 = vadd.f32 %v7914_v0, %v16695_v46  ;;  %12815 = vpow2.f32 %v7937_v35 }
0x3117   :  { %v11751_v47 = vpop.f32.mrf.mxu0  ;;  %12817 = vpow2.f32 %v7935_v38 }
0x3118   :  { %v7939_v24 = vmul.f32 1.442695, %v7931_v49  ;;  %v7927_v15 = vand.u32 2147483647, %v7915_v12 }
0x311a   :  { %12819 = vpow2.f32 %v7939_v24  ;;  %v7932_v44 = vsub.f32 0.0, %v7927_v15  ;;  %v7922_v15 = vmax.f32 %v7915_v12, 0.0 }
0x311b   :  { %12821 = vpow2.f32 %v7933_v60 }
0x311c   :  { %v7941_v26 = vmul.f32 1.442695, %v7932_v44 }
0x311e   :  { %12823 = vpow2.f32 %v7941_v26 }
0x3123   :  { %v12816_v63 = vpop.eup %12815 }
0x3124   :  { %v12818_v40 = vpop.eup %12817  ;;  %v7961_v22 = vadd.f32 1.0, %v12816_v63  ;;  %v7964_v29 = vmul.f32 -0.5, %v12816_v63  ;;  %v7967_v44 = vand.u32 2147483647, %v12816_v63 }
0x3125   :  { %v7952_v23 = vadd.f32 1.0, %v12818_v40  ;;  %v7955_v13 = vmul.f32 -0.5, %v12818_v40 }
0x3126   :  { %v7965_v60 = vadd.f32 1.0, %v7964_v29  ;;  %vm7968_vm13 = vcmp.lt.f32.partialorder %v7967_v44, 0.0004427343 }
0x3127   :  { %v12820_v10 = vpop.eup %12819  ;;  %v7956_v26 = vadd.f32 1.0, %v7955_v13 }
0x3128   :  { %v7970_v5 = vadd.f32 1.0, %v12820_v10  ;;  %v12822_v32 = vpop.eup %12821  ;;  %v7973_v11 = vmul.f32 -0.5, %v12820_v10  ;;  %v7976_v0 = vand.u32 2147483647, %v12820_v10  ;;  %v7966_v7 = vmul.f32 %v12816_v63, %v7965_v60 }
0x3129   :  { %v7943_v2 = vadd.f32 1.0, %v12822_v32  ;;  %v7946_v33 = vmul.f32 -0.5, %v12822_v32  ;;  %v7949_v12 = vand.u32 2147483647, %v12822_v32  ;;  %v7957_v13 = vmul.f32 %v12818_v40, %v7956_v26 }
0x312a   :  { %12825 = vlog2.f32 %v7970_v5  ;;  %v7974_v35 = vadd.f32 1.0, %v7973_v11  ;;  %vm7977_vm12 = vcmp.lt.f32.partialorder %v7976_v0, 0.0004427343 }
0x312b   :  { %v12824_v55 = vpop.eup %12823  ;;  %12827 = vlog2.f32 %v7961_v22  ;;  %v7947_v5 = vadd.f32 1.0, %v7946_v33  ;;  %vm7950_vm15 = vcmp.lt.f32.partialorder %v7949_v12, 0.0004427343 }
0x312c   :  { %v7979_v14 = vadd.f32 1.0, %v12824_v55  ;;  %12829 = vlog2.f32 %v7952_v23  ;;  %v7982_v54 = vmul.f32 -0.5, %v12824_v55  ;;  %v7985_v38 = vand.u32 2147483647, %v12824_v55 }
0x312e   :  { %12831 = vlog2.f32 %v7979_v14  ;;  %v7983_v56 = vadd.f32 1.0, %v7982_v54  ;;  %v7975_v14 = vmul.f32 %v12820_v10, %v7974_v35  ;;  %vm7986_vm11 = vcmp.lt.f32.partialorder %v7985_v38, 0.0004427343 }
0x312f   :  { %12833 = vlog2.f32 %v7943_v2  ;;  %v7958_v54 = vand.u32 2147483647, %v12818_v40  ;;  %v7948_v35 = vmul.f32 %v12822_v32, %v7947_v5  ;;  %v7918_v38 = vmax.f32 %v15965_v57, 0.0 }
0x3130   :  { %v7984_v23 = vmul.f32 %v12824_v55, %v7983_v56  ;;  %v7920_v55 = vmax.f32 %v15969_v9, 0.0 }
0x3131   :  { %vm7959_vm14 = vcmp.lt.f32.partialorder %v7958_v54, 0.0004427343 }
0x3137   :  { %v12826_v6 = vpop.eup %12825 }
0x3138   :  { %v12828_v17 = vpop.eup %12827  ;;  %v7972_v47 = vmul.f32 0.6931472, %v12826_v6  ;;  %v7921_v6 = vmax.f32 %v15974_v58, 0.0 }
0x3139   :  { %v12830_v49 = vpop.eup %12829  ;;  %v7963_v2 = vmul.f32 0.6931472, %v12828_v17  ;;  %v7919_v17 = vmax.f32 %v15962_v43, 0.0 }
0x313a   :  { %v7978_v8 = vsel %vm7977_vm12, %v7975_v14, %v7972_v47  ;;  %v7954_v4 = vmul.f32 0.6931472, %v12830_v49  ;;  %v8090_v49 = vpop.permute.xlu0 %8089 }
0x313b   :  { %v12832_v24 = vpop.eup %12831  ;;  %v7969_v20 = vsel %vm7968_vm13, %v7966_v7, %v7963_v2  ;;  %v7991_v10 = vadd.f32 %v7978_v8, %v7921_v6 }
0x313c   :  { %v7981_v22 = vmul.f32 0.6931472, %v12832_v24  ;;  %v12834_v46 = vpop.eup %12833  ;;  %v7960_v56 = vsel %vm7959_vm14, %v7957_v13, %v7954_v4  ;;  %v7990_v63 = vadd.f32 %v7969_v20, %v7920_v55  ;;  %v15985_v4 = vld [vmem:[%s16522_s1 + $0x190] sm:$0xff] }
0x313d   :  { %v7945_v33 = vmul.f32 0.6931472, %v12834_v46  ;;  %v7989_v7 = vadd.f32 %v7960_v56, %v7919_v17 }
0x313e   :  { %v7987_v11 = vsel %vm7986_vm11, %v7984_v23, %v7981_v22 }
0x313f   :  { %v7992_v29 = vadd.f32 %v7987_v11, %v7922_v15  ;;  %v7951_v58 = vsel %vm7950_vm15, %v7948_v35, %v7945_v33  ;;  %v8078_v15 = vpop.permute.xlu0 %8077 }
0x3140   :  { %v7988_v46 = vadd.f32 %v7951_v58, %v7918_v38 }
0x3141   :  { %11752 = vmatprep.subr.mxu1 %v7992_v29 }
0x3142   :  { %11753 = vmatpush3.msra.mxu1 %v7992_v29 }
0x3143   :  { %11754 = vmatprep.subr.mxu1 %v7991_v10 }
0x3144   :  { %11755 = vmatpush3.msra.mxu1 %v7991_v10 }
0x3145   :  { %11756 = vmatprep.subr.mxu1 %v7990_v63 }
0x3146   :  { %11757 = vmatpush3.msra.mxu1 %v7990_v63 }
0x3147   :  { %11758 = vmatprep.subr.mxu1 %v7989_v7 }
0x3148   :  { %11759 = vmatpush3.msra.mxu1 %v7989_v7 }
0x3149   :  { %11760 = vmatprep.subr.mxu1 %v7988_v46 }
0x314a   :  { %11761 = vmatpush3.msra.mxu1 %v7988_v46 }
0x314b   :  { %11763 = vmatmul.mubr.msk.f32.vlgmr.msra.gmra.mxu1 %vm312_vm7, %v15985_v4  ;;  %11765 = vmatprep.subr.mxu1 %v16629_v34 }
0x314c   :  { %11769 = vmatprep.mubr.msk.f32.mxu1 %vm13134_vm1, %v16629_v34 }
0x320b   :  { %v11764_v20 = vpop.f32.mrf.mxu1 }
0x320c   :  { %v15993_v8 = vadd.f32 %v11764_v20, %v15240_v25 }
0x320d   :  { %v8059_v43 = vpop.f32.mrf.mxu1 }
0x320e   :  { %v8073_v57 = vmul.f32 0.25, %v15993_v8  ;;  %v15997_v9 = vadd.f32 %v8059_v43, %v15245_v48 }
0x3210   :  { %v8075_v40 = vadd.f32 %v8073_v57, %v15766_v62  ;;  %v8072_v32 = vmul.f32 0.25, %v15997_v9 }
0x3212   :  { %v8074_v0 = vadd.f32 %v8072_v32, %v15769_v37  ;;  %11766 = vmatpush3.msra.mxu1 %v8075_v40 }
0x3213   :  { %11767 = vmatprep.subr.mxu1 %v16629_v34 }
0x3214   :  { %11768 = vmatpush3.msra.mxu1 %v8074_v0 }
0x3215   :  { %11770 = vmatmul.mubr.msk.f32.vlgmr.msra.gmra.mxu1 %vm131_vm0, %v15777_v18  ;;  %11809 = vmatprep.subr.mxu1 %v16629_v34  ;;  %v8094_v18 = vpop.permute.xlu1 %8093 }
0x3216   :  { %11772 = vmatprep.mubr.msk.f32.mxu1 %vm13134_vm1, %v16629_v34 }
0x3219   :  { %11773 = vmatmul.mubr.msk.f32.gmra.mxu1 %vm131_vm0, %v15787_v1  ;;  %v8086_v1 = vpop.permute.xlu1 %8085 }
0x321a   :  { %11775 = vmatprep.mubr.msk.f32.mxu1 %vm13134_vm1, %v16629_v34 }
0x321d   :  { %11776 = vmatmul.mubr.msk.f32.gmra.mxu1 %vm131_vm0, %v15796_v51  ;;  %v8082_v60 = vpop.permute.xlu1 %8081 }
0x321e   :  { %11778 = vmatprep.mubr.msk.f32.mxu1 %vm13134_vm1, %v16629_v34 }
0x3221   :  { %11779 = vmatmul.mubr.msk.f32.gmra.mxu1 %vm131_vm0, %v15805_v41 }
0x3222   :  { %11781 = vmatprep.mubr.msk.f32.mxu1 %vm13134_vm1, %v16629_v34 }
0x3225   :  { %11782 = vmatmul.mubr.msk.f32.gmra.mxu1 %vm131_vm0, %v15814_v50 }
0x3226   :  { %11819 = vmatprep.mubr.msk.f32.mxu1 %vm13134_vm1, %v16629_v34 }
0x32d5   :  { %v8162_v47 = vpop.f32.mrf.mxu1 }
0x32d6   :  { %v16027_v5 = vadd.f32 %v8162_v47, %v8078_v15 }
0x32d7   :  { %v11771_v51 = vpop.f32.mrf.mxu1 }
0x32d8   :  { %v8191_v54 = vand.u32 2147483647, %v16027_v5 }
0x32d9   :  { %v8167_v24 = vpop.f32.mrf.mxu1 }
0x32da   :  { %v16024_v44 = vadd.f32 %v8167_v24, %v8082_v60  ;;  %v8196_v55 = vsub.f32 0.0, %v8191_v54 }
0x32db   :  { %v11774_v41 = vpop.f32.mrf.mxu1 }
0x32dc   :  { %v8192_v26 = vand.u32 2147483647, %v16024_v44  ;;  %v8201_v7 = vmul.f32 1.442695, %v8196_v55 }
0x32dd   :  { %v8172_v22 = vpop.f32.mrf.mxu1 }
0x32de   :  { %v16029_v50 = vadd.f32 %v8172_v22, %v8086_v1  ;;  %v8197_v14 = vsub.f32 0.0, %v8192_v26 }
0x32df   :  { %v11777_v23 = vpop.f32.mrf.mxu1 }
0x32e0   :  { %v8193_v2 = vand.u32 2147483647, %v16029_v50  ;;  %v8203_v13 = vmul.f32 1.442695, %v8197_v14 }
0x32e1   :  { %v8177_v11 = vpop.f32.mrf.mxu1 }
0x32e2   :  { %v8198_v6 = vsub.f32 0.0, %v8193_v2  ;;  %v16033_v29 = vadd.f32 %v8177_v11, %v8090_v49  ;;  %12835 = vpow2.f32 %v8203_v13 }
0x32e3   :  { %v11780_v12 = vpop.f32.mrf.mxu1 }
0x32e4   :  { %v8194_v33 = vand.u32 2147483647, %v16033_v29  ;;  %v8205_v10 = vmul.f32 1.442695, %v8198_v6 }
0x32e5   :  { %v8182_v56 = vpop.f32.mrf.mxu1 }
0x32e6   :  { %v8199_v35 = vsub.f32 0.0, %v8194_v33  ;;  %v8183_v17 = vadd.f32 %v8182_v56, %v8094_v18  ;;  %12837 = vpow2.f32 %v8205_v10 }
0x32e7   :  { %v11783_v63 = vpop.f32.mrf.mxu1 }
0x32e8   :  { %v8207_v58 = vmul.f32 1.442695, %v8199_v35  ;;  %v8195_v38 = vand.u32 2147483647, %v8183_v17  ;;  %v8190_v35 = vmax.f32 %v8183_v17, 0.0 }
0x32ea   :  { %12839 = vpow2.f32 %v8207_v58  ;;  %v8200_v46 = vsub.f32 0.0, %v8195_v38 }
0x32eb   :  { %12841 = vpow2.f32 %v8201_v7 }
0x32ec   :  { %v8209_v20 = vmul.f32 1.442695, %v8200_v46 }
0x32ee   :  { %12843 = vpow2.f32 %v8209_v20 }
0x32ef   :  { %v12836_v43 = vpop.eup %12835 }
0x32f0   :  { %v8220_v49 = vadd.f32 1.0, %v12836_v43  ;;  %v8223_v22 = vmul.f32 -0.5, %v12836_v43  ;;  %v8226_v20 = vand.u32 2147483647, %v12836_v43 }
0x32f2   :  { %v8224_v10 = vadd.f32 1.0, %v8223_v22  ;;  %vm8227_vm5 = vcmp.lt.f32.partialorder %v8226_v20, 0.0004427343 }
0x32f3   :  { %v12838_v57 = vpop.eup %12837 }
0x32f4   :  { %v8229_v0 = vadd.f32 1.0, %v12838_v57  ;;  %v8232_v15 = vmul.f32 -0.5, %v12838_v57  ;;  %v8235_v56 = vand.u32 2147483647, %v12838_v57 }
0x32f6   :  { %v8233_v12 = vadd.f32 1.0, %v8232_v15  ;;  %vm8236_vm4 = vcmp.lt.f32.partialorder %v8235_v56, 0.0004427343 }
0x32f7   :  { %v12840_v40 = vpop.eup %12839 }
0x32f8   :  { %v8238_v32 = vadd.f32 1.0, %v12840_v40  ;;  %v12842_v1 = vpop.eup %12841  ;;  %v8241_v60 = vmul.f32 -0.5, %v12840_v40  ;;  %v8244_v54 = vand.u32 2147483647, %v12840_v40 }
0x32f9   :  { %v8211_v47 = vadd.f32 1.0, %v12842_v1  ;;  %v8214_v26 = vmul.f32 -0.5, %v12842_v1 }
0x32fa   :  { %12845 = vlog2.f32 %v8238_v32  ;;  %v8242_v23 = vadd.f32 1.0, %v8241_v60  ;;  %vm8245_vm2 = vcmp.lt.f32.partialorder %v8244_v54, 0.0004427343  ;;  %v8189_v60 = vmax.f32 %v16033_v29, 0.0 }
0x32fb   :  { %v12844_v18 = vpop.eup %12843  ;;  %12847 = vlog2.f32 %v8229_v0  ;;  %v8215_v55 = vadd.f32 1.0, %v8214_v26  ;;  %v8234_v0 = vmul.f32 %v12838_v57, %v8233_v12  ;;  %v8187_v57 = vmax.f32 %v16024_v44, 0.0 }
0x32fc   :  { %v8247_v51 = vadd.f32 1.0, %v12844_v18  ;;  %12849 = vlog2.f32 %v8220_v49  ;;  %v8250_v24 = vmul.f32 -0.5, %v12844_v18  ;;  %v8253_v11 = vand.u32 2147483647, %v12844_v18 }
0x32fd   :  { %v8243_v58 = vmul.f32 %v12840_v40, %v8242_v23  ;;  %v8188_v40 = vmax.f32 %v16029_v50, 0.0  ;;  %v8216_v26 = vmul.f32 %v12842_v1, %v8215_v55  ;;  %v8186_v29 = vmax.f32 %v16027_v5, 0.0 }
0x32fe   :  { %12851 = vlog2.f32 %v8247_v51  ;;  %v8251_v14 = vadd.f32 1.0, %v8250_v24  ;;  %vm8254_vm3 = vcmp.lt.f32.partialorder %v8253_v11, 0.0004427343  ;;  %v8217_v51 = vand.u32 2147483647, %v12842_v1 }
0x32ff   :  { %12853 = vlog2.f32 %v8211_v47 }
0x3300   :  { %v8252_v7 = vmul.f32 %v12844_v18, %v8251_v14  ;;  %vm8218_vm6 = vcmp.lt.f32.partialorder %v8217_v51, 0.0004427343 }
0x3307   :  { %v12846_v41 = vpop.eup %12845 }
0x3308   :  { %v12848_v2 = vpop.eup %12847  ;;  %v8240_v13 = vmul.f32 0.6931472, %v12846_v41  ;;  %v8225_v41 = vmul.f32 %v12836_v43, %v8224_v10 }
0x3309   :  { %v12850_v6 = vpop.eup %12849  ;;  %v8231_v63 = vmul.f32 0.6931472, %v12848_v2 }
0x330a   :  { %v8222_v32 = vmul.f32 0.6931472, %v12850_v6  ;;  %v8246_v49 = vsel %vm8245_vm2, %v8243_v58, %v8240_v13 }
0x330b   :  { %v12852_v33 = vpop.eup %12851  ;;  %v8237_v17 = vsel %vm8236_vm4, %v8234_v0, %v8231_v63  ;;  %v8259_v18 = vadd.f32 %v8246_v49, %v8189_v60 }
0x330c   :  { %v8249_v38 = vmul.f32 0.6931472, %v12852_v33  ;;  %v12854_v46 = vpop.eup %12853  ;;  %v8228_v22 = vsel %vm8227_vm5, %v8225_v41, %v8222_v32  ;;  %v8258_v23 = vadd.f32 %v8237_v17, %v8188_v40 }
0x330d   :  { %v8213_v15 = vmul.f32 0.6931472, %v12854_v46  ;;  %v8257_v43 = vadd.f32 %v8228_v22, %v8187_v57 }
0x330e   :  { %v8255_v47 = vsel %vm8254_vm3, %v8252_v7, %v8249_v38 }
0x330f   :  { %v8260_v24 = vadd.f32 %v8255_v47, %v8190_v35  ;;  %v8219_v14 = vsel %vm8218_vm6, %v8216_v26, %v8213_v15 }
0x3310   :  { %v8256_v50 = vadd.f32 %v8219_v14, %v8186_v29 }
0x3311   :  { %11785 = vmatpush3.msra.mxu0 %v8260_v24 }
0x3312   :  { %11786 = vmatprep.subr.mxu0 %v16629_v34 }
0x3313   :  { %11787 = vmatpush3.msra.mxu0 %v8259_v18 }
0x3314   :  { %11788 = vmatprep.subr.mxu0 %v16629_v34 }
0x3315   :  { %11789 = vmatpush3.msra.mxu0 %v8258_v23 }
0x3316   :  { %11790 = vmatprep.subr.mxu0 %v16629_v34 }
0x3317   :  { %11791 = vmatpush3.msra.mxu0 %v8257_v43 }
0x3318   :  { %11792 = vmatprep.subr.mxu0 %v16629_v34 }
0x3319   :  { %11793 = vmatpush3.msra.mxu0 %v8256_v50 }
0x331a   :  { %11795 = vmatmul.mubr.msk.f32.vlgmr.msra.gmra.mxu0 %vm312_vm7, %v15843_v59 }
0x331b   :  { %11797 = vmatprep.mubr.msk.f32.mxu0 %vm13134_vm1, %v16629_v34 }
0x331e   :  { %11798 = vmatmul.mubr.msk.f32.gmra.mxu0 %vm312_vm7, %v15852_v39 }
0x331f   :  { %11800 = vmatprep.mubr.msk.f32.mxu0 %vm13134_vm1, %v16629_v34 }
0x3322   :  { %11801 = vmatmul.mubr.msk.f32.gmra.mxu0 %vm312_vm7, %v15861_v45 }
0x3323   :  { %11803 = vmatprep.mubr.msk.f32.mxu0 %vm13134_vm1, %v16629_v34 }
0x3326   :  { %11804 = vmatmul.mubr.msk.f32.gmra.mxu0 %vm312_vm7, %v15870_v30 }
0x3327   :  { %11806 = vmatprep.mubr.msk.f32.mxu0 %vm13134_vm1, %v16629_v34 }
0x332a   :  { %11807 = vmatmul.mubr.msk.f32.gmra.mxu0 %vm312_vm7, %v15879_v19 }
0x332b   :  { %11844 = vmatprep.mubr.msk.f32.mxu0 %vm312_vm7, %v15886_v42 }
0x33da   :  { %v8327_v59 = vpop.f32.mrf.mxu0 }
0x33db   :  { %v16069_v30 = vadd.f32 %v8327_v59, %v15122_v61 }
0x33dc   :  { %v11796_v39 = vpop.f32.mrf.mxu0 }
0x33dd   :  { %v8356_v6 = vand.u32 2147483647, %v16069_v30 }
0x33de   :  { %v8332_v44 = vpop.f32.mrf.mxu0 }
0x33df   :  { %v16065_v45 = vadd.f32 %v8332_v44, %v15117_v27  ;;  %v8361_v35 = vsub.f32 0.0, %v8356_v6 }
0x33e0   :  { %v11799_v5 = vpop.f32.mrf.mxu0 }
0x33e1   :  { %v8357_v1 = vand.u32 2147483647, %v16065_v45  ;;  %v8366_v0 = vmul.f32 1.442695, %v8361_v35 }
0x33e2   :  { %v8337_v2 = vpop.f32.mrf.mxu0 }
0x33e3   :  { %v16072_v54 = vadd.f32 %v8337_v2, %v15115_v21  ;;  %v8362_v11 = vsub.f32 0.0, %v8357_v1 }
0x33e4   :  { %v11802_v19 = vpop.f32.mrf.mxu0 }
0x33e5   :  { %v8358_v42 = vand.u32 2147483647, %v16072_v54  ;;  %v8368_v10 = vmul.f32 1.442695, %v8362_v11 }
0x33e6   :  { %v8342_v12 = vpop.f32.mrf.mxu0 }
0x33e7   :  { %v8363_v13 = vsub.f32 0.0, %v8358_v42  ;;  %v16077_v33 = vadd.f32 %v8342_v12, %v16689_v31  ;;  %12855 = vpow2.f32 %v8368_v10 }
0x33e8   :  { %v11805_v55 = vpop.f32.mrf.mxu0 }
0x33e9   :  { %v8359_v56 = vand.u32 2147483647, %v16077_v33  ;;  %v8370_v63 = vmul.f32 1.442695, %v8363_v13 }
0x33ea   :  { %v8347_v58 = vpop.f32.mrf.mxu0 }
0x33eb   :  { %v8364_v38 = vsub.f32 0.0, %v8359_v56  ;;  %v8348_v7 = vadd.f32 %v8347_v58, %v16690_v3  ;;  %12857 = vpow2.f32 %v8370_v63 }
0x33ec   :  { %v11808_v46 = vpop.f32.mrf.mxu0 }
0x33ed   :  { %v8372_v20 = vmul.f32 1.442695, %v8364_v38  ;;  %v8360_v32 = vand.u32 2147483647, %v8348_v7  ;;  %v8355_v55 = vmax.f32 %v8348_v7, 0.0 }
0x33ef   :  { %12859 = vpow2.f32 %v8372_v20  ;;  %v8365_v49 = vsub.f32 0.0, %v8360_v32 }
0x33f0   :  { %12861 = vpow2.f32 %v8366_v0 }
0x33f1   :  { %v8374_v47 = vmul.f32 1.442695, %v8365_v49 }
0x33f3   :  { %12863 = vpow2.f32 %v8374_v47  ;;  %v8354_v47 = vmax.f32 %v16077_v33, 0.0  ;;  %v8351_v33 = vmax.f32 %v16069_v30, 0.0  ;;  %v16696_v30 = vld [vmem:[#allocation3_spill] sm:$0xff] }
0x33f4   :  { %v12856_v51 = vpop.eup %12855 }
0x33f5   :  { %v8385_v40 = vadd.f32 1.0, %v12856_v51  ;;  %v8388_v50 = vmul.f32 -0.5, %v12856_v51  ;;  %v8391_v38 = vand.u32 2147483647, %v12856_v51 }
0x33f7   :  { %v8389_v12 = vadd.f32 1.0, %v8388_v50  ;;  %vm8392_vm11 = vcmp.lt.f32.partialorder %v8391_v38, 0.0004427343  ;;  %v16698_v50 = vld [vmem:[#allocation4_spill] sm:$0xff] }
0x33f8   :  { %v12858_v60 = vpop.eup %12857 }
0x33f9   :  { %v8394_v41 = vadd.f32 1.0, %v12858_v60  ;;  %v8397_v14 = vmul.f32 -0.5, %v12858_v60  ;;  %v8400_v13 = vand.u32 2147483647, %v12858_v60 }
0x33fb   :  { %v8398_v19 = vadd.f32 1.0, %v8397_v14  ;;  %vm8401_vm10 = vcmp.lt.f32.partialorder %v8400_v13, 0.0004427343  ;;  %v16697_v14 = vld [vmem:[#allocation2_spill] sm:$0xff] }
0x33fc   :  { %v12860_v24 = vpop.eup %12859 }
0x33fd   :  { %v8403_v15 = vadd.f32 1.0, %v12860_v24  ;;  %v12862_v17 = vpop.eup %12861  ;;  %v8406_v57 = vmul.f32 -0.5, %v12860_v24  ;;  %v8409_v5 = vand.u32 2147483647, %v12860_v24  ;;  %v8399_v20 = vmul.f32 %v12858_v60, %v8398_v19  ;;  %v16699_v19 = vld [vmem:[#allocation6_spill] sm:$0xff] }
0x33fe   :  { %v8376_v26 = vadd.f32 1.0, %v12862_v17  ;;  %v8379_v43 = vmul.f32 -0.5, %v12862_v17  ;;  %v8382_v49 = vand.u32 2147483647, %v12862_v17  ;;  %v8352_v60 = vmax.f32 %v16065_v45, 0.0 }
0x33ff   :  { %12865 = vlog2.f32 %v8403_v15  ;;  %v8407_v59 = vadd.f32 1.0, %v8406_v57  ;;  %vm8410_vm8 = vcmp.lt.f32.partialorder %v8409_v5, 0.0004427343 }
0x3400   :  { %v12864_v18 = vpop.eup %12863  ;;  %12867 = vlog2.f32 %v8394_v41  ;;  %v8380_v6 = vadd.f32 1.0, %v8379_v43  ;;  %vm8383_vm12 = vcmp.lt.f32.partialorder %v8382_v49, 0.0004427343 }
0x3401   :  { %v8412_v22 = vadd.f32 1.0, %v12864_v18  ;;  %12869 = vlog2.f32 %v8385_v40  ;;  %v8415_v23 = vmul.f32 -0.5, %v12864_v18  ;;  %v8418_v1 = vand.u32 2147483647, %v12864_v18 }
0x3402   :  { %v8408_v56 = vmul.f32 %v12860_v24, %v8407_v59  ;;  %v8390_v40 = vmul.f32 %v12856_v51, %v8389_v12  ;;  %v8353_v24 = vmax.f32 %v16072_v54, 0.0 }
0x3403   :  { %12871 = vlog2.f32 %v8412_v22  ;;  %v8416_v39 = vadd.f32 1.0, %v8415_v23  ;;  %vm8419_vm9 = vcmp.lt.f32.partialorder %v8418_v1, 0.0004427343 }
0x3404   :  { %12873 = vlog2.f32 %v8376_v26  ;;  %v8381_v26 = vmul.f32 %v12862_v17, %v8380_v6 }
0x3405   :  { %v8417_v63 = vmul.f32 %v12864_v18, %v8416_v39 }
0x340c   :  { %v12866_v29 = vpop.eup %12865 }
0x340d   :  { %v12868_v44 = vpop.eup %12867  ;;  %v8405_v11 = vmul.f32 0.6931472, %v12866_v29 }
0x340e   :  { %v12870_v2 = vpop.eup %12869  ;;  %v8396_v10 = vmul.f32 0.6931472, %v12868_v44 }
0x340f   :  { %v8387_v46 = vmul.f32 0.6931472, %v12870_v2  ;;  %v8411_v32 = vsel %vm8410_vm8, %v8408_v56, %v8405_v11 }
0x3410   :  { %v12872_v42 = vpop.eup %12871  ;;  %v8402_v7 = vsel %vm8401_vm10, %v8399_v20, %v8396_v10  ;;  %v8424_v18 = vadd.f32 %v8411_v32, %v8354_v47 }
0x3411   :  { %v8414_v35 = vmul.f32 0.6931472, %v12872_v42  ;;  %v12874_v58 = vpop.eup %12873  ;;  %v8393_v22 = vsel %vm8392_vm11, %v8390_v40, %v8387_v46  ;;  %v8423_v57 = vadd.f32 %v8402_v7, %v8353_v24 }
0x3412   :  { %v8378_v41 = vmul.f32 0.6931472, %v12874_v58  ;;  %v8422_v51 = vadd.f32 %v8393_v22, %v8352_v60 }
0x3413   :  { %v8420_v0 = vsel %vm8419_vm9, %v8417_v63, %v8414_v35  ;;  %v16700_v35 = vld [vmem:[#allocation5_spill] sm:$0xff] }
0x3414   :  { %v8425_v15 = vadd.f32 %v8420_v0, %v8355_v55  ;;  %v8384_v23 = vsel %vm8383_vm12, %v8381_v26, %v8378_v41 }
0x3415   :  { %v8421_v54 = vadd.f32 %v8384_v23, %v8351_v33 }
0x3416   :  { %11810 = vmatpush3.msra.mxu1 %v8425_v15 }
0x3417   :  { %11811 = vmatprep.subr.mxu1 %v16629_v34 }
0x3418   :  { %11812 = vmatpush3.msra.mxu1 %v8424_v18 }
0x3419   :  { %11813 = vmatprep.subr.mxu1 %v16629_v34 }
0x341a   :  { %11814 = vmatpush3.msra.mxu1 %v8423_v57 }
0x341b   :  { %11815 = vmatprep.subr.mxu1 %v16629_v34 }
0x341c   :  { %11816 = vmatpush3.msra.mxu1 %v8422_v51 }
0x341d   :  { %11817 = vmatprep.subr.mxu1 %v16629_v34 }
0x341e   :  { %11818 = vmatpush3.msra.mxu1 %v8421_v54 }
0x341f   :  { %11820 = vmatmul.mubr.msk.f32.vlgmr.msra.gmra.mxu1 %vm312_vm7, %v15918_v28  ;;  %11866 = vmatprep.subr.mxu1 %v16629_v34 }
0x3420   :  { %11822 = vmatprep.mubr.msk.f32.mxu1 %vm13134_vm1, %v16629_v34 }
0x3423   :  { %11823 = vmatmul.mubr.msk.f32.gmra.mxu1 %vm312_vm7, %v15928_v53 }
0x3424   :  { %11825 = vmatprep.mubr.msk.f32.mxu1 %vm13134_vm1, %v16629_v34 }
0x3427   :  { %11826 = vmatmul.mubr.msk.f32.gmra.mxu1 %vm312_vm7, %v15937_v36 }
0x3428   :  { %11828 = vmatprep.mubr.msk.f32.mxu1 %vm13134_vm1, %v16629_v34 }
0x342b   :  { %11829 = vmatmul.mubr.msk.f32.gmra.mxu1 %vm312_vm7, %v15946_v52 }
0x342c   :  { %11831 = vmatprep.mubr.msk.f32.mxu1 %vm13134_vm1, %v16629_v34 }
0x342f   :  { %11832 = vmatmul.mubr.msk.f32.gmra.mxu1 %vm312_vm7, %v15955_v16 }
0x3430   :  { %11876 = vmatprep.mubr.msk.f32.mxu1 %vm13134_vm1, %v16629_v34 }
0x34df   :  { %v8492_v28 = vpop.f32.mrf.mxu1 }
0x34e0   :  { %v16114_v29 = vadd.f32 %v8492_v28, %v16697_v14 }
0x34e1   :  { %v11821_v53 = vpop.f32.mrf.mxu1 }
0x34e2   :  { %v8521_v39 = vand.u32 2147483647, %v16114_v29 }
0x34e3   :  { %v8497_v45 = vpop.f32.mrf.mxu1 }
0x34e4   :  { %v16111_v36 = vadd.f32 %v8497_v45, %v16696_v30  ;;  %v8526_v6 = vsub.f32 0.0, %v8521_v39 }
0x34e5   :  { %v11824_v17 = vpop.f32.mrf.mxu1 }
0x34e6   :  { %v8522_v52 = vand.u32 2147483647, %v16111_v36  ;;  %v8531_v38 = vmul.f32 1.442695, %v8526_v6 }
0x34e7   :  { %v8502_v43 = vpop.f32.mrf.mxu1 }
0x34e8   :  { %v16118_v59 = vadd.f32 %v8502_v43, %v16698_v50  ;;  %v8527_v5 = vsub.f32 0.0, %v8522_v52 }
0x34e9   :  { %v11827_v16 = vpop.f32.mrf.mxu1 }
0x34ea   :  { %v8523_v44 = vand.u32 2147483647, %v16118_v59  ;;  %v8533_v55 = vmul.f32 1.442695, %v8527_v5 }
0x34eb   :  { %v8507_v1 = vpop.f32.mrf.mxu1 }
0x34ec   :  { %v8528_v2 = vsub.f32 0.0, %v8523_v44  ;;  %v16123_v11 = vadd.f32 %v8507_v1, %v16699_v19 }
0x34ed   :  { %v11830_v42 = vpop.f32.mrf.mxu1 }
0x34ee   :  { %v8535_v12 = vmul.f32 1.442695, %v8528_v2  ;;  %v8524_v13 = vand.u32 2147483647, %v16123_v11 }
0x34ef   :  { %v8512_v10 = vpop.f32.mrf.mxu1 }
0x34f0   :  { %v8529_v56 = vsub.f32 0.0, %v8524_v13  ;;  %v8513_v63 = vadd.f32 %v8512_v10, %v16700_v35  ;;  %12875 = vpow2.f32 %v8535_v12 }
0x34f1   :  { %v11833_v58 = vpop.f32.mrf.mxu1  ;;  %12877 = vpow2.f32 %v8533_v55 }
0x34f2   :  { %v8537_v46 = vmul.f32 1.442695, %v8529_v56  ;;  %v8525_v20 = vand.u32 2147483647, %v8513_v63  ;;  %v8520_v5 = vmax.f32 %v8513_v63, 0.0 }
0x34f4   :  { %12879 = vpow2.f32 %v8537_v46  ;;  %v8530_v32 = vsub.f32 0.0, %v8525_v20 }
0x34f5   :  { %12881 = vpow2.f32 %v8531_v38 }
0x34f6   :  { %v8539_v0 = vmul.f32 1.442695, %v8530_v32  ;;  %v8519_v32 = vmax.f32 %v16123_v11, 0.0 }
0x34f8   :  { %12883 = vpow2.f32 %v8539_v0 }
0x34fd   :  { %v12876_v49 = vpop.eup %12875 }
0x34fe   :  { %v12878_v47 = vpop.eup %12877  ;;  %v8559_v40 = vadd.f32 1.0, %v12876_v49  ;;  %v8562_v23 = vmul.f32 -0.5, %v12876_v49  ;;  %v8565_v1 = vand.u32 2147483647, %v12876_v49 }
0x34ff   :  { %v8550_v24 = vadd.f32 1.0, %v12878_v47  ;;  %v8553_v51 = vmul.f32 -0.5, %v12878_v47  ;;  %v8556_v56 = vand.u32 2147483647, %v12878_v47 }
0x3500   :  { %v8563_v39 = vadd.f32 1.0, %v8562_v23  ;;  %vm8566_vm15 = vcmp.lt.f32.partialorder %v8565_v1, 0.0004427343  ;;  %v16189_v1 = vld [vmem:[%s16522_s1 + $0x130] sm:$0xff] }
0x3501   :  { %v12880_v15 = vpop.eup %12879  ;;  %v8554_v2 = vadd.f32 1.0, %v8553_v51  ;;  %vm8557_vm2 = vcmp.lt.f32.partialorder %v8556_v56, 0.0004427343 }
0x3502   :  { %v8568_v41 = vadd.f32 1.0, %v12880_v15  ;;  %v12882_v7 = vpop.eup %12881  ;;  %v8571_v57 = vmul.f32 -0.5, %v12880_v15  ;;  %v8574_v52 = vand.u32 2147483647, %v12880_v15  ;;  %v8564_v46 = vmul.f32 %v12876_v49, %v8563_v39  ;;  %v16162_v39 = vld [vmem:[%s16522_s1 + $0x118] sm:$0xff] }
0x3503   :  { %v8541_v22 = vadd.f32 1.0, %v12882_v7  ;;  %v8544_v54 = vmul.f32 -0.5, %v12882_v7  ;;  %v8547_v63 = vand.u32 2147483647, %v12882_v7 }
0x3504   :  { %12885 = vlog2.f32 %v8568_v41  ;;  %v8572_v53 = vadd.f32 1.0, %v8571_v57  ;;  %vm8575_vm14 = vcmp.lt.f32.partialorder %v8574_v52, 0.0004427343  ;;  %v8516_v57 = vmax.f32 %v16114_v29, 0.0 }
0x3505   :  { %v12884_v18 = vpop.eup %12883  ;;  %12887 = vlog2.f32 %v8559_v40  ;;  %v8545_v42 = vadd.f32 1.0, %v8544_v54  ;;  %v8555_v40 = vmul.f32 %v12878_v47, %v8554_v2  ;;  %vm8548_vm3 = vcmp.lt.f32.partialorder %v8547_v63, 0.0004427343  ;;  %v8692_v2 = vpop.permute.xlu1 %8691 }
0x3506   :  { %v8577_v26 = vadd.f32 1.0, %v12884_v18  ;;  %12889 = vlog2.f32 %v8550_v24  ;;  %v8580_v60 = vmul.f32 -0.5, %v12884_v18  ;;  %v8583_v17 = vand.u32 2147483647, %v12884_v18 }
0x3507   :  { %v8573_v13 = vmul.f32 %v12880_v15, %v8572_v53  ;;  %v8068_v29 = vmul.f32 0.083333336, %v15997_v9 }
0x3508   :  { %12891 = vlog2.f32 %v8577_v26  ;;  %v8581_v28 = vadd.f32 1.0, %v8580_v60  ;;  %vm8584_vm13 = vcmp.lt.f32.partialorder %v8583_v17, 0.0004427343  ;;  %v8517_v60 = vmax.f32 %v16111_v36, 0.0 }
0x3509   :  { %12893 = vlog2.f32 %v8541_v22  ;;  %v8546_v22 = vmul.f32 %v12882_v7, %v8545_v42  ;;  %v8069_v36 = vmul.f32 0.083333336, %v15993_v8  ;;  %v8684_v42 = vpop.permute.xlu1 %8683 }
0x350a   :  { %v8582_v12 = vmul.f32 %v12884_v18, %v8581_v28  ;;  %v8518_v18 = vmax.f32 %v16118_v59, 0.0 }
0x350b   :  { %v8071_v51 = vadd.f32 %v8069_v36, %v15766_v62 }
0x3511   :  { %v12886_v33 = vpop.eup %12885 }
0x3512   :  { %v12888_v45 = vpop.eup %12887  ;;  %v8570_v16 = vmul.f32 0.6931472, %v12886_v33 }
0x3513   :  { %v12890_v43 = vpop.eup %12889  ;;  %v8561_v55 = vmul.f32 0.6931472, %v12888_v45 }
0x3514   :  { %v8576_v38 = vsel %vm8575_vm14, %v8573_v13, %v8570_v16  ;;  %v8552_v20 = vmul.f32 0.6931472, %v12890_v43  ;;  %v16152_v16 = vld [vmem:[%s16522_s1 + $0x110] sm:$0xff] }
0x3515   :  { %v12892_v44 = vpop.eup %12891  ;;  %v8567_v41 = vsel %vm8566_vm15, %v8564_v46, %v8561_v55  ;;  %v8589_v15 = vadd.f32 %v8576_v38, %v8519_v32  ;;  %v8680_v55 = vpop.permute.xlu1 %8679 }
0x3516   :  { %v8579_v6 = vmul.f32 0.6931472, %v12892_v44  ;;  %v12894_v10 = vpop.eup %12893  ;;  %v8558_v26 = vsel %vm8557_vm2, %v8555_v40, %v8552_v20  ;;  %v8588_v49 = vadd.f32 %v8567_v41, %v8518_v18  ;;  %v16171_v44 = vld [vmem:[%s16522_s1 + $0x120] sm:$0xff] }
0x3517   :  { %v8543_v24 = vmul.f32 0.6931472, %v12894_v10  ;;  %v8587_v47 = vadd.f32 %v8558_v26, %v8517_v60 }
0x3518   :  { %v8585_v58 = vsel %vm8584_vm13, %v8582_v12, %v8579_v6  ;;  %v8688_v6 = vpop.permute.xlu0 %8687 }
0x3519   :  { %v8590_v0 = vadd.f32 %v8585_v58, %v8520_v5  ;;  %v8549_v11 = vsel %vm8548_vm3, %v8546_v22, %v8543_v24  ;;  %v16180_v5 = vld [vmem:[%s16522_s1 + $0x128] sm:$0xff] }
0x351a   :  { %v8586_v59 = vadd.f32 %v8549_v11, %v8516_v57 }
0x351b   :  { %11834 = vmatprep.subr.mxu0 %v8590_v0 }
0x351c   :  { %11835 = vmatpush3.msra.mxu0 %v8590_v0  ;;  %v8676_v56 = vpop.permute.xlu0 %8675 }
0x351d   :  { %11836 = vmatprep.subr.mxu0 %v8589_v15 }
0x351e   :  { %11837 = vmatpush3.msra.mxu0 %v8589_v15 }
0x351f   :  { %11838 = vmatprep.subr.mxu0 %v8588_v49 }
0x3520   :  { %11839 = vmatpush3.msra.mxu0 %v8588_v49 }
0x3521   :  { %11840 = vmatprep.subr.mxu0 %v8587_v47 }
0x3522   :  { %11841 = vmatpush3.msra.mxu0 %v8587_v47 }
0x3523   :  { %11842 = vmatprep.subr.mxu0 %v8586_v59 }
0x3524   :  { %11843 = vmatpush3.msra.mxu0 %v8586_v59 }
0x3525   :  { %11845 = vmatmul.mubr.msk.f32.vlgmr.msra.gmra.mxu0 %vm312_vm7, %v15985_v4  ;;  %11847 = vmatprep.subr.mxu0 %v16629_v34  ;;  %v8070_v4 = vadd.f32 %v8068_v29, %v15769_v37 }
0x3526   :  { %11851 = vmatprep.mubr.msk.f32.mxu0 %vm13134_vm1, %v16629_v34 }
0x35e5   :  { %v11846_v7 = vpop.f32.mrf.mxu0 }
0x35e6   :  { %v8663_v23 = vadd.f32 %v11846_v7, %v15240_v25 }
0x35e7   :  { %v8657_v33 = vpop.f32.mrf.mxu0 }
0x35e8   :  { %v8667_v54 = vmul.f32 0.16666667, %v8663_v23  ;;  %v8671_v28 = vmul.f32 0.25, %v8663_v23  ;;  %v8658_v53 = vadd.f32 %v8657_v33, %v15245_v48 }
0x35ea   :  { %v16142_v45 = vadd.f32 %v8667_v54, %v8071_v51  ;;  %v8673_v17 = vadd.f32 %v8671_v28, %v15766_v62  ;;  %v8666_v52 = vmul.f32 0.16666667, %v8658_v53  ;;  %v8670_v8 = vmul.f32 0.25, %v8658_v53 }
0x35ec   :  { %v16145_v43 = vadd.f32 %v8666_v52, %v8070_v4  ;;  %v8672_v9 = vadd.f32 %v8670_v8, %v15769_v37  ;;  %11848 = vmatpush3.msra.mxu0 %v8673_v17 }
0x35ed   :  { %11849 = vmatprep.subr.mxu0 %v16629_v34 }
0x35ee   :  { %11850 = vmatpush3.msra.mxu0 %v8672_v9 }
0x35ef   :  { %11852 = vmatmul.mubr.msk.f32.vlgmr.msra.gmra.mxu0 %vm131_vm0, %v16152_v16  ;;  %11891 = vmatprep.subr.mxu0 %v16629_v34 }
0x35f0   :  { %11854 = vmatprep.mubr.msk.f32.mxu0 %vm13134_vm1, %v16629_v34 }
0x35f3   :  { %11855 = vmatmul.mubr.msk.f32.gmra.mxu0 %vm131_vm0, %v16162_v39 }
0x35f4   :  { %11857 = vmatprep.mubr.msk.f32.mxu0 %vm13134_vm1, %v16629_v34 }
0x35f7   :  { %11858 = vmatmul.mubr.msk.f32.gmra.mxu0 %vm131_vm0, %v16171_v44 }
0x35f8   :  { %11860 = vmatprep.mubr.msk.f32.mxu0 %vm13134_vm1, %v16629_v34 }
0x35fb   :  { %11861 = vmatmul.mubr.msk.f32.gmra.mxu0 %vm131_vm0, %v16180_v5 }
0x35fc   :  { %11863 = vmatprep.mubr.msk.f32.mxu0 %vm13134_vm1, %v16629_v34 }
0x35ff   :  { %11864 = vmatmul.mubr.msk.f32.gmra.mxu0 %vm131_vm0, %v16189_v1 }
0x3600   :  { %11901 = vmatprep.mubr.msk.f32.mxu0 %vm13134_vm1, %v16629_v34 }
0x36af   :  { %v8760_v12 = vpop.f32.mrf.mxu0 }
0x36b0   :  { %v16198_v20 = vadd.f32 %v8760_v12, %v8676_v56 }
0x36b1   :  { %v11853_v13 = vpop.f32.mrf.mxu0 }
0x36b2   :  { %v8789_v24 = vand.u32 2147483647, %v16198_v20 }
0x36b3   :  { %v8765_v10 = vpop.f32.mrf.mxu0 }
0x36b4   :  { %v16195_v58 = vadd.f32 %v8765_v10, %v8680_v55  ;;  %v8794_v11 = vsub.f32 0.0, %v8789_v24 }
0x36b5   :  { %v11856_v38 = vpop.f32.mrf.mxu0 }
0x36b6   :  { %v8790_v46 = vand.u32 2147483647, %v16195_v58  ;;  %v8799_v33 = vmul.f32 1.442695, %v8794_v11 }
0x36b7   :  { %v8770_v32 = vpop.f32.mrf.mxu0 }
0x36b8   :  { %v16200_v0 = vadd.f32 %v8770_v32, %v8684_v42  ;;  %v8795_v41 = vsub.f32 0.0, %v8790_v46 }
0x36b9   :  { %v11859_v63 = vpop.f32.mrf.mxu0 }
0x36ba   :  { %v8791_v40 = vand.u32 2147483647, %v16200_v0  ;;  %v8801_v60 = vmul.f32 1.442695, %v8795_v41 }
0x36bb   :  { %v8775_v18 = vpop.f32.mrf.mxu0 }
0x36bc   :  { %v8796_v15 = vsub.f32 0.0, %v8791_v40  ;;  %v16204_v26 = vadd.f32 %v8775_v18, %v8688_v6  ;;  %12895 = vpow2.f32 %v8801_v60 }
0x36bd   :  { %v11862_v22 = vpop.f32.mrf.mxu0 }
0x36be   :  { %v8792_v49 = vand.u32 2147483647, %v16204_v26  ;;  %v8803_v57 = vmul.f32 1.442695, %v8796_v15 }
0x36bf   :  { %v8780_v47 = vpop.f32.mrf.mxu0 }
0x36c0   :  { %v8797_v59 = vsub.f32 0.0, %v8792_v49  ;;  %v8781_v36 = vadd.f32 %v8780_v47, %v8692_v2  ;;  %12897 = vpow2.f32 %v8803_v57 }
0x36c1   :  { %v11865_v29 = vpop.f32.mrf.mxu0 }
0x36c2   :  { %v8805_v7 = vmul.f32 1.442695, %v8797_v59  ;;  %v8793_v23 = vand.u32 2147483647, %v8781_v36  ;;  %v8788_v57 = vmax.f32 %v8781_v36, 0.0 }
0x36c4   :  { %12899 = vpow2.f32 %v8805_v7  ;;  %v8798_v51 = vsub.f32 0.0, %v8793_v23 }
0x36c5   :  { %12901 = vpow2.f32 %v8799_v33 }
0x36c6   :  { %v8807_v54 = vmul.f32 1.442695, %v8798_v51 }
0x36c8   :  { %12903 = vpow2.f32 %v8807_v54 }
0x36c9   :  { %v12896_v28 = vpop.eup %12895 }
0x36ca   :  { %v8818_v9 = vadd.f32 1.0, %v12896_v28  ;;  %v8821_v38 = vmul.f32 -0.5, %v12896_v28  ;;  %v8824_v33 = vand.u32 2147483647, %v12896_v28 }
0x36cc   :  { %v8822_v49 = vadd.f32 1.0, %v8821_v38  ;;  %vm8825_vm8 = vcmp.lt.f32.partialorder %v8824_v33, 0.0004427343 }
0x36cd   :  { %v12898_v53 = vpop.eup %12897 }
0x36ce   :  { %v8827_v52 = vadd.f32 1.0, %v12898_v53  ;;  %v8830_v55 = vmul.f32 -0.5, %v12898_v53  ;;  %v8833_v11 = vand.u32 2147483647, %v12898_v53 }
0x36d0   :  { %v8831_v18 = vadd.f32 1.0, %v8830_v55  ;;  %vm8834_vm6 = vcmp.lt.f32.partialorder %v8833_v11, 0.0004427343 }
0x36d1   :  { %v12900_v4 = vpop.eup %12899 }
0x36d2   :  { %v8836_v17 = vadd.f32 1.0, %v12900_v4  ;;  %v12902_v8 = vpop.eup %12901  ;;  %v8839_v12 = vmul.f32 -0.5, %v12900_v4  ;;  %v8842_v41 = vand.u32 2147483647, %v12900_v4  ;;  %v8832_v54 = vmul.f32 %v12898_v53, %v8831_v18 }
0x36d3   :  { %v8809_v42 = vadd.f32 1.0, %v12902_v8  ;;  %v8812_v56 = vmul.f32 -0.5, %v12902_v8  ;;  %v8785_v53 = vmax.f32 %v16195_v58, 0.0  ;;  %v16218_v58 = vld [vmem:[%s16522_s1 + $0x138] sm:$0xff] }
0x36d4   :  { %12905 = vlog2.f32 %v8836_v17  ;;  %v8840_v46 = vadd.f32 1.0, %v8839_v12  ;;  %vm8843_vm4 = vcmp.lt.f32.partialorder %v8842_v41, 0.0004427343 }
0x36d5   :  { %v12904_v2 = vpop.eup %12903  ;;  %12907 = vlog2.f32 %v8827_v52  ;;  %v8813_v60 = vadd.f32 1.0, %v8812_v56 }
0x36d6   :  { %v8845_v6 = vadd.f32 1.0, %v12904_v2  ;;  %12909 = vlog2.f32 %v8818_v9  ;;  %v8848_v13 = vmul.f32 -0.5, %v12904_v2  ;;  %v8851_v40 = vand.u32 2147483647, %v12904_v2 }
0x36d7   :  { %v8841_v59 = vmul.f32 %v12900_v4, %v8840_v46  ;;  %v8815_v9 = vand.u32 2147483647, %v12902_v8  ;;  %v8786_v4 = vmax.f32 %v16200_v0, 0.0  ;;  %v8814_v55 = vmul.f32 %v12902_v8, %v8813_v60  ;;  %v16236_v8 = vld [vmem:[%s16522_s1 + $0x148] sm:$0xff]  ;;  %v16245_v46 = vld [vmem:[%s16522_s1 + $0x150] sm:$0xff] }
0x36d8   :  { %12911 = vlog2.f32 %v8845_v6  ;;  %v8849_v32 = vadd.f32 1.0, %v8848_v13  ;;  %vm8852_vm5 = vcmp.lt.f32.partialorder %v8851_v40, 0.0004427343  ;;  %v8823_v13 = vmul.f32 %v12896_v28, %v8822_v49 }
0x36d9   :  { %12913 = vlog2.f32 %v8809_v42  ;;  %v8787_v42 = vmax.f32 %v16204_v26, 0.0  ;;  %vm8816_vm9 = vcmp.lt.f32.partialorder %v8815_v9, 0.0004427343  ;;  %v8784_v26 = vmax.f32 %v16198_v20, 0.0  ;;  %v16227_v20 = vld [vmem:[%s16522_s1 + $0x140] sm:$0xff] }
0x36da   :  { %v8850_v7 = vmul.f32 %v12904_v2, %v8849_v32  ;;  %v16254_v32 = vld [vmem:[%s16522_s1 + $0x158] sm:$0xff] }
0x36e1   :  { %v12906_v10 = vpop.eup %12905 }
0x36e2   :  { %v12908_v63 = vpop.eup %12907  ;;  %v8838_v15 = vmul.f32 0.6931472, %v12906_v10 }
0x36e3   :  { %v12910_v24 = vpop.eup %12909  ;;  %v8829_v47 = vmul.f32 0.6931472, %v12908_v63  ;;  %v16261_v63 = vld [vmem:[%s16522_s1 + $0x188] sm:$0xff] }
0x36e4   :  { %v8820_v51 = vmul.f32 0.6931472, %v12910_v24  ;;  %v8844_v17 = vsel %vm8843_vm4, %v8841_v59, %v8838_v15 }
0x36e5   :  { %v12912_v22 = vpop.eup %12911  ;;  %v8835_v36 = vsel %vm8834_vm6, %v8832_v54, %v8829_v47  ;;  %v8857_v2 = vadd.f32 %v8844_v17, %v8787_v42 }
0x36e6   :  { %v8847_v29 = vmul.f32 0.6931472, %v12912_v22  ;;  %v12914_v23 = vpop.eup %12913  ;;  %v8826_v10 = vsel %vm8825_vm8, %v8823_v13, %v8820_v51  ;;  %v8856_v56 = vadd.f32 %v8835_v36, %v8786_v4 }
0x36e7   :  { %v8811_v12 = vmul.f32 0.6931472, %v12914_v23  ;;  %v8855_v28 = vadd.f32 %v8826_v10, %v8785_v53 }
0x36e8   :  { %v8853_v52 = vsel %vm8852_vm5, %v8850_v7, %v8847_v29 }
0x36e9   :  { %v8858_v6 = vadd.f32 %v8853_v52, %v8788_v57  ;;  %v8817_v38 = vsel %vm8816_vm9, %v8814_v55, %v8811_v12 }
0x36ea   :  { %v8854_v0 = vadd.f32 %v8817_v38, %v8784_v26 }
0x36eb   :  { %11867 = vmatpush3.msra.mxu1 %v8858_v6 }
0x36ec   :  { %11868 = vmatprep.subr.mxu1 %v16629_v34 }
0x36ed   :  { %11869 = vmatpush3.msra.mxu1 %v8857_v2 }
0x36ee   :  { %11870 = vmatprep.subr.mxu1 %v16629_v34 }
0x36ef   :  { %11871 = vmatpush3.msra.mxu1 %v8856_v56 }
0x36f0   :  { %11872 = vmatprep.subr.mxu1 %v16629_v34 }
0x36f1   :  { %11873 = vmatpush3.msra.mxu1 %v8855_v28 }
0x36f2   :  { %11874 = vmatprep.subr.mxu1 %v16629_v34 }
0x36f3   :  { %11875 = vmatpush3.msra.mxu1 %v8854_v0 }
0x36f4   :  { %11877 = vmatmul.mubr.msk.f32.vlgmr.msra.gmra.mxu1 %vm312_vm7, %v16218_v58 }
0x36f5   :  { %11879 = vmatprep.mubr.msk.f32.mxu1 %vm13134_vm1, %v16629_v34 }
0x36f8   :  { %11880 = vmatmul.mubr.msk.f32.gmra.mxu1 %vm312_vm7, %v16227_v20 }
0x36f9   :  { %11882 = vmatprep.mubr.msk.f32.mxu1 %vm13134_vm1, %v16629_v34 }
0x36fc   :  { %11883 = vmatmul.mubr.msk.f32.gmra.mxu1 %vm312_vm7, %v16236_v8 }
0x36fd   :  { %11885 = vmatprep.mubr.msk.f32.mxu1 %vm13134_vm1, %v16629_v34 }
0x3700   :  { %11886 = vmatmul.mubr.msk.f32.gmra.mxu1 %vm312_vm7, %v16245_v46 }
0x3701   :  { %11888 = vmatprep.mubr.msk.f32.mxu1 %vm13134_vm1, %v16629_v34 }
0x3704   :  { %11889 = vmatmul.mubr.msk.f32.gmra.mxu1 %vm312_vm7, %v16254_v32 }
0x3705   :  { %11926 = vmatprep.mubr.msk.f32.mxu1 %vm312_vm7, %v16261_v63 }
0x37b4   :  { %v8925_v41 = vpop.f32.mrf.mxu1 }
0x37b5   :  { %v16270_v60 = vadd.f32 %v8925_v41, %v15122_v61 }
0x37b6   :  { %v11878_v40 = vpop.f32.mrf.mxu1 }
0x37b7   :  { %v8954_v29 = vand.u32 2147483647, %v16270_v60 }
0x37b8   :  { %v8930_v24 = vpop.f32.mrf.mxu1 }
0x37b9   :  { %v16266_v18 = vadd.f32 %v8930_v24, %v15117_v27  ;;  %v8959_v52 = vsub.f32 0.0, %v8954_v29 }
0x37ba   :  { %v11881_v15 = vpop.f32.mrf.mxu1 }
0x37bb   :  { %v8955_v22 = vand.u32 2147483647, %v16266_v18  ;;  %v8964_v2 = vmul.f32 1.442695, %v8959_v52 }
0x37bc   :  { %v8935_v49 = vpop.f32.mrf.mxu1 }
0x37bd   :  { %v16273_v11 = vadd.f32 %v8935_v49, %v15115_v21  ;;  %v8960_v47 = vsub.f32 0.0, %v8955_v22 }
0x37be   :  { %v11884_v57 = vpop.f32.mrf.mxu1 }
0x37bf   :  { %v8956_v59 = vand.u32 2147483647, %v16273_v11  ;;  %v8966_v54 = vmul.f32 1.442695, %v8960_v47 }
0x37c0   :  { %v8940_v7 = vpop.f32.mrf.mxu1 }
0x37c1   :  { %v8961_v23 = vsub.f32 0.0, %v8956_v59  ;;  %v16278_v33 = vadd.f32 %v8940_v7, %v16689_v31  ;;  %12915 = vpow2.f32 %v8966_v54 }
0x37c2   :  { %v11887_v51 = vpop.f32.mrf.mxu1 }
0x37c3   :  { %v8957_v17 = vand.u32 2147483647, %v16278_v33  ;;  %v8968_v9 = vmul.f32 1.442695, %v8961_v23 }
0x37c4   :  { %v8945_v42 = vpop.f32.mrf.mxu1 }
0x37c5   :  { %v8962_v6 = vsub.f32 0.0, %v8957_v17  ;;  %v8946_v12 = vadd.f32 %v8945_v42, %v16690_v3  ;;  %12917 = vpow2.f32 %v8968_v9 }
0x37c6   :  { %v11890_v13 = vpop.f32.mrf.mxu1 }
0x37c7   :  { %v8970_v36 = vmul.f32 1.442695, %v8962_v6  ;;  %v8958_v4 = vand.u32 2147483647, %v8946_v12 }
0x37c9   :  { %12919 = vpow2.f32 %v8970_v36  ;;  %v8963_v55 = vsub.f32 0.0, %v8958_v4 }
0x37ca   :  { %12921 = vpow2.f32 %v8964_v2  ;;  %v8953_v2 = vmax.f32 %v8946_v12, 0.0 }
0x37cb   :  { %v8972_v10 = vmul.f32 1.442695, %v8963_v55 }
0x37cd   :  { %12923 = vpow2.f32 %v8972_v10 }
0x37ce   :  { %v12916_v53 = vpop.eup %12915 }
0x37cf   :  { %v8983_v41 = vadd.f32 1.0, %v12916_v53  ;;  %v8986_v29 = vmul.f32 -0.5, %v12916_v53 }
0x37d1   :  { %v8987_v36 = vadd.f32 1.0, %v8986_v29 }
0x37d2   :  { %v12918_v56 = vpop.eup %12917 }
0x37d3   :  { %v8992_v28 = vadd.f32 1.0, %v12918_v56  ;;  %v8995_v57 = vmul.f32 -0.5, %v12918_v56  ;;  %v8998_v4 = vand.u32 2147483647, %v12918_v56  ;;  %v8988_v29 = vmul.f32 %v12916_v53, %v8987_v36 }
0x37d5   :  { %v8996_v9 = vadd.f32 1.0, %v8995_v57  ;;  %vm8999_vm12 = vcmp.lt.f32.partialorder %v8998_v4, 0.0004427343  ;;  %v8952_v57 = vmax.f32 %v16278_v33, 0.0 }
0x37d6   :  { %v12920_v38 = vpop.eup %12919 }
0x37d7   :  { %v9001_v26 = vadd.f32 1.0, %v12920_v38  ;;  %v12922_v0 = vpop.eup %12921  ;;  %v9004_v22 = vmul.f32 -0.5, %v12920_v38  ;;  %v9007_v54 = vand.u32 2147483647, %v12920_v38 }
0x37d8   :  { %v8974_v24 = vadd.f32 1.0, %v12922_v0  ;;  %v8977_v59 = vmul.f32 -0.5, %v12922_v0  ;;  %v8980_v31 = vand.u32 2147483647, %v12922_v0 }
0x37d9   :  { %12925 = vlog2.f32 %v9001_v26  ;;  %v9005_v7 = vadd.f32 1.0, %v9004_v22  ;;  %vm9008_vm10 = vcmp.lt.f32.partialorder %v9007_v54, 0.0004427343  ;;  %v8997_v22 = vmul.f32 %v12918_v56, %v8996_v9 }
0x37da   :  { %v12924_v40 = vpop.eup %12923  ;;  %12927 = vlog2.f32 %v8992_v28  ;;  %v8978_v13 = vadd.f32 1.0, %v8977_v59  ;;  %vm8981_vm14 = vcmp.lt.f32.partialorder %v8980_v31, 0.0004427343  ;;  %v8950_v56 = vmax.f32 %v16266_v18, 0.0  ;;  %v16293_v31 = vld [vmem:[%s16522_s1 + $0x160] sm:$0xff]  ;;  %v16303_v18 = vld [vmem:[%s16522_s1 + $0x168] sm:$0xff] }
0x37db   :  { %v9010_v15 = vadd.f32 1.0, %v12924_v40  ;;  %12929 = vlog2.f32 %v8983_v41  ;;  %v9013_v49 = vmul.f32 -0.5, %v12924_v40  ;;  %v9016_v17 = vand.u32 2147483647, %v12924_v40 }
0x37dc   :  { %v9006_v10 = vmul.f32 %v12920_v38, %v9005_v7  ;;  %v8951_v38 = vmax.f32 %v16273_v11, 0.0  ;;  %v8979_v7 = vmul.f32 %v12922_v0, %v8978_v13  ;;  %v16330_v0 = vld [vmem:[%s16522_s1 + $0x180] sm:$0xff] }
0x37dd   :  { %12931 = vlog2.f32 %v9010_v15  ;;  %v9014_v23 = vadd.f32 1.0, %v9013_v49  ;;  %vm9017_vm11 = vcmp.lt.f32.partialorder %v9016_v17, 0.0004427343 }
0x37de   :  { %12933 = vlog2.f32 %v8974_v24  ;;  %v8989_v24 = vand.u32 2147483647, %v12916_v53  ;;  %v16321_v53 = vld [vmem:[%s16522_s1 + $0x178] sm:$0xff] }
0x37df   :  { %v9015_v28 = vmul.f32 %v12924_v40, %v9014_v23 }
0x37e0   :  { %vm8990_vm13 = vcmp.lt.f32.partialorder %v8989_v24, 0.0004427343 }
0x37e6   :  { %v12926_v47 = vpop.eup %12925 }
0x37e7   :  { %v12928_v51 = vpop.eup %12927  ;;  %v9003_v42 = vmul.f32 0.6931472, %v12926_v47 }
0x37e8   :  { %v12930_v52 = vpop.eup %12929  ;;  %v8994_v55 = vmul.f32 0.6931472, %v12928_v51 }
0x37e9   :  { %v8985_v15 = vmul.f32 0.6931472, %v12930_v52  ;;  %v9009_v49 = vsel %vm9008_vm10, %v9006_v10, %v9003_v42 }
0x37ea   :  { %v12932_v6 = vpop.eup %12931  ;;  %v9000_v12 = vsel %vm8999_vm12, %v8997_v22, %v8994_v55  ;;  %v9022_v40 = vadd.f32 %v9009_v49, %v8952_v57 }
0x37eb   :  { %v9012_v26 = vmul.f32 0.6931472, %v12932_v6  ;;  %v12934_v41 = vpop.eup %12933  ;;  %v8991_v23 = vsel %vm8990_vm13, %v8988_v29, %v8985_v15  ;;  %v9021_v51 = vadd.f32 %v9000_v12, %v8951_v38 }
0x37ec   :  { %v8976_v59 = vmul.f32 0.6931472, %v12934_v41  ;;  %v9020_v33 = vadd.f32 %v8991_v23, %v8950_v56 }
0x37ed   :  { %v9018_v3 = vsel %vm9017_vm11, %v9015_v28, %v9012_v26 }
0x37ee   :  { %v9023_v47 = vadd.f32 %v9018_v3, %v8953_v2  ;;  %v8982_v54 = vsel %vm8981_vm14, %v8979_v7, %v8976_v59  ;;  %v8949_v3 = vmax.f32 %v16270_v60, 0.0  ;;  %v16312_v60 = vld [vmem:[%s16522_s1 + $0x170] sm:$0xff] }
0x37f0   :  { %11892 = vmatpush3.msra.mxu0 %v9023_v47  ;;  %v9019_v11 = vadd.f32 %v8982_v54, %v8949_v3 }
0x37f1   :  { %11893 = vmatprep.subr.mxu0 %v16629_v34 }
0x37f2   :  { %11894 = vmatpush3.msra.mxu0 %v9022_v40 }
0x37f3   :  { %11895 = vmatprep.subr.mxu0 %v16629_v34 }
0x37f4   :  { %11896 = vmatpush3.msra.mxu0 %v9021_v51 }
0x37f5   :  { %11897 = vmatprep.subr.mxu0 %v16629_v34 }
0x37f6   :  { %11898 = vmatpush3.msra.mxu0 %v9020_v33 }
0x37f7   :  { %11899 = vmatprep.subr.mxu0 %v16629_v34 }
0x37f8   :  { %11900 = vmatpush3.msra.mxu0 %v9019_v11 }
0x37f9   :  { %11902 = vmatmul.mubr.msk.f32.vlgmr.msra.gmra.mxu0 %vm312_vm7, %v16293_v31  ;;  %11948 = vmatprep.subr.mxu0 %v16629_v34 }
0x37fa   :  { %11904 = vmatprep.mubr.msk.f32.mxu0 %vm13134_vm1, %v16629_v34 }
0x37fd   :  { %11905 = vmatmul.mubr.msk.f32.gmra.mxu0 %vm312_vm7, %v16303_v18 }
0x37fe   :  { %11907 = vmatprep.mubr.msk.f32.mxu0 %vm13134_vm1, %v16629_v34 }
0x3801   :  { %11908 = vmatmul.mubr.msk.f32.gmra.mxu0 %vm312_vm7, %v16312_v60 }
0x3802   :  { %11910 = vmatprep.mubr.msk.f32.mxu0 %vm13134_vm1, %v16629_v34 }
0x3805   :  { %11911 = vmatmul.mubr.msk.f32.gmra.mxu0 %vm312_vm7, %v16321_v53 }
0x3806   :  { %11913 = vmatprep.mubr.msk.f32.mxu0 %vm13134_vm1, %v16629_v34 }
0x3809   :  { %11914 = vmatmul.mubr.msk.f32.gmra.mxu0 %vm312_vm7, %v16330_v0 }
0x380a   :  { %11958 = vmatprep.mubr.msk.f32.mxu0 %vm13134_vm1, %v16629_v34 }
0x38b9   :  { %v9090_v17 = vpop.f32.mrf.mxu0 }
0x38ba   :  { %v16340_v13 = vadd.f32 %v9090_v17, %v16697_v14 }
0x38bb   :  { %v11903_v52 = vpop.f32.mrf.mxu0 }
0x38bc   :  { %v9119_v10 = vand.u32 2147483647, %v16340_v13 }
0x38bd   :  { %v9095_v9 = vpop.f32.mrf.mxu0 }
0x38be   :  { %v16337_v42 = vadd.f32 %v9095_v9, %v16696_v30  ;;  %v9124_v49 = vsub.f32 0.0, %v9119_v10 }
0x38bf   :  { %v11906_v6 = vpop.f32.mrf.mxu0 }
0x38c0   :  { %v9120_v36 = vand.u32 2147483647, %v16337_v42  ;;  %v9129_v7 = vmul.f32 1.442695, %v9124_v49 }
0x38c1   :  { %v9100_v4 = vpop.f32.mrf.mxu0 }
0x38c2   :  { %v16344_v2 = vadd.f32 %v9100_v4, %v16698_v50  ;;  %v9125_v28 = vsub.f32 0.0, %v9120_v36 }
0x38c3   :  { %v11909_v55 = vpop.f32.mrf.mxu0 }
0x38c4   :  { %v9121_v26 = vand.u32 2147483647, %v16344_v2  ;;  %v9131_v59 = vmul.f32 1.442695, %v9125_v28 }
0x38c5   :  { %v9105_v41 = vpop.f32.mrf.mxu0 }
0x38c6   :  { %v9126_v24 = vsub.f32 0.0, %v9121_v26  ;;  %v16349_v15 = vadd.f32 %v9105_v41, %v16699_v19 }
0x38c7   :  { %v11912_v22 = vpop.f32.mrf.mxu0 }
0x38c8   :  { %v9133_v57 = vmul.f32 1.442695, %v9126_v24  ;;  %v9122_v47 = vand.u32 2147483647, %v16349_v15 }
0x38c9   :  { %v9110_v29 = vpop.f32.mrf.mxu0 }
0x38ca   :  { %v9127_v12 = vsub.f32 0.0, %v9122_v47  ;;  %v9111_v38 = vadd.f32 %v9110_v29, %v16700_v35  ;;  %12935 = vpow2.f32 %v9133_v57 }
0x38cb   :  { %v11915_v40 = vpop.f32.mrf.mxu0  ;;  %12937 = vpow2.f32 %v9131_v59 }
0x38cc   :  { %v9135_v23 = vmul.f32 1.442695, %v9127_v12  ;;  %v9123_v56 = vand.u32 2147483647, %v9111_v38 }
0x38ce   :  { %12939 = vpow2.f32 %v9135_v23  ;;  %v9128_v51 = vsub.f32 0.0, %v9123_v56  ;;  %v9118_v56 = vmax.f32 %v9111_v38, 0.0 }
0x38cf   :  { %12941 = vpow2.f32 %v9129_v7 }
0x38d0   :  { %v9137_v54 = vmul.f32 1.442695, %v9128_v51 }
0x38d2   :  { %12943 = vpow2.f32 %v9137_v54 }
0x38d7   :  { %v12936_v3 = vpop.eup %12935 }
0x38d8   :  { %v12938_v33 = vpop.eup %12937  ;;  %v9157_v52 = vadd.f32 1.0, %v12936_v3  ;;  %v9160_v28 = vmul.f32 -0.5, %v12936_v3  ;;  %v9163_v51 = vand.u32 2147483647, %v12936_v3 }
0x38d9   :  { %v9148_v6 = vadd.f32 1.0, %v12938_v33  ;;  %v9151_v24 = vmul.f32 -0.5, %v12938_v33 }
0x38da   :  { %v9161_v7 = vadd.f32 1.0, %v9160_v28  ;;  %vm9164_vm3 = vcmp.lt.f32.partialorder %v9163_v51, 0.0004427343 }
0x38db   :  { %v12940_v11 = vpop.eup %12939  ;;  %v9152_v54 = vadd.f32 1.0, %v9151_v24 }
0x38dc   :  { %v9166_v17 = vadd.f32 1.0, %v12940_v11  ;;  %v12942_v9 = vpop.eup %12941  ;;  %v9169_v26 = vmul.f32 -0.5, %v12940_v11  ;;  %v9172_v29 = vand.u32 2147483647, %v12940_v11  ;;  %v9162_v50 = vmul.f32 %v12936_v3, %v9161_v7 }
0x38dd   :  { %v9139_v55 = vadd.f32 1.0, %v12942_v9  ;;  %v9142_v22 = vmul.f32 -0.5, %v12942_v9  ;;  %v9145_v38 = vand.u32 2147483647, %v12942_v9  ;;  %v9153_v24 = vmul.f32 %v12938_v33, %v9152_v54 }
0x38de   :  { %12945 = vlog2.f32 %v9166_v17  ;;  %v9170_v57 = vadd.f32 1.0, %v9169_v26  ;;  %vm9173_vm2 = vcmp.lt.f32.partialorder %v9172_v29, 0.0004427343 }
0x38df   :  { %v12944_v36 = vpop.eup %12943  ;;  %12947 = vlog2.f32 %v9157_v52  ;;  %v9143_v17 = vadd.f32 1.0, %v9142_v22  ;;  %vm9146_vm5 = vcmp.lt.f32.partialorder %v9145_v38, 0.0004427343 }
0x38e0   :  { %v9175_v4 = vadd.f32 1.0, %v12944_v36  ;;  %12949 = vlog2.f32 %v9148_v6  ;;  %v9178_v10 = vmul.f32 -0.5, %v12944_v36  ;;  %v9181_v59 = vand.u32 2147483647, %v12944_v36 }
0x38e2   :  { %12951 = vlog2.f32 %v9175_v4  ;;  %v9179_v49 = vadd.f32 1.0, %v9178_v10  ;;  %v9171_v4 = vmul.f32 %v12940_v11, %v9170_v57  ;;  %vm9182_vm15 = vcmp.lt.f32.partialorder %v9181_v59, 0.0004427343 }
0x38e3   :  { %12953 = vlog2.f32 %v9139_v55  ;;  %v9154_v10 = vand.u32 2147483647, %v12938_v33  ;;  %v9144_v57 = vmul.f32 %v12942_v9, %v9143_v17  ;;  %v9114_v59 = vmax.f32 %v16340_v13, 0.0 }
0x38e4   :  { %v9180_v6 = vmul.f32 %v12944_v36, %v9179_v49  ;;  %v9116_v36 = vmax.f32 %v16344_v2, 0.0 }
0x38e5   :  { %vm9155_vm4 = vcmp.lt.f32.partialorder %v9154_v10, 0.0004427343 }
0x38eb   :  { %v12946_v41 = vpop.eup %12945 }
0x38ec   :  { %v12948_v47 = vpop.eup %12947  ;;  %v9168_v40 = vmul.f32 0.6931472, %v12946_v41  ;;  %v9117_v41 = vmax.f32 %v16349_v15, 0.0 }
0x38ed   :  { %v12950_v12 = vpop.eup %12949  ;;  %v9159_v55 = vmul.f32 0.6931472, %v12948_v47  ;;  %v9115_v47 = vmax.f32 %v16337_v42, 0.0 }
0x38ee   :  { %v9174_v19 = vsel %vm9173_vm2, %v9171_v4, %v9168_v40  ;;  %v9150_v14 = vmul.f32 0.6931472, %v12950_v12 }
0x38ef   :  { %v12952_v23 = vpop.eup %12951  ;;  %v9165_v30 = vsel %vm9164_vm3, %v9162_v50, %v9159_v55  ;;  %v9187_v11 = vadd.f32 %v9174_v19, %v9117_v41 }
0x38f0   :  { %v9177_v52 = vmul.f32 0.6931472, %v12952_v23  ;;  %v12954_v35 = vpop.eup %12953  ;;  %v9156_v49 = vsel %vm9155_vm4, %v9153_v24, %v9150_v14  ;;  %v9186_v3 = vadd.f32 %v9165_v30, %v9116_v36  ;;  %v16360_v14 = vld [vmem:[%s16522_s1 + $0x190] sm:$0xff] }
0x38f1   :  { %v9141_v22 = vmul.f32 0.6931472, %v12954_v35  ;;  %v9185_v50 = vadd.f32 %v9156_v49, %v9115_v47 }
0x38f2   :  { %v9183_v26 = vsel %vm9182_vm15, %v9180_v6, %v9177_v52 }
0x38f3   :  { %v9188_v28 = vadd.f32 %v9183_v26, %v9118_v56  ;;  %v9147_v15 = vsel %vm9146_vm5, %v9144_v57, %v9141_v22 }
0x38f4   :  { %v9184_v35 = vadd.f32 %v9147_v15, %v9114_v59 }
0x38f5   :  { %11916 = vmatprep.subr.mxu1 %v9188_v28 }
0x38f6   :  { %11917 = vmatpush3.msra.mxu1 %v9188_v28 }
0x38f7   :  { %11918 = vmatprep.subr.mxu1 %v9187_v11 }
0x38f8   :  { %11919 = vmatpush3.msra.mxu1 %v9187_v11 }
0x38f9   :  { %11920 = vmatprep.subr.mxu1 %v9186_v3 }
0x38fa   :  { %11921 = vmatpush3.msra.mxu1 %v9186_v3 }
0x38fb   :  { %11922 = vmatprep.subr.mxu1 %v9185_v50 }
0x38fc   :  { %11923 = vmatpush3.msra.mxu1 %v9185_v50 }
0x38fd   :  { %11924 = vmatprep.subr.mxu1 %v9184_v35 }
0x38fe   :  { %11925 = vmatpush3.msra.mxu1 %v9184_v35 }
0x38ff   :  { %11927 = vmatmul.mubr.msk.f32.vlgmr.msra.gmra.mxu1 %vm312_vm7, %v16360_v14  ;;  %11929 = vmatprep.subr.mxu1 %v16629_v34 }
0x3900   :  { %11933 = vmatprep.mubr.msk.f32.mxu1 %vm13134_vm1, %v16629_v34 }
0x39bf   :  { %v11928_v30 = vpop.f32.mrf.mxu1 }
0x39c0   :  { %v9261_v19 = vadd.f32 %v11928_v30, %v15240_v25 }
0x39c1   :  { %v9255_v42 = vpop.f32.mrf.mxu1 }
0x39c2   :  { %v9265_v13 = vmul.f32 0.16666667, %v9261_v19  ;;  %v9269_v2 = vmul.f32 0.5, %v9261_v19  ;;  %v9256_v33 = vadd.f32 %v9255_v42, %v15245_v48 }
0x39c4   :  { %v9271_v9 = vadd.f32 %v9269_v2, %v15766_v62  ;;  %v9264_v29 = vmul.f32 0.16666667, %v9256_v33  ;;  %v9268_v12 = vmul.f32 0.5, %v9256_v33  ;;  %v16371_v40 = vadd.f32 %v9265_v13, %v16142_v45  ;;  %v9290_v62 = vpop.permute.xlu1 %9289  ;;  %v9286_v45 = vpop.permute.xlu0 %9285 }
0x39c6   :  { %v9270_v7 = vadd.f32 %v9268_v12, %v15769_v37  ;;  %11930 = vmatpush3.msra.mxu1 %v9271_v9  ;;  %v16375_v23 = vadd.f32 %v9264_v29, %v16145_v43 }
0x39c7   :  { %11931 = vmatprep.subr.mxu1 %v16629_v34 }
0x39c8   :  { %11932 = vmatpush3.msra.mxu1 %v9270_v7  ;;  %v9282_v37 = vpop.permute.xlu1 %9281  ;;  %v9274_v56 = vpop.permute.xlu0 %9273 }
0x39c9   :  { %11934 = vmatmul.mubr.msk.f32.vlgmr.msra.gmra.mxu1 %vm131_vm0, %v16152_v16  ;;  %11973 = vmatprep.subr.mxu1 %v16629_v34 }
0x39ca   :  { %11936 = vmatprep.mubr.msk.f32.mxu1 %vm13134_vm1, %v16629_v34 }
0x39cd   :  { %11937 = vmatmul.mubr.msk.f32.gmra.mxu1 %vm131_vm0, %v16162_v39  ;;  %v9278_v39 = vpop.permute.xlu1 %9277 }
0x39ce   :  { %11939 = vmatprep.mubr.msk.f32.mxu1 %vm13134_vm1, %v16629_v34 }
0x39d1   :  { %11940 = vmatmul.mubr.msk.f32.gmra.mxu1 %vm131_vm0, %v16171_v44 }
0x39d2   :  { %11942 = vmatprep.mubr.msk.f32.mxu1 %vm13134_vm1, %v16629_v34 }
0x39d5   :  { %11943 = vmatmul.mubr.msk.f32.gmra.mxu1 %vm131_vm0, %v16180_v5 }
0x39d6   :  { %11945 = vmatprep.mubr.msk.f32.mxu1 %vm13134_vm1, %v16629_v34 }
0x39d9   :  { %11946 = vmatmul.mubr.msk.f32.gmra.mxu1 %vm131_vm0, %v16189_v1 }
0x39da   :  { %11983 = vmatprep.mubr.msk.f32.mxu1 %vm13134_vm1, %v16629_v34 }
0x3a89   :  { %v9358_v43 = vpop.f32.mrf.mxu1 }
0x3a8a   :  { %v16402_v17 = vadd.f32 %v9358_v43, %v9274_v56 }
0x3a8b   :  { %v11935_v16 = vpop.f32.mrf.mxu1 }
0x3a8c   :  { %v9387_v10 = vand.u32 2147483647, %v16402_v17 }
0x3a8d   :  { %v9363_v44 = vpop.f32.mrf.mxu1 }
0x3a8e   :  { %v16399_v51 = vadd.f32 %v9363_v44, %v9278_v39  ;;  %v9392_v36 = vsub.f32 0.0, %v9387_v10 }
0x3a8f   :  { %v11938_v5 = vpop.f32.mrf.mxu1 }
0x3a90   :  { %v9388_v54 = vand.u32 2147483647, %v16399_v51  ;;  %v9397_v50 = vmul.f32 1.442695, %v9392_v36 }
0x3a91   :  { %v9368_v52 = vpop.f32.mrf.mxu1 }
0x3a92   :  { %v16404_v1 = vadd.f32 %v9368_v52, %v9282_v37  ;;  %v9393_v4 = vsub.f32 0.0, %v9388_v54 }
0x3a93   :  { %v11941_v6 = vpop.f32.mrf.mxu1 }
0x3a94   :  { %v9389_v55 = vand.u32 2147483647, %v16404_v1  ;;  %v9399_v24 = vmul.f32 1.442695, %v9393_v4 }
0x3a95   :  { %v9373_v26 = vpop.f32.mrf.mxu1 }
0x3a96   :  { %v9394_v41 = vsub.f32 0.0, %v9389_v55  ;;  %v16408_v28 = vadd.f32 %v9373_v26, %v9286_v45  ;;  %12955 = vpow2.f32 %v9399_v24 }
0x3a97   :  { %v11944_v38 = vpop.f32.mrf.mxu1 }
0x3a98   :  { %v9390_v22 = vand.u32 2147483647, %v16408_v28  ;;  %v9401_v11 = vmul.f32 1.442695, %v9394_v41 }
0x3a99   :  { %v9378_v49 = vpop.f32.mrf.mxu1 }
0x3a9a   :  { %v9395_v57 = vsub.f32 0.0, %v9390_v22  ;;  %v9379_v47 = vadd.f32 %v9378_v49, %v9290_v62  ;;  %12957 = vpow2.f32 %v9401_v11 }
0x3a9b   :  { %v11947_v3 = vpop.f32.mrf.mxu1 }
0x3a9c   :  { %v9403_v15 = vmul.f32 1.442695, %v9395_v57  ;;  %v9391_v59 = vand.u32 2147483647, %v9379_v47  ;;  %v9386_v22 = vmax.f32 %v9379_v47, 0.0 }
0x3a9e   :  { %12959 = vpow2.f32 %v9403_v15  ;;  %v9396_v35 = vsub.f32 0.0, %v9391_v59 }
0x3a9f   :  { %12961 = vpow2.f32 %v9397_v50 }
0x3aa0   :  { %v9405_v30 = vmul.f32 1.442695, %v9396_v35 }
0x3aa2   :  { %12963 = vpow2.f32 %v9405_v30 }
0x3aa3   :  { %v12956_v19 = vpop.eup %12955 }
0x3aa4   :  { %v9416_v29 = vadd.f32 1.0, %v12956_v19  ;;  %v9419_v44 = vmul.f32 -0.5, %v12956_v19  ;;  %v9422_v15 = vand.u32 2147483647, %v12956_v19 }
0x3aa6   :  { %v9420_v38 = vadd.f32 1.0, %v9419_v44  ;;  %vm9423_vm9 = vcmp.lt.f32.partialorder %v9422_v15, 0.0004427343 }
0x3aa7   :  { %v12958_v42 = vpop.eup %12957 }
0x3aa8   :  { %v9425_v33 = vadd.f32 1.0, %v12958_v42  ;;  %v9428_v43 = vmul.f32 -0.5, %v12958_v42  ;;  %v9431_v24 = vand.u32 2147483647, %v12958_v42 }
0x3aaa   :  { %v9429_v55 = vadd.f32 1.0, %v9428_v43  ;;  %vm9432_vm8 = vcmp.lt.f32.partialorder %v9431_v24, 0.0004427343 }
0x3aab   :  { %v12960_v13 = vpop.eup %12959 }
0x3aac   :  { %v9434_v2 = vadd.f32 1.0, %v12960_v13  ;;  %v12962_v9 = vpop.eup %12961  ;;  %v9437_v37 = vmul.f32 -0.5, %v12960_v13  ;;  %v9440_v52 = vand.u32 2147483647, %v12960_v13  ;;  %v9430_v50 = vmul.f32 %v12958_v42, %v9429_v55 }
0x3aad   :  { %v9407_v7 = vadd.f32 1.0, %v12962_v9  ;;  %v9410_v39 = vmul.f32 -0.5, %v12962_v9  ;;  %v9383_v42 = vmax.f32 %v16399_v51, 0.0 }
0x3aae   :  { %12965 = vlog2.f32 %v9434_v2  ;;  %v9438_v56 = vadd.f32 1.0, %v9437_v37  ;;  %vm9441_vm0 = vcmp.lt.f32.partialorder %v9440_v52, 0.0004427343  ;;  %v9413_v2 = vand.u32 2147483647, %v12962_v9 }
0x3aaf   :  { %v12964_v12 = vpop.eup %12963  ;;  %12967 = vlog2.f32 %v9425_v33  ;;  %v9411_v41 = vadd.f32 1.0, %v9410_v39  ;;  %v9385_v33 = vmax.f32 %v16408_v28, 0.0  ;;  %v9382_v28 = vmax.f32 %v16402_v17, 0.0 }
0x3ab0   :  { %v9443_v62 = vadd.f32 1.0, %v12964_v12  ;;  %12969 = vlog2.f32 %v9416_v29  ;;  %v9446_v45 = vmul.f32 -0.5, %v12964_v12  ;;  %v9449_v6 = vand.u32 2147483647, %v12964_v12 }
0x3ab1   :  { %v9439_v11 = vmul.f32 %v12960_v13, %v9438_v56  ;;  %v9384_v13 = vmax.f32 %v16404_v1, 0.0  ;;  %v9412_v37 = vmul.f32 %v12962_v9, %v9411_v41  ;;  %vm9414_vm10 = vcmp.lt.f32.partialorder %v9413_v2, 0.0004427343 }
0x3ab2   :  { %12971 = vlog2.f32 %v9443_v62  ;;  %v9447_v5 = vadd.f32 1.0, %v9446_v45  ;;  %vm9450_vm6 = vcmp.lt.f32.partialorder %v9449_v6, 0.0004427343  ;;  %v9421_v62 = vmul.f32 %v12956_v19, %v9420_v38  ;;  %v16702_v38 = vld [vmem:[#allocation7_spill] sm:$0xff] }
0x3ab3   :  { %12973 = vlog2.f32 %v9407_v7 }
0x3ab4   :  { %v9448_v57 = vmul.f32 %v12964_v12, %v9447_v5 }
0x3abb   :  { %v12966_v16 = vpop.eup %12965 }
0x3abc   :  { %v12968_v54 = vpop.eup %12967  ;;  %v9436_v10 = vmul.f32 0.6931472, %v12966_v16 }
0x3abd   :  { %v12970_v4 = vpop.eup %12969  ;;  %v9427_v36 = vmul.f32 0.6931472, %v12968_v54 }
0x3abe   :  { %v9418_v59 = vmul.f32 0.6931472, %v12970_v4  ;;  %v9442_v35 = vsel %vm9441_vm0, %v9439_v11, %v9436_v10 }
0x3abf   :  { %v12972_v26 = vpop.eup %12971  ;;  %v9433_v47 = vsel %vm9432_vm8, %v9430_v50, %v9427_v36  ;;  %v9455_v12 = vadd.f32 %v9442_v35, %v9385_v33 }
0x3ac0   :  { %v9445_v49 = vmul.f32 0.6931472, %v12972_v26  ;;  %v12974_v3 = vpop.eup %12973  ;;  %v9424_v45 = vsel %vm9423_vm9, %v9421_v62, %v9418_v59  ;;  %v9454_v43 = vadd.f32 %v9433_v47, %v9384_v13 }
0x3ac1   :  { %v9409_v7 = vmul.f32 0.6931472, %v12974_v3  ;;  %v9453_v19 = vadd.f32 %v9424_v45, %v9383_v42 }
0x3ac2   :  { %v9451_v30 = vsel %vm9450_vm6, %v9448_v57, %v9445_v49 }
0x3ac3   :  { %v9456_v29 = vadd.f32 %v9451_v30, %v9386_v22  ;;  %v9415_v16 = vsel %vm9414_vm10, %v9412_v37, %v9409_v7 }
0x3ac4   :  { %v9452_v1 = vadd.f32 %v9415_v16, %v9382_v28 }
0x3ac5   :  { %11949 = vmatpush3.msra.mxu0 %v9456_v29 }
0x3ac6   :  { %11950 = vmatprep.subr.mxu0 %v16629_v34 }
0x3ac7   :  { %11951 = vmatpush3.msra.mxu0 %v9455_v12 }
0x3ac8   :  { %11952 = vmatprep.subr.mxu0 %v16629_v34 }
0x3ac9   :  { %11953 = vmatpush3.msra.mxu0 %v9454_v43 }
0x3aca   :  { %11954 = vmatprep.subr.mxu0 %v16629_v34 }
0x3acb   :  { %11955 = vmatpush3.msra.mxu0 %v9453_v19 }
0x3acc   :  { %11956 = vmatprep.subr.mxu0 %v16629_v34 }
0x3acd   :  { %11957 = vmatpush3.msra.mxu0 %v9452_v1 }
0x3ace   :  { %11959 = vmatmul.mubr.msk.f32.vlgmr.msra.gmra.mxu0 %vm312_vm7, %v16218_v58 }
0x3acf   :  { %11961 = vmatprep.mubr.msk.f32.mxu0 %vm13134_vm1, %v16629_v34 }
0x3ad2   :  { %11962 = vmatmul.mubr.msk.f32.gmra.mxu0 %vm312_vm7, %v16227_v20 }
0x3ad3   :  { %11964 = vmatprep.mubr.msk.f32.mxu0 %vm13134_vm1, %v16629_v34 }
0x3ad6   :  { %11965 = vmatmul.mubr.msk.f32.gmra.mxu0 %vm312_vm7, %v16236_v8 }
0x3ad7   :  { %11967 = vmatprep.mubr.msk.f32.mxu0 %vm13134_vm1, %v16629_v34 }
0x3ada   :  { %11968 = vmatmul.mubr.msk.f32.gmra.mxu0 %vm312_vm7, %v16245_v46 }
0x3adb   :  { %11970 = vmatprep.mubr.msk.f32.mxu0 %vm13134_vm1, %v16629_v34 }
0x3ade   :  { %11971 = vmatmul.mubr.msk.f32.gmra.mxu0 %vm312_vm7, %v16254_v32 }
0x3adf   :  { %12008 = vmatprep.mubr.msk.f32.mxu0 %vm312_vm7, %v16261_v63 }
0x3b8e   :  { %v9523_v58 = vpop.f32.mrf.mxu0 }
0x3b8f   :  { %v16444_v46 = vadd.f32 %v9523_v58, %v15122_v61 }
0x3b90   :  { %v11960_v20 = vpop.f32.mrf.mxu0 }
0x3b91   :  { %v9552_v5 = vand.u32 2147483647, %v16444_v46 }
0x3b92   :  { %v9528_v51 = vpop.f32.mrf.mxu0 }
0x3b93   :  { %v16440_v8 = vadd.f32 %v9528_v51, %v15117_v27  ;;  %v16701_v27 = vld [vmem:[#allocation13_spill] sm:$0xff]  ;;  %v9557_v10 = vsub.f32 0.0, %v9552_v5 }
0x3b94   :  { %v11963_v17 = vpop.f32.mrf.mxu0 }
0x3b95   :  { %v9553_v9 = vand.u32 2147483647, %v16440_v8  ;;  %v9562_v49 = vmul.f32 1.442695, %v9557_v10 }
0x3b96   :  { %v9533_v39 = vpop.f32.mrf.mxu0 }
0x3b97   :  { %v16447_v44 = vadd.f32 %v9533_v39, %v15115_v21  ;;  %v9558_v56 = vsub.f32 0.0, %v9553_v9 }
0x3b98   :  { %v11966_v32 = vpop.f32.mrf.mxu0 }
0x3b99   :  { %v9554_v63 = vand.u32 2147483647, %v16447_v44  ;;  %v9564_v55 = vmul.f32 1.442695, %v9558_v56 }
0x3b9a   :  { %v9538_v54 = vpop.f32.mrf.mxu0 }
0x3b9b   :  { %v9559_v52 = vsub.f32 0.0, %v9554_v63  ;;  %v16452_v6 = vadd.f32 %v9538_v54, %v16701_v27  ;;  %12975 = vpow2.f32 %v9564_v55 }
0x3b9c   :  { %v11969_v4 = vpop.f32.mrf.mxu0 }
0x3b9d   :  { %v9555_v61 = vand.u32 2147483647, %v16452_v6  ;;  %v9566_v26 = vmul.f32 1.442695, %v9559_v52 }
0x3b9e   :  { %v9543_v41 = vpop.f32.mrf.mxu0 }
0x3b9f   :  { %v9560_v21 = vsub.f32 0.0, %v9555_v61  ;;  %v9544_v24 = vadd.f32 %v9543_v41, %v16702_v38  ;;  %12977 = vpow2.f32 %v9566_v26 }
0x3ba0   :  { %v11972_v22 = vpop.f32.mrf.mxu0 }
0x3ba1   :  { %v9568_v36 = vmul.f32 1.442695, %v9560_v21  ;;  %v9556_v11 = vand.u32 2147483647, %v9544_v24  ;;  %v9551_v56 = vmax.f32 %v9544_v24, 0.0  ;;  %v9550_v21 = vmax.f32 %v16452_v6, 0.0 }
0x3ba2   :  { %v9547_v6 = vmax.f32 %v16444_v46, 0.0 }
0x3ba3   :  { %12979 = vpow2.f32 %v9568_v36  ;;  %v9561_v57 = vsub.f32 0.0, %v9556_v11  ;;  %v9549_v11 = vmax.f32 %v16447_v44, 0.0 }
0x3ba4   :  { %12981 = vpow2.f32 %v9562_v49 }
0x3ba5   :  { %v9570_v3 = vmul.f32 1.442695, %v9561_v57 }
0x3ba7   :  { %12983 = vpow2.f32 %v9570_v3 }
0x3ba8   :  { %v12976_v15 = vpop.eup %12975 }
0x3ba9   :  { %v9581_v33 = vadd.f32 1.0, %v12976_v15  ;;  %v9584_v42 = vmul.f32 -0.5, %v12976_v15  ;;  %v9587_v4 = vand.u32 2147483647, %v12976_v15 }
0x3bab   :  { %v9585_v39 = vadd.f32 1.0, %v9584_v42  ;;  %vm9588_vm14 = vcmp.lt.f32.partialorder %v9587_v4, 0.0004427343 }
0x3bac   :  { %v12978_v59 = vpop.eup %12977 }
0x3bad   :  { %v9590_v30 = vadd.f32 1.0, %v12978_v59  ;;  %v9593_v12 = vmul.f32 -0.5, %v12978_v59  ;;  %v9596_v32 = vand.u32 2147483647, %v12978_v59  ;;  %v9586_v36 = vmul.f32 %v12976_v15, %v9585_v39 }
0x3baf   :  { %v9594_v20 = vadd.f32 1.0, %v9593_v12  ;;  %vm9597_vm13 = vcmp.lt.f32.partialorder %v9596_v32, 0.0004427343 }
0x3bb0   :  { %v12980_v50 = vpop.eup %12979 }
0x3bb1   :  { %v9599_v35 = vadd.f32 1.0, %v12980_v50  ;;  %v12982_v2 = vpop.eup %12981  ;;  %v9602_v47 = vmul.f32 -0.5, %v12980_v50  ;;  %v9605_v19 = vand.u32 2147483647, %v12980_v50  ;;  %v9595_v61 = vmul.f32 %v12978_v59, %v9594_v20 }
0x3bb2   :  { %v9572_v7 = vadd.f32 1.0, %v12982_v2  ;;  %v9575_v45 = vmul.f32 -0.5, %v12982_v2  ;;  %v9578_v41 = vand.u32 2147483647, %v12982_v2  ;;  %v9548_v59 = vmax.f32 %v16440_v8, 0.0 }
0x3bb3   :  { %12985 = vlog2.f32 %v9599_v35  ;;  %v9603_v43 = vadd.f32 1.0, %v9602_v47  ;;  %vm9606_vm11 = vcmp.lt.f32.partialorder %v9605_v19, 0.0004427343 }
0x3bb4   :  { %v12984_v29 = vpop.eup %12983  ;;  %12987 = vlog2.f32 %v9590_v30  ;;  %v9576_v9 = vadd.f32 1.0, %v9575_v45  ;;  %vm9579_vm15 = vcmp.lt.f32.partialorder %v9578_v41, 0.0004427343 }
0x3bb5   :  { %v9608_v62 = vadd.f32 1.0, %v12984_v29  ;;  %12989 = vlog2.f32 %v9581_v33  ;;  %v9611_v13 = vmul.f32 -0.5, %v12984_v29  ;;  %v9614_v1 = vand.u32 2147483647, %v12984_v29 }
0x3bb6   :  { %v9604_v5 = vmul.f32 %v12980_v50, %v9603_v43  ;;  %v9577_v57 = vmul.f32 %v12982_v2, %v9576_v9  ;;  %v16704_v2 = vld [vmem:[#allocation2_spill] sm:$0xff]  ;;  %v16707_v9 = vld [vmem:[#allocation5_spill] sm:$0xff] }
0x3bb7   :  { %12991 = vlog2.f32 %v9608_v62  ;;  %v9612_v16 = vadd.f32 1.0, %v9611_v13  ;;  %vm9615_vm12 = vcmp.lt.f32.partialorder %v9614_v1, 0.0004427343  ;;  %v16706_v43 = vld [vmem:[#allocation6_spill] sm:$0xff] }
0x3bb8   :  { %12993 = vlog2.f32 %v9572_v7  ;;  %v16705_v7 = vld [vmem:[#allocation4_spill] sm:$0xff] }
0x3bb9   :  { %v9613_v52 = vmul.f32 %v12984_v29, %v9612_v16 }
0x3bc0   :  { %v12986_v37 = vpop.eup %12985 }
0x3bc1   :  { %v12988_v28 = vpop.eup %12987  ;;  %v9601_v51 = vmul.f32 0.6931472, %v12986_v37 }
0x3bc2   :  { %v12990_v58 = vpop.eup %12989  ;;  %v9592_v63 = vmul.f32 0.6931472, %v12988_v28 }
0x3bc3   :  { %v9583_v55 = vmul.f32 0.6931472, %v12990_v58  ;;  %v9607_v10 = vsel %vm9606_vm11, %v9604_v5, %v9601_v51 }
0x3bc4   :  { %v12992_v17 = vpop.eup %12991  ;;  %v9598_v24 = vsel %vm9597_vm13, %v9595_v61, %v9592_v63  ;;  %v9620_v49 = vadd.f32 %v9607_v10, %v9550_v21 }
0x3bc5   :  { %v9610_v54 = vmul.f32 0.6931472, %v12992_v17  ;;  %v12994_v27 = vpop.eup %12993  ;;  %v9589_v3 = vsel %vm9588_vm14, %v9586_v36, %v9583_v55  ;;  %v9619_v50 = vadd.f32 %v9598_v24, %v9549_v11 }
0x3bc6   :  { %v9574_v22 = vmul.f32 0.6931472, %v12994_v27  ;;  %v9618_v15 = vadd.f32 %v9589_v3, %v9548_v59 }
0x3bc7   :  { %v9616_v26 = vsel %vm9615_vm12, %v9613_v52, %v9610_v54 }
0x3bc8   :  { %v9621_v38 = vadd.f32 %v9616_v26, %v9551_v56  ;;  %v9580_v35 = vsel %vm9579_vm15, %v9577_v57, %v9574_v22 }
0x3bc9   :  { %v9617_v44 = vadd.f32 %v9580_v35, %v9547_v6 }
0x3bca   :  { %11974 = vmatpush3.msra.mxu1 %v9621_v38 }
0x3bcb   :  { %11975 = vmatprep.subr.mxu1 %v16629_v34 }
0x3bcc   :  { %11976 = vmatpush3.msra.mxu1 %v9620_v49 }
0x3bcd   :  { %11977 = vmatprep.subr.mxu1 %v16629_v34 }
0x3bce   :  { %11978 = vmatpush3.msra.mxu1 %v9619_v50 }
0x3bcf   :  { %11979 = vmatprep.subr.mxu1 %v16629_v34 }
0x3bd0   :  { %11980 = vmatpush3.msra.mxu1 %v9618_v15 }
0x3bd1   :  { %11981 = vmatprep.subr.mxu1 %v16629_v34 }
0x3bd2   :  { %11982 = vmatpush3.msra.mxu1 %v9617_v44 }
0x3bd3   :  { %11984 = vmatmul.mubr.msk.f32.vlgmr.msra.gmra.mxu1 %vm312_vm7, %v16293_v31  ;;  %v9867_v31 = vld [vmem:[%s16522_s1 + $0x228] sm:$0xff] }
0x3bd4   :  { %11986 = vmatprep.mubr.msk.f32.mxu1 %vm13134_vm1, %v16629_v34  ;;  %9875 = vperm.xlu0 %12054, %v9867_v31  }
0x3bd7   :  { %11987 = vmatmul.mubr.msk.f32.gmra.mxu1 %vm312_vm7, %v16303_v18  ;;  %v9866_v18 = vld [vmem:[%s16522_s1 + $0x220] sm:$0xff] }
0x3bd8   :  { %11989 = vmatprep.mubr.msk.f32.mxu1 %vm13134_vm1, %v16629_v34  ;;  %9870 = vperm.xlu1 %12053, %v9866_v18  }
0x3bdb   :  { %11990 = vmatmul.mubr.msk.f32.gmra.mxu1 %vm312_vm7, %v16312_v60 }
0x3bdc   :  { %11992 = vmatprep.mubr.msk.f32.mxu1 %vm13134_vm1, %v16629_v34 }
0x3bdf   :  { %11993 = vmatmul.mubr.msk.f32.gmra.mxu1 %vm312_vm7, %v16321_v53  ;;  %v16703_v53 = vld [vmem:[#allocation3_spill] sm:$0xff] }
0x3be0   :  { %11995 = vmatprep.mubr.msk.f32.mxu1 %vm13134_vm1, %v16629_v34 }
0x3be3   :  { %11996 = vmatmul.mubr.msk.f32.gmra.mxu1 %vm312_vm7, %v16330_v0 }
0x3c93   :  { %v9688_v60 = vpop.f32.mrf.mxu1 }
0x3c94   :  { %v16492_v33 = vadd.f32 %v9688_v60, %v16704_v2 }
0x3c95   :  { %v11985_v8 = vpop.f32.mrf.mxu1 }
0x3c96   :  { %v9717_v13 = vand.u32 2147483647, %v16492_v33 }
0x3c97   :  { %v9693_v46 = vpop.f32.mrf.mxu1 }
0x3c98   :  { %v16489_v30 = vadd.f32 %v9693_v46, %v16703_v53  ;;  %v9722_v19 = vsub.f32 0.0, %v9717_v13 }
0x3c99   :  { %v11988_v34 = vpop.f32.mrf.mxu1 }
0x3c9a   :  { %v9718_v0 = vand.u32 2147483647, %v16489_v30  ;;  %v9727_v56 = vmul.f32 1.442695, %v9722_v19 }
0x3c9b   :  { %v9698_v29 = vpop.f32.mrf.mxu1 }
0x3c9c   :  { %v16496_v62 = vadd.f32 %v9698_v29, %v16705_v7  ;;  %v9723_v37 = vsub.f32 0.0, %v9718_v0 }
0x3c9d   :  { %v11991_v47 = vpop.f32.mrf.mxu1 }
0x3c9e   :  { %v9719_v12 = vand.u32 2147483647, %v16496_v62  ;;  %v9729_v20 = vmul.f32 1.442695, %v9723_v37 }
0x3c9f   :  { %v9703_v45 = vpop.f32.mrf.mxu1 }
0x3ca0   :  { %v9724_v42 = vsub.f32 0.0, %v9719_v12  ;;  %v16501_v16 = vadd.f32 %v9703_v45, %v16706_v43 }
0x3ca1   :  { %v11994_v28 = vpop.f32.mrf.mxu1 }
0x3ca2   :  { %v9731_v1 = vmul.f32 1.442695, %v9724_v42  ;;  %v9720_v58 = vand.u32 2147483647, %v16501_v16  ;;  %v9715_v43 = vmax.f32 %v16501_v16, 0.0 }
0x3ca3   :  { %v9708_v51 = vpop.f32.mrf.mxu1 }
0x3ca4   :  { %v9725_v17 = vsub.f32 0.0, %v9720_v58  ;;  %v9709_v39 = vadd.f32 %v9708_v51, %v16707_v9  ;;  %12995 = vpow2.f32 %v9731_v1  ;;  %v9714_v51 = vmax.f32 %v16496_v62, 0.0 }
0x3ca5   :  { %v11997_v32 = vpop.f32.mrf.mxu1  ;;  %12997 = vpow2.f32 %v9729_v20 }
0x3ca6   :  { %v9733_v63 = vmul.f32 1.442695, %v9725_v17  ;;  %v9721_v5 = vand.u32 2147483647, %v9709_v39  ;;  %v9716_v8 = vmax.f32 %v9709_v39, 0.0  ;;  %v9713_v32 = vmax.f32 %v16489_v30, 0.0 }
0x3ca8   :  { %12999 = vpow2.f32 %v9733_v63  ;;  %v9726_v54 = vsub.f32 0.0, %v9721_v5  ;;  %v9712_v63 = vmax.f32 %v16492_v33, 0.0 }
0x3ca9   :  { %13001 = vpow2.f32 %v9727_v56 }
0x3caa   :  { %v9735_v52 = vmul.f32 1.442695, %v9726_v54 }
0x3cac   :  { %13003 = vpow2.f32 %v9735_v52 }
0x3cb1   :  { %v12996_v27 = vpop.eup %12995 }
0x3cb2   :  { %v12998_v4 = vpop.eup %12997  ;;  %v9755_v10 = vadd.f32 1.0, %v12996_v27  ;;  %v9758_v11 = vmul.f32 -0.5, %v12996_v27  ;;  %v9761_v46 = vand.u32 2147483647, %v12996_v27 }
0x3cb3   :  { %v9746_v41 = vadd.f32 1.0, %v12998_v4  ;;  %v9749_v57 = vmul.f32 -0.5, %v12998_v4  ;;  %v9752_v13 = vand.u32 2147483647, %v12998_v4 }
0x3cb4   :  { %v9759_v18 = vadd.f32 1.0, %v9758_v11  ;;  %vm9762_vm3 = vcmp.lt.f32.partialorder %v9761_v46, 0.0004427343 }
0x3cb5   :  { %v13000_v55 = vpop.eup %12999  ;;  %v9750_v53 = vadd.f32 1.0, %v9749_v57  ;;  %vm9753_vm4 = vcmp.lt.f32.partialorder %v9752_v13, 0.0004427343 }
0x3cb6   :  { %v9764_v61 = vadd.f32 1.0, %v13000_v55  ;;  %v13002_v26 = vpop.eup %13001  ;;  %v9767_v24 = vmul.f32 -0.5, %v13000_v55  ;;  %v9770_v15 = vand.u32 2147483647, %v13000_v55  ;;  %v9760_v45 = vmul.f32 %v12996_v27, %v9759_v18 }
0x3cb7   :  { %v9737_v22 = vadd.f32 1.0, %v13002_v26  ;;  %v9740_v3 = vmul.f32 -0.5, %v13002_v26  ;;  %v9743_v19 = vand.u32 2147483647, %v13002_v26  ;;  %v9751_v58 = vmul.f32 %v12998_v4, %v9750_v53 }
0x3cb8   :  { %13005 = vlog2.f32 %v9764_v61  ;;  %v9768_v50 = vadd.f32 1.0, %v9767_v24  ;;  %vm9771_vm2 = vcmp.lt.f32.partialorder %v9770_v15, 0.0004427343 }
0x3cb9   :  { %v13004_v21 = vpop.eup %13003  ;;  %13007 = vlog2.f32 %v9755_v10  ;;  %v9741_v34 = vadd.f32 1.0, %v9740_v3  ;;  %vm9744_vm5 = vcmp.lt.f32.partialorder %v9743_v19, 0.0004427343  ;;  %v9871_v10 = vpop.permute.xlu1 %9870 }
0x3cba   :  { %v9773_v38 = vadd.f32 1.0, %v13004_v21  ;;  %13009 = vlog2.f32 %v9746_v41  ;;  %v9776_v36 = vmul.f32 -0.5, %v13004_v21  ;;  %v9779_v6 = vand.u32 2147483647, %v13004_v21 }
0x3cbb   :  { %v9769_v29 = vmul.f32 %v13000_v55, %v9768_v50  ;;  %v9742_v39 = vmul.f32 %v13002_v26, %v9741_v34  ;;  %v9876_v55 = vpop.permute.xlu0 %9875 }
0x3cbc   :  { %13011 = vlog2.f32 %v9773_v38  ;;  %v9777_v59 = vadd.f32 1.0, %v9776_v36  ;;  %vm9780_vm1 = vcmp.lt.f32.partialorder %v9779_v6, 0.0004427343 }
0x3cbd   :  { %13013 = vlog2.f32 %v9737_v22 }
0x3cbe   :  { %v9778_v0 = vmul.f32 %v13004_v21, %v9777_v59 }
0x3cc5   :  { %v13006_v49 = vpop.eup %13005 }
0x3cc6   :  { %v13008_v35 = vpop.eup %13007  ;;  %v9766_v31 = vmul.f32 0.6931472, %v13006_v49 }
0x3cc7   :  { %v13010_v44 = vpop.eup %13009  ;;  %v9757_v7 = vmul.f32 0.6931472, %v13008_v35 }
0x3cc8   :  { %v9772_v37 = vsel %vm9771_vm2, %v9769_v29, %v9766_v31  ;;  %v9748_v42 = vmul.f32 0.6931472, %v13010_v44 }
0x3cc9   :  { %v13012_v60 = vpop.eup %13011  ;;  %v9763_v1 = vsel %vm9762_vm3, %v9760_v45, %v9757_v7  ;;  %v9785_v17 = vadd.f32 %v9772_v37, %v9715_v43 }
0x3cca   :  { %v9775_v2 = vmul.f32 0.6931472, %v13012_v60  ;;  %v13014_v47 = vpop.eup %13013  ;;  %v9754_v9 = vsel %vm9753_vm4, %v9751_v58, %v9748_v42  ;;  %v9784_v56 = vadd.f32 %v9763_v1, %v9714_v51 }
0x3ccb   :  { %v9739_v20 = vmul.f32 0.6931472, %v13014_v47  ;;  %v9783_v5 = vadd.f32 %v9754_v9, %v9713_v32 }
0x3ccc   :  { %v9781_v12 = vsel %vm9780_vm1, %v9778_v0, %v9775_v2 }
0x3ccd   :  { %v9786_v28 = vadd.f32 %v9781_v12, %v9716_v8  ;;  %v9745_v16 = vsel %vm9744_vm5, %v9742_v39, %v9739_v20 }
0x3cce   :  { %v9782_v62 = vadd.f32 %v9745_v16, %v9712_v63 }
0x3ccf   :  { %11998 = vmatprep.subr.mxu0 %v9786_v28 }
0x3cd0   :  { %11999 = vmatpush3.msra.mxu0 %v9786_v28 }
0x3cd1   :  { %12000 = vmatprep.subr.mxu0 %v9785_v17 }
0x3cd2   :  { %12001 = vmatpush3.msra.mxu0 %v9785_v17 }
0x3cd3   :  { %12002 = vmatprep.subr.mxu0 %v9784_v56 }
0x3cd4   :  { %12003 = vmatpush3.msra.mxu0 %v9784_v56 }
0x3cd5   :  { %12004 = vmatprep.subr.mxu0 %v9783_v5 }
0x3cd6   :  { %12005 = vmatpush3.msra.mxu0 %v9783_v5 }
0x3cd7   :  { %12006 = vmatprep.subr.mxu0 %v9782_v62 }
0x3cd8   :  { %12007 = vmatpush3.msra.mxu0 %v9782_v62 }
0x3cd9   :  { %12009 = vmatmul.mubr.msk.f32.vlgmr.msra.gmra.mxu0 %vm312_vm7, %v16360_v14 }
0x3d99   :  { %v12010_v54 = vpop.f32.mrf.mxu0 }
0x3d9a   :  { %v9859_v30 = vadd.f32 %v12010_v54, %v15240_v25 }
0x3d9b   :  { %v9853_v52 = vpop.f32.mrf.mxu0 }
0x3d9c   :  { %v9863_v27 = vmul.f32 0.083333336, %v9859_v30  ;;  %v9854_v4 = vadd.f32 %v9853_v52, %v15245_v48 }
0x3d9e   :  { %v9862_v33 = vmul.f32 0.083333336, %v9854_v4  ;;  %v9865_v61 = vadd.f32 %v9863_v27, %v16371_v40 }
0x3da0   :  { %v9879_v26 = vmul.f32 %v9876_v55, %v9865_v61  ;;  %v9864_v41 = vadd.f32 %v9862_v33, %v16375_v23 }
0x3da2   :  { %9881 = vst [vmem:[%s16523_s2 + $0x8] sm:$0xff] %v9879_v26  ;;  %v9878_v14 = vmul.f32 %v9871_v10, %v9864_v41 }
0x3da4   :  { %9880 = vst [vmem:[%s16523_s2] sm:$0xff] %v9878_v14 }

</bundles_post_ra>
